<compile_context>
chip_gen: v7x
topology: tpu7x:2x2x1
jax: 0.10.0
libtpu: 0.0.40
codegen_flags: <defaults>
</compile_context>

<pallas_src>
import functools

import jax
import jax.numpy as jnp
from jax import lax
from jax.experimental import pallas as pl
from jax.experimental.pallas import tpu as pltpu

BOS_INDEX = 1
EOS_INDEX = 2


def _greedy_kernel(src_onehot_ref, enc_fold_ref, enc_wh_ref, enc_b_ref,
                   dec_w_ref, dec_b_ref, wc_ref, wout_ref, bout_ref,
                   tokens_ref, len_ref, enc_scratch_ref,
                   *, S, H, V, max_length):
    f32 = jnp.float32
    bf16 = jnp.bfloat16

    # ---------------- encoder: GRU over the source sequence ----------------
    # Input-gate matmuls hoisted: one (S,V)x(V,3H) matmul (embedding folded
    # into enc_fold), bias added once.  Only the recurrent h @ Wh matmul stays
    # inside the (statically unrolled) time loop.
    enc_wh = enc_wh_ref[...]                                     # (H, 3H) bf16
    gx_all = jnp.dot(src_onehot_ref[...], enc_fold_ref[...],
                     preferred_element_type=f32) + enc_b_ref[...]  # (S, 3H) f32

    h = jnp.zeros((1, H), f32)
    for t in range(S):                                           # static unroll
        gx = gx_all[t:t + 1, :]
        gh = jnp.dot(h.astype(bf16), enc_wh,
                     preferred_element_type=f32)                 # (1, 3H)
        z = jax.nn.sigmoid(gx[:, :H] + gh[:, :H])
        r = jax.nn.sigmoid(gx[:, H:2 * H] + gh[:, H:2 * H])
        n = jnp.tanh(gx[:, 2 * H:] + r * gh[:, 2 * H:])
        h = (1.0 - z) * n + z * h
        enc_scratch_ref[t:t + 1, :] = h                          # encoder_output row

    enc_out_f32 = enc_scratch_ref[...]                           # (S, H) f32
    enc_out_bf = enc_out_f32.astype(bf16)                        # (S, H)
    enc_out_T = enc_out_f32.T.astype(bf16)                       # (H, S), one transpose

    # ---------------- greedy decoding loop (statically unrolled) ----------------
    dec_w = dec_w_ref[...]                                       # (V+H, 4H) bf16
    dec_b = dec_b_ref[...]                                       # (1, 4H)   f32
    wc = wc_ref[...]                                             # (2H, H)   bf16
    wout = wout_ref[...]                                         # (H, V)    bf16
    bout = bout_ref[...]                                         # (1, V)    f32

    col_v = lax.broadcasted_iota(jnp.int32, (1, V), 1)
    col_t = lax.broadcasted_iota(jnp.int32, (1, max_length + 1), 1)

    h_dec = h                                                    # decoder state (f32)
    onehot = (col_v == BOS_INDEX).astype(bf16)                   # (1, V)
    done = jnp.zeros((1, 1), jnp.int32)
    tokens = jnp.zeros((1, max_length + 1), jnp.int32)           # leading zero token
    length = jnp.ones((1, 1), jnp.int32)                         # counts the zero token

    for i in range(max_length):                                  # static unroll
        active = done == 0                                       # (1, 1) bool

        # --- fused GRU gates: embedding fold + input/hidden matmul in one shot ---
        xin = jnp.concatenate([onehot, h_dec.astype(bf16)], axis=1)    # (1, V+H)
        g = jnp.dot(xin, dec_w, preferred_element_type=f32) + dec_b    # (1, 4H)
        z = jax.nn.sigmoid(g[:, :H])
        r = jax.nn.sigmoid(g[:, H:2 * H])
        n = jnp.tanh(g[:, 2 * H:3 * H] + r * g[:, 3 * H:])
        h_new = (1.0 - z) * n + z * h_dec

        # --- Luong dot attention over encoder outputs ---
        h_bf = h_new.astype(bf16)
        scores = jnp.dot(h_bf, enc_out_T, preferred_element_type=f32)  # (1, S)
        scores = scores - jnp.max(scores, axis=1, keepdims=True)
        w = jnp.exp(scores)
        inv = pl.reciprocal(jnp.sum(w, axis=1, keepdims=True), approx=True)
        attn = (w * inv).astype(bf16)
        ctx = jnp.dot(attn, enc_out_bf, preferred_element_type=f32)    # (1, H)

        dec_in = jnp.concatenate([h_bf, ctx.astype(bf16)], axis=1)     # (1, 2H)
        dec_out = jnp.tanh(jnp.dot(dec_in, wc, preferred_element_type=f32))

        # --- vocab projection; argmax on logits (softmax dropped: same argmax) ---
        logits = jnp.dot(dec_out.astype(bf16), wout,
                         preferred_element_type=f32) + bout            # (1, V)
        mx = jnp.max(logits, axis=1, keepdims=True)
        tok_idx = jnp.min(jnp.where(logits >= mx, col_v, V),
                          axis=1, keepdims=True).astype(jnp.int32)     # (1, 1)

        # append token (only while not done), then check EOS (same order as torch)
        tokens = jnp.where(jnp.logical_and(col_t == (i + 1), active),
                           tok_idx, tokens)
        length = length + active.astype(jnp.int32)
        done = jnp.maximum(done, (tok_idx == EOS_INDEX).astype(jnp.int32))

        # post-EOS steps are dead (all writes masked), so no need to freeze state
        onehot = (col_v == tok_idx).astype(bf16)
        h_dec = h_new

    tokens_ref[...] = tokens
    len_ref[...] = length


def _fold_params(params):
    """One-time weight preprocessing: embedding fold, GRU gate fusion, bf16 cast."""
    V, H = params["emb"].shape
    emb = params["emb"]

    # encoder: fold embedding into the input-gate table
    enc_fold = (emb @ params["enc_wx"]).astype(jnp.bfloat16)            # (V, 3H)
    enc_wh = params["enc_wh"].astype(jnp.bfloat16)                      # (H, 3H)
    enc_b = params["enc_b"].astype(jnp.float32)                         # (1, 3H)

    # decoder: fold embedding + fuse input/hidden gate matmuls into one table
    # output column layout: [ z-sum | r-sum | x_n | h_n ]  (4H columns)
    dec_fold = emb @ params["dec_wx"]                                   # (V, 3H)
    dec_wh = params["dec_wh"]                                           # (H, 3H)
    zeros_vh = jnp.zeros((V, H), jnp.float32)
    zeros_hh = jnp.zeros((H, H), jnp.float32)
    w_top = jnp.concatenate([dec_fold[:, :2 * H], dec_fold[:, 2 * H:], zeros_vh], axis=1)
    w_bot = jnp.concatenate([dec_wh[:, :2 * H], zeros_hh, dec_wh[:, 2 * H:]], axis=1)
    dec_w_fused = jnp.concatenate([w_top, w_bot], axis=0).astype(jnp.bfloat16)  # (V+H, 4H)
    dec_b_fused = jnp.concatenate([params["dec_b"],
                                   jnp.zeros((1, H), jnp.float32)], axis=1)     # (1, 4H)

    wc = params["wc"].astype(jnp.bfloat16)                              # (2H, H)
    wout = params["wout"].astype(jnp.bfloat16)                          # (H, V)
    bout = params["bout"].astype(jnp.float32)                           # (1, V)
    return enc_fold, enc_wh, enc_b, dec_w_fused, dec_b_fused, wc, wout, bout


def greedy_search_decode(src_ids, params, max_length):
    """Wrapper: one-hot encode the source ids (glue), fold weights, run the kernel."""
    S = src_ids.shape[0]
    V, H = params["emb"].shape
    src_onehot = jax.nn.one_hot(src_ids, V, dtype=jnp.bfloat16)         # (S, V) glue

    folded = _fold_params(params)

    kernel = functools.partial(_greedy_kernel, S=S, H=H, V=V,
                               max_length=max_length)
    vmem = pl.BlockSpec(memory_space=pltpu.MemorySpace.VMEM)
    tokens, length = pl.pallas_call(
        kernel,
        out_shape=(jax.ShapeDtypeStruct((1, max_length + 1), jnp.int32),
                   jax.ShapeDtypeStruct((1, 1), jnp.int32)),
        in_specs=[vmem] * 9,
        out_specs=(vmem, vmem),
        scratch_shapes=[pltpu.VMEM((S, H), jnp.float32)],
    )(src_onehot, *folded)
    return tokens, length


if __name__ == "__main__":
    V, H, S, MAXLEN = 128, 128, 8, 8
    key = jax.random.PRNGKey(0)
    ks = jax.random.split(key, 12)
    scale = 0.1
    params = {
        "emb":    jax.random.normal(ks[0], (V, H), jnp.float32) * scale,
        "enc_wx": jax.random.normal(ks[1], (H, 3 * H), jnp.float32) * scale,
        "enc_wh": jax.random.normal(ks[2], (H, 3 * H), jnp.float32) * scale,
        "enc_b":  jax.random.normal(ks[3], (1, 3 * H), jnp.float32) * scale,
        "dec_wx": jax.random.normal(ks[4], (H, 3 * H), jnp.float32) * scale,
        "dec_wh": jax.random.normal(ks[5], (H, 3 * H), jnp.float32) * scale,
        "dec_b":  jax.random.normal(ks[6], (1, 3 * H), jnp.float32) * scale,
        "wc":     jax.random.normal(ks[7], (2 * H, H), jnp.float32) * scale,
        "wout":   jax.random.normal(ks[8], (H, V), jnp.float32) * scale,
        "bout":   jax.random.normal(ks[9], (1, V), jnp.float32) * scale,
    }
    src_ids = jax.random.randint(ks[10], (S,), 3, V, dtype=jnp.int32)

    tokens, length = greedy_search_decode(src_ids, params, MAXLEN)
    jax.block_until_ready((tokens, length))
    print("KERNEL_OK")
</pallas_src>

<mosaic_0001>
module attributes {stable_mosaic.version = 11 : i64} {
  func.func @_greedy_kernel(%arg0: memref<8x128xbf16, #tpu.memory_space<vmem>>, %arg1: memref<128x384xbf16, #tpu.memory_space<vmem>>, %arg2: memref<128x384xbf16, #tpu.memory_space<vmem>>, %arg3: memref<1x384xf32, #tpu.memory_space<vmem>>, %arg4: memref<256x512xbf16, #tpu.memory_space<vmem>>, %arg5: memref<1x512xf32, #tpu.memory_space<vmem>>, %arg6: memref<256x128xbf16, #tpu.memory_space<vmem>>, %arg7: memref<128x128xbf16, #tpu.memory_space<vmem>>, %arg8: memref<1x128xf32, #tpu.memory_space<vmem>>, %arg9: memref<1x9xi32, #tpu.memory_space<vmem>>, %arg10: memref<1x1xi32, #tpu.memory_space<vmem>>, %arg11: memref<8x128xf32, #tpu.memory_space<vmem>>) attributes {dimension_semantics = [], scalar_prefetch = 0 : i64, scratch_operands = 1 : i64, tpu.core_type = #tpu.core_type<tc>} {
    %c0 = arith.constant 0 : index
    %c0_0 = arith.constant 0 : index
    %0 = vector.load %arg2[%c0, %c0_0] : memref<128x384xbf16, #tpu.memory_space<vmem>>, vector<128x384xbf16>
    %c0_1 = arith.constant 0 : index
    %c0_2 = arith.constant 0 : index
    %1 = vector.load %arg0[%c0_1, %c0_2] : memref<8x128xbf16, #tpu.memory_space<vmem>>, vector<8x128xbf16>
    %c0_3 = arith.constant 0 : index
    %c0_4 = arith.constant 0 : index
    %2 = vector.load %arg1[%c0_3, %c0_4] : memref<128x384xbf16, #tpu.memory_space<vmem>>, vector<128x384xbf16>
    %cst = arith.constant dense<0.000000e+00> : vector<8x384xf32>
    %3 = tpu.matmul %1, %2, %cst {dimension_numbers = #tpu.dot_dimension_numbers<[1], [0], [0], [1], [0, 0, 1, 1], [], []>} : vector<8x128xbf16>, vector<128x384xbf16>, vector<8x384xf32> -> vector<8x384xf32>
    %c0_5 = arith.constant 0 : index
    %c0_6 = arith.constant 0 : index
    %4 = vector.load %arg3[%c0_5, %c0_6] : memref<1x384xf32, #tpu.memory_space<vmem>>, vector<1x384xf32>
    %5 = vector.broadcast %4 : vector<1x384xf32> to vector<8x384xf32>
    %6 = arith.addf %3, %5 : vector<8x384xf32>
    %cst_7 = arith.constant 0.000000e+00 : f32
    %7 = vector.broadcast %cst_7 : f32 to vector<1x128xf32>
    %8 = vector.extract_strided_slice %6 {offsets = [0, 0], sizes = [1, 384], strides = [1, 1]} : vector<8x384xf32> to vector<1x384xf32>
    %9 = arith.truncf %7 : vector<1x128xf32> to vector<1x128xbf16>
    %cst_8 = arith.constant dense<0.000000e+00> : vector<1x384xf32>
    %10 = tpu.matmul %9, %0, %cst_8 {dimension_numbers = #tpu.dot_dimension_numbers<[1], [0], [0], [1], [0, 0, 1, 1], [], []>} : vector<1x128xbf16>, vector<128x384xbf16>, vector<1x384xf32> -> vector<1x384xf32>
    %11 = vector.extract_strided_slice %8 {offsets = [0, 0], sizes = [1, 128], strides = [1, 1]} : vector<1x384xf32> to vector<1x128xf32>
    %12 = vector.extract_strided_slice %10 {offsets = [0, 0], sizes = [1, 128], strides = [1, 1]} : vector<1x384xf32> to vector<1x128xf32>
    %13 = arith.addf %11, %12 : vector<1x128xf32>
    %14 = arith.negf %13 : vector<1x128xf32>
    %15 = math.exp %14 : vector<1x128xf32>
    %cst_9 = arith.constant 1.000000e+00 : f32
    %16 = vector.broadcast %cst_9 : f32 to vector<1x128xf32>
    %17 = arith.addf %16, %15 : vector<1x128xf32>
    %18 = arith.divf %16, %17 : vector<1x128xf32>
    %19 = vector.extract_strided_slice %8 {offsets = [0, 128], sizes = [1, 128], strides = [1, 1]} : vector<1x384xf32> to vector<1x128xf32>
    %20 = vector.extract_strided_slice %10 {offsets = [0, 128], sizes = [1, 128], strides = [1, 1]} : vector<1x384xf32> to vector<1x128xf32>
    %21 = arith.addf %19, %20 : vector<1x128xf32>
    %22 = arith.negf %21 : vector<1x128xf32>
    %23 = math.exp %22 : vector<1x128xf32>
    %cst_10 = arith.constant 1.000000e+00 : f32
    %24 = vector.broadcast %cst_10 : f32 to vector<1x128xf32>
    %25 = arith.addf %24, %23 : vector<1x128xf32>
    %26 = arith.divf %24, %25 : vector<1x128xf32>
    %27 = vector.extract_strided_slice %8 {offsets = [0, 256], sizes = [1, 128], strides = [1, 1]} : vector<1x384xf32> to vector<1x128xf32>
    %28 = vector.extract_strided_slice %10 {offsets = [0, 256], sizes = [1, 128], strides = [1, 1]} : vector<1x384xf32> to vector<1x128xf32>
    %29 = arith.mulf %26, %28 : vector<1x128xf32>
    %30 = arith.addf %27, %29 : vector<1x128xf32>
    %31 = math.tanh %30 : vector<1x128xf32>
    %cst_11 = arith.constant 1.000000e+00 : f32
    %32 = vector.broadcast %cst_11 : f32 to vector<1x128xf32>
    %33 = arith.subf %32, %18 : vector<1x128xf32>
    %34 = arith.mulf %33, %31 : vector<1x128xf32>
    %35 = arith.mulf %18, %7 : vector<1x128xf32>
    %36 = arith.addf %34, %35 : vector<1x128xf32>
    %c0_12 = arith.constant 0 : index
    %c0_13 = arith.constant 0 : index
    %37 = vector.load %arg11[%c0_12, %c0_13] : memref<8x128xf32, #tpu.memory_space<vmem>>, vector<1x128xf32>
    tpu.vector_store %arg11[%c0_12, %c0_13], %36 {strides = array<i32>} : memref<8x128xf32, #tpu.memory_space<vmem>>, vector<1x128xf32>,
    %38 = vector.extract_strided_slice %6 {offsets = [1, 0], sizes = [1, 384], strides = [1, 1]} : vector<8x384xf32> to vector<1x384xf32>
    %39 = arith.truncf %36 : vector<1x128xf32> to vector<1x128xbf16>
    %cst_14 = arith.constant dense<0.000000e+00> : vector<1x384xf32>
    %40 = tpu.matmul %39, %0, %cst_14 {dimension_numbers = #tpu.dot_dimension_numbers<[1], [0], [0], [1], [0, 0, 1, 1], [], []>} : vector<1x128xbf16>, vector<128x384xbf16>, vector<1x384xf32> -> vector<1x384xf32>
    %41 = vector.extract_strided_slice %38 {offsets = [0, 0], sizes = [1, 128], strides = [1, 1]} : vector<1x384xf32> to vector<1x128xf32>
    %42 = vector.extract_strided_slice %40 {offsets = [0, 0], sizes = [1, 128], strides = [1, 1]} : vector<1x384xf32> to vector<1x128xf32>
    %43 = arith.addf %41, %42 : vector<1x128xf32>
    %44 = arith.negf %43 : vector<1x128xf32>
    %45 = math.exp %44 : vector<1x128xf32>
    %cst_15 = arith.constant 1.000000e+00 : f32
    %46 = vector.broadcast %cst_15 : f32 to vector<1x128xf32>
    %47 = arith.addf %46, %45 : vector<1x128xf32>
    %48 = arith.divf %46, %47 : vector<1x128xf32>
    %49 = vector.extract_strided_slice %38 {offsets = [0, 128], sizes = [1, 128], strides = [1, 1]} : vector<1x384xf32> to vector<1x128xf32>
    %50 = vector.extract_strided_slice %40 {offsets = [0, 128], sizes = [1, 128], strides = [1, 1]} : vector<1x384xf32> to vector<1x128xf32>
    %51 = arith.addf %49, %50 : vector<1x128xf32>
    %52 = arith.negf %51 : vector<1x128xf32>
    %53 = math.exp %52 : vector<1x128xf32>
    %cst_16 = arith.constant 1.000000e+00 : f32
    %54 = vector.broadcast %cst_16 : f32 to vector<1x128xf32>
    %55 = arith.addf %54, %53 : vector<1x128xf32>
    %56 = arith.divf %54, %55 : vector<1x128xf32>
    %57 = vector.extract_strided_slice %38 {offsets = [0, 256], sizes = [1, 128], strides = [1, 1]} : vector<1x384xf32> to vector<1x128xf32>
    %58 = vector.extract_strided_slice %40 {offsets = [0, 256], sizes = [1, 128], strides = [1, 1]} : vector<1x384xf32> to vector<1x128xf32>
    %59 = arith.mulf %56, %58 : vector<1x128xf32>
    %60 = arith.addf %57, %59 : vector<1x128xf32>
    %61 = math.tanh %60 : vector<1x128xf32>
    %cst_17 = arith.constant 1.000000e+00 : f32
    %62 = vector.broadcast %cst_17 : f32 to vector<1x128xf32>
    %63 = arith.subf %62, %48 : vector<1x128xf32>
    %64 = arith.mulf %63, %61 : vector<1x128xf32>
    %65 = arith.mulf %48, %36 : vector<1x128xf32>
    %66 = arith.addf %64, %65 : vector<1x128xf32>
    %c1 = arith.constant 1 : index
    %c0_18 = arith.constant 0 : index
    %67 = vector.load %arg11[%c1, %c0_18] : memref<8x128xf32, #tpu.memory_space<vmem>>, vector<1x128xf32>
    tpu.vector_store %arg11[%c1, %c0_18], %66 {strides = array<i32>} : memref<8x128xf32, #tpu.memory_space<vmem>>, vector<1x128xf32>,
    %68 = vector.extract_strided_slice %6 {offsets = [2, 0], sizes = [1, 384], strides = [1, 1]} : vector<8x384xf32> to vector<1x384xf32>
    %69 = arith.truncf %66 : vector<1x128xf32> to vector<1x128xbf16>
    %cst_19 = arith.constant dense<0.000000e+00> : vector<1x384xf32>
    %70 = tpu.matmul %69, %0, %cst_19 {dimension_numbers = #tpu.dot_dimension_numbers<[1], [0], [0], [1], [0, 0, 1, 1], [], []>} : vector<1x128xbf16>, vector<128x384xbf16>, vector<1x384xf32> -> vector<1x384xf32>
    %71 = vector.extract_strided_slice %68 {offsets = [0, 0], sizes = [1, 128], strides = [1, 1]} : vector<1x384xf32> to vector<1x128xf32>
    %72 = vector.extract_strided_slice %70 {offsets = [0, 0], sizes = [1, 128], strides = [1, 1]} : vector<1x384xf32> to vector<1x128xf32>
    %73 = arith.addf %71, %72 : vector<1x128xf32>
    %74 = arith.negf %73 : vector<1x128xf32>
    %75 = math.exp %74 : vector<1x128xf32>
    %cst_20 = arith.constant 1.000000e+00 : f32
    %76 = vector.broadcast %cst_20 : f32 to vector<1x128xf32>
    %77 = arith.addf %76, %75 : vector<1x128xf32>
    %78 = arith.divf %76, %77 : vector<1x128xf32>
    %79 = vector.extract_strided_slice %68 {offsets = [0, 128], sizes = [1, 128], strides = [1, 1]} : vector<1x384xf32> to vector<1x128xf32>
    %80 = vector.extract_strided_slice %70 {offsets = [0, 128], sizes = [1, 128], strides = [1, 1]} : vector<1x384xf32> to vector<1x128xf32>
    %81 = arith.addf %79, %80 : vector<1x128xf32>
    %82 = arith.negf %81 : vector<1x128xf32>
    %83 = math.exp %82 : vector<1x128xf32>
    %cst_21 = arith.constant 1.000000e+00 : f32
    %84 = vector.broadcast %cst_21 : f32 to vector<1x128xf32>
    %85 = arith.addf %84, %83 : vector<1x128xf32>
    %86 = arith.divf %84, %85 : vector<1x128xf32>
    %87 = vector.extract_strided_slice %68 {offsets = [0, 256], sizes = [1, 128], strides = [1, 1]} : vector<1x384xf32> to vector<1x128xf32>
    %88 = vector.extract_strided_slice %70 {offsets = [0, 256], sizes = [1, 128], strides = [1, 1]} : vector<1x384xf32> to vector<1x128xf32>
    %89 = arith.mulf %86, %88 : vector<1x128xf32>
    %90 = arith.addf %87, %89 : vector<1x128xf32>
    %91 = math.tanh %90 : vector<1x128xf32>
    %cst_22 = arith.constant 1.000000e+00 : f32
    %92 = vector.broadcast %cst_22 : f32 to vector<1x128xf32>
    %93 = arith.subf %92, %78 : vector<1x128xf32>
    %94 = arith.mulf %93, %91 : vector<1x128xf32>
    %95 = arith.mulf %78, %66 : vector<1x128xf32>
    %96 = arith.addf %94, %95 : vector<1x128xf32>
    %c2 = arith.constant 2 : index
    %c0_23 = arith.constant 0 : index
    %97 = vector.load %arg11[%c2, %c0_23] : memref<8x128xf32, #tpu.memory_space<vmem>>, vector<1x128xf32>
    tpu.vector_store %arg11[%c2, %c0_23], %96 {strides = array<i32>} : memref<8x128xf32, #tpu.memory_space<vmem>>, vector<1x128xf32>,
    %98 = vector.extract_strided_slice %6 {offsets = [3, 0], sizes = [1, 384], strides = [1, 1]} : vector<8x384xf32> to vector<1x384xf32>
    %99 = arith.truncf %96 : vector<1x128xf32> to vector<1x128xbf16>
    %cst_24 = arith.constant dense<0.000000e+00> : vector<1x384xf32>
    %100 = tpu.matmul %99, %0, %cst_24 {dimension_numbers = #tpu.dot_dimension_numbers<[1], [0], [0], [1], [0, 0, 1, 1], [], []>} : vector<1x128xbf16>, vector<128x384xbf16>, vector<1x384xf32> -> vector<1x384xf32>
    %101 = vector.extract_strided_slice %98 {offsets = [0, 0], sizes = [1, 128], strides = [1, 1]} : vector<1x384xf32> to vector<1x128xf32>
    %102 = vector.extract_strided_slice %100 {offsets = [0, 0], sizes = [1, 128], strides = [1, 1]} : vector<1x384xf32> to vector<1x128xf32>
    %103 = arith.addf %101, %102 : vector<1x128xf32>
    %104 = arith.negf %103 : vector<1x128xf32>
    %105 = math.exp %104 : vector<1x128xf32>
    %cst_25 = arith.constant 1.000000e+00 : f32
    %106 = vector.broadcast %cst_25 : f32 to vector<1x128xf32>
    %107 = arith.addf %106, %105 : vector<1x128xf32>
    %108 = arith.divf %106, %107 : vector<1x128xf32>
    %109 = vector.extract_strided_slice %98 {offsets = [0, 128], sizes = [1, 128], strides = [1, 1]} : vector<1x384xf32> to vector<1x128xf32>
    %110 = vector.extract_strided_slice %100 {offsets = [0, 128], sizes = [1, 128], strides = [1, 1]} : vector<1x384xf32> to vector<1x128xf32>
    %111 = arith.addf %109, %110 : vector<1x128xf32>
    %112 = arith.negf %111 : vector<1x128xf32>
    %113 = math.exp %112 : vector<1x128xf32>
    %cst_26 = arith.constant 1.000000e+00 : f32
    %114 = vector.broadcast %cst_26 : f32 to vector<1x128xf32>
    %115 = arith.addf %114, %113 : vector<1x128xf32>
    %116 = arith.divf %114, %115 : vector<1x128xf32>
    %117 = vector.extract_strided_slice %98 {offsets = [0, 256], sizes = [1, 128], strides = [1, 1]} : vector<1x384xf32> to vector<1x128xf32>
    %118 = vector.extract_strided_slice %100 {offsets = [0, 256], sizes = [1, 128], strides = [1, 1]} : vector<1x384xf32> to vector<1x128xf32>
    %119 = arith.mulf %116, %118 : vector<1x128xf32>
    %120 = arith.addf %117, %119 : vector<1x128xf32>
    %121 = math.tanh %120 : vector<1x128xf32>
    %cst_27 = arith.constant 1.000000e+00 : f32
    %122 = vector.broadcast %cst_27 : f32 to vector<1x128xf32>
    %123 = arith.subf %122, %108 : vector<1x128xf32>
    %124 = arith.mulf %123, %121 : vector<1x128xf32>
    %125 = arith.mulf %108, %96 : vector<1x128xf32>
    %126 = arith.addf %124, %125 : vector<1x128xf32>
    %c3 = arith.constant 3 : index
    %c0_28 = arith.constant 0 : index
    %127 = vector.load %arg11[%c3, %c0_28] : memref<8x128xf32, #tpu.memory_space<vmem>>, vector<1x128xf32>
    tpu.vector_store %arg11[%c3, %c0_28], %126 {strides = array<i32>} : memref<8x128xf32, #tpu.memory_space<vmem>>, vector<1x128xf32>,
    %128 = vector.extract_strided_slice %6 {offsets = [4, 0], sizes = [1, 384], strides = [1, 1]} : vector<8x384xf32> to vector<1x384xf32>
    %129 = arith.truncf %126 : vector<1x128xf32> to vector<1x128xbf16>
    %cst_29 = arith.constant dense<0.000000e+00> : vector<1x384xf32>
    %130 = tpu.matmul %129, %0, %cst_29 {dimension_numbers = #tpu.dot_dimension_numbers<[1], [0], [0], [1], [0, 0, 1, 1], [], []>} : vector<1x128xbf16>, vector<128x384xbf16>, vector<1x384xf32> -> vector<1x384xf32>
    %131 = vector.extract_strided_slice %128 {offsets = [0, 0], sizes = [1, 128], strides = [1, 1]} : vector<1x384xf32> to vector<1x128xf32>
    %132 = vector.extract_strided_slice %130 {offsets = [0, 0], sizes = [1, 128], strides = [1, 1]} : vector<1x384xf32> to vector<1x128xf32>
    %133 = arith.addf %131, %132 : vector<1x128xf32>
    %134 = arith.negf %133 : vector<1x128xf32>
    %135 = math.exp %134 : vector<1x128xf32>
    %cst_30 = arith.constant 1.000000e+00 : f32
    %136 = vector.broadcast %cst_30 : f32 to vector<1x128xf32>
    %137 = arith.addf %136, %135 : vector<1x128xf32>
    %138 = arith.divf %136, %137 : vector<1x128xf32>
    %139 = vector.extract_strided_slice %128 {offsets = [0, 128], sizes = [1, 128], strides = [1, 1]} : vector<1x384xf32> to vector<1x128xf32>
    %140 = vector.extract_strided_slice %130 {offsets = [0, 128], sizes = [1, 128], strides = [1, 1]} : vector<1x384xf32> to vector<1x128xf32>
    %141 = arith.addf %139, %140 : vector<1x128xf32>
    %142 = arith.negf %141 : vector<1x128xf32>
    %143 = math.exp %142 : vector<1x128xf32>
    %cst_31 = arith.constant 1.000000e+00 : f32
    %144 = vector.broadcast %cst_31 : f32 to vector<1x128xf32>
    %145 = arith.addf %144, %143 : vector<1x128xf32>
    %146 = arith.divf %144, %145 : vector<1x128xf32>
    %147 = vector.extract_strided_slice %128 {offsets = [0, 256], sizes = [1, 128], strides = [1, 1]} : vector<1x384xf32> to vector<1x128xf32>
    %148 = vector.extract_strided_slice %130 {offsets = [0, 256], sizes = [1, 128], strides = [1, 1]} : vector<1x384xf32> to vector<1x128xf32>
    %149 = arith.mulf %146, %148 : vector<1x128xf32>
    %150 = arith.addf %147, %149 : vector<1x128xf32>
    %151 = math.tanh %150 : vector<1x128xf32>
    %cst_32 = arith.constant 1.000000e+00 : f32
    %152 = vector.broadcast %cst_32 : f32 to vector<1x128xf32>
    %153 = arith.subf %152, %138 : vector<1x128xf32>
    %154 = arith.mulf %153, %151 : vector<1x128xf32>
    %155 = arith.mulf %138, %126 : vector<1x128xf32>
    %156 = arith.addf %154, %155 : vector<1x128xf32>
    %c4 = arith.constant 4 : index
    %c0_33 = arith.constant 0 : index
    %157 = vector.load %arg11[%c4, %c0_33] : memref<8x128xf32, #tpu.memory_space<vmem>>, vector<1x128xf32>
    tpu.vector_store %arg11[%c4, %c0_33], %156 {strides = array<i32>} : memref<8x128xf32, #tpu.memory_space<vmem>>, vector<1x128xf32>,
    %158 = vector.extract_strided_slice %6 {offsets = [5, 0], sizes = [1, 384], strides = [1, 1]} : vector<8x384xf32> to vector<1x384xf32>
    %159 = arith.truncf %156 : vector<1x128xf32> to vector<1x128xbf16>
    %cst_34 = arith.constant dense<0.000000e+00> : vector<1x384xf32>
    %160 = tpu.matmul %159, %0, %cst_34 {dimension_numbers = #tpu.dot_dimension_numbers<[1], [0], [0], [1], [0, 0, 1, 1], [], []>} : vector<1x128xbf16>, vector<128x384xbf16>, vector<1x384xf32> -> vector<1x384xf32>
    %161 = vector.extract_strided_slice %158 {offsets = [0, 0], sizes = [1, 128], strides = [1, 1]} : vector<1x384xf32> to vector<1x128xf32>
    %162 = vector.extract_strided_slice %160 {offsets = [0, 0], sizes = [1, 128], strides = [1, 1]} : vector<1x384xf32> to vector<1x128xf32>
    %163 = arith.addf %161, %162 : vector<1x128xf32>
    %164 = arith.negf %163 : vector<1x128xf32>
    %165 = math.exp %164 : vector<1x128xf32>
    %cst_35 = arith.constant 1.000000e+00 : f32
    %166 = vector.broadcast %cst_35 : f32 to vector<1x128xf32>
    %167 = arith.addf %166, %165 : vector<1x128xf32>
    %168 = arith.divf %166, %167 : vector<1x128xf32>
    %169 = vector.extract_strided_slice %158 {offsets = [0, 128], sizes = [1, 128], strides = [1, 1]} : vector<1x384xf32> to vector<1x128xf32>
    %170 = vector.extract_strided_slice %160 {offsets = [0, 128], sizes = [1, 128], strides = [1, 1]} : vector<1x384xf32> to vector<1x128xf32>
    %171 = arith.addf %169, %170 : vector<1x128xf32>
    %172 = arith.negf %171 : vector<1x128xf32>
    %173 = math.exp %172 : vector<1x128xf32>
    %cst_36 = arith.constant 1.000000e+00 : f32
    %174 = vector.broadcast %cst_36 : f32 to vector<1x128xf32>
    %175 = arith.addf %174, %173 : vector<1x128xf32>
    %176 = arith.divf %174, %175 : vector<1x128xf32>
    %177 = vector.extract_strided_slice %158 {offsets = [0, 256], sizes = [1, 128], strides = [1, 1]} : vector<1x384xf32> to vector<1x128xf32>
    %178 = vector.extract_strided_slice %160 {offsets = [0, 256], sizes = [1, 128], strides = [1, 1]} : vector<1x384xf32> to vector<1x128xf32>
    %179 = arith.mulf %176, %178 : vector<1x128xf32>
    %180 = arith.addf %177, %179 : vector<1x128xf32>
    %181 = math.tanh %180 : vector<1x128xf32>
    %cst_37 = arith.constant 1.000000e+00 : f32
    %182 = vector.broadcast %cst_37 : f32 to vector<1x128xf32>
    %183 = arith.subf %182, %168 : vector<1x128xf32>
    %184 = arith.mulf %183, %181 : vector<1x128xf32>
    %185 = arith.mulf %168, %156 : vector<1x128xf32>
    %186 = arith.addf %184, %185 : vector<1x128xf32>
    %c5 = arith.constant 5 : index
    %c0_38 = arith.constant 0 : index
    %187 = vector.load %arg11[%c5, %c0_38] : memref<8x128xf32, #tpu.memory_space<vmem>>, vector<1x128xf32>
    tpu.vector_store %arg11[%c5, %c0_38], %186 {strides = array<i32>} : memref<8x128xf32, #tpu.memory_space<vmem>>, vector<1x128xf32>,
    %188 = vector.extract_strided_slice %6 {offsets = [6, 0], sizes = [1, 384], strides = [1, 1]} : vector<8x384xf32> to vector<1x384xf32>
    %189 = arith.truncf %186 : vector<1x128xf32> to vector<1x128xbf16>
    %cst_39 = arith.constant dense<0.000000e+00> : vector<1x384xf32>
    %190 = tpu.matmul %189, %0, %cst_39 {dimension_numbers = #tpu.dot_dimension_numbers<[1], [0], [0], [1], [0, 0, 1, 1], [], []>} : vector<1x128xbf16>, vector<128x384xbf16>, vector<1x384xf32> -> vector<1x384xf32>
    %191 = vector.extract_strided_slice %188 {offsets = [0, 0], sizes = [1, 128], strides = [1, 1]} : vector<1x384xf32> to vector<1x128xf32>
    %192 = vector.extract_strided_slice %190 {offsets = [0, 0], sizes = [1, 128], strides = [1, 1]} : vector<1x384xf32> to vector<1x128xf32>
    %193 = arith.addf %191, %192 : vector<1x128xf32>
    %194 = arith.negf %193 : vector<1x128xf32>
    %195 = math.exp %194 : vector<1x128xf32>
    %cst_40 = arith.constant 1.000000e+00 : f32
    %196 = vector.broadcast %cst_40 : f32 to vector<1x128xf32>
    %197 = arith.addf %196, %195 : vector<1x128xf32>
    %198 = arith.divf %196, %197 : vector<1x128xf32>
    %199 = vector.extract_strided_slice %188 {offsets = [0, 128], sizes = [1, 128], strides = [1, 1]} : vector<1x384xf32> to vector<1x128xf32>
    %200 = vector.extract_strided_slice %190 {offsets = [0, 128], sizes = [1, 128], strides = [1, 1]} : vector<1x384xf32> to vector<1x128xf32>
    %201 = arith.addf %199, %200 : vector<1x128xf32>
    %202 = arith.negf %201 : vector<1x128xf32>
    %203 = math.exp %202 : vector<1x128xf32>
    %cst_41 = arith.constant 1.000000e+00 : f32
    %204 = vector.broadcast %cst_41 : f32 to vector<1x128xf32>
    %205 = arith.addf %204, %203 : vector<1x128xf32>
    %206 = arith.divf %204, %205 : vector<1x128xf32>
    %207 = vector.extract_strided_slice %188 {offsets = [0, 256], sizes = [1, 128], strides = [1, 1]} : vector<1x384xf32> to vector<1x128xf32>
    %208 = vector.extract_strided_slice %190 {offsets = [0, 256], sizes = [1, 128], strides = [1, 1]} : vector<1x384xf32> to vector<1x128xf32>
    %209 = arith.mulf %206, %208 : vector<1x128xf32>
    %210 = arith.addf %207, %209 : vector<1x128xf32>
    %211 = math.tanh %210 : vector<1x128xf32>
    %cst_42 = arith.constant 1.000000e+00 : f32
    %212 = vector.broadcast %cst_42 : f32 to vector<1x128xf32>
    %213 = arith.subf %212, %198 : vector<1x128xf32>
    %214 = arith.mulf %213, %211 : vector<1x128xf32>
    %215 = arith.mulf %198, %186 : vector<1x128xf32>
    %216 = arith.addf %214, %215 : vector<1x128xf32>
    %c6 = arith.constant 6 : index
    %c0_43 = arith.constant 0 : index
    %217 = vector.load %arg11[%c6, %c0_43] : memref<8x128xf32, #tpu.memory_space<vmem>>, vector<1x128xf32>
    tpu.vector_store %arg11[%c6, %c0_43], %216 {strides = array<i32>} : memref<8x128xf32, #tpu.memory_space<vmem>>, vector<1x128xf32>,
    %218 = vector.extract_strided_slice %6 {offsets = [7, 0], sizes = [1, 384], strides = [1, 1]} : vector<8x384xf32> to vector<1x384xf32>
    %219 = arith.truncf %216 : vector<1x128xf32> to vector<1x128xbf16>
    %cst_44 = arith.constant dense<0.000000e+00> : vector<1x384xf32>
    %220 = tpu.matmul %219, %0, %cst_44 {dimension_numbers = #tpu.dot_dimension_numbers<[1], [0], [0], [1], [0, 0, 1, 1], [], []>} : vector<1x128xbf16>, vector<128x384xbf16>, vector<1x384xf32> -> vector<1x384xf32>
    %221 = vector.extract_strided_slice %218 {offsets = [0, 0], sizes = [1, 128], strides = [1, 1]} : vector<1x384xf32> to vector<1x128xf32>
    %222 = vector.extract_strided_slice %220 {offsets = [0, 0], sizes = [1, 128], strides = [1, 1]} : vector<1x384xf32> to vector<1x128xf32>
    %223 = arith.addf %221, %222 : vector<1x128xf32>
    %224 = arith.negf %223 : vector<1x128xf32>
    %225 = math.exp %224 : vector<1x128xf32>
    %cst_45 = arith.constant 1.000000e+00 : f32
    %226 = vector.broadcast %cst_45 : f32 to vector<1x128xf32>
    %227 = arith.addf %226, %225 : vector<1x128xf32>
    %228 = arith.divf %226, %227 : vector<1x128xf32>
    %229 = vector.extract_strided_slice %218 {offsets = [0, 128], sizes = [1, 128], strides = [1, 1]} : vector<1x384xf32> to vector<1x128xf32>
    %230 = vector.extract_strided_slice %220 {offsets = [0, 128], sizes = [1, 128], strides = [1, 1]} : vector<1x384xf32> to vector<1x128xf32>
    %231 = arith.addf %229, %230 : vector<1x128xf32>
    %232 = arith.negf %231 : vector<1x128xf32>
    %233 = math.exp %232 : vector<1x128xf32>
    %cst_46 = arith.constant 1.000000e+00 : f32
    %234 = vector.broadcast %cst_46 : f32 to vector<1x128xf32>
    %235 = arith.addf %234, %233 : vector<1x128xf32>
    %236 = arith.divf %234, %235 : vector<1x128xf32>
    %237 = vector.extract_strided_slice %218 {offsets = [0, 256], sizes = [1, 128], strides = [1, 1]} : vector<1x384xf32> to vector<1x128xf32>
    %238 = vector.extract_strided_slice %220 {offsets = [0, 256], sizes = [1, 128], strides = [1, 1]} : vector<1x384xf32> to vector<1x128xf32>
    %239 = arith.mulf %236, %238 : vector<1x128xf32>
    %240 = arith.addf %237, %239 : vector<1x128xf32>
    %241 = math.tanh %240 : vector<1x128xf32>
    %cst_47 = arith.constant 1.000000e+00 : f32
    %242 = vector.broadcast %cst_47 : f32 to vector<1x128xf32>
    %243 = arith.subf %242, %228 : vector<1x128xf32>
    %244 = arith.mulf %243, %241 : vector<1x128xf32>
    %245 = arith.mulf %228, %216 : vector<1x128xf32>
    %246 = arith.addf %244, %245 : vector<1x128xf32>
    %c7 = arith.constant 7 : index
    %c0_48 = arith.constant 0 : index
    %247 = vector.load %arg11[%c7, %c0_48] : memref<8x128xf32, #tpu.memory_space<vmem>>, vector<1x128xf32>
    tpu.vector_store %arg11[%c7, %c0_48], %246 {strides = array<i32>} : memref<8x128xf32, #tpu.memory_space<vmem>>, vector<1x128xf32>,
    %c0_49 = arith.constant 0 : index
    %c0_50 = arith.constant 0 : index
    %248 = vector.load %arg11[%c0_49, %c0_50] : memref<8x128xf32, #tpu.memory_space<vmem>>, vector<8x128xf32>
    %249 = arith.truncf %248 : vector<8x128xf32> to vector<8x128xbf16>
    %250 = tpu.transpose %248, [1, 0] : vector<8x128xf32> -> vector<128x8xf32>
    %251 = arith.truncf %250 : vector<128x8xf32> to vector<128x8xbf16>
    %c0_51 = arith.constant 0 : index
    %c0_52 = arith.constant 0 : index
    %252 = vector.load %arg4[%c0_51, %c0_52] : memref<256x512xbf16, #tpu.memory_space<vmem>>, vector<256x512xbf16>
    %c0_53 = arith.constant 0 : index
    %c0_54 = arith.constant 0 : index
    %253 = vector.load %arg5[%c0_53, %c0_54] : memref<1x512xf32, #tpu.memory_space<vmem>>, vector<1x512xf32>
    %c0_55 = arith.constant 0 : index
    %c0_56 = arith.constant 0 : index
    %254 = vector.load %arg6[%c0_55, %c0_56] : memref<256x128xbf16, #tpu.memory_space<vmem>>, vector<256x128xbf16>
    %c0_57 = arith.constant 0 : index
    %c0_58 = arith.constant 0 : index
    %255 = vector.load %arg7[%c0_57, %c0_58] : memref<128x128xbf16, #tpu.memory_space<vmem>>, vector<128x128xbf16>
    %c0_59 = arith.constant 0 : index
    %c0_60 = arith.constant 0 : index
    %256 = vector.load %arg8[%c0_59, %c0_60] : memref<1x128xf32, #tpu.memory_space<vmem>>, vector<1x128xf32>
    %257 = tpu.iota {dimensions = array<i32: 1>} : vector<1x128xi32>
    %258 = tpu.iota {dimensions = array<i32: 1>} : vector<1x9xi32>
    %c1_i32 = arith.constant 1 : i32
    %259 = vector.broadcast %c1_i32 : i32 to vector<1x128xi32>
    %260 = arith.cmpi eq, %257, %259 : vector<1x128xi32>
    %261 = arith.extui %260 : vector<1x128xi1> to vector<1x128xi32>
    %262 = arith.sitofp %261 : vector<1x128xi32> to vector<1x128xf32>
    %263 = arith.truncf %262 : vector<1x128xf32> to vector<1x128xbf16>
    %c0_i32 = arith.constant 0 : i32
    %264 = vector.broadcast %c0_i32 : i32 to vector<1x1xi32>
    %c0_i32_61 = arith.constant 0 : i32
    %265 = vector.broadcast %c0_i32_61 : i32 to vector<1x9xi32>
    %c1_i32_62 = arith.constant 1 : i32
    %266 = vector.broadcast %c1_i32_62 : i32 to vector<1x1xi32>
    %c0_i32_63 = arith.constant 0 : i32
    %267 = vector.broadcast %c0_i32_63 : i32 to vector<1x1xi32>
    %268 = arith.cmpi eq, %264, %267 : vector<1x1xi32>
    %269 = arith.truncf %246 : vector<1x128xf32> to vector<1x128xbf16>
    %270 = tpu.concatenate %263, %269 in 1 : vector<1x128xbf16>, vector<1x128xbf16> -> vector<1x256xbf16>
    %cst_64 = arith.constant dense<0.000000e+00> : vector<1x512xf32>
    %271 = tpu.matmul %270, %252, %cst_64 {dimension_numbers = #tpu.dot_dimension_numbers<[1], [0], [0], [1], [0, 0, 1, 1], [], []>} : vector<1x256xbf16>, vector<256x512xbf16>, vector<1x512xf32> -> vector<1x512xf32>
    %272 = arith.addf %271, %253 : vector<1x512xf32>
    %273 = vector.extract_strided_slice %272 {offsets = [0, 0], sizes = [1, 128], strides = [1, 1]} : vector<1x512xf32> to vector<1x128xf32>
    %274 = arith.negf %273 : vector<1x128xf32>
    %275 = math.exp %274 : vector<1x128xf32>
    %cst_65 = arith.constant 1.000000e+00 : f32
    %276 = vector.broadcast %cst_65 : f32 to vector<1x128xf32>
    %277 = arith.addf %276, %275 : vector<1x128xf32>
    %278 = arith.divf %276, %277 : vector<1x128xf32>
    %279 = vector.extract_strided_slice %272 {offsets = [0, 128], sizes = [1, 128], strides = [1, 1]} : vector<1x512xf32> to vector<1x128xf32>
    %280 = arith.negf %279 : vector<1x128xf32>
    %281 = math.exp %280 : vector<1x128xf32>
    %cst_66 = arith.constant 1.000000e+00 : f32
    %282 = vector.broadcast %cst_66 : f32 to vector<1x128xf32>
    %283 = arith.addf %282, %281 : vector<1x128xf32>
    %284 = arith.divf %282, %283 : vector<1x128xf32>
    %285 = vector.extract_strided_slice %272 {offsets = [0, 256], sizes = [1, 128], strides = [1, 1]} : vector<1x512xf32> to vector<1x128xf32>
    %286 = vector.extract_strided_slice %272 {offsets = [0, 384], sizes = [1, 128], strides = [1, 1]} : vector<1x512xf32> to vector<1x128xf32>
    %287 = arith.mulf %284, %286 : vector<1x128xf32>
    %288 = arith.addf %285, %287 : vector<1x128xf32>
    %289 = math.tanh %288 : vector<1x128xf32>
    %cst_67 = arith.constant 1.000000e+00 : f32
    %290 = vector.broadcast %cst_67 : f32 to vector<1x128xf32>
    %291 = arith.subf %290, %278 : vector<1x128xf32>
    %292 = arith.mulf %291, %289 : vector<1x128xf32>
    %293 = arith.mulf %278, %246 : vector<1x128xf32>
    %294 = arith.addf %292, %293 : vector<1x128xf32>
    %295 = arith.truncf %294 : vector<1x128xf32> to vector<1x128xbf16>
    %cst_68 = arith.constant dense<0.000000e+00> : vector<1x8xf32>
    %296 = tpu.matmul %295, %251, %cst_68 {dimension_numbers = #tpu.dot_dimension_numbers<[1], [0], [0], [1], [0, 0, 1, 1], [], []>} : vector<1x128xbf16>, vector<128x8xbf16>, vector<1x8xf32> -> vector<1x8xf32>
    %cst_69 = arith.constant dense<0xFF800000> : vector<1xf32>
    %297 = vector.multi_reduction <maximumf>, %296, %cst_69 [1] : vector<1x8xf32> to vector<1xf32>
    %298 = vector.shape_cast %297 : vector<1xf32> to vector<1x1xf32>
    %299 = vector.broadcast %298 : vector<1x1xf32> to vector<1x8xf32>
    %300 = arith.subf %296, %299 : vector<1x8xf32>
    %301 = math.exp %300 : vector<1x8xf32>
    %cst_70 = arith.constant dense<0.000000e+00> : vector<1xf32>
    %302 = vector.multi_reduction <add>, %301, %cst_70 [1] : vector<1x8xf32> to vector<1xf32>
    %303 = vector.shape_cast %302 : vector<1xf32> to vector<1x1xf32>
    %304 = tpu.reciprocal %303 {approx = true} : vector<1x1xf32> -> vector<1x1xf32>
    %305 = vector.broadcast %304 : vector<1x1xf32> to vector<1x8xf32>
    %306 = arith.mulf %301, %305 : vector<1x8xf32>
    %307 = arith.truncf %306 : vector<1x8xf32> to vector<1x8xbf16>
    %cst_71 = arith.constant dense<0.000000e+00> : vector<1x128xf32>
    %308 = tpu.matmul %307, %249, %cst_71 {dimension_numbers = #tpu.dot_dimension_numbers<[1], [0], [0], [1], [0, 0, 1, 1], [], []>} : vector<1x8xbf16>, vector<8x128xbf16>, vector<1x128xf32> -> vector<1x128xf32>
    %309 = arith.truncf %308 : vector<1x128xf32> to vector<1x128xbf16>
    %310 = tpu.concatenate %295, %309 in 1 : vector<1x128xbf16>, vector<1x128xbf16> -> vector<1x256xbf16>
    %cst_72 = arith.constant dense<0.000000e+00> : vector<1x128xf32>
    %311 = tpu.matmul %310, %254, %cst_72 {dimension_numbers = #tpu.dot_dimension_numbers<[1], [0], [0], [1], [0, 0, 1, 1], [], []>} : vector<1x256xbf16>, vector<256x128xbf16>, vector<1x128xf32> -> vector<1x128xf32>
    %312 = math.tanh %311 : vector<1x128xf32>
    %313 = arith.truncf %312 : vector<1x128xf32> to vector<1x128xbf16>
    %cst_73 = arith.constant dense<0.000000e+00> : vector<1x128xf32>
    %314 = tpu.matmul %313, %255, %cst_73 {dimension_numbers = #tpu.dot_dimension_numbers<[1], [0], [0], [1], [0, 0, 1, 1], [], []>} : vector<1x128xbf16>, vector<128x128xbf16>, vector<1x128xf32> -> vector<1x128xf32>
    %315 = arith.addf %314, %256 : vector<1x128xf32>
    %cst_74 = arith.constant dense<0xFF800000> : vector<1xf32>
    %316 = vector.multi_reduction <maximumf>, %315, %cst_74 [1] : vector<1x128xf32> to vector<1xf32>
    %317 = vector.shape_cast %316 : vector<1xf32> to vector<1x1xf32>
    %318 = vector.broadcast %317 : vector<1x1xf32> to vector<1x128xf32>
    %319 = arith.cmpf oge, %315, %318 : vector<1x128xf32>
    %c128_i32 = arith.constant 128 : i32
    %320 = vector.broadcast %c128_i32 : i32 to vector<1x128xi32>
    %321 = arith.select %319, %257, %320 : vector<1x128xi1>, vector<1x128xi32>
    %cst_75 = arith.constant dense<2147483647> : vector<1xi32>
    %322 = vector.multi_reduction <minsi>, %321, %cst_75 [1] : vector<1x128xi32> to vector<1xi32>
    %323 = vector.shape_cast %322 : vector<1xi32> to vector<1x1xi32>
    %c1_i32_76 = arith.constant 1 : i32
    %324 = vector.broadcast %c1_i32_76 : i32 to vector<1x9xi32>
    %325 = arith.cmpi eq, %258, %324 : vector<1x9xi32>
    %326 = vector.broadcast %268 : vector<1x1xi1> to vector<1x9xi1>
    %327 = arith.andi %325, %326 : vector<1x9xi1>
    %328 = vector.shape_cast %323 : vector<1x1xi32> to vector<1x1xi32>
    %329 = vector.broadcast %328 : vector<1x1xi32> to vector<1x9xi32>
    %330 = arith.select %327, %329, %265 : vector<1x9xi1>, vector<1x9xi32>
    %331 = arith.extui %268 : vector<1x1xi1> to vector<1x1xi32>
    %332 = arith.addi %266, %331 : vector<1x1xi32>
    %c2_i32 = arith.constant 2 : i32
    %333 = vector.broadcast %c2_i32 : i32 to vector<1x1xi32>
    %334 = arith.cmpi eq, %323, %333 : vector<1x1xi32>
    %335 = arith.extui %334 : vector<1x1xi1> to vector<1x1xi32>
    %336 = arith.maxsi %264, %335 : vector<1x1xi32>
    %337 = vector.broadcast %323 : vector<1x1xi32> to vector<1x128xi32>
    %338 = arith.cmpi eq, %257, %337 : vector<1x128xi32>
    %339 = arith.extui %338 : vector<1x128xi1> to vector<1x128xi32>
    %340 = arith.sitofp %339 : vector<1x128xi32> to vector<1x128xf32>
    %341 = arith.truncf %340 : vector<1x128xf32> to vector<1x128xbf16>
    %c0_i32_77 = arith.constant 0 : i32
    %342 = vector.broadcast %c0_i32_77 : i32 to vector<1x1xi32>
    %343 = arith.cmpi eq, %336, %342 : vector<1x1xi32>
    %344 = arith.truncf %294 : vector<1x128xf32> to vector<1x128xbf16>
    %345 = tpu.concatenate %341, %344 in 1 : vector<1x128xbf16>, vector<1x128xbf16> -> vector<1x256xbf16>
    %cst_78 = arith.constant dense<0.000000e+00> : vector<1x512xf32>
    %346 = tpu.matmul %345, %252, %cst_78 {dimension_numbers = #tpu.dot_dimension_numbers<[1], [0], [0], [1], [0, 0, 1, 1], [], []>} : vector<1x256xbf16>, vector<256x512xbf16>, vector<1x512xf32> -> vector<1x512xf32>
    %347 = arith.addf %346, %253 : vector<1x512xf32>
    %348 = vector.extract_strided_slice %347 {offsets = [0, 0], sizes = [1, 128], strides = [1, 1]} : vector<1x512xf32> to vector<1x128xf32>
    %349 = arith.negf %348 : vector<1x128xf32>
    %350 = math.exp %349 : vector<1x128xf32>
    %cst_79 = arith.constant 1.000000e+00 : f32
    %351 = vector.broadcast %cst_79 : f32 to vector<1x128xf32>
    %352 = arith.addf %351, %350 : vector<1x128xf32>
    %353 = arith.divf %351, %352 : vector<1x128xf32>
    %354 = vector.extract_strided_slice %347 {offsets = [0, 128], sizes = [1, 128], strides = [1, 1]} : vector<1x512xf32> to vector<1x128xf32>
    %355 = arith.negf %354 : vector<1x128xf32>
    %356 = math.exp %355 : vector<1x128xf32>
    %cst_80 = arith.constant 1.000000e+00 : f32
    %357 = vector.broadcast %cst_80 : f32 to vector<1x128xf32>
    %358 = arith.addf %357, %356 : vector<1x128xf32>
    %359 = arith.divf %357, %358 : vector<1x128xf32>
    %360 = vector.extract_strided_slice %347 {offsets = [0, 256], sizes = [1, 128], strides = [1, 1]} : vector<1x512xf32> to vector<1x128xf32>
    %361 = vector.extract_strided_slice %347 {offsets = [0, 384], sizes = [1, 128], strides = [1, 1]} : vector<1x512xf32> to vector<1x128xf32>
    %362 = arith.mulf %359, %361 : vector<1x128xf32>
    %363 = arith.addf %360, %362 : vector<1x128xf32>
    %364 = math.tanh %363 : vector<1x128xf32>
    %cst_81 = arith.constant 1.000000e+00 : f32
    %365 = vector.broadcast %cst_81 : f32 to vector<1x128xf32>
    %366 = arith.subf %365, %353 : vector<1x128xf32>
    %367 = arith.mulf %366, %364 : vector<1x128xf32>
    %368 = arith.mulf %353, %294 : vector<1x128xf32>
    %369 = arith.addf %367, %368 : vector<1x128xf32>
    %370 = arith.truncf %369 : vector<1x128xf32> to vector<1x128xbf16>
    %cst_82 = arith.constant dense<0.000000e+00> : vector<1x8xf32>
    %371 = tpu.matmul %370, %251, %cst_82 {dimension_numbers = #tpu.dot_dimension_numbers<[1], [0], [0], [1], [0, 0, 1, 1], [], []>} : vector<1x128xbf16>, vector<128x8xbf16>, vector<1x8xf32> -> vector<1x8xf32>
    %cst_83 = arith.constant dense<0xFF800000> : vector<1xf32>
    %372 = vector.multi_reduction <maximumf>, %371, %cst_83 [1] : vector<1x8xf32> to vector<1xf32>
    %373 = vector.shape_cast %372 : vector<1xf32> to vector<1x1xf32>
    %374 = vector.broadcast %373 : vector<1x1xf32> to vector<1x8xf32>
    %375 = arith.subf %371, %374 : vector<1x8xf32>
    %376 = math.exp %375 : vector<1x8xf32>
    %cst_84 = arith.constant dense<0.000000e+00> : vector<1xf32>
    %377 = vector.multi_reduction <add>, %376, %cst_84 [1] : vector<1x8xf32> to vector<1xf32>
    %378 = vector.shape_cast %377 : vector<1xf32> to vector<1x1xf32>
    %379 = tpu.reciprocal %378 {approx = true} : vector<1x1xf32> -> vector<1x1xf32>
    %380 = vector.broadcast %379 : vector<1x1xf32> to vector<1x8xf32>
    %381 = arith.mulf %376, %380 : vector<1x8xf32>
    %382 = arith.truncf %381 : vector<1x8xf32> to vector<1x8xbf16>
    %cst_85 = arith.constant dense<0.000000e+00> : vector<1x128xf32>
    %383 = tpu.matmul %382, %249, %cst_85 {dimension_numbers = #tpu.dot_dimension_numbers<[1], [0], [0], [1], [0, 0, 1, 1], [], []>} : vector<1x8xbf16>, vector<8x128xbf16>, vector<1x128xf32> -> vector<1x128xf32>
    %384 = arith.truncf %383 : vector<1x128xf32> to vector<1x128xbf16>
    %385 = tpu.concatenate %370, %384 in 1 : vector<1x128xbf16>, vector<1x128xbf16> -> vector<1x256xbf16>
    %cst_86 = arith.constant dense<0.000000e+00> : vector<1x128xf32>
    %386 = tpu.matmul %385, %254, %cst_86 {dimension_numbers = #tpu.dot_dimension_numbers<[1], [0], [0], [1], [0, 0, 1, 1], [], []>} : vector<1x256xbf16>, vector<256x128xbf16>, vector<1x128xf32> -> vector<1x128xf32>
    %387 = math.tanh %386 : vector<1x128xf32>
    %388 = arith.truncf %387 : vector<1x128xf32> to vector<1x128xbf16>
    %cst_87 = arith.constant dense<0.000000e+00> : vector<1x128xf32>
    %389 = tpu.matmul %388, %255, %cst_87 {dimension_numbers = #tpu.dot_dimension_numbers<[1], [0], [0], [1], [0, 0, 1, 1], [], []>} : vector<1x128xbf16>, vector<128x128xbf16>, vector<1x128xf32> -> vector<1x128xf32>
    %390 = arith.addf %389, %256 : vector<1x128xf32>
    %cst_88 = arith.constant dense<0xFF800000> : vector<1xf32>
    %391 = vector.multi_reduction <maximumf>, %390, %cst_88 [1] : vector<1x128xf32> to vector<1xf32>
    %392 = vector.shape_cast %391 : vector<1xf32> to vector<1x1xf32>
    %393 = vector.broadcast %392 : vector<1x1xf32> to vector<1x128xf32>
    %394 = arith.cmpf oge, %390, %393 : vector<1x128xf32>
    %c128_i32_89 = arith.constant 128 : i32
    %395 = vector.broadcast %c128_i32_89 : i32 to vector<1x128xi32>
    %396 = arith.select %394, %257, %395 : vector<1x128xi1>, vector<1x128xi32>
    %cst_90 = arith.constant dense<2147483647> : vector<1xi32>
    %397 = vector.multi_reduction <minsi>, %396, %cst_90 [1] : vector<1x128xi32> to vector<1xi32>
    %398 = vector.shape_cast %397 : vector<1xi32> to vector<1x1xi32>
    %c2_i32_91 = arith.constant 2 : i32
    %399 = vector.broadcast %c2_i32_91 : i32 to vector<1x9xi32>
    %400 = arith.cmpi eq, %258, %399 : vector<1x9xi32>
    %401 = vector.broadcast %343 : vector<1x1xi1> to vector<1x9xi1>
    %402 = arith.andi %400, %401 : vector<1x9xi1>
    %403 = vector.shape_cast %398 : vector<1x1xi32> to vector<1x1xi32>
    %404 = vector.broadcast %403 : vector<1x1xi32> to vector<1x9xi32>
    %405 = arith.select %402, %404, %330 : vector<1x9xi1>, vector<1x9xi32>
    %406 = arith.extui %343 : vector<1x1xi1> to vector<1x1xi32>
    %407 = arith.addi %332, %406 : vector<1x1xi32>
    %c2_i32_92 = arith.constant 2 : i32
    %408 = vector.broadcast %c2_i32_92 : i32 to vector<1x1xi32>
    %409 = arith.cmpi eq, %398, %408 : vector<1x1xi32>
    %410 = arith.extui %409 : vector<1x1xi1> to vector<1x1xi32>
    %411 = arith.maxsi %336, %410 : vector<1x1xi32>
    %412 = vector.broadcast %398 : vector<1x1xi32> to vector<1x128xi32>
    %413 = arith.cmpi eq, %257, %412 : vector<1x128xi32>
    %414 = arith.extui %413 : vector<1x128xi1> to vector<1x128xi32>
    %415 = arith.sitofp %414 : vector<1x128xi32> to vector<1x128xf32>
    %416 = arith.truncf %415 : vector<1x128xf32> to vector<1x128xbf16>
    %c0_i32_93 = arith.constant 0 : i32
    %417 = vector.broadcast %c0_i32_93 : i32 to vector<1x1xi32>
    %418 = arith.cmpi eq, %411, %417 : vector<1x1xi32>
    %419 = arith.truncf %369 : vector<1x128xf32> to vector<1x128xbf16>
    %420 = tpu.concatenate %416, %419 in 1 : vector<1x128xbf16>, vector<1x128xbf16> -> vector<1x256xbf16>
    %cst_94 = arith.constant dense<0.000000e+00> : vector<1x512xf32>
    %421 = tpu.matmul %420, %252, %cst_94 {dimension_numbers = #tpu.dot_dimension_numbers<[1], [0], [0], [1], [0, 0, 1, 1], [], []>} : vector<1x256xbf16>, vector<256x512xbf16>, vector<1x512xf32> -> vector<1x512xf32>
    %422 = arith.addf %421, %253 : vector<1x512xf32>
    %423 = vector.extract_strided_slice %422 {offsets = [0, 0], sizes = [1, 128], strides = [1, 1]} : vector<1x512xf32> to vector<1x128xf32>
    %424 = arith.negf %423 : vector<1x128xf32>
    %425 = math.exp %424 : vector<1x128xf32>
    %cst_95 = arith.constant 1.000000e+00 : f32
    %426 = vector.broadcast %cst_95 : f32 to vector<1x128xf32>
    %427 = arith.addf %426, %425 : vector<1x128xf32>
    %428 = arith.divf %426, %427 : vector<1x128xf32>
    %429 = vector.extract_strided_slice %422 {offsets = [0, 128], sizes = [1, 128], strides = [1, 1]} : vector<1x512xf32> to vector<1x128xf32>
    %430 = arith.negf %429 : vector<1x128xf32>
    %431 = math.exp %430 : vector<1x128xf32>
    %cst_96 = arith.constant 1.000000e+00 : f32
    %432 = vector.broadcast %cst_96 : f32 to vector<1x128xf32>
    %433 = arith.addf %432, %431 : vector<1x128xf32>
    %434 = arith.divf %432, %433 : vector<1x128xf32>
    %435 = vector.extract_strided_slice %422 {offsets = [0, 256], sizes = [1, 128], strides = [1, 1]} : vector<1x512xf32> to vector<1x128xf32>
    %436 = vector.extract_strided_slice %422 {offsets = [0, 384], sizes = [1, 128], strides = [1, 1]} : vector<1x512xf32> to vector<1x128xf32>
    %437 = arith.mulf %434, %436 : vector<1x128xf32>
    %438 = arith.addf %435, %437 : vector<1x128xf32>
    %439 = math.tanh %438 : vector<1x128xf32>
    %cst_97 = arith.constant 1.000000e+00 : f32
    %440 = vector.broadcast %cst_97 : f32 to vector<1x128xf32>
    %441 = arith.subf %440, %428 : vector<1x128xf32>
    %442 = arith.mulf %441, %439 : vector<1x128xf32>
    %443 = arith.mulf %428, %369 : vector<1x128xf32>
    %444 = arith.addf %442, %443 : vector<1x128xf32>
    %445 = arith.truncf %444 : vector<1x128xf32> to vector<1x128xbf16>
    %cst_98 = arith.constant dense<0.000000e+00> : vector<1x8xf32>
    %446 = tpu.matmul %445, %251, %cst_98 {dimension_numbers = #tpu.dot_dimension_numbers<[1], [0], [0], [1], [0, 0, 1, 1], [], []>} : vector<1x128xbf16>, vector<128x8xbf16>, vector<1x8xf32> -> vector<1x8xf32>
    %cst_99 = arith.constant dense<0xFF800000> : vector<1xf32>
    %447 = vector.multi_reduction <maximumf>, %446, %cst_99 [1] : vector<1x8xf32> to vector<1xf32>
    %448 = vector.shape_cast %447 : vector<1xf32> to vector<1x1xf32>
    %449 = vector.broadcast %448 : vector<1x1xf32> to vector<1x8xf32>
    %450 = arith.subf %446, %449 : vector<1x8xf32>
    %451 = math.exp %450 : vector<1x8xf32>
    %cst_100 = arith.constant dense<0.000000e+00> : vector<1xf32>
    %452 = vector.multi_reduction <add>, %451, %cst_100 [1] : vector<1x8xf32> to vector<1xf32>
    %453 = vector.shape_cast %452 : vector<1xf32> to vector<1x1xf32>
    %454 = tpu.reciprocal %453 {approx = true} : vector<1x1xf32> -> vector<1x1xf32>
    %455 = vector.broadcast %454 : vector<1x1xf32> to vector<1x8xf32>
    %456 = arith.mulf %451, %455 : vector<1x8xf32>
    %457 = arith.truncf %456 : vector<1x8xf32> to vector<1x8xbf16>
    %cst_101 = arith.constant dense<0.000000e+00> : vector<1x128xf32>
    %458 = tpu.matmul %457, %249, %cst_101 {dimension_numbers = #tpu.dot_dimension_numbers<[1], [0], [0], [1], [0, 0, 1, 1], [], []>} : vector<1x8xbf16>, vector<8x128xbf16>, vector<1x128xf32> -> vector<1x128xf32>
    %459 = arith.truncf %458 : vector<1x128xf32> to vector<1x128xbf16>
    %460 = tpu.concatenate %445, %459 in 1 : vector<1x128xbf16>, vector<1x128xbf16> -> vector<1x256xbf16>
    %cst_102 = arith.constant dense<0.000000e+00> : vector<1x128xf32>
    %461 = tpu.matmul %460, %254, %cst_102 {dimension_numbers = #tpu.dot_dimension_numbers<[1], [0], [0], [1], [0, 0, 1, 1], [], []>} : vector<1x256xbf16>, vector<256x128xbf16>, vector<1x128xf32> -> vector<1x128xf32>
    %462 = math.tanh %461 : vector<1x128xf32>
    %463 = arith.truncf %462 : vector<1x128xf32> to vector<1x128xbf16>
    %cst_103 = arith.constant dense<0.000000e+00> : vector<1x128xf32>
    %464 = tpu.matmul %463, %255, %cst_103 {dimension_numbers = #tpu.dot_dimension_numbers<[1], [0], [0], [1], [0, 0, 1, 1], [], []>} : vector<1x128xbf16>, vector<128x128xbf16>, vector<1x128xf32> -> vector<1x128xf32>
    %465 = arith.addf %464, %256 : vector<1x128xf32>
    %cst_104 = arith.constant dense<0xFF800000> : vector<1xf32>
    %466 = vector.multi_reduction <maximumf>, %465, %cst_104 [1] : vector<1x128xf32> to vector<1xf32>
    %467 = vector.shape_cast %466 : vector<1xf32> to vector<1x1xf32>
    %468 = vector.broadcast %467 : vector<1x1xf32> to vector<1x128xf32>
    %469 = arith.cmpf oge, %465, %468 : vector<1x128xf32>
    %c128_i32_105 = arith.constant 128 : i32
    %470 = vector.broadcast %c128_i32_105 : i32 to vector<1x128xi32>
    %471 = arith.select %469, %257, %470 : vector<1x128xi1>, vector<1x128xi32>
    %cst_106 = arith.constant dense<2147483647> : vector<1xi32>
    %472 = vector.multi_reduction <minsi>, %471, %cst_106 [1] : vector<1x128xi32> to vector<1xi32>
    %473 = vector.shape_cast %472 : vector<1xi32> to vector<1x1xi32>
    %c3_i32 = arith.constant 3 : i32
    %474 = vector.broadcast %c3_i32 : i32 to vector<1x9xi32>
    %475 = arith.cmpi eq, %258, %474 : vector<1x9xi32>
    %476 = vector.broadcast %418 : vector<1x1xi1> to vector<1x9xi1>
    %477 = arith.andi %475, %476 : vector<1x9xi1>
    %478 = vector.shape_cast %473 : vector<1x1xi32> to vector<1x1xi32>
    %479 = vector.broadcast %478 : vector<1x1xi32> to vector<1x9xi32>
    %480 = arith.select %477, %479, %405 : vector<1x9xi1>, vector<1x9xi32>
    %481 = arith.extui %418 : vector<1x1xi1> to vector<1x1xi32>
    %482 = arith.addi %407, %481 : vector<1x1xi32>
    %c2_i32_107 = arith.constant 2 : i32
    %483 = vector.broadcast %c2_i32_107 : i32 to vector<1x1xi32>
    %484 = arith.cmpi eq, %473, %483 : vector<1x1xi32>
    %485 = arith.extui %484 : vector<1x1xi1> to vector<1x1xi32>
    %486 = arith.maxsi %411, %485 : vector<1x1xi32>
    %487 = vector.broadcast %473 : vector<1x1xi32> to vector<1x128xi32>
    %488 = arith.cmpi eq, %257, %487 : vector<1x128xi32>
    %489 = arith.extui %488 : vector<1x128xi1> to vector<1x128xi32>
    %490 = arith.sitofp %489 : vector<1x128xi32> to vector<1x128xf32>
    %491 = arith.truncf %490 : vector<1x128xf32> to vector<1x128xbf16>
    %c0_i32_108 = arith.constant 0 : i32
    %492 = vector.broadcast %c0_i32_108 : i32 to vector<1x1xi32>
    %493 = arith.cmpi eq, %486, %492 : vector<1x1xi32>
    %494 = arith.truncf %444 : vector<1x128xf32> to vector<1x128xbf16>
    %495 = tpu.concatenate %491, %494 in 1 : vector<1x128xbf16>, vector<1x128xbf16> -> vector<1x256xbf16>
    %cst_109 = arith.constant dense<0.000000e+00> : vector<1x512xf32>
    %496 = tpu.matmul %495, %252, %cst_109 {dimension_numbers = #tpu.dot_dimension_numbers<[1], [0], [0], [1], [0, 0, 1, 1], [], []>} : vector<1x256xbf16>, vector<256x512xbf16>, vector<1x512xf32> -> vector<1x512xf32>
    %497 = arith.addf %496, %253 : vector<1x512xf32>
    %498 = vector.extract_strided_slice %497 {offsets = [0, 0], sizes = [1, 128], strides = [1, 1]} : vector<1x512xf32> to vector<1x128xf32>
    %499 = arith.negf %498 : vector<1x128xf32>
    %500 = math.exp %499 : vector<1x128xf32>
    %cst_110 = arith.constant 1.000000e+00 : f32
    %501 = vector.broadcast %cst_110 : f32 to vector<1x128xf32>
    %502 = arith.addf %501, %500 : vector<1x128xf32>
    %503 = arith.divf %501, %502 : vector<1x128xf32>
    %504 = vector.extract_strided_slice %497 {offsets = [0, 128], sizes = [1, 128], strides = [1, 1]} : vector<1x512xf32> to vector<1x128xf32>
    %505 = arith.negf %504 : vector<1x128xf32>
    %506 = math.exp %505 : vector<1x128xf32>
    %cst_111 = arith.constant 1.000000e+00 : f32
    %507 = vector.broadcast %cst_111 : f32 to vector<1x128xf32>
    %508 = arith.addf %507, %506 : vector<1x128xf32>
    %509 = arith.divf %507, %508 : vector<1x128xf32>
    %510 = vector.extract_strided_slice %497 {offsets = [0, 256], sizes = [1, 128], strides = [1, 1]} : vector<1x512xf32> to vector<1x128xf32>
    %511 = vector.extract_strided_slice %497 {offsets = [0, 384], sizes = [1, 128], strides = [1, 1]} : vector<1x512xf32> to vector<1x128xf32>
    %512 = arith.mulf %509, %511 : vector<1x128xf32>
    %513 = arith.addf %510, %512 : vector<1x128xf32>
    %514 = math.tanh %513 : vector<1x128xf32>
    %cst_112 = arith.constant 1.000000e+00 : f32
    %515 = vector.broadcast %cst_112 : f32 to vector<1x128xf32>
    %516 = arith.subf %515, %503 : vector<1x128xf32>
    %517 = arith.mulf %516, %514 : vector<1x128xf32>
    %518 = arith.mulf %503, %444 : vector<1x128xf32>
    %519 = arith.addf %517, %518 : vector<1x128xf32>
    %520 = arith.truncf %519 : vector<1x128xf32> to vector<1x128xbf16>
    %cst_113 = arith.constant dense<0.000000e+00> : vector<1x8xf32>
    %521 = tpu.matmul %520, %251, %cst_113 {dimension_numbers = #tpu.dot_dimension_numbers<[1], [0], [0], [1], [0, 0, 1, 1], [], []>} : vector<1x128xbf16>, vector<128x8xbf16>, vector<1x8xf32> -> vector<1x8xf32>
    %cst_114 = arith.constant dense<0xFF800000> : vector<1xf32>
    %522 = vector.multi_reduction <maximumf>, %521, %cst_114 [1] : vector<1x8xf32> to vector<1xf32>
    %523 = vector.shape_cast %522 : vector<1xf32> to vector<1x1xf32>
    %524 = vector.broadcast %523 : vector<1x1xf32> to vector<1x8xf32>
    %525 = arith.subf %521, %524 : vector<1x8xf32>
    %526 = math.exp %525 : vector<1x8xf32>
    %cst_115 = arith.constant dense<0.000000e+00> : vector<1xf32>
    %527 = vector.multi_reduction <add>, %526, %cst_115 [1] : vector<1x8xf32> to vector<1xf32>
    %528 = vector.shape_cast %527 : vector<1xf32> to vector<1x1xf32>
    %529 = tpu.reciprocal %528 {approx = true} : vector<1x1xf32> -> vector<1x1xf32>
    %530 = vector.broadcast %529 : vector<1x1xf32> to vector<1x8xf32>
    %531 = arith.mulf %526, %530 : vector<1x8xf32>
    %532 = arith.truncf %531 : vector<1x8xf32> to vector<1x8xbf16>
    %cst_116 = arith.constant dense<0.000000e+00> : vector<1x128xf32>
    %533 = tpu.matmul %532, %249, %cst_116 {dimension_numbers = #tpu.dot_dimension_numbers<[1], [0], [0], [1], [0, 0, 1, 1], [], []>} : vector<1x8xbf16>, vector<8x128xbf16>, vector<1x128xf32> -> vector<1x128xf32>
    %534 = arith.truncf %533 : vector<1x128xf32> to vector<1x128xbf16>
    %535 = tpu.concatenate %520, %534 in 1 : vector<1x128xbf16>, vector<1x128xbf16> -> vector<1x256xbf16>
    %cst_117 = arith.constant dense<0.000000e+00> : vector<1x128xf32>
    %536 = tpu.matmul %535, %254, %cst_117 {dimension_numbers = #tpu.dot_dimension_numbers<[1], [0], [0], [1], [0, 0, 1, 1], [], []>} : vector<1x256xbf16>, vector<256x128xbf16>, vector<1x128xf32> -> vector<1x128xf32>
    %537 = math.tanh %536 : vector<1x128xf32>
    %538 = arith.truncf %537 : vector<1x128xf32> to vector<1x128xbf16>
    %cst_118 = arith.constant dense<0.000000e+00> : vector<1x128xf32>
    %539 = tpu.matmul %538, %255, %cst_118 {dimension_numbers = #tpu.dot_dimension_numbers<[1], [0], [0], [1], [0, 0, 1, 1], [], []>} : vector<1x128xbf16>, vector<128x128xbf16>, vector<1x128xf32> -> vector<1x128xf32>
    %540 = arith.addf %539, %256 : vector<1x128xf32>
    %cst_119 = arith.constant dense<0xFF800000> : vector<1xf32>
    %541 = vector.multi_reduction <maximumf>, %540, %cst_119 [1] : vector<1x128xf32> to vector<1xf32>
    %542 = vector.shape_cast %541 : vector<1xf32> to vector<1x1xf32>
    %543 = vector.broadcast %542 : vector<1x1xf32> to vector<1x128xf32>
    %544 = arith.cmpf oge, %540, %543 : vector<1x128xf32>
    %c128_i32_120 = arith.constant 128 : i32
    %545 = vector.broadcast %c128_i32_120 : i32 to vector<1x128xi32>
    %546 = arith.select %544, %257, %545 : vector<1x128xi1>, vector<1x128xi32>
    %cst_121 = arith.constant dense<2147483647> : vector<1xi32>
    %547 = vector.multi_reduction <minsi>, %546, %cst_121 [1] : vector<1x128xi32> to vector<1xi32>
    %548 = vector.shape_cast %547 : vector<1xi32> to vector<1x1xi32>
    %c4_i32 = arith.constant 4 : i32
    %549 = vector.broadcast %c4_i32 : i32 to vector<1x9xi32>
    %550 = arith.cmpi eq, %258, %549 : vector<1x9xi32>
    %551 = vector.broadcast %493 : vector<1x1xi1> to vector<1x9xi1>
    %552 = arith.andi %550, %551 : vector<1x9xi1>
    %553 = vector.shape_cast %548 : vector<1x1xi32> to vector<1x1xi32>
    %554 = vector.broadcast %553 : vector<1x1xi32> to vector<1x9xi32>
    %555 = arith.select %552, %554, %480 : vector<1x9xi1>, vector<1x9xi32>
    %556 = arith.extui %493 : vector<1x1xi1> to vector<1x1xi32>
    %557 = arith.addi %482, %556 : vector<1x1xi32>
    %c2_i32_122 = arith.constant 2 : i32
    %558 = vector.broadcast %c2_i32_122 : i32 to vector<1x1xi32>
    %559 = arith.cmpi eq, %548, %558 : vector<1x1xi32>
    %560 = arith.extui %559 : vector<1x1xi1> to vector<1x1xi32>
    %561 = arith.maxsi %486, %560 : vector<1x1xi32>
    %562 = vector.broadcast %548 : vector<1x1xi32> to vector<1x128xi32>
    %563 = arith.cmpi eq, %257, %562 : vector<1x128xi32>
    %564 = arith.extui %563 : vector<1x128xi1> to vector<1x128xi32>
    %565 = arith.sitofp %564 : vector<1x128xi32> to vector<1x128xf32>
    %566 = arith.truncf %565 : vector<1x128xf32> to vector<1x128xbf16>
    %c0_i32_123 = arith.constant 0 : i32
    %567 = vector.broadcast %c0_i32_123 : i32 to vector<1x1xi32>
    %568 = arith.cmpi eq, %561, %567 : vector<1x1xi32>
    %569 = arith.truncf %519 : vector<1x128xf32> to vector<1x128xbf16>
    %570 = tpu.concatenate %566, %569 in 1 : vector<1x128xbf16>, vector<1x128xbf16> -> vector<1x256xbf16>
    %cst_124 = arith.constant dense<0.000000e+00> : vector<1x512xf32>
    %571 = tpu.matmul %570, %252, %cst_124 {dimension_numbers = #tpu.dot_dimension_numbers<[1], [0], [0], [1], [0, 0, 1, 1], [], []>} : vector<1x256xbf16>, vector<256x512xbf16>, vector<1x512xf32> -> vector<1x512xf32>
    %572 = arith.addf %571, %253 : vector<1x512xf32>
    %573 = vector.extract_strided_slice %572 {offsets = [0, 0], sizes = [1, 128], strides = [1, 1]} : vector<1x512xf32> to vector<1x128xf32>
    %574 = arith.negf %573 : vector<1x128xf32>
    %575 = math.exp %574 : vector<1x128xf32>
    %cst_125 = arith.constant 1.000000e+00 : f32
    %576 = vector.broadcast %cst_125 : f32 to vector<1x128xf32>
    %577 = arith.addf %576, %575 : vector<1x128xf32>
    %578 = arith.divf %576, %577 : vector<1x128xf32>
    %579 = vector.extract_strided_slice %572 {offsets = [0, 128], sizes = [1, 128], strides = [1, 1]} : vector<1x512xf32> to vector<1x128xf32>
    %580 = arith.negf %579 : vector<1x128xf32>
    %581 = math.exp %580 : vector<1x128xf32>
    %cst_126 = arith.constant 1.000000e+00 : f32
    %582 = vector.broadcast %cst_126 : f32 to vector<1x128xf32>
    %583 = arith.addf %582, %581 : vector<1x128xf32>
    %584 = arith.divf %582, %583 : vector<1x128xf32>
    %585 = vector.extract_strided_slice %572 {offsets = [0, 256], sizes = [1, 128], strides = [1, 1]} : vector<1x512xf32> to vector<1x128xf32>
    %586 = vector.extract_strided_slice %572 {offsets = [0, 384], sizes = [1, 128], strides = [1, 1]} : vector<1x512xf32> to vector<1x128xf32>
    %587 = arith.mulf %584, %586 : vector<1x128xf32>
    %588 = arith.addf %585, %587 : vector<1x128xf32>
    %589 = math.tanh %588 : vector<1x128xf32>
    %cst_127 = arith.constant 1.000000e+00 : f32
    %590 = vector.broadcast %cst_127 : f32 to vector<1x128xf32>
    %591 = arith.subf %590, %578 : vector<1x128xf32>
    %592 = arith.mulf %591, %589 : vector<1x128xf32>
    %593 = arith.mulf %578, %519 : vector<1x128xf32>
    %594 = arith.addf %592, %593 : vector<1x128xf32>
    %595 = arith.truncf %594 : vector<1x128xf32> to vector<1x128xbf16>
    %cst_128 = arith.constant dense<0.000000e+00> : vector<1x8xf32>
    %596 = tpu.matmul %595, %251, %cst_128 {dimension_numbers = #tpu.dot_dimension_numbers<[1], [0], [0], [1], [0, 0, 1, 1], [], []>} : vector<1x128xbf16>, vector<128x8xbf16>, vector<1x8xf32> -> vector<1x8xf32>
    %cst_129 = arith.constant dense<0xFF800000> : vector<1xf32>
    %597 = vector.multi_reduction <maximumf>, %596, %cst_129 [1] : vector<1x8xf32> to vector<1xf32>
    %598 = vector.shape_cast %597 : vector<1xf32> to vector<1x1xf32>
    %599 = vector.broadcast %598 : vector<1x1xf32> to vector<1x8xf32>
    %600 = arith.subf %596, %599 : vector<1x8xf32>
    %601 = math.exp %600 : vector<1x8xf32>
    %cst_130 = arith.constant dense<0.000000e+00> : vector<1xf32>
    %602 = vector.multi_reduction <add>, %601, %cst_130 [1] : vector<1x8xf32> to vector<1xf32>
    %603 = vector.shape_cast %602 : vector<1xf32> to vector<1x1xf32>
    %604 = tpu.reciprocal %603 {approx = true} : vector<1x1xf32> -> vector<1x1xf32>
    %605 = vector.broadcast %604 : vector<1x1xf32> to vector<1x8xf32>
    %606 = arith.mulf %601, %605 : vector<1x8xf32>
    %607 = arith.truncf %606 : vector<1x8xf32> to vector<1x8xbf16>
    %cst_131 = arith.constant dense<0.000000e+00> : vector<1x128xf32>
    %608 = tpu.matmul %607, %249, %cst_131 {dimension_numbers = #tpu.dot_dimension_numbers<[1], [0], [0], [1], [0, 0, 1, 1], [], []>} : vector<1x8xbf16>, vector<8x128xbf16>, vector<1x128xf32> -> vector<1x128xf32>
    %609 = arith.truncf %608 : vector<1x128xf32> to vector<1x128xbf16>
    %610 = tpu.concatenate %595, %609 in 1 : vector<1x128xbf16>, vector<1x128xbf16> -> vector<1x256xbf16>
    %cst_132 = arith.constant dense<0.000000e+00> : vector<1x128xf32>
    %611 = tpu.matmul %610, %254, %cst_132 {dimension_numbers = #tpu.dot_dimension_numbers<[1], [0], [0], [1], [0, 0, 1, 1], [], []>} : vector<1x256xbf16>, vector<256x128xbf16>, vector<1x128xf32> -> vector<1x128xf32>
    %612 = math.tanh %611 : vector<1x128xf32>
    %613 = arith.truncf %612 : vector<1x128xf32> to vector<1x128xbf16>
    %cst_133 = arith.constant dense<0.000000e+00> : vector<1x128xf32>
    %614 = tpu.matmul %613, %255, %cst_133 {dimension_numbers = #tpu.dot_dimension_numbers<[1], [0], [0], [1], [0, 0, 1, 1], [], []>} : vector<1x128xbf16>, vector<128x128xbf16>, vector<1x128xf32> -> vector<1x128xf32>
    %615 = arith.addf %614, %256 : vector<1x128xf32>
    %cst_134 = arith.constant dense<0xFF800000> : vector<1xf32>
    %616 = vector.multi_reduction <maximumf>, %615, %cst_134 [1] : vector<1x128xf32> to vector<1xf32>
    %617 = vector.shape_cast %616 : vector<1xf32> to vector<1x1xf32>
    %618 = vector.broadcast %617 : vector<1x1xf32> to vector<1x128xf32>
    %619 = arith.cmpf oge, %615, %618 : vector<1x128xf32>
    %c128_i32_135 = arith.constant 128 : i32
    %620 = vector.broadcast %c128_i32_135 : i32 to vector<1x128xi32>
    %621 = arith.select %619, %257, %620 : vector<1x128xi1>, vector<1x128xi32>
    %cst_136 = arith.constant dense<2147483647> : vector<1xi32>
    %622 = vector.multi_reduction <minsi>, %621, %cst_136 [1] : vector<1x128xi32> to vector<1xi32>
    %623 = vector.shape_cast %622 : vector<1xi32> to vector<1x1xi32>
    %c5_i32 = arith.constant 5 : i32
    %624 = vector.broadcast %c5_i32 : i32 to vector<1x9xi32>
    %625 = arith.cmpi eq, %258, %624 : vector<1x9xi32>
    %626 = vector.broadcast %568 : vector<1x1xi1> to vector<1x9xi1>
    %627 = arith.andi %625, %626 : vector<1x9xi1>
    %628 = vector.shape_cast %623 : vector<1x1xi32> to vector<1x1xi32>
    %629 = vector.broadcast %628 : vector<1x1xi32> to vector<1x9xi32>
    %630 = arith.select %627, %629, %555 : vector<1x9xi1>, vector<1x9xi32>
    %631 = arith.extui %568 : vector<1x1xi1> to vector<1x1xi32>
    %632 = arith.addi %557, %631 : vector<1x1xi32>
    %c2_i32_137 = arith.constant 2 : i32
    %633 = vector.broadcast %c2_i32_137 : i32 to vector<1x1xi32>
    %634 = arith.cmpi eq, %623, %633 : vector<1x1xi32>
    %635 = arith.extui %634 : vector<1x1xi1> to vector<1x1xi32>
    %636 = arith.maxsi %561, %635 : vector<1x1xi32>
    %637 = vector.broadcast %623 : vector<1x1xi32> to vector<1x128xi32>
    %638 = arith.cmpi eq, %257, %637 : vector<1x128xi32>
    %639 = arith.extui %638 : vector<1x128xi1> to vector<1x128xi32>
    %640 = arith.sitofp %639 : vector<1x128xi32> to vector<1x128xf32>
    %641 = arith.truncf %640 : vector<1x128xf32> to vector<1x128xbf16>
    %c0_i32_138 = arith.constant 0 : i32
    %642 = vector.broadcast %c0_i32_138 : i32 to vector<1x1xi32>
    %643 = arith.cmpi eq, %636, %642 : vector<1x1xi32>
    %644 = arith.truncf %594 : vector<1x128xf32> to vector<1x128xbf16>
    %645 = tpu.concatenate %641, %644 in 1 : vector<1x128xbf16>, vector<1x128xbf16> -> vector<1x256xbf16>
    %cst_139 = arith.constant dense<0.000000e+00> : vector<1x512xf32>
    %646 = tpu.matmul %645, %252, %cst_139 {dimension_numbers = #tpu.dot_dimension_numbers<[1], [0], [0], [1], [0, 0, 1, 1], [], []>} : vector<1x256xbf16>, vector<256x512xbf16>, vector<1x512xf32> -> vector<1x512xf32>
    %647 = arith.addf %646, %253 : vector<1x512xf32>
    %648 = vector.extract_strided_slice %647 {offsets = [0, 0], sizes = [1, 128], strides = [1, 1]} : vector<1x512xf32> to vector<1x128xf32>
    %649 = arith.negf %648 : vector<1x128xf32>
    %650 = math.exp %649 : vector<1x128xf32>
    %cst_140 = arith.constant 1.000000e+00 : f32
    %651 = vector.broadcast %cst_140 : f32 to vector<1x128xf32>
    %652 = arith.addf %651, %650 : vector<1x128xf32>
    %653 = arith.divf %651, %652 : vector<1x128xf32>
    %654 = vector.extract_strided_slice %647 {offsets = [0, 128], sizes = [1, 128], strides = [1, 1]} : vector<1x512xf32> to vector<1x128xf32>
    %655 = arith.negf %654 : vector<1x128xf32>
    %656 = math.exp %655 : vector<1x128xf32>
    %cst_141 = arith.constant 1.000000e+00 : f32
    %657 = vector.broadcast %cst_141 : f32 to vector<1x128xf32>
    %658 = arith.addf %657, %656 : vector<1x128xf32>
    %659 = arith.divf %657, %658 : vector<1x128xf32>
    %660 = vector.extract_strided_slice %647 {offsets = [0, 256], sizes = [1, 128], strides = [1, 1]} : vector<1x512xf32> to vector<1x128xf32>
    %661 = vector.extract_strided_slice %647 {offsets = [0, 384], sizes = [1, 128], strides = [1, 1]} : vector<1x512xf32> to vector<1x128xf32>
    %662 = arith.mulf %659, %661 : vector<1x128xf32>
    %663 = arith.addf %660, %662 : vector<1x128xf32>
    %664 = math.tanh %663 : vector<1x128xf32>
    %cst_142 = arith.constant 1.000000e+00 : f32
    %665 = vector.broadcast %cst_142 : f32 to vector<1x128xf32>
    %666 = arith.subf %665, %653 : vector<1x128xf32>
    %667 = arith.mulf %666, %664 : vector<1x128xf32>
    %668 = arith.mulf %653, %594 : vector<1x128xf32>
    %669 = arith.addf %667, %668 : vector<1x128xf32>
    %670 = arith.truncf %669 : vector<1x128xf32> to vector<1x128xbf16>
    %cst_143 = arith.constant dense<0.000000e+00> : vector<1x8xf32>
    %671 = tpu.matmul %670, %251, %cst_143 {dimension_numbers = #tpu.dot_dimension_numbers<[1], [0], [0], [1], [0, 0, 1, 1], [], []>} : vector<1x128xbf16>, vector<128x8xbf16>, vector<1x8xf32> -> vector<1x8xf32>
    %cst_144 = arith.constant dense<0xFF800000> : vector<1xf32>
    %672 = vector.multi_reduction <maximumf>, %671, %cst_144 [1] : vector<1x8xf32> to vector<1xf32>
    %673 = vector.shape_cast %672 : vector<1xf32> to vector<1x1xf32>
    %674 = vector.broadcast %673 : vector<1x1xf32> to vector<1x8xf32>
    %675 = arith.subf %671, %674 : vector<1x8xf32>
    %676 = math.exp %675 : vector<1x8xf32>
    %cst_145 = arith.constant dense<0.000000e+00> : vector<1xf32>
    %677 = vector.multi_reduction <add>, %676, %cst_145 [1] : vector<1x8xf32> to vector<1xf32>
    %678 = vector.shape_cast %677 : vector<1xf32> to vector<1x1xf32>
    %679 = tpu.reciprocal %678 {approx = true} : vector<1x1xf32> -> vector<1x1xf32>
    %680 = vector.broadcast %679 : vector<1x1xf32> to vector<1x8xf32>
    %681 = arith.mulf %676, %680 : vector<1x8xf32>
    %682 = arith.truncf %681 : vector<1x8xf32> to vector<1x8xbf16>
    %cst_146 = arith.constant dense<0.000000e+00> : vector<1x128xf32>
    %683 = tpu.matmul %682, %249, %cst_146 {dimension_numbers = #tpu.dot_dimension_numbers<[1], [0], [0], [1], [0, 0, 1, 1], [], []>} : vector<1x8xbf16>, vector<8x128xbf16>, vector<1x128xf32> -> vector<1x128xf32>
    %684 = arith.truncf %683 : vector<1x128xf32> to vector<1x128xbf16>
    %685 = tpu.concatenate %670, %684 in 1 : vector<1x128xbf16>, vector<1x128xbf16> -> vector<1x256xbf16>
    %cst_147 = arith.constant dense<0.000000e+00> : vector<1x128xf32>
    %686 = tpu.matmul %685, %254, %cst_147 {dimension_numbers = #tpu.dot_dimension_numbers<[1], [0], [0], [1], [0, 0, 1, 1], [], []>} : vector<1x256xbf16>, vector<256x128xbf16>, vector<1x128xf32> -> vector<1x128xf32>
    %687 = math.tanh %686 : vector<1x128xf32>
    %688 = arith.truncf %687 : vector<1x128xf32> to vector<1x128xbf16>
    %cst_148 = arith.constant dense<0.000000e+00> : vector<1x128xf32>
    %689 = tpu.matmul %688, %255, %cst_148 {dimension_numbers = #tpu.dot_dimension_numbers<[1], [0], [0], [1], [0, 0, 1, 1], [], []>} : vector<1x128xbf16>, vector<128x128xbf16>, vector<1x128xf32> -> vector<1x128xf32>
    %690 = arith.addf %689, %256 : vector<1x128xf32>
    %cst_149 = arith.constant dense<0xFF800000> : vector<1xf32>
    %691 = vector.multi_reduction <maximumf>, %690, %cst_149 [1] : vector<1x128xf32> to vector<1xf32>
    %692 = vector.shape_cast %691 : vector<1xf32> to vector<1x1xf32>
    %693 = vector.broadcast %692 : vector<1x1xf32> to vector<1x128xf32>
    %694 = arith.cmpf oge, %690, %693 : vector<1x128xf32>
    %c128_i32_150 = arith.constant 128 : i32
    %695 = vector.broadcast %c128_i32_150 : i32 to vector<1x128xi32>
    %696 = arith.select %694, %257, %695 : vector<1x128xi1>, vector<1x128xi32>
    %cst_151 = arith.constant dense<2147483647> : vector<1xi32>
    %697 = vector.multi_reduction <minsi>, %696, %cst_151 [1] : vector<1x128xi32> to vector<1xi32>
    %698 = vector.shape_cast %697 : vector<1xi32> to vector<1x1xi32>
    %c6_i32 = arith.constant 6 : i32
    %699 = vector.broadcast %c6_i32 : i32 to vector<1x9xi32>
    %700 = arith.cmpi eq, %258, %699 : vector<1x9xi32>
    %701 = vector.broadcast %643 : vector<1x1xi1> to vector<1x9xi1>
    %702 = arith.andi %700, %701 : vector<1x9xi1>
    %703 = vector.shape_cast %698 : vector<1x1xi32> to vector<1x1xi32>
    %704 = vector.broadcast %703 : vector<1x1xi32> to vector<1x9xi32>
    %705 = arith.select %702, %704, %630 : vector<1x9xi1>, vector<1x9xi32>
    %706 = arith.extui %643 : vector<1x1xi1> to vector<1x1xi32>
    %707 = arith.addi %632, %706 : vector<1x1xi32>
    %c2_i32_152 = arith.constant 2 : i32
    %708 = vector.broadcast %c2_i32_152 : i32 to vector<1x1xi32>
    %709 = arith.cmpi eq, %698, %708 : vector<1x1xi32>
    %710 = arith.extui %709 : vector<1x1xi1> to vector<1x1xi32>
    %711 = arith.maxsi %636, %710 : vector<1x1xi32>
    %712 = vector.broadcast %698 : vector<1x1xi32> to vector<1x128xi32>
    %713 = arith.cmpi eq, %257, %712 : vector<1x128xi32>
    %714 = arith.extui %713 : vector<1x128xi1> to vector<1x128xi32>
    %715 = arith.sitofp %714 : vector<1x128xi32> to vector<1x128xf32>
    %716 = arith.truncf %715 : vector<1x128xf32> to vector<1x128xbf16>
    %c0_i32_153 = arith.constant 0 : i32
    %717 = vector.broadcast %c0_i32_153 : i32 to vector<1x1xi32>
    %718 = arith.cmpi eq, %711, %717 : vector<1x1xi32>
    %719 = arith.truncf %669 : vector<1x128xf32> to vector<1x128xbf16>
    %720 = tpu.concatenate %716, %719 in 1 : vector<1x128xbf16>, vector<1x128xbf16> -> vector<1x256xbf16>
    %cst_154 = arith.constant dense<0.000000e+00> : vector<1x512xf32>
    %721 = tpu.matmul %720, %252, %cst_154 {dimension_numbers = #tpu.dot_dimension_numbers<[1], [0], [0], [1], [0, 0, 1, 1], [], []>} : vector<1x256xbf16>, vector<256x512xbf16>, vector<1x512xf32> -> vector<1x512xf32>
    %722 = arith.addf %721, %253 : vector<1x512xf32>
    %723 = vector.extract_strided_slice %722 {offsets = [0, 0], sizes = [1, 128], strides = [1, 1]} : vector<1x512xf32> to vector<1x128xf32>
    %724 = arith.negf %723 : vector<1x128xf32>
    %725 = math.exp %724 : vector<1x128xf32>
    %cst_155 = arith.constant 1.000000e+00 : f32
    %726 = vector.broadcast %cst_155 : f32 to vector<1x128xf32>
    %727 = arith.addf %726, %725 : vector<1x128xf32>
    %728 = arith.divf %726, %727 : vector<1x128xf32>
    %729 = vector.extract_strided_slice %722 {offsets = [0, 128], sizes = [1, 128], strides = [1, 1]} : vector<1x512xf32> to vector<1x128xf32>
    %730 = arith.negf %729 : vector<1x128xf32>
    %731 = math.exp %730 : vector<1x128xf32>
    %cst_156 = arith.constant 1.000000e+00 : f32
    %732 = vector.broadcast %cst_156 : f32 to vector<1x128xf32>
    %733 = arith.addf %732, %731 : vector<1x128xf32>
    %734 = arith.divf %732, %733 : vector<1x128xf32>
    %735 = vector.extract_strided_slice %722 {offsets = [0, 256], sizes = [1, 128], strides = [1, 1]} : vector<1x512xf32> to vector<1x128xf32>
    %736 = vector.extract_strided_slice %722 {offsets = [0, 384], sizes = [1, 128], strides = [1, 1]} : vector<1x512xf32> to vector<1x128xf32>
    %737 = arith.mulf %734, %736 : vector<1x128xf32>
    %738 = arith.addf %735, %737 : vector<1x128xf32>
    %739 = math.tanh %738 : vector<1x128xf32>
    %cst_157 = arith.constant 1.000000e+00 : f32
    %740 = vector.broadcast %cst_157 : f32 to vector<1x128xf32>
    %741 = arith.subf %740, %728 : vector<1x128xf32>
    %742 = arith.mulf %741, %739 : vector<1x128xf32>
    %743 = arith.mulf %728, %669 : vector<1x128xf32>
    %744 = arith.addf %742, %743 : vector<1x128xf32>
    %745 = arith.truncf %744 : vector<1x128xf32> to vector<1x128xbf16>
    %cst_158 = arith.constant dense<0.000000e+00> : vector<1x8xf32>
    %746 = tpu.matmul %745, %251, %cst_158 {dimension_numbers = #tpu.dot_dimension_numbers<[1], [0], [0], [1], [0, 0, 1, 1], [], []>} : vector<1x128xbf16>, vector<128x8xbf16>, vector<1x8xf32> -> vector<1x8xf32>
    %cst_159 = arith.constant dense<0xFF800000> : vector<1xf32>
    %747 = vector.multi_reduction <maximumf>, %746, %cst_159 [1] : vector<1x8xf32> to vector<1xf32>
    %748 = vector.shape_cast %747 : vector<1xf32> to vector<1x1xf32>
    %749 = vector.broadcast %748 : vector<1x1xf32> to vector<1x8xf32>
    %750 = arith.subf %746, %749 : vector<1x8xf32>
    %751 = math.exp %750 : vector<1x8xf32>
    %cst_160 = arith.constant dense<0.000000e+00> : vector<1xf32>
    %752 = vector.multi_reduction <add>, %751, %cst_160 [1] : vector<1x8xf32> to vector<1xf32>
    %753 = vector.shape_cast %752 : vector<1xf32> to vector<1x1xf32>
    %754 = tpu.reciprocal %753 {approx = true} : vector<1x1xf32> -> vector<1x1xf32>
    %755 = vector.broadcast %754 : vector<1x1xf32> to vector<1x8xf32>
    %756 = arith.mulf %751, %755 : vector<1x8xf32>
    %757 = arith.truncf %756 : vector<1x8xf32> to vector<1x8xbf16>
    %cst_161 = arith.constant dense<0.000000e+00> : vector<1x128xf32>
    %758 = tpu.matmul %757, %249, %cst_161 {dimension_numbers = #tpu.dot_dimension_numbers<[1], [0], [0], [1], [0, 0, 1, 1], [], []>} : vector<1x8xbf16>, vector<8x128xbf16>, vector<1x128xf32> -> vector<1x128xf32>
    %759 = arith.truncf %758 : vector<1x128xf32> to vector<1x128xbf16>
    %760 = tpu.concatenate %745, %759 in 1 : vector<1x128xbf16>, vector<1x128xbf16> -> vector<1x256xbf16>
    %cst_162 = arith.constant dense<0.000000e+00> : vector<1x128xf32>
    %761 = tpu.matmul %760, %254, %cst_162 {dimension_numbers = #tpu.dot_dimension_numbers<[1], [0], [0], [1], [0, 0, 1, 1], [], []>} : vector<1x256xbf16>, vector<256x128xbf16>, vector<1x128xf32> -> vector<1x128xf32>
    %762 = math.tanh %761 : vector<1x128xf32>
    %763 = arith.truncf %762 : vector<1x128xf32> to vector<1x128xbf16>
    %cst_163 = arith.constant dense<0.000000e+00> : vector<1x128xf32>
    %764 = tpu.matmul %763, %255, %cst_163 {dimension_numbers = #tpu.dot_dimension_numbers<[1], [0], [0], [1], [0, 0, 1, 1], [], []>} : vector<1x128xbf16>, vector<128x128xbf16>, vector<1x128xf32> -> vector<1x128xf32>
    %765 = arith.addf %764, %256 : vector<1x128xf32>
    %cst_164 = arith.constant dense<0xFF800000> : vector<1xf32>
    %766 = vector.multi_reduction <maximumf>, %765, %cst_164 [1] : vector<1x128xf32> to vector<1xf32>
    %767 = vector.shape_cast %766 : vector<1xf32> to vector<1x1xf32>
    %768 = vector.broadcast %767 : vector<1x1xf32> to vector<1x128xf32>
    %769 = arith.cmpf oge, %765, %768 : vector<1x128xf32>
    %c128_i32_165 = arith.constant 128 : i32
    %770 = vector.broadcast %c128_i32_165 : i32 to vector<1x128xi32>
    %771 = arith.select %769, %257, %770 : vector<1x128xi1>, vector<1x128xi32>
    %cst_166 = arith.constant dense<2147483647> : vector<1xi32>
    %772 = vector.multi_reduction <minsi>, %771, %cst_166 [1] : vector<1x128xi32> to vector<1xi32>
    %773 = vector.shape_cast %772 : vector<1xi32> to vector<1x1xi32>
    %c7_i32 = arith.constant 7 : i32
    %774 = vector.broadcast %c7_i32 : i32 to vector<1x9xi32>
    %775 = arith.cmpi eq, %258, %774 : vector<1x9xi32>
    %776 = vector.broadcast %718 : vector<1x1xi1> to vector<1x9xi1>
    %777 = arith.andi %775, %776 : vector<1x9xi1>
    %778 = vector.shape_cast %773 : vector<1x1xi32> to vector<1x1xi32>
    %779 = vector.broadcast %778 : vector<1x1xi32> to vector<1x9xi32>
    %780 = arith.select %777, %779, %705 : vector<1x9xi1>, vector<1x9xi32>
    %781 = arith.extui %718 : vector<1x1xi1> to vector<1x1xi32>
    %782 = arith.addi %707, %781 : vector<1x1xi32>
    %c2_i32_167 = arith.constant 2 : i32
    %783 = vector.broadcast %c2_i32_167 : i32 to vector<1x1xi32>
    %784 = arith.cmpi eq, %773, %783 : vector<1x1xi32>
    %785 = arith.extui %784 : vector<1x1xi1> to vector<1x1xi32>
    %786 = arith.maxsi %711, %785 : vector<1x1xi32>
    %787 = vector.broadcast %773 : vector<1x1xi32> to vector<1x128xi32>
    %788 = arith.cmpi eq, %257, %787 : vector<1x128xi32>
    %789 = arith.extui %788 : vector<1x128xi1> to vector<1x128xi32>
    %790 = arith.sitofp %789 : vector<1x128xi32> to vector<1x128xf32>
    %791 = arith.truncf %790 : vector<1x128xf32> to vector<1x128xbf16>
    %c0_i32_168 = arith.constant 0 : i32
    %792 = vector.broadcast %c0_i32_168 : i32 to vector<1x1xi32>
    %793 = arith.cmpi eq, %786, %792 : vector<1x1xi32>
    %794 = arith.truncf %744 : vector<1x128xf32> to vector<1x128xbf16>
    %795 = tpu.concatenate %791, %794 in 1 : vector<1x128xbf16>, vector<1x128xbf16> -> vector<1x256xbf16>
    %cst_169 = arith.constant dense<0.000000e+00> : vector<1x512xf32>
    %796 = tpu.matmul %795, %252, %cst_169 {dimension_numbers = #tpu.dot_dimension_numbers<[1], [0], [0], [1], [0, 0, 1, 1], [], []>} : vector<1x256xbf16>, vector<256x512xbf16>, vector<1x512xf32> -> vector<1x512xf32>
    %797 = arith.addf %796, %253 : vector<1x512xf32>
    %798 = vector.extract_strided_slice %797 {offsets = [0, 0], sizes = [1, 128], strides = [1, 1]} : vector<1x512xf32> to vector<1x128xf32>
    %799 = arith.negf %798 : vector<1x128xf32>
    %800 = math.exp %799 : vector<1x128xf32>
    %cst_170 = arith.constant 1.000000e+00 : f32
    %801 = vector.broadcast %cst_170 : f32 to vector<1x128xf32>
    %802 = arith.addf %801, %800 : vector<1x128xf32>
    %803 = arith.divf %801, %802 : vector<1x128xf32>
    %804 = vector.extract_strided_slice %797 {offsets = [0, 128], sizes = [1, 128], strides = [1, 1]} : vector<1x512xf32> to vector<1x128xf32>
    %805 = arith.negf %804 : vector<1x128xf32>
    %806 = math.exp %805 : vector<1x128xf32>
    %cst_171 = arith.constant 1.000000e+00 : f32
    %807 = vector.broadcast %cst_171 : f32 to vector<1x128xf32>
    %808 = arith.addf %807, %806 : vector<1x128xf32>
    %809 = arith.divf %807, %808 : vector<1x128xf32>
    %810 = vector.extract_strided_slice %797 {offsets = [0, 256], sizes = [1, 128], strides = [1, 1]} : vector<1x512xf32> to vector<1x128xf32>
    %811 = vector.extract_strided_slice %797 {offsets = [0, 384], sizes = [1, 128], strides = [1, 1]} : vector<1x512xf32> to vector<1x128xf32>
    %812 = arith.mulf %809, %811 : vector<1x128xf32>
    %813 = arith.addf %810, %812 : vector<1x128xf32>
    %814 = math.tanh %813 : vector<1x128xf32>
    %cst_172 = arith.constant 1.000000e+00 : f32
    %815 = vector.broadcast %cst_172 : f32 to vector<1x128xf32>
    %816 = arith.subf %815, %803 : vector<1x128xf32>
    %817 = arith.mulf %816, %814 : vector<1x128xf32>
    %818 = arith.mulf %803, %744 : vector<1x128xf32>
    %819 = arith.addf %817, %818 : vector<1x128xf32>
    %820 = arith.truncf %819 : vector<1x128xf32> to vector<1x128xbf16>
    %cst_173 = arith.constant dense<0.000000e+00> : vector<1x8xf32>
    %821 = tpu.matmul %820, %251, %cst_173 {dimension_numbers = #tpu.dot_dimension_numbers<[1], [0], [0], [1], [0, 0, 1, 1], [], []>} : vector<1x128xbf16>, vector<128x8xbf16>, vector<1x8xf32> -> vector<1x8xf32>
    %cst_174 = arith.constant dense<0xFF800000> : vector<1xf32>
    %822 = vector.multi_reduction <maximumf>, %821, %cst_174 [1] : vector<1x8xf32> to vector<1xf32>
    %823 = vector.shape_cast %822 : vector<1xf32> to vector<1x1xf32>
    %824 = vector.broadcast %823 : vector<1x1xf32> to vector<1x8xf32>
    %825 = arith.subf %821, %824 : vector<1x8xf32>
    %826 = math.exp %825 : vector<1x8xf32>
    %cst_175 = arith.constant dense<0.000000e+00> : vector<1xf32>
    %827 = vector.multi_reduction <add>, %826, %cst_175 [1] : vector<1x8xf32> to vector<1xf32>
    %828 = vector.shape_cast %827 : vector<1xf32> to vector<1x1xf32>
    %829 = tpu.reciprocal %828 {approx = true} : vector<1x1xf32> -> vector<1x1xf32>
    %830 = vector.broadcast %829 : vector<1x1xf32> to vector<1x8xf32>
    %831 = arith.mulf %826, %830 : vector<1x8xf32>
    %832 = arith.truncf %831 : vector<1x8xf32> to vector<1x8xbf16>
    %cst_176 = arith.constant dense<0.000000e+00> : vector<1x128xf32>
    %833 = tpu.matmul %832, %249, %cst_176 {dimension_numbers = #tpu.dot_dimension_numbers<[1], [0], [0], [1], [0, 0, 1, 1], [], []>} : vector<1x8xbf16>, vector<8x128xbf16>, vector<1x128xf32> -> vector<1x128xf32>
    %834 = arith.truncf %833 : vector<1x128xf32> to vector<1x128xbf16>
    %835 = tpu.concatenate %820, %834 in 1 : vector<1x128xbf16>, vector<1x128xbf16> -> vector<1x256xbf16>
    %cst_177 = arith.constant dense<0.000000e+00> : vector<1x128xf32>
    %836 = tpu.matmul %835, %254, %cst_177 {dimension_numbers = #tpu.dot_dimension_numbers<[1], [0], [0], [1], [0, 0, 1, 1], [], []>} : vector<1x256xbf16>, vector<256x128xbf16>, vector<1x128xf32> -> vector<1x128xf32>
    %837 = math.tanh %836 : vector<1x128xf32>
    %838 = arith.truncf %837 : vector<1x128xf32> to vector<1x128xbf16>
    %cst_178 = arith.constant dense<0.000000e+00> : vector<1x128xf32>
    %839 = tpu.matmul %838, %255, %cst_178 {dimension_numbers = #tpu.dot_dimension_numbers<[1], [0], [0], [1], [0, 0, 1, 1], [], []>} : vector<1x128xbf16>, vector<128x128xbf16>, vector<1x128xf32> -> vector<1x128xf32>
    %840 = arith.addf %839, %256 : vector<1x128xf32>
    %cst_179 = arith.constant dense<0xFF800000> : vector<1xf32>
    %841 = vector.multi_reduction <maximumf>, %840, %cst_179 [1] : vector<1x128xf32> to vector<1xf32>
    %842 = vector.shape_cast %841 : vector<1xf32> to vector<1x1xf32>
    %843 = vector.broadcast %842 : vector<1x1xf32> to vector<1x128xf32>
    %844 = arith.cmpf oge, %840, %843 : vector<1x128xf32>
    %c128_i32_180 = arith.constant 128 : i32
    %845 = vector.broadcast %c128_i32_180 : i32 to vector<1x128xi32>
    %846 = arith.select %844, %257, %845 : vector<1x128xi1>, vector<1x128xi32>
    %cst_181 = arith.constant dense<2147483647> : vector<1xi32>
    %847 = vector.multi_reduction <minsi>, %846, %cst_181 [1] : vector<1x128xi32> to vector<1xi32>
    %848 = vector.shape_cast %847 : vector<1xi32> to vector<1x1xi32>
    %c8_i32 = arith.constant 8 : i32
    %849 = vector.broadcast %c8_i32 : i32 to vector<1x9xi32>
    %850 = arith.cmpi eq, %258, %849 : vector<1x9xi32>
    %851 = vector.broadcast %793 : vector<1x1xi1> to vector<1x9xi1>
    %852 = arith.andi %850, %851 : vector<1x9xi1>
    %853 = vector.shape_cast %848 : vector<1x1xi32> to vector<1x1xi32>
    %854 = vector.broadcast %853 : vector<1x1xi32> to vector<1x9xi32>
    %855 = arith.select %852, %854, %780 : vector<1x9xi1>, vector<1x9xi32>
    %856 = arith.extui %793 : vector<1x1xi1> to vector<1x1xi32>
    %857 = arith.addi %782, %856 : vector<1x1xi32>
    %c0_182 = arith.constant 0 : index
    %c0_183 = arith.constant 0 : index
    %858 = vector.load %arg9[%c0_182, %c0_183] : memref<1x9xi32, #tpu.memory_space<vmem>>, vector<1x9xi32>
    tpu.vector_store %arg9[%c0_182, %c0_183], %855 {strides = array<i32>} : memref<1x9xi32, #tpu.memory_space<vmem>>, vector<1x9xi32>,
    %c0_184 = arith.constant 0 : index
    %c0_185 = arith.constant 0 : index
    %859 = vector.load %arg10[%c0_184, %c0_185] : memref<1x1xi32, #tpu.memory_space<vmem>>, vector<1x1xi32>
    tpu.vector_store %arg10[%c0_184, %c0_185], %857 {strides = array<i32>} : memref<1x1xi32, #tpu.memory_space<vmem>>, vector<1x1xi32>,
    return
  }
}

</mosaic_0001>

<bundles_post_ra>
// kernel: tpu_custom_call.1
= control target key start
LH: loop header
LB: loop body
LE: loop exit
PB: predicated region body
PF: predicated region fallthrough
CT: control target
= control target key end

     0   :  { %16 = vsyncpa [#allocation4], 0  ;;  %s9188_s0 = inlined_call_operand.hbm [shape: bf16[8,128], index: 0, kind: input, shape index: {}]   ;;  %s9189_s1 = inlined_call_operand.hbm [shape: bf16[128,384], index: 1, kind: input, shape index: {}]   ;;  %s9190_s2 = inlined_call_operand.hbm [shape: bf16[128,384], index: 2, kind: input, shape index: {}]   ;;  %s9191_s3 = inlined_call_operand.vmem [shape: f32[1,384], index: 3, kind: input, shape index: {}]   ;;  %s9192_s4 = inlined_call_operand.hbm [shape: bf16[256,512], index: 4, kind: input, shape index: {}]   ;;  %s9193_s5 = inlined_call_operand.vmem [shape: f32[1,512], index: 5, kind: input, shape index: {}]   ;;  %s9194_s6 = inlined_call_operand.hbm [shape: bf16[256,128], index: 6, kind: input, shape index: {}]   ;;  %s9195_s7 = inlined_call_operand.hbm [shape: bf16[128,128], index: 7, kind: input, shape index: {}]   ;;  %s9196_s8 = inlined_call_operand.vmem [shape: f32[1,128], index: 8, kind: input, shape index: {}]   ;;  %s9197_s9 = inlined_call_operand.hbm [shape: s32[1,9], index: 9, kind: output, shape index: {0}]   ;;  %s9198_s10 = inlined_call_operand.hbm [shape: s32[1,1], index: 10, kind: output, shape index: {1}]  }
   0x1   :  { %17 = vsyncpa [#allocation7], 0 }
   0x2   :  { %18 = vsyncpa [#allocation10], 0 }
   0x3   :  { %19 = vsyncpa [#allocation13], 0 }
   0x4   :  { %20 = vsyncpa [#allocation5], 0 }
   0x5   :  { %21 = vsyncpa [#allocation16], 0  ;;  %s6659_s13 = smov [#allocation6]   ;;  %s6471_s17 = scalar_lea.hbm %s9189_s1, 3072 }
   0x6   :  { %s37_s14 = sshll.u32 %s6659_s13, 4  ;;  %p6472_p0 = scmp.ne.s32.totalorder %s9189_s1, %s6471_s17  ;;  %s38_s14 = int_to_ptr.vmem [resolvable:$true] %s37_s14 }
   0x7   :  { %p6475_p1 = scmp.lt.u32.totalorder %s6471_s17, %s9189_s1 }
   0x9   :  { %p6477_p2 = pnand %p6475_p1, %p6472_p0 }
   0xb   :  { %6480 = shalt.err (!%p6477_p2)
}
   0xc   :  { %s6481_s22 = scalar_lea.vmem %s38_s14, 3072  ;;  %p6486_p4 = scmp.lt.s32.totalorder %s38_s14, %s38_s14 }
   0xd   :  { %p6482_p3 = scmp.ne.s32.totalorder %s38_s14, %s6481_s22  ;;  %p6487_p5 = scmp.lt.s32.totalorder %s6481_s22, %s6481_s22 }
   0xf   :  { %p6488_p6 = por %p6487_p5, %p6486_p4 }
  0x11   :  { %p6489_p7 = pnand %p6488_p6, %p6482_p3 }
  0x13   :  { %6492 = shalt.err (!%p6489_p7)
}
  0x14   :  { %s6660_s23 = smov 192   ;;  %s6661_s24 = smov 12  }
  0x15   :  { %43 = dma.hbm_to_vmem [thread:$0]  %s9189_s1, 3072, %s38_s14, [#allocation7], %s6660_s23, %s6660_s23, %s6661_s24  }
  0x16   :  { %s6662_s27 = smov [#allocation9]   ;;  %s6493_s11 = scalar_lea.hbm %s9192_s4, 8192 }
  0x17   :  { %s63_s28 = sshll.u32 %s6662_s27, 4  ;;  %p6494_p8 = scmp.ne.s32.totalorder %s9192_s4, %s6493_s11  ;;  %s64_s28 = int_to_ptr.vmem [resolvable:$true] %s63_s28 }
  0x18   :  { %p6497_p9 = scmp.lt.u32.totalorder %s6493_s11, %s9192_s4 }
  0x1a   :  { %p6499_p10 = pnand %p6497_p9, %p6494_p8 }
  0x1c   :  { %6502 = shalt.err (!%p6499_p10)
}
  0x1d   :  { %s6503_s17 = scalar_lea.vmem %s64_s28, 8192  ;;  %p6508_p12 = scmp.lt.s32.totalorder %s64_s28, %s64_s28 }
  0x1e   :  { %p6504_p11 = scmp.ne.s32.totalorder %s64_s28, %s6503_s17  ;;  %p6509_p13 = scmp.lt.s32.totalorder %s6503_s17, %s6503_s17 }
  0x20   :  { %p6510_p0 = por %p6509_p13, %p6508_p12 }
  0x22   :  { %p6511_p1 = pnand %p6510_p0, %p6504_p11 }
  0x24   :  { %6514 = shalt.err (!%p6511_p1)
}
  0x25   :  { %s6663_s1 = smov 256   ;;  %s6664_s14 = smov 16  }
  0x26   :  { %69 = dma.hbm_to_vmem [thread:$0]  %s9192_s4, 8192, %s64_s28, [#allocation10], %s6663_s1, %s6663_s1, %s6664_s14  }
  0x27   :  { %s6665_s20 = smov [#allocation3]   ;;  %s6666_s22 = smov [#allocation8]  }
  0x28   :  { %s28_s21 = sshll.u32 %s6665_s20, 4  ;;  %s49_s25 = sshll.u32 %s6666_s22, 4  ;;  %s29_s21 = int_to_ptr.vmem [resolvable:$true] %s28_s21  ;;  %s6759_s25 = int_to_ptr.vmem [resolvable:$true] %s49_s25 }
  0x29   :  { %s6515_s29 = scalar_lea.hbm %s9188_s0, 64 }
  0x2a   :  { %p6516_p2 = scmp.ne.s32.totalorder %s9188_s0, %s6515_s29  ;;  %p6519_p3 = scmp.lt.u32.totalorder %s6515_s29, %s9188_s0 }
  0x2c   :  { %p6521_p4 = pnand %p6519_p3, %p6516_p2 }
  0x2e   :  { %6524 = shalt.err (!%p6521_p4)
}
  0x2f   :  { %s6525_s4 = scalar_lea.vmem %s29_s21, 64  ;;  %p6530_p6 = scmp.lt.s32.totalorder %s29_s21, %s29_s21 }
  0x30   :  { %p6526_p5 = scmp.ne.s32.totalorder %s29_s21, %s6525_s4  ;;  %p6531_p7 = scmp.lt.s32.totalorder %s6525_s4, %s6525_s4 }
  0x32   :  { %p6532_p8 = por %p6531_p7, %p6530_p6 }
  0x34   :  { %p6533_p9 = pnand %p6532_p8, %p6526_p5 }
  0x36   :  { %6536 = shalt.err (!%p6533_p9)
}
  0x37   :  { %31 = dma.hbm_to_vmem [thread:$0]  %s9188_s0, 64, %s29_s21, [#allocation4]  }
  0x38   :  { %s6537_s1 = scalar_lea.hbm %s9190_s2, 3072 }
  0x39   :  { %p6538_p10 = scmp.ne.s32.totalorder %s9190_s2, %s6537_s1  ;;  %p6541_p11 = scmp.lt.u32.totalorder %s6537_s1, %s9190_s2 }
  0x3b   :  { %p6543_p12 = pnand %p6541_p11, %p6538_p10 }
  0x3d   :  { %6546 = shalt.err (!%p6543_p12)
}
  0x3e   :  { %s6547_s22 = scalar_lea.vmem %s6759_s25, 3072  ;;  %p6552_p0 = scmp.lt.s32.totalorder %s6759_s25, %s6759_s25 }
  0x3f   :  { %p6548_p13 = scmp.ne.s32.totalorder %s6759_s25, %s6547_s22  ;;  %p6553_p1 = scmp.lt.s32.totalorder %s6547_s22, %s6547_s22 }
  0x41   :  { %p6554_p2 = por %p6553_p1, %p6552_p0 }
  0x43   :  { %p6555_p3 = pnand %p6554_p2, %p6548_p13 }
  0x45   :  { %6558 = shalt.err (!%p6555_p3)
}
  0x46   :  { %55 = dma.hbm_to_vmem [thread:$0]  %s9190_s2, 3072, %s6759_s25, [#allocation7], %s6660_s23, %s6660_s23, %s6661_s24  }
  0x47   :  { %s6667_s26 = smov [#allocation11]   ;;  %s6559_s11 = scalar_lea.hbm %s9194_s6, 2048 }
  0x48   :  { %s77_s27 = sshll.u32 %s6667_s26, 4  ;;  %p6560_p4 = scmp.ne.s32.totalorder %s9194_s6, %s6559_s11  ;;  %s78_s27 = int_to_ptr.vmem [resolvable:$true] %s77_s27 }
  0x49   :  { %p6563_p5 = scmp.lt.u32.totalorder %s6559_s11, %s9194_s6 }
  0x4b   :  { %p6565_p6 = pnand %p6563_p5, %p6560_p4 }
  0x4d   :  { %6568 = shalt.err (!%p6565_p6)
}
  0x4e   :  { %s6569_s15 = scalar_lea.vmem %s78_s27, 2048  ;;  %p6574_p8 = scmp.lt.s32.totalorder %s78_s27, %s78_s27 }
  0x4f   :  { %p6570_p7 = scmp.ne.s32.totalorder %s78_s27, %s6569_s15  ;;  %p6575_p9 = scmp.lt.s32.totalorder %s6569_s15, %s6569_s15 }
  0x51   :  { %p6576_p10 = por %p6575_p9, %p6574_p8 }
  0x53   :  { %p6577_p11 = pnand %p6576_p10, %p6570_p7 }
  0x55   :  { %6580 = shalt.err (!%p6577_p11)
}
  0x56   :  { %s6668_s2 = smov 64   ;;  %s6669_s23 = smov 4  }
  0x57   :  { %83 = dma.hbm_to_vmem [thread:$0]  %s9194_s6, 2048, %s78_s27, [#allocation10], %s6668_s2, %s6668_s2, %s6669_s23  }
  0x58   :  { %s6670_s16 = smov [#allocation12]   ;;  %s6581_s18 = scalar_lea.hbm %s9195_s7, 1024 }
  0x59   :  { %s89_s17 = sshll.u32 %s6670_s16, 4  ;;  %p6582_p12 = scmp.ne.s32.totalorder %s9195_s7, %s6581_s18  ;;  %s90_s17 = int_to_ptr.vmem [resolvable:$true] %s89_s17 }
  0x5a   :  { %p6585_p13 = scmp.lt.u32.totalorder %s6581_s18, %s9195_s7 }
  0x5c   :  { %p6587_p0 = pnand %p6585_p13, %p6582_p12 }
  0x5e   :  { %6590 = shalt.err (!%p6587_p0)
}
  0x5f   :  { %s6591_s21 = scalar_lea.vmem %s90_s17, 1024  ;;  %p6596_p2 = scmp.lt.s32.totalorder %s90_s17, %s90_s17 }
  0x60   :  { %p6592_p1 = scmp.ne.s32.totalorder %s90_s17, %s6591_s21  ;;  %p6597_p3 = scmp.lt.s32.totalorder %s6591_s21, %s6591_s21 }
  0x62   :  { %p6598_p4 = por %p6597_p3, %p6596_p2 }
  0x64   :  { %p6599_p5 = pnand %p6598_p4, %p6592_p1 }
  0x66   :  { %6602 = shalt.err (!%p6599_p5)
}
  0x67   :  { %95 = dma.hbm_to_vmem [thread:$0]  %s9195_s7, 1024, %s90_s17, [#allocation13], %s6668_s2, %s6668_s2, %s6669_s23  }
  0x68   :  { %6647 = dma.done.wait [#allocation4], 64  }
  0x69   :  { %6648 = vsyncadd [#allocation4], 4294967232 }
  0x6a   :  { %6649 = dma.done.wait [#allocation7], 6144  }
  0x6b   :  { %6650 = vsyncadd [#allocation7], 4294961152 }
  0x6c   :  { %6651 = dma.done.wait [#allocation10], 10240  }
  0x6d   :  { %6652 = vsyncadd [#allocation10], 4294957056 }
  0x6e   :  { %6653 = dma.done.wait [#allocation13], 1024  }
  0x6f   :  { %6654 = vsyncadd [#allocation13], 4294966272  ;;  %v9205_v0 = vmov 0.0   ;;  %v9199_v1 = vmov 0   ;;  %vm6673_vm0 = vmmov 0   ;;  %v9204_v59 = vlaneseq }
  0x70   :  { %5311 = vmatprep.subr.bf16.mxu1 %v9205_v0  ;;  %359 = vmatprep.mubr.bf16.mxu0 %v9199_v1  ;;  %v5877_v2 = vld [vmem:[#allocation6 + $0x4] ss:$12 sps:$4 sm:$0xff]   ;;  %v5879_v3 = vld [vmem:[#allocation6] ss:$12 sps:$4 sm:$0xff]   ;;  %v5880_v4 = vld [vmem:[#allocation6 + $0x1c] ss:$12 sps:$4 sm:$0xff]  }
  0x71   :  { %5327 = vmatprep.mubr.msk.bf16.mxu1 %vm6673_vm0, %v9205_v0  ;;  %327 = vmatprep.subr.bf16.mxu0 %v5877_v2  ;;  %v5882_v5 = vld [vmem:[#allocation6 + $0x18] ss:$12 sps:$4 sm:$0xff]   ;;  %v5883_v6 = vld [vmem:[#allocation6 + $0x34] ss:$12 sps:$4 sm:$0xff]   ;;  %v5885_v7 = vld [vmem:[#allocation6 + $0x30] ss:$12 sps:$4 sm:$0xff]  }
  0x72   :  { %328 = vmatpush1.bf16.msra.mxu0 %v5879_v3  ;;  %v5886_v8 = vld [vmem:[#allocation6 + $0x4c] ss:$12 sps:$4 sm:$0xff]   ;;  %v5898_v9 = vld [vmem:[#allocation6 + $0x8] ss:$12 sps:$4 sm:$0xff]   ;;  %v5889_v11 = vld [vmem:[#allocation6 + $0x64] ss:$12 sps:$4 sm:$0xff]  }
  0x73   :  { %329 = vmatprep.subr.bf16.mxu0 %v5880_v4  ;;  %v5888_v10 = vld [vmem:[#allocation6 + $0x48] ss:$12 sps:$4 sm:$0xff]   ;;  %5312 = vmatpush3.bf16.msra.mxu1 %v5898_v9  ;;  %v5902_v12 = vld [vmem:[#allocation6 + $0x20] ss:$12 sps:$4 sm:$0xff]   ;;  %v5906_v15 = vld [vmem:[#allocation6 + $0x38] ss:$12 sps:$4 sm:$0xff]  }
  0x74   :  { %5313 = vmatprep.subr.bf16.mxu1 %v9205_v0  ;;  %v5891_v13 = vld [vmem:[#allocation6 + $0x60] ss:$12 sps:$4 sm:$0xff]   ;;  %v5892_v14 = vld [vmem:[#allocation6 + $0x7c] ss:$12 sps:$4 sm:$0xff]   ;;  %v5894_v16 = vld [vmem:[#allocation6 + $0x78] ss:$12 sps:$4 sm:$0xff]  }
  0x75   :  { %v5895_v17 = vld [vmem:[#allocation6 + $0x94] ss:$12 sps:$4 sm:$0xff]   ;;  %v5910_v18 = vld [vmem:[#allocation6 + $0x50] ss:$12 sps:$4 sm:$0xff]   ;;  %v5899_v20 = vld [vmem:[#allocation6 + $0xac] ss:$12 sps:$4 sm:$0xff]  }
  0x76   :  { %330 = vmatpush1.bf16.msra.mxu0 %v5882_v5  ;;  %v5897_v19 = vld [vmem:[#allocation6 + $0x90] ss:$12 sps:$4 sm:$0xff]   ;;  %v5914_v21 = vld [vmem:[#allocation6 + $0x68] ss:$12 sps:$4 sm:$0xff]   ;;  %v5918_v24 = vld [vmem:[#allocation6 + $0x80] ss:$12 sps:$4 sm:$0xff]  }
  0x77   :  { %331 = vmatprep.subr.bf16.mxu0 %v5883_v6  ;;  %5314 = vmatpush3.bf16.msra.mxu1 %v5902_v12  ;;  %v5901_v22 = vld [vmem:[#allocation6 + $0xa8] ss:$12 sps:$4 sm:$0xff]   ;;  %v6825_v23 = vld [vmem:[#allocation8 + $0x4] ss:$12 sps:$4 sm:$0xff]   ;;  %v149_v25 = vld [vmem:[#allocation3] sm:$0xf] }
  0x78   :  { %5315 = vmatprep.subr.bf16.mxu1 %v9205_v0  ;;  %v6828_v26 = vld [vmem:[#allocation8] ss:$12 sps:$4 sm:$0xff]   ;;  %v6830_v27 = vld [vmem:[#allocation8 + $0x1c] ss:$12 sps:$4 sm:$0xff]   ;;  %v5922_v28 = vld [vmem:[#allocation6 + $0x98] ss:$12 sps:$4 sm:$0xff]  }
  0x79   :  { %v6834_v29 = vld [vmem:[#allocation8 + $0x18] ss:$12 sps:$4 sm:$0xff]   ;;  %v6837_v30 = vld [vmem:[#allocation8 + $0x34] ss:$12 sps:$4 sm:$0xff]   ;;  %v5926_v31 = vld [vmem:[#allocation6 + $0xb0] ss:$12 sps:$4 sm:$0xff]  }
  0x7a   :  { %332 = vmatpush1.bf16.msra.mxu0 %v5885_v7  ;;  %v6841_v32 = vld [vmem:[#allocation8 + $0x30] ss:$12 sps:$4 sm:$0xff]   ;;  %v6844_v33 = vld [vmem:[#allocation8 + $0x4c] ss:$12 sps:$4 sm:$0xff]   ;;  %v6846_v34 = vld [vmem:[#allocation8 + $0x8] ss:$12 sps:$4 sm:$0xff]  }
  0x7b   :  { %333 = vmatprep.subr.bf16.mxu0 %v5886_v8  ;;  %5316 = vmatpush3.bf16.msra.mxu1 %v5906_v15  ;;  %v6850_v35 = vld [vmem:[#allocation8 + $0x48] ss:$12 sps:$4 sm:$0xff]   ;;  %v6853_v36 = vld [vmem:[#allocation8 + $0x64] ss:$12 sps:$4 sm:$0xff]   ;;  %v6855_v37 = vld [vmem:[#allocation8 + $0x20] ss:$12 sps:$4 sm:$0xff]  }
  0x7c   :  { %5317 = vmatprep.subr.bf16.mxu1 %v9205_v0  ;;  %v6860_v38 = vld [vmem:[#allocation8 + $0x60] ss:$12 sps:$4 sm:$0xff]   ;;  %v6865_v39 = vld [vmem:[#allocation8 + $0x7c] ss:$12 sps:$4 sm:$0xff]   ;;  %v6867_v40 = vld [vmem:[#allocation8 + $0x38] ss:$12 sps:$4 sm:$0xff]  }
  0x7d   :  { %v6872_v41 = vld [vmem:[#allocation8 + $0x78] ss:$12 sps:$4 sm:$0xff]   ;;  %v6875_v42 = vld [vmem:[#allocation8 + $0x94] ss:$12 sps:$4 sm:$0xff]   ;;  %v6877_v43 = vld [vmem:[#allocation8 + $0x50] ss:$12 sps:$4 sm:$0xff]  }
  0x7e   :  { %334 = vmatpush1.bf16.msra.mxu0 %v5888_v10  ;;  %v6882_v44 = vld [vmem:[#allocation8 + $0x90] ss:$12 sps:$4 sm:$0xff]   ;;  %v6885_v45 = vld [vmem:[#allocation8 + $0xac] ss:$12 sps:$4 sm:$0xff]   ;;  %v6887_v46 = vld [vmem:[#allocation8 + $0x68] ss:$12 sps:$4 sm:$0xff]  }
  0x7f   :  { %335 = vmatprep.subr.bf16.mxu0 %v5889_v11  ;;  %5318 = vmatpush3.bf16.msra.mxu1 %v5910_v18  ;;  %v6892_v47 = vld [vmem:[#allocation8 + $0xa8] ss:$12 sps:$4 sm:$0xff]   ;;  %v6895_v48 = vld [vmem:[#allocation8 + $0x80] ss:$12 sps:$4 sm:$0xff]   ;;  %v6901_v49 = vld [vmem:[#allocation8 + $0x98] ss:$12 sps:$4 sm:$0xff]  }
  0x80   :  { %5319 = vmatprep.subr.bf16.mxu1 %v9205_v0  ;;  %v6908_v50 = vld [vmem:[#allocation8 + $0xb0] ss:$12 sps:$4 sm:$0xff]   ;;  %v6951_v60 = vshrl.u32 %v9204_v59, 7  ;;  %v182_v62 = vld [vmem:[%s9191_s3] sm:$0x7]  ;;  %vm2145_vm3 = vcmask 1043456  }
  0x81   :  { %v7434_v59 = vld [vmem:[#allocation9 + $0x1c0] ss:$16 sps:$4 sm:$0xff]   ;;  %vm2128_vm4 = vcmask 57344   ;;  %vm2141_vm5 = vcmask 64512   ;;  %vm2416_vm6 = vcmask 1040384  }
  0x82   :  { %336 = vmatpush1.bf16.msra.mxu0 %v5891_v13  ;;  %v9202_v61 = vsub.s32 1, %v6951_v60  ;;  %v9203_v63 = vsub.s32 0, %v6951_v60 }
  0x83   :  { %337 = vmatprep.subr.bf16.mxu0 %v5892_v14  ;;  %5320 = vmatpush3.bf16.msra.mxu1 %v5914_v21 }
  0x84   :  { %5321 = vmatprep.subr.bf16.mxu1 %v9205_v0  ;;  %v191_v2 = vrot.slane %v182_v62, %v9202_v61  ;;  %v187_v3 = vrot.slane %v182_v62, %v9203_v63  ;;  %v7427_v61 = vld [vmem:[#allocation9 + $0x1c4] ss:$16 sps:$4 sm:$0xff]   ;;  %v7430_v63 = vld [vmem:[#allocation9 + $0x1a8] ss:$16 sps:$4 sm:$0xff]  }
  0x85   :  { %9516 = vst [vmem:[#allocation42_spill] sm:$0xff] %v7430_v63 }
  0x86   :  { %338 = vmatpush1.bf16.msra.mxu0 %v5894_v16 }
  0x87   :  { %339 = vmatprep.subr.bf16.mxu0 %v5895_v17  ;;  %5322 = vmatpush3.bf16.msra.mxu1 %v5918_v24 }
  0x88   :  { %5323 = vmatprep.subr.bf16.mxu1 %v9205_v0 }
  0x8a   :  { %340 = vmatpush1.bf16.msra.mxu0 %v5897_v19 }
  0x8b   :  { %341 = vmatprep.subr.bf16.mxu0 %v5899_v20  ;;  %5324 = vmatpush3.bf16.msra.mxu1 %v5922_v28  ;;  %v9201_v20 = vsub.s32 2, %v6951_v60 }
  0x8c   :  { %5325 = vmatprep.subr.bf16.mxu1 %v9205_v0 }
  0x8e   :  { %342 = vmatpush1.bf16.msra.mxu0 %v5901_v22  ;;  %v195_v22 = vrot.slane %v182_v62, %v9201_v20  ;;  %v7424_v20 = vld [vmem:[#allocation9 + $0x1ac] ss:$16 sps:$4 sm:$0xff]  }
  0x8f   :  { %536 = vmatprep.subr.bf16.mxu0 %v6825_v23  ;;  %5326 = vmatpush3.bf16.msra.mxu1 %v5926_v31  ;;  %9515 = vst [vmem:[#allocation41_spill] sm:$0xff] %v7424_v20 }
  0x90   :  { %5331 = vmatprep.subr.bf16.mxu1 %v9205_v0 }
  0x91   :  { %360 = vmatmul.mubr.bf16.vlgmr.msra.gmra.mrb[0].mxu0 %v149_v25 }
  0x92   :  { %537 = vmatpush1.bf16.msra.mxu0 %v6828_v26  ;;  %568 = vmatprep.mubr.bf16.mxu0 %v9199_v1 }
  0x93   :  { %538 = vmatprep.subr.bf16.mxu0 %v6830_v27  ;;  %5328 = vmatmul.mubr.bf16.vlgmr.msra.gmra.mrb[0].mxu1 %v149_v25 }
  0x94   :  { %5332 = vmatpush3.bf16.msra.mxu1 %v6846_v34  ;;  %5347 = vmatprep.mubr.msk.bf16.mxu1 %vm6673_vm0, %v9205_v0 }
  0x95   :  { %5333 = vmatprep.subr.bf16.mxu1 %v9205_v0 }
  0x96   :  { %539 = vmatpush1.bf16.msra.mxu0 %v6834_v29 }
  0x97   :  { %540 = vmatprep.subr.bf16.mxu0 %v6837_v30 }
  0x98   :  { %5334 = vmatpush3.bf16.msra.mxu1 %v6855_v37 }
  0x99   :  { %5335 = vmatprep.subr.bf16.mxu1 %v9205_v0 }
  0x9a   :  { %541 = vmatpush1.bf16.msra.mxu0 %v6841_v32 }
  0x9b   :  { %542 = vmatprep.subr.bf16.mxu0 %v6844_v33 }
  0x9c   :  { %5336 = vmatpush3.bf16.msra.mxu1 %v6867_v40 }
  0x9d   :  { %5337 = vmatprep.subr.bf16.mxu1 %v9205_v0 }
  0x9e   :  { %543 = vmatpush1.bf16.msra.mxu0 %v6850_v35 }
  0x9f   :  { %544 = vmatprep.subr.bf16.mxu0 %v6853_v36 }
  0xa0   :  { %5338 = vmatpush3.bf16.msra.mxu1 %v6877_v43 }
  0xa1   :  { %5339 = vmatprep.subr.bf16.mxu1 %v9205_v0 }
  0xa2   :  { %545 = vmatpush1.bf16.msra.mxu0 %v6860_v38 }
  0xa3   :  { %546 = vmatprep.subr.bf16.mxu0 %v6865_v39 }
  0xa4   :  { %5340 = vmatpush3.bf16.msra.mxu1 %v6887_v46 }
  0xa5   :  { %5341 = vmatprep.subr.bf16.mxu1 %v9205_v0 }
  0xa6   :  { %547 = vmatpush1.bf16.msra.mxu0 %v6872_v41 }
  0xa7   :  { %548 = vmatprep.subr.bf16.mxu0 %v6875_v42 }
  0xa8   :  { %5342 = vmatpush3.bf16.msra.mxu1 %v6895_v48 }
  0xa9   :  { %5343 = vmatprep.subr.bf16.mxu1 %v9205_v0 }
  0xaa   :  { %549 = vmatpush1.bf16.msra.mxu0 %v6882_v44 }
  0xab   :  { %550 = vmatprep.subr.bf16.mxu0 %v6885_v45 }
  0xac   :  { %5344 = vmatpush3.bf16.msra.mxu1 %v6901_v49 }
  0xad   :  { %5345 = vmatprep.subr.bf16.mxu1 %v9205_v0 }
  0xae   :  { %551 = vmatpush1.bf16.msra.mxu0 %v6892_v47 }
  0xaf   :  { %640 = vmatprep.subr.bf16.mxu0 %v6825_v23 }
  0xb0   :  { %5346 = vmatpush3.bf16.msra.mxu1 %v6908_v50 }
  0xb1   :  { %569 = vmatmul.mubr.bf16.vlgmr.msra.gmra.mrb[4].mxu0 %v9199_v1  ;;  %5351 = vmatprep.subr.bf16.mxu1 %v9205_v0 }
  0xb2   :  { %641 = vmatpush1.bf16.msra.mxu0 %v6828_v26  ;;  %672 = vmatprep.mubr.bf16.mxu0 %v9199_v1 }
  0xb3   :  { %642 = vmatprep.subr.bf16.mxu0 %v6830_v27  ;;  %5348 = vmatmul.mubr.bf16.vlgmr.msra.gmra.mrb[4].mxu1 %v9199_v1 }
  0xb4   :  { %5352 = vmatpush3.bf16.msra.mxu1 %v6846_v34  ;;  %5367 = vmatprep.mubr.msk.bf16.mxu1 %vm6673_vm0, %v9205_v0 }
  0xb5   :  { %5353 = vmatprep.subr.bf16.mxu1 %v9205_v0 }
  0xb6   :  { %643 = vmatpush1.bf16.msra.mxu0 %v6834_v29 }
  0xb7   :  { %644 = vmatprep.subr.bf16.mxu0 %v6837_v30 }
  0xb8   :  { %5354 = vmatpush3.bf16.msra.mxu1 %v6855_v37 }
  0xb9   :  { %5355 = vmatprep.subr.bf16.mxu1 %v9205_v0 }
  0xba   :  { %645 = vmatpush1.bf16.msra.mxu0 %v6841_v32 }
  0xbb   :  { %646 = vmatprep.subr.bf16.mxu0 %v6844_v33 }
  0xbc   :  { %5356 = vmatpush3.bf16.msra.mxu1 %v6867_v40 }
  0xbd   :  { %5357 = vmatprep.subr.bf16.mxu1 %v9205_v0 }
  0xbe   :  { %647 = vmatpush1.bf16.msra.mxu0 %v6850_v35 }
  0xbf   :  { %648 = vmatprep.subr.bf16.mxu0 %v6853_v36 }
  0xc0   :  { %5358 = vmatpush3.bf16.msra.mxu1 %v6877_v43 }
  0xc1   :  { %5359 = vmatprep.subr.bf16.mxu1 %v9205_v0 }
  0xc2   :  { %649 = vmatpush1.bf16.msra.mxu0 %v6860_v38 }
  0xc3   :  { %650 = vmatprep.subr.bf16.mxu0 %v6865_v39 }
  0xc4   :  { %5360 = vmatpush3.bf16.msra.mxu1 %v6887_v46 }
  0xc5   :  { %5361 = vmatprep.subr.bf16.mxu1 %v9205_v0 }
  0xc6   :  { %651 = vmatpush1.bf16.msra.mxu0 %v6872_v41 }
  0xc7   :  { %652 = vmatprep.subr.bf16.mxu0 %v6875_v42 }
  0xc8   :  { %5362 = vmatpush3.bf16.msra.mxu1 %v6895_v48 }
  0xc9   :  { %5363 = vmatprep.subr.bf16.mxu1 %v9205_v0 }
  0xca   :  { %653 = vmatpush1.bf16.msra.mxu0 %v6882_v44 }
  0xcb   :  { %654 = vmatprep.subr.bf16.mxu0 %v6885_v45 }
  0xcc   :  { %5364 = vmatpush3.bf16.msra.mxu1 %v6901_v49 }
  0xcd   :  { %5365 = vmatprep.subr.bf16.mxu1 %v9205_v0 }
  0xce   :  { %655 = vmatpush1.bf16.msra.mxu0 %v6892_v47 }
  0xcf   :  { %760 = vmatprep.subr.bf16.mxu0 %v6825_v23 }
  0xd0   :  { %5366 = vmatpush3.bf16.msra.mxu1 %v6908_v50 }
  0xd1   :  { %5371 = vmatprep.subr.bf16.mxu1 %v9205_v0 }
 0x164   :  { %v361_v51 = vpop.f32.mrb[0].mxu0 }
 0x165   :  { %v363_v52 = vpop.f32.mrb[1].mxu0  ;;  %v6965_v9 = vadd.f32 %v361_v51, %v187_v3 }
 0x166   :  { %v365_v53 = vpop.f32.mrb[2].mxu0  ;;  %v402_v55 = vpop.f32.mrb[0].mxu1  ;;  %v6962_v4 = vadd.f32 %v363_v52, %v191_v2 }
 0x167   :  { %v366_v54 = vpop.f32.mrb[3].mxu0  ;;  %v5329_v56 = vpop.f32.mrb[1].mxu1  ;;  %v6971_v28 = vadd.f32 %v402_v55, %v195_v22 }
 0x168   :  { %v405_v57 = vpop.f32.mrb[2].mxu1 }
 0x169   :  { %v5330_v58 = vpop.f32.mrb[3].mxu1 }
 0x184   :  { %v570_v5 = vpop.f32.mrb[4].mxu0 }
 0x185   :  { %v572_v6 = vpop.f32.mrb[5].mxu0  ;;  %v617_v12 = vadd.f32 %v570_v5, %v6965_v9 }
 0x186   :  { %v624_v7 = vadd.f32 %v572_v6, %v6962_v4  ;;  %v574_v8 = vpop.f32.mrb[6].mxu0  ;;  %v611_v14 = vpop.f32.mrb[4].mxu1 }
 0x187   :  { %v575_v10 = vpop.f32.mrb[7].mxu0  ;;  %v4726_v13 = vmul.f32 -1.442695, %v617_v12  ;;  %v5349_v15 = vpop.f32.mrb[5].mxu1 }
 0x188   :  { %v4727_v11 = vmul.f32 -1.442695, %v624_v7  ;;  %v614_v16 = vpop.f32.mrb[6].mxu1 }
 0x189   :  { %v5350_v17 = vpop.f32.mrb[7].mxu1 }
 0x18a   :  { %6061 = vpow2.f32 %v4727_v11 }
 0x18b   :  { %6063 = vpow2.f32 %v4726_v13 }
 0x194   :  { %v6062_v18 = vpop.eup %6061 }
 0x195   :  { %v628_v19 = vadd.f32 1.0, %v6062_v18  ;;  %v6064_v21 = vpop.eup %6063 }
 0x196   :  { %v621_v24 = vadd.f32 1.0, %v6064_v21 }
 0x197   :  { %6065 = vrcp.f32 %v628_v19 }
 0x198   :  { %6067 = vrcp.f32 %v621_v24 }
 0x1a1   :  { %v6066_v25 = vpop.eup %6065 }
 0x1a2   :  { %v631_v31 = vmul.f32 %v6066_v25, %v611_v14  ;;  %v6068_v52 = vpop.eup %6067 }
 0x1a3   :  { %v634_v53 = vsub.f32 1.0, %v6068_v52  ;;  %v636_v57 = vmul.f32 0.0, %v6068_v52 }
 0x1a4   :  { %v632_v51 = vadd.f32 %v631_v31, %v6971_v28 }
 0x1a6   :  { %6069 = vtanh.f32 %v632_v51 }
 0x1b0   :  { %v6070_v54 = vpop.eup %6069 }
 0x1b1   :  { %v635_v56 = vmul.f32 %v6070_v54, %v634_v53 }
 0x1b3   :  { %v6974_v58 = vadd.f32 %v636_v57, %v635_v56 }
 0x1b5   :  { %638 = vst [vmem:[#allocation2] sm:$0x1] %v6974_v58  ;;  %v639_v62 = vpack.c.bf16 %v6974_v58, %v6974_v58  ;;  %v750_v22 = vrot.slane %v6974_v58, 7 }
 0x1b7   :  { %673 = vmatmul.mubr.bf16.vlgmr.msra.gmra.mrb[8].mxu0 %v639_v62  ;;  %5368 = vmatmul.mubr.bf16.vlgmr.msra.gmra.mrb[8].mxu1 %v639_v62 }
 0x1b8   :  { %761 = vmatpush1.bf16.msra.mxu0 %v6828_v26  ;;  %5372 = vmatpush3.bf16.msra.mxu1 %v6846_v34 }
 0x1b9   :  { %762 = vmatprep.subr.bf16.mxu0 %v6830_v27  ;;  %5373 = vmatprep.subr.bf16.mxu1 %v9205_v0 }
 0x1ba   :  { %792 = vmatprep.mubr.bf16.mxu0 %v9199_v1  ;;  %5387 = vmatprep.mubr.msk.bf16.mxu1 %vm6673_vm0, %v9205_v0 }
 0x1bc   :  { %763 = vmatpush1.bf16.msra.mxu0 %v6834_v29  ;;  %5374 = vmatpush3.bf16.msra.mxu1 %v6855_v37 }
 0x1bd   :  { %764 = vmatprep.subr.bf16.mxu0 %v6837_v30  ;;  %5375 = vmatprep.subr.bf16.mxu1 %v9205_v0 }
 0x1c0   :  { %765 = vmatpush1.bf16.msra.mxu0 %v6841_v32  ;;  %5376 = vmatpush3.bf16.msra.mxu1 %v6867_v40 }
 0x1c1   :  { %766 = vmatprep.subr.bf16.mxu0 %v6844_v33  ;;  %5377 = vmatprep.subr.bf16.mxu1 %v9205_v0 }
 0x1c4   :  { %767 = vmatpush1.bf16.msra.mxu0 %v6850_v35  ;;  %5378 = vmatpush3.bf16.msra.mxu1 %v6877_v43 }
 0x1c5   :  { %768 = vmatprep.subr.bf16.mxu0 %v6853_v36  ;;  %5379 = vmatprep.subr.bf16.mxu1 %v9205_v0 }
 0x1c8   :  { %769 = vmatpush1.bf16.msra.mxu0 %v6860_v38  ;;  %5380 = vmatpush3.bf16.msra.mxu1 %v6887_v46 }
 0x1c9   :  { %770 = vmatprep.subr.bf16.mxu0 %v6865_v39  ;;  %5381 = vmatprep.subr.bf16.mxu1 %v9205_v0 }
 0x1cc   :  { %771 = vmatpush1.bf16.msra.mxu0 %v6872_v41  ;;  %5382 = vmatpush3.bf16.msra.mxu1 %v6895_v48 }
 0x1cd   :  { %772 = vmatprep.subr.bf16.mxu0 %v6875_v42  ;;  %5383 = vmatprep.subr.bf16.mxu1 %v9205_v0 }
 0x1d0   :  { %773 = vmatpush1.bf16.msra.mxu0 %v6882_v44  ;;  %5384 = vmatpush3.bf16.msra.mxu1 %v6901_v49 }
 0x1d1   :  { %774 = vmatprep.subr.bf16.mxu0 %v6885_v45  ;;  %5385 = vmatprep.subr.bf16.mxu1 %v9205_v0 }
 0x1d4   :  { %775 = vmatpush1.bf16.msra.mxu0 %v6892_v47  ;;  %5386 = vmatpush3.bf16.msra.mxu1 %v6908_v50 }
 0x1d5   :  { %879 = vmatprep.subr.bf16.mxu0 %v6825_v23  ;;  %5391 = vmatprep.subr.bf16.mxu1 %v9205_v0 }
 0x28a   :  { %v674_v55 = vpop.f32.mrb[8].mxu0  ;;  %v715_v2 = vpop.f32.mrb[8].mxu1 }
 0x28b   :  { %v722_v3 = vrot.slane %v674_v55, 7  ;;  %v676_v5 = vpop.f32.mrb[9].mxu0  ;;  %v5369_v6 = vpop.f32.mrb[9].mxu1  ;;  %v742_v25 = vrot.slane %v715_v2, 7 }
 0x28c   :  { %v732_v7 = vrot.slane %v676_v5, 7  ;;  %v678_v8 = vpop.f32.mrb[10].mxu0  ;;  %v718_v10 = vpop.f32.mrb[10].mxu1 }
 0x28d   :  { %v724_v11 = vadd.f32 %v722_v3, %v6965_v9  ;;  %v679_v12 = vpop.f32.mrb[11].mxu0  ;;  %v5370_v13 = vpop.f32.mrb[11].mxu1 }
 0x28e   :  { %v734_v14 = vadd.f32 %v732_v7, %v6962_v4 }
 0x28f   :  { %v4728_v15 = vmul.f32 -1.442695, %v724_v11 }
 0x290   :  { %v4729_v16 = vmul.f32 -1.442695, %v734_v14 }
 0x291   :  { %6071 = vpow2.f32 %v4728_v15 }
 0x292   :  { %6073 = vpow2.f32 %v4729_v16 }
 0x29b   :  { %v6072_v17 = vpop.eup %6071 }
 0x29c   :  { %v6074_v18 = vpop.eup %6073  ;;  %v728_v19 = vadd.f32 1.0, %v6072_v17 }
 0x29d   :  { %v738_v21 = vadd.f32 1.0, %v6074_v18 }
 0x29e   :  { %6075 = vrcp.f32 %v728_v19 }
 0x29f   :  { %6077 = vrcp.f32 %v738_v21 }
 0x2a8   :  { %v6076_v24 = vpop.eup %6075 }
 0x2a9   :  { %v6078_v31 = vpop.eup %6077  ;;  %v752_v51 = vmul.f32 %v6076_v24, %v750_v22  ;;  %v747_v54 = vsub.f32 1.0, %v6076_v24 }
 0x2aa   :  { %v744_v52 = vmul.f32 %v6078_v31, %v742_v25 }
 0x2ac   :  { %v745_v53 = vadd.f32 %v744_v52, %v6971_v28 }
 0x2ae   :  { %6079 = vtanh.f32 %v745_v53 }
 0x2b8   :  { %v6080_v56 = vpop.eup %6079 }
 0x2b9   :  { %v748_v57 = vmul.f32 %v6080_v56, %v747_v54 }
 0x2bb   :  { %v7018_v62 = vadd.f32 %v752_v51, %v748_v57 }
 0x2bd   :  { %754 = vst [vmem:[#allocation2] sm:$0x2] %v7018_v62  ;;  %v755_v55 = vpack.c.bf16 %v7018_v62, %v7018_v62  ;;  %v870_v24 = vrot.slane %v7018_v62, 7 }
 0x2bf   :  { %v757_v3 = vshrl.u32 %v755_v55, 16 }
 0x2c1   :  { %793 = vmatmul.mubr.bf16.vlgmr.msra.gmra.mrb[12].mxu0 %v757_v3  ;;  %5388 = vmatmul.mubr.bf16.vlgmr.msra.gmra.mrb[12].mxu1 %v757_v3 }
 0x2c2   :  { %880 = vmatpush1.bf16.msra.mxu0 %v6828_v26  ;;  %5392 = vmatpush3.bf16.msra.mxu1 %v6846_v34 }
 0x2c3   :  { %881 = vmatprep.subr.bf16.mxu0 %v6830_v27  ;;  %5393 = vmatprep.subr.bf16.mxu1 %v9205_v0 }
 0x2c4   :  { %911 = vmatprep.mubr.bf16.mxu0 %v9199_v1  ;;  %5407 = vmatprep.mubr.msk.bf16.mxu1 %vm6673_vm0, %v9205_v0 }
 0x2c6   :  { %882 = vmatpush1.bf16.msra.mxu0 %v6834_v29  ;;  %5394 = vmatpush3.bf16.msra.mxu1 %v6855_v37 }
 0x2c7   :  { %883 = vmatprep.subr.bf16.mxu0 %v6837_v30  ;;  %5395 = vmatprep.subr.bf16.mxu1 %v9205_v0 }
 0x2ca   :  { %884 = vmatpush1.bf16.msra.mxu0 %v6841_v32  ;;  %5396 = vmatpush3.bf16.msra.mxu1 %v6867_v40 }
 0x2cb   :  { %885 = vmatprep.subr.bf16.mxu0 %v6844_v33  ;;  %5397 = vmatprep.subr.bf16.mxu1 %v9205_v0 }
 0x2ce   :  { %886 = vmatpush1.bf16.msra.mxu0 %v6850_v35  ;;  %5398 = vmatpush3.bf16.msra.mxu1 %v6877_v43 }
 0x2cf   :  { %887 = vmatprep.subr.bf16.mxu0 %v6853_v36  ;;  %5399 = vmatprep.subr.bf16.mxu1 %v9205_v0 }
 0x2d2   :  { %888 = vmatpush1.bf16.msra.mxu0 %v6860_v38  ;;  %5400 = vmatpush3.bf16.msra.mxu1 %v6887_v46 }
 0x2d3   :  { %889 = vmatprep.subr.bf16.mxu0 %v6865_v39  ;;  %5401 = vmatprep.subr.bf16.mxu1 %v9205_v0 }
 0x2d6   :  { %890 = vmatpush1.bf16.msra.mxu0 %v6872_v41  ;;  %5402 = vmatpush3.bf16.msra.mxu1 %v6895_v48 }
 0x2d7   :  { %891 = vmatprep.subr.bf16.mxu0 %v6875_v42  ;;  %5403 = vmatprep.subr.bf16.mxu1 %v9205_v0 }
 0x2da   :  { %892 = vmatpush1.bf16.msra.mxu0 %v6882_v44  ;;  %5404 = vmatpush3.bf16.msra.mxu1 %v6901_v49 }
 0x2db   :  { %893 = vmatprep.subr.bf16.mxu0 %v6885_v45  ;;  %5405 = vmatprep.subr.bf16.mxu1 %v9205_v0 }
 0x2de   :  { %894 = vmatpush1.bf16.msra.mxu0 %v6892_v47  ;;  %5406 = vmatpush3.bf16.msra.mxu1 %v6908_v50 }
 0x2df   :  { %1000 = vmatprep.subr.bf16.mxu0 %v6825_v23  ;;  %5411 = vmatprep.subr.bf16.mxu1 %v9205_v0 }
 0x394   :  { %v794_v58 = vpop.f32.mrb[12].mxu0  ;;  %v835_v2 = vpop.f32.mrb[12].mxu1 }
 0x395   :  { %v842_v5 = vrot.slane %v794_v58, 6  ;;  %v796_v6 = vpop.f32.mrb[13].mxu0  ;;  %v5389_v7 = vpop.f32.mrb[13].mxu1  ;;  %v862_v31 = vrot.slane %v835_v2, 6 }
 0x396   :  { %v852_v8 = vrot.slane %v796_v6, 6  ;;  %v798_v10 = vpop.f32.mrb[14].mxu0  ;;  %v838_v11 = vpop.f32.mrb[14].mxu1 }
 0x397   :  { %v844_v12 = vadd.f32 %v842_v5, %v6965_v9  ;;  %v799_v13 = vpop.f32.mrb[15].mxu0  ;;  %v5390_v14 = vpop.f32.mrb[15].mxu1 }
 0x398   :  { %v854_v15 = vadd.f32 %v852_v8, %v6962_v4 }
 0x399   :  { %v4730_v16 = vmul.f32 -1.442695, %v844_v12 }
 0x39a   :  { %v4731_v17 = vmul.f32 -1.442695, %v854_v15 }
 0x39b   :  { %6081 = vpow2.f32 %v4730_v16 }
 0x39c   :  { %6083 = vpow2.f32 %v4731_v17 }
 0x3a5   :  { %v6082_v18 = vpop.eup %6081 }
 0x3a6   :  { %v6084_v19 = vpop.eup %6083  ;;  %v848_v21 = vadd.f32 1.0, %v6082_v18 }
 0x3a7   :  { %v858_v22 = vadd.f32 1.0, %v6084_v19 }
 0x3a8   :  { %6085 = vrcp.f32 %v848_v21 }
 0x3a9   :  { %6087 = vrcp.f32 %v858_v22 }
 0x3b2   :  { %v6086_v25 = vpop.eup %6085 }
 0x3b3   :  { %v6088_v51 = vpop.eup %6087  ;;  %v872_v52 = vmul.f32 %v6086_v25, %v870_v24  ;;  %v867_v56 = vsub.f32 1.0, %v6086_v25 }
 0x3b4   :  { %v864_v53 = vmul.f32 %v6088_v51, %v862_v31 }
 0x3b6   :  { %v865_v54 = vadd.f32 %v864_v53, %v6971_v28 }
 0x3b8   :  { %6089 = vtanh.f32 %v865_v54 }
 0x3c2   :  { %v6090_v57 = vpop.eup %6089 }
 0x3c3   :  { %v868_v55 = vmul.f32 %v6090_v57, %v867_v56 }
 0x3c5   :  { %v7062_v3 = vadd.f32 %v872_v52, %v868_v55 }
 0x3c7   :  { %874 = vst [vmem:[#allocation2] sm:$0x4] %v7062_v3  ;;  %v875_v58 = vpack.c.bf16 %v7062_v3, %v7062_v3  ;;  %v989_v24 = vrot.slane %v7062_v3, 7 }
 0x3c9   :  { %v877_v5 = vrot.slane %v875_v58, 1 }
 0x3cb   :  { %912 = vmatmul.mubr.bf16.vlgmr.msra.gmra.mrb[16].mxu0 %v877_v5  ;;  %5408 = vmatmul.mubr.bf16.vlgmr.msra.gmra.mrb[16].mxu1 %v877_v5 }
 0x3cc   :  { %1001 = vmatpush1.bf16.msra.mxu0 %v6828_v26  ;;  %5412 = vmatpush3.bf16.msra.mxu1 %v6846_v34 }
 0x3cd   :  { %1002 = vmatprep.subr.bf16.mxu0 %v6830_v27  ;;  %5413 = vmatprep.subr.bf16.mxu1 %v9205_v0 }
 0x3ce   :  { %1032 = vmatprep.mubr.bf16.mxu0 %v9199_v1  ;;  %5427 = vmatprep.mubr.msk.bf16.mxu1 %vm6673_vm0, %v9205_v0 }
 0x3d0   :  { %1003 = vmatpush1.bf16.msra.mxu0 %v6834_v29  ;;  %5414 = vmatpush3.bf16.msra.mxu1 %v6855_v37 }
 0x3d1   :  { %1004 = vmatprep.subr.bf16.mxu0 %v6837_v30  ;;  %5415 = vmatprep.subr.bf16.mxu1 %v9205_v0 }
 0x3d4   :  { %1005 = vmatpush1.bf16.msra.mxu0 %v6841_v32  ;;  %5416 = vmatpush3.bf16.msra.mxu1 %v6867_v40 }
 0x3d5   :  { %1006 = vmatprep.subr.bf16.mxu0 %v6844_v33  ;;  %5417 = vmatprep.subr.bf16.mxu1 %v9205_v0 }
 0x3d8   :  { %1007 = vmatpush1.bf16.msra.mxu0 %v6850_v35  ;;  %5418 = vmatpush3.bf16.msra.mxu1 %v6877_v43 }
 0x3d9   :  { %1008 = vmatprep.subr.bf16.mxu0 %v6853_v36  ;;  %5419 = vmatprep.subr.bf16.mxu1 %v9205_v0 }
 0x3dc   :  { %1009 = vmatpush1.bf16.msra.mxu0 %v6860_v38  ;;  %5420 = vmatpush3.bf16.msra.mxu1 %v6887_v46 }
 0x3dd   :  { %1010 = vmatprep.subr.bf16.mxu0 %v6865_v39  ;;  %5421 = vmatprep.subr.bf16.mxu1 %v9205_v0 }
 0x3e0   :  { %1011 = vmatpush1.bf16.msra.mxu0 %v6872_v41  ;;  %5422 = vmatpush3.bf16.msra.mxu1 %v6895_v48 }
 0x3e1   :  { %1012 = vmatprep.subr.bf16.mxu0 %v6875_v42  ;;  %5423 = vmatprep.subr.bf16.mxu1 %v9205_v0 }
 0x3e4   :  { %1013 = vmatpush1.bf16.msra.mxu0 %v6882_v44  ;;  %5424 = vmatpush3.bf16.msra.mxu1 %v6901_v49 }
 0x3e5   :  { %1014 = vmatprep.subr.bf16.mxu0 %v6885_v45  ;;  %5425 = vmatprep.subr.bf16.mxu1 %v9205_v0 }
 0x3e8   :  { %1015 = vmatpush1.bf16.msra.mxu0 %v6892_v47  ;;  %5426 = vmatpush3.bf16.msra.mxu1 %v6908_v50 }
 0x3e9   :  { %1119 = vmatprep.subr.bf16.mxu0 %v6825_v23  ;;  %5431 = vmatprep.subr.bf16.mxu1 %v9205_v0 }
 0x49e   :  { %v913_v62 = vpop.f32.mrb[16].mxu0  ;;  %v954_v2 = vpop.f32.mrb[16].mxu1 }
 0x49f   :  { %v961_v6 = vrot.slane %v913_v62, 5  ;;  %v915_v7 = vpop.f32.mrb[17].mxu0  ;;  %v5409_v8 = vpop.f32.mrb[17].mxu1  ;;  %v981_v31 = vrot.slane %v954_v2, 5 }
 0x4a0   :  { %v971_v10 = vrot.slane %v915_v7, 5  ;;  %v917_v11 = vpop.f32.mrb[18].mxu0  ;;  %v957_v12 = vpop.f32.mrb[18].mxu1 }
 0x4a1   :  { %v963_v13 = vadd.f32 %v961_v6, %v6965_v9  ;;  %v918_v14 = vpop.f32.mrb[19].mxu0  ;;  %v5410_v15 = vpop.f32.mrb[19].mxu1 }
 0x4a2   :  { %v973_v16 = vadd.f32 %v971_v10, %v6962_v4 }
 0x4a3   :  { %v4732_v17 = vmul.f32 -1.442695, %v963_v13 }
 0x4a4   :  { %v4733_v18 = vmul.f32 -1.442695, %v973_v16 }
 0x4a5   :  { %6091 = vpow2.f32 %v4732_v17 }
 0x4a6   :  { %6093 = vpow2.f32 %v4733_v18 }
 0x4af   :  { %v6092_v23 = vpop.eup %6091 }
 0x4b0   :  { %v6094_v19 = vpop.eup %6093  ;;  %v967_v21 = vadd.f32 1.0, %v6092_v23 }
 0x4b1   :  { %v977_v22 = vadd.f32 1.0, %v6094_v19 }
 0x4b2   :  { %6095 = vrcp.f32 %v967_v21 }
 0x4b3   :  { %6097 = vrcp.f32 %v977_v22 }
 0x4bc   :  { %v6096_v25 = vpop.eup %6095 }
 0x4bd   :  { %v6098_v51 = vpop.eup %6097  ;;  %v991_v52 = vmul.f32 %v6096_v25, %v989_v24  ;;  %v986_v56 = vsub.f32 1.0, %v6096_v25  ;;  %v7157_v24 = vld [vmem:[#allocation8] ss:$12 sps:$4 sm:$0xff]   ;;  %v7160_v25 = vld [vmem:[#allocation8 + $0x8] ss:$12 sps:$4 sm:$0xff]  }
 0x4be   :  { %v983_v53 = vmul.f32 %v6098_v51, %v981_v31  ;;  %v7163_v31 = vld [vmem:[#allocation8 + $0x1c] ss:$12 sps:$4 sm:$0xff]   ;;  %v7170_v51 = vld [vmem:[#allocation8 + $0x18] ss:$12 sps:$4 sm:$0xff]  }
 0x4c0   :  { %v984_v54 = vadd.f32 %v983_v53, %v6971_v28  ;;  %v7176_v53 = vld [vmem:[#allocation8 + $0x34] ss:$12 sps:$4 sm:$0xff]  }
 0x4c2   :  { %6099 = vtanh.f32 %v984_v54  ;;  %v7180_v54 = vld [vmem:[#allocation8 + $0x30] ss:$12 sps:$4 sm:$0xff]  }
 0x4cc   :  { %v6100_v57 = vpop.eup %6099 }
 0x4cd   :  { %v987_v55 = vmul.f32 %v6100_v57, %v986_v56  ;;  %v7183_v56 = vld [vmem:[#allocation8 + $0x38] ss:$12 sps:$4 sm:$0xff]  }
 0x4ce   :  { %v7186_v57 = vld [vmem:[#allocation8 + $0x4c] ss:$12 sps:$4 sm:$0xff]  }
 0x4cf   :  { %v7106_v58 = vadd.f32 %v991_v52, %v987_v55  ;;  %v7173_v52 = vld [vmem:[#allocation8 + $0x20] ss:$12 sps:$4 sm:$0xff]   ;;  %v7190_v55 = vld [vmem:[#allocation8 + $0x48] ss:$12 sps:$4 sm:$0xff]  }
 0x4d1   :  { %993 = vst [vmem:[#allocation2] sm:$0x8] %v7106_v58  ;;  %v994_v5 = vpack.c.bf16 %v7106_v58, %v7106_v58  ;;  %v1110_v10 = vrot.slane %v7106_v58, 7  ;;  %v7194_v58 = vld [vmem:[#allocation8 + $0x64] ss:$12 sps:$4 sm:$0xff]  }
 0x4d3   :  { %v996_v62 = vshrl.u32 %v994_v5, 16  ;;  %v7198_v5 = vld [vmem:[#allocation8 + $0x60] ss:$12 sps:$4 sm:$0xff]  }
 0x4d5   :  { %v998_v3 = vrot.slane %v996_v62, 1  ;;  %v7202_v62 = vld [vmem:[#allocation8 + $0x7c] ss:$12 sps:$4 sm:$0xff]  }
 0x4d7   :  { %1033 = vmatmul.mubr.bf16.vlgmr.msra.gmra.mrb[20].mxu0 %v998_v3  ;;  %5428 = vmatmul.mubr.bf16.vlgmr.msra.gmra.mrb[20].mxu1 %v998_v3  ;;  %v7206_v3 = vld [vmem:[#allocation8 + $0x78] ss:$12 sps:$4 sm:$0xff]  }
 0x4d8   :  { %1120 = vmatpush1.bf16.msra.mxu0 %v6828_v26  ;;  %5432 = vmatpush3.bf16.msra.mxu1 %v6846_v34  ;;  %v7144_v26 = vld [vmem:[#allocation8 + $0x4] ss:$12 sps:$4 sm:$0xff]  }
 0x4d9   :  { %1121 = vmatprep.subr.bf16.mxu0 %v6830_v27  ;;  %5433 = vmatprep.subr.bf16.mxu1 %v9205_v0 }
 0x4da   :  { %1151 = vmatprep.mubr.bf16.mxu0 %v9199_v1  ;;  %5447 = vmatprep.mubr.msk.bf16.mxu1 %vm6673_vm0, %v9205_v0 }
 0x4dc   :  { %1122 = vmatpush1.bf16.msra.mxu0 %v6834_v29  ;;  %5434 = vmatpush3.bf16.msra.mxu1 %v6855_v37 }
 0x4dd   :  { %1123 = vmatprep.subr.bf16.mxu0 %v6837_v30  ;;  %5435 = vmatprep.subr.bf16.mxu1 %v9205_v0 }
 0x4e0   :  { %1124 = vmatpush1.bf16.msra.mxu0 %v6841_v32  ;;  %5436 = vmatpush3.bf16.msra.mxu1 %v6867_v40 }
 0x4e1   :  { %1125 = vmatprep.subr.bf16.mxu0 %v6844_v33  ;;  %5437 = vmatprep.subr.bf16.mxu1 %v9205_v0 }
 0x4e4   :  { %1126 = vmatpush1.bf16.msra.mxu0 %v6850_v35  ;;  %5438 = vmatpush3.bf16.msra.mxu1 %v6877_v43 }
 0x4e5   :  { %1127 = vmatprep.subr.bf16.mxu0 %v6853_v36  ;;  %5439 = vmatprep.subr.bf16.mxu1 %v9205_v0 }
 0x4e8   :  { %1128 = vmatpush1.bf16.msra.mxu0 %v6860_v38  ;;  %5440 = vmatpush3.bf16.msra.mxu1 %v6887_v46 }
 0x4e9   :  { %1129 = vmatprep.subr.bf16.mxu0 %v6865_v39  ;;  %5441 = vmatprep.subr.bf16.mxu1 %v9205_v0 }
 0x4ec   :  { %1130 = vmatpush1.bf16.msra.mxu0 %v6872_v41  ;;  %5442 = vmatpush3.bf16.msra.mxu1 %v6895_v48 }
 0x4ed   :  { %1131 = vmatprep.subr.bf16.mxu0 %v6875_v42  ;;  %5443 = vmatprep.subr.bf16.mxu1 %v9205_v0 }
 0x4f0   :  { %1132 = vmatpush1.bf16.msra.mxu0 %v6882_v44  ;;  %5444 = vmatpush3.bf16.msra.mxu1 %v6901_v49 }
 0x4f1   :  { %1133 = vmatprep.subr.bf16.mxu0 %v6885_v45  ;;  %5445 = vmatprep.subr.bf16.mxu1 %v9205_v0 }
 0x4f4   :  { %1134 = vmatpush1.bf16.msra.mxu0 %v6892_v47  ;;  %5446 = vmatpush3.bf16.msra.mxu1 %v6908_v50 }
 0x4f5   :  { %1240 = vmatprep.subr.bf16.mxu0 %v7144_v26  ;;  %5451 = vmatprep.subr.bf16.mxu1 %v9205_v0 }
 0x5aa   :  { %v1034_v27 = vpop.f32.mrb[20].mxu0  ;;  %v1075_v29 = vpop.f32.mrb[20].mxu1 }
 0x5ab   :  { %v1082_v30 = vrot.slane %v1034_v27, 4  ;;  %v1036_v32 = vpop.f32.mrb[21].mxu0  ;;  %v5429_v33 = vpop.f32.mrb[21].mxu1  ;;  %v1102_v12 = vrot.slane %v1075_v29, 4 }
 0x5ac   :  { %v1092_v34 = vrot.slane %v1036_v32, 4  ;;  %v1038_v35 = vpop.f32.mrb[22].mxu0  ;;  %v1078_v36 = vpop.f32.mrb[22].mxu1 }
 0x5ad   :  { %v1084_v37 = vadd.f32 %v1082_v30, %v6965_v9  ;;  %v1039_v38 = vpop.f32.mrb[23].mxu0  ;;  %v5430_v39 = vpop.f32.mrb[23].mxu1 }
 0x5ae   :  { %v1094_v40 = vadd.f32 %v1092_v34, %v6962_v4 }
 0x5af   :  { %v4734_v41 = vmul.f32 -1.442695, %v1084_v37 }
 0x5b0   :  { %v4735_v42 = vmul.f32 -1.442695, %v1094_v40 }
 0x5b1   :  { %6101 = vpow2.f32 %v4734_v41 }
 0x5b2   :  { %6103 = vpow2.f32 %v4735_v42 }
 0x5bb   :  { %v6102_v2 = vpop.eup %6101 }
 0x5bc   :  { %v6104_v6 = vpop.eup %6103  ;;  %v1088_v7 = vadd.f32 1.0, %v6102_v2 }
 0x5bd   :  { %v1098_v8 = vadd.f32 1.0, %v6104_v6 }
 0x5be   :  { %6105 = vrcp.f32 %v1088_v7 }
 0x5bf   :  { %6107 = vrcp.f32 %v1098_v8 }
 0x5c8   :  { %v6106_v11 = vpop.eup %6105 }
 0x5c9   :  { %v6108_v13 = vpop.eup %6107  ;;  %v1112_v14 = vmul.f32 %v6106_v11, %v1110_v10  ;;  %v1107_v17 = vsub.f32 1.0, %v6106_v11 }
 0x5ca   :  { %v1104_v15 = vmul.f32 %v6108_v13, %v1102_v12 }
 0x5cc   :  { %v1105_v16 = vadd.f32 %v1104_v15, %v6971_v28 }
 0x5ce   :  { %6109 = vtanh.f32 %v1105_v16  ;;  %v6285_v16 = vld [vmem:[#allocation8 + $0x50] ss:$12 sps:$4 sm:$0xff]  }
 0x5d8   :  { %v6110_v18 = vpop.eup %6109 }
 0x5d9   :  { %v1108_v23 = vmul.f32 %v6110_v18, %v1107_v17  ;;  %v6286_v17 = vld [vmem:[#allocation8 + $0x68] ss:$12 sps:$4 sm:$0xff]   ;;  %v6287_v18 = vld [vmem:[#allocation8 + $0x80] ss:$12 sps:$4 sm:$0xff]  }
 0x5db   :  { %v7152_v19 = vadd.f32 %v1112_v14, %v1108_v23  ;;  %v6288_v23 = vld [vmem:[#allocation8 + $0x90] ss:$12 sps:$4 sm:$0xff]  }
 0x5dd   :  { %1114 = vst [vmem:[#allocation2] sm:$0x10] %v7152_v19  ;;  %v1115_v21 = vpack.c.bf16 %v7152_v19, %v7152_v19  ;;  %v1229_v39 = vrot.slane %v7152_v19, 7  ;;  %v6289_v19 = vld [vmem:[#allocation8 + $0x98] ss:$12 sps:$4 sm:$0xff]  }
 0x5df   :  { %v1117_v22 = vrot.slane %v1115_v21, 2  ;;  %v6290_v21 = vld [vmem:[#allocation8 + $0xac] ss:$12 sps:$4 sm:$0xff]  }
 0x5e1   :  { %1152 = vmatmul.mubr.bf16.vlgmr.msra.gmra.mrb[24].mxu0 %v1117_v22  ;;  %5448 = vmatmul.mubr.bf16.vlgmr.msra.gmra.mrb[24].mxu1 %v1117_v22  ;;  %v6291_v22 = vld [vmem:[#allocation8 + $0xa8] ss:$12 sps:$4 sm:$0xff]  }
 0x5e2   :  { %1241 = vmatpush1.bf16.msra.mxu0 %v7157_v24  ;;  %5452 = vmatpush3.bf16.msra.mxu1 %v7160_v25 }
 0x5e3   :  { %1242 = vmatprep.subr.bf16.mxu0 %v7163_v31  ;;  %5453 = vmatprep.subr.bf16.mxu1 %v9205_v0 }
 0x5e4   :  { %1272 = vmatprep.mubr.bf16.mxu0 %v9199_v1  ;;  %5467 = vmatprep.mubr.msk.bf16.mxu1 %vm6673_vm0, %v9205_v0 }
 0x5e6   :  { %1243 = vmatpush1.bf16.msra.mxu0 %v7170_v51  ;;  %5454 = vmatpush3.bf16.msra.mxu1 %v7173_v52 }
 0x5e7   :  { %1244 = vmatprep.subr.bf16.mxu0 %v7176_v53  ;;  %5455 = vmatprep.subr.bf16.mxu1 %v9205_v0 }
 0x5ea   :  { %1245 = vmatpush1.bf16.msra.mxu0 %v7180_v54  ;;  %5456 = vmatpush3.bf16.msra.mxu1 %v7183_v56 }
 0x5eb   :  { %1246 = vmatprep.subr.bf16.mxu0 %v7186_v57  ;;  %5457 = vmatprep.subr.bf16.mxu1 %v9205_v0 }
 0x5ee   :  { %1247 = vmatpush1.bf16.msra.mxu0 %v7190_v55  ;;  %5458 = vmatpush3.bf16.msra.mxu1 %v6877_v43  ;;  %v7210_v43 = vld [vmem:[#allocation8 + $0x94] ss:$12 sps:$4 sm:$0xff]  }
 0x5ef   :  { %1248 = vmatprep.subr.bf16.mxu0 %v7194_v58  ;;  %5459 = vmatprep.subr.bf16.mxu1 %v9205_v0 }
 0x5f2   :  { %1249 = vmatpush1.bf16.msra.mxu0 %v7198_v5  ;;  %5460 = vmatpush3.bf16.msra.mxu1 %v6887_v46 }
 0x5f3   :  { %1250 = vmatprep.subr.bf16.mxu0 %v7202_v62  ;;  %5461 = vmatprep.subr.bf16.mxu1 %v9205_v0 }
 0x5f6   :  { %1251 = vmatpush1.bf16.msra.mxu0 %v7206_v3  ;;  %5462 = vmatpush3.bf16.msra.mxu1 %v6895_v48 }
 0x5f7   :  { %1252 = vmatprep.subr.bf16.mxu0 %v7210_v43  ;;  %5463 = vmatprep.subr.bf16.mxu1 %v9205_v0 }
 0x5fa   :  { %1253 = vmatpush1.bf16.msra.mxu0 %v6882_v44  ;;  %5464 = vmatpush3.bf16.msra.mxu1 %v6901_v49 }
 0x5fb   :  { %1254 = vmatprep.subr.bf16.mxu0 %v6885_v45  ;;  %5465 = vmatprep.subr.bf16.mxu1 %v9205_v0 }
 0x5fe   :  { %1255 = vmatpush1.bf16.msra.mxu0 %v6892_v47  ;;  %5466 = vmatpush3.bf16.msra.mxu1 %v6908_v50 }
 0x5ff   :  { %1359 = vmatprep.subr.bf16.mxu0 %v7144_v26  ;;  %5471 = vmatprep.subr.bf16.mxu1 %v9205_v0 }
 0x6b4   :  { %v1153_v46 = vpop.f32.mrb[24].mxu0  ;;  %v1194_v48 = vpop.f32.mrb[24].mxu1 }
 0x6b5   :  { %v1201_v27 = vrot.slane %v1153_v46, 3  ;;  %v1155_v29 = vpop.f32.mrb[25].mxu0  ;;  %v5449_v30 = vpop.f32.mrb[25].mxu1  ;;  %v1221_v41 = vrot.slane %v1194_v48, 3 }
 0x6b6   :  { %v1211_v44 = vrot.slane %v1155_v29, 3  ;;  %v1157_v32 = vpop.f32.mrb[26].mxu0  ;;  %v1197_v49 = vpop.f32.mrb[26].mxu1 }
 0x6b7   :  { %v1203_v45 = vadd.f32 %v1201_v27, %v6965_v9  ;;  %v1158_v33 = vpop.f32.mrb[27].mxu0  ;;  %v5450_v34 = vpop.f32.mrb[27].mxu1 }
 0x6b8   :  { %v1213_v47 = vadd.f32 %v1211_v44, %v6962_v4 }
 0x6b9   :  { %v4736_v35 = vmul.f32 -1.442695, %v1203_v45 }
 0x6ba   :  { %v4737_v50 = vmul.f32 -1.442695, %v1213_v47 }
 0x6bb   :  { %6111 = vpow2.f32 %v4736_v35 }
 0x6bc   :  { %6113 = vpow2.f32 %v4737_v50 }
 0x6c5   :  { %v6112_v26 = vpop.eup %6111 }
 0x6c6   :  { %v6114_v36 = vpop.eup %6113  ;;  %v1207_v37 = vadd.f32 1.0, %v6112_v26 }
 0x6c7   :  { %v1217_v38 = vadd.f32 1.0, %v6114_v36 }
 0x6c8   :  { %6115 = vrcp.f32 %v1207_v37 }
 0x6c9   :  { %6117 = vrcp.f32 %v1217_v38 }
 0x6d2   :  { %v6116_v40 = vpop.eup %6115 }
 0x6d3   :  { %v6118_v42 = vpop.eup %6117  ;;  %v1231_v2 = vmul.f32 %v6116_v40, %v1229_v39  ;;  %v1226_v8 = vsub.f32 1.0, %v6116_v40  ;;  %v7271_v39 = vld [vmem:[#allocation9] ss:$16 sps:$4 sm:$0xff]   ;;  %v7273_v40 = vld [vmem:[#allocation9 + $0x8] ss:$16 sps:$4 sm:$0xff]  }
 0x6d4   :  { %v1223_v6 = vmul.f32 %v6118_v42, %v1221_v41  ;;  %v7275_v42 = vld [vmem:[#allocation9 + $0x24] ss:$16 sps:$4 sm:$0xff]  }
 0x6d6   :  { %v1224_v7 = vadd.f32 %v1223_v6, %v6971_v28  ;;  %v7283_v6 = vld [vmem:[#allocation9 + $0x2c] ss:$16 sps:$4 sm:$0xff]  }
 0x6d8   :  { %6119 = vtanh.f32 %v1224_v7  ;;  %v7285_v7 = vld [vmem:[#allocation9 + $0x44] ss:$16 sps:$4 sm:$0xff]  }
 0x6e2   :  { %v6120_v10 = vpop.eup %6119 }
 0x6e3   :  { %v1227_v11 = vmul.f32 %v6120_v10, %v1226_v8  ;;  %v7287_v8 = vld [vmem:[#allocation9 + $0x28] ss:$16 sps:$4 sm:$0xff]   ;;  %v7290_v10 = vld [vmem:[#allocation9 + $0x40] ss:$16 sps:$4 sm:$0xff]  }
 0x6e5   :  { %v7226_v12 = vadd.f32 %v1231_v2, %v1227_v11  ;;  %v7279_v2 = vld [vmem:[#allocation9 + $0x20] ss:$16 sps:$4 sm:$0xff]   ;;  %v7295_v11 = vld [vmem:[#allocation9 + $0x4c] ss:$16 sps:$4 sm:$0xff]  }
 0x6e7   :  { %1233 = vst [vmem:[#allocation2] sm:$0x20] %v7226_v12  ;;  %v1234_v13 = vpack.c.bf16 %v7226_v12, %v7226_v12  ;;  %v1350_v32 = vrot.slane %v7226_v12, 7  ;;  %v7297_v12 = vld [vmem:[#allocation9 + $0x64] ss:$16 sps:$4 sm:$0xff]  }
 0x6e9   :  { %v1236_v14 = vshrl.u32 %v1234_v13, 16  ;;  %v7299_v13 = vld [vmem:[#allocation9 + $0x48] ss:$16 sps:$4 sm:$0xff]  }
 0x6eb   :  { %v1238_v15 = vrot.slane %v1236_v14, 2  ;;  %v7302_v14 = vld [vmem:[#allocation9 + $0x60] ss:$16 sps:$4 sm:$0xff]  }
 0x6ed   :  { %1273 = vmatmul.mubr.bf16.vlgmr.msra.gmra.mrb[28].mxu0 %v1238_v15  ;;  %5468 = vmatmul.mubr.bf16.vlgmr.msra.gmra.mrb[28].mxu1 %v1238_v15  ;;  %v7307_v15 = vld [vmem:[#allocation9 + $0x6c] ss:$16 sps:$4 sm:$0xff]  }
 0x6ee   :  { %1360 = vmatpush1.bf16.msra.mxu0 %v7157_v24  ;;  %5472 = vmatpush3.bf16.msra.mxu1 %v7160_v25  ;;  %v6292_v24 = vld [vmem:[#allocation8 + $0xb0] ss:$12 sps:$4 sm:$0xff]   ;;  %v7256_v25 = vld [vmem:[#allocation9 + $0x4] ss:$16 sps:$4 sm:$0xff]  }
 0x6ef   :  { %1361 = vmatprep.subr.bf16.mxu0 %v7163_v31  ;;  %5473 = vmatprep.subr.bf16.mxu1 %v9205_v0  ;;  %v7258_v31 = vld [vmem:[#allocation9 + $0xc] ss:$16 sps:$4 sm:$0xff]  }
 0x6f0   :  { %1391 = vmatprep.mubr.bf16.mxu0 %v9199_v1  ;;  %5487 = vmatprep.mubr.msk.bf16.mxu1 %vm6673_vm0, %v9205_v0  ;;  %v7422_v1 = vld [vmem:[#allocation9 + $0x1a0] ss:$16 sps:$4 sm:$0xff]  }
 0x6f2   :  { %1362 = vmatpush1.bf16.msra.mxu0 %v7170_v51  ;;  %5474 = vmatpush3.bf16.msra.mxu1 %v7173_v52 }
 0x6f3   :  { %1363 = vmatprep.subr.bf16.mxu0 %v7176_v53  ;;  %5475 = vmatprep.subr.bf16.mxu1 %v9205_v0 }
 0x6f6   :  { %1364 = vmatpush1.bf16.msra.mxu0 %v7180_v54  ;;  %5476 = vmatpush3.bf16.msra.mxu1 %v7183_v56 }
 0x6f7   :  { %1365 = vmatprep.subr.bf16.mxu0 %v7186_v57  ;;  %5477 = vmatprep.subr.bf16.mxu1 %v9205_v0 }
 0x6fa   :  { %1366 = vmatpush1.bf16.msra.mxu0 %v7190_v55  ;;  %5478 = vmatpush3.bf16.msra.mxu1 %v6285_v16  ;;  %v7309_v16 = vld [vmem:[#allocation9 + $0x84] ss:$16 sps:$4 sm:$0xff]  }
 0x6fb   :  { %1367 = vmatprep.subr.bf16.mxu0 %v7194_v58  ;;  %5479 = vmatprep.subr.bf16.mxu1 %v9205_v0 }
 0x6fe   :  { %1368 = vmatpush1.bf16.msra.mxu0 %v7198_v5  ;;  %5480 = vmatpush3.bf16.msra.mxu1 %v6286_v17  ;;  %v7311_v17 = vld [vmem:[#allocation9 + $0x68] ss:$16 sps:$4 sm:$0xff]  }
 0x6ff   :  { %1369 = vmatprep.subr.bf16.mxu0 %v7202_v62  ;;  %5481 = vmatprep.subr.bf16.mxu1 %v9205_v0 }
 0x702   :  { %1370 = vmatpush1.bf16.msra.mxu0 %v7206_v3  ;;  %5482 = vmatpush3.bf16.msra.mxu1 %v6287_v18  ;;  %v7314_v18 = vld [vmem:[#allocation9 + $0x80] ss:$16 sps:$4 sm:$0xff]  }
 0x703   :  { %1371 = vmatprep.subr.bf16.mxu0 %v7210_v43  ;;  %5483 = vmatprep.subr.bf16.mxu1 %v9205_v0 }
 0x706   :  { %1372 = vmatpush1.bf16.msra.mxu0 %v6288_v23  ;;  %5484 = vmatpush3.bf16.msra.mxu1 %v6289_v19  ;;  %v7319_v23 = vld [vmem:[#allocation9 + $0x8c] ss:$16 sps:$4 sm:$0xff]   ;;  %v7321_v19 = vld [vmem:[#allocation9 + $0xa4] ss:$16 sps:$4 sm:$0xff]  }
 0x707   :  { %1373 = vmatprep.subr.bf16.mxu0 %v6290_v21  ;;  %5485 = vmatprep.subr.bf16.mxu1 %v9205_v0  ;;  %9497 = vst [vmem:[#allocation23_spill] sm:$0xff] %v7319_v23  ;;  %v7323_v21 = vld [vmem:[#allocation9 + $0x88] ss:$16 sps:$4 sm:$0xff]   ;;  %v7436_v0 = vld [vmem:[#allocation9 + $0x1cc] ss:$16 sps:$4 sm:$0xff]  }
 0x708   :  { %9498 = vst [vmem:[#allocation24_spill] sm:$0xff] %v7323_v21  ;;  %9517 = vst [vmem:[#allocation43_spill] sm:$0xff] %v7436_v0 }
 0x70a   :  { %1374 = vmatpush1.bf16.msra.mxu0 %v6291_v22  ;;  %5486 = vmatpush3.bf16.msra.mxu1 %v6292_v24  ;;  %v7326_v22 = vld [vmem:[#allocation9 + $0xa0] ss:$16 sps:$4 sm:$0xff]   ;;  %v7331_v24 = vld [vmem:[#allocation9 + $0xac] ss:$16 sps:$4 sm:$0xff]  }
 0x70b   :  { %1983 = vmatprep.subr.bf16.mxu0 %v7256_v25  ;;  %2024 = vmatprep.subr.bf16.mxu1 %v7258_v31  ;;  %9499 = vst [vmem:[#allocation25_spill] sm:$0xff] %v7331_v24 }
 0x7c0   :  { %v1274_v51 = vpop.f32.mrb[28].mxu0  ;;  %v1315_v52 = vpop.f32.mrb[28].mxu1 }
 0x7c1   :  { %v1322_v53 = vrot.slane %v1274_v51, 2  ;;  %v1276_v54 = vpop.f32.mrb[29].mxu0  ;;  %v5469_v56 = vpop.f32.mrb[29].mxu1  ;;  %v1342_v45 = vrot.slane %v1315_v52, 2  ;;  %v7333_v51 = vld [vmem:[#allocation9 + $0xc4] ss:$16 sps:$4 sm:$0xff]  }
 0x7c2   :  { %v1332_v57 = vrot.slane %v1276_v54, 2  ;;  %v1278_v55 = vpop.f32.mrb[30].mxu0  ;;  %v1318_v58 = vpop.f32.mrb[30].mxu1  ;;  %v7335_v52 = vld [vmem:[#allocation9 + $0xa8] ss:$16 sps:$4 sm:$0xff]  }
 0x7c3   :  { %v1324_v5 = vadd.f32 %v1322_v53, %v6965_v9  ;;  %v1279_v62 = vpop.f32.mrb[31].mxu0  ;;  %v5470_v3 = vpop.f32.mrb[31].mxu1  ;;  %9500 = vst [vmem:[#allocation26_spill] sm:$0xff] %v7335_v52  ;;  %v7338_v53 = vld [vmem:[#allocation9 + $0xc0] ss:$16 sps:$4 sm:$0xff]  }
 0x7c4   :  { %v1334_v43 = vadd.f32 %v1332_v57, %v6962_v4  ;;  %v7343_v54 = vld [vmem:[#allocation9 + $0xcc] ss:$16 sps:$4 sm:$0xff]   ;;  %v7345_v56 = vld [vmem:[#allocation9 + $0xe4] ss:$16 sps:$4 sm:$0xff]   ;;  %v7347_v57 = vld [vmem:[#allocation9 + $0xc8] ss:$16 sps:$4 sm:$0xff]  }
 0x7c5   :  { %v4738_v46 = vmul.f32 -1.442695, %v1324_v5  ;;  %9501 = vst [vmem:[#allocation27_spill] sm:$0xff] %v7343_v54  ;;  %9502 = vst [vmem:[#allocation28_spill] sm:$0xff] %v7347_v57  ;;  %v7350_v55 = vld [vmem:[#allocation9 + $0xe0] ss:$16 sps:$4 sm:$0xff]  }
 0x7c6   :  { %v4739_v48 = vmul.f32 -1.442695, %v1334_v43  ;;  %v7355_v58 = vld [vmem:[#allocation9 + $0xec] ss:$16 sps:$4 sm:$0xff]   ;;  %v7357_v5 = vld [vmem:[#allocation9 + $0x104] ss:$16 sps:$4 sm:$0xff]  }
 0x7c7   :  { %6121 = vpow2.f32 %v4738_v46  ;;  %9503 = vst [vmem:[#allocation29_spill] sm:$0xff] %v7355_v58  ;;  %v7359_v62 = vld [vmem:[#allocation9 + $0xe8] ss:$16 sps:$4 sm:$0xff]   ;;  %v7362_v3 = vld [vmem:[#allocation9 + $0x100] ss:$16 sps:$4 sm:$0xff]  }
 0x7c8   :  { %6123 = vpow2.f32 %v4739_v48  ;;  %9504 = vst [vmem:[#allocation30_spill] sm:$0xff] %v7359_v62  ;;  %v7367_v43 = vld [vmem:[#allocation9 + $0x10c] ss:$16 sps:$4 sm:$0xff]   ;;  %v7369_v46 = vld [vmem:[#allocation9 + $0x124] ss:$16 sps:$4 sm:$0xff]  }
 0x7c9   :  { %9505 = vst [vmem:[#allocation31_spill] sm:$0xff] %v7367_v43  ;;  %v7371_v48 = vld [vmem:[#allocation9 + $0x108] ss:$16 sps:$4 sm:$0xff]  }
 0x7ca   :  { %9506 = vst [vmem:[#allocation32_spill] sm:$0xff] %v7371_v48 }
 0x7d1   :  { %v6122_v27 = vpop.eup %6121 }
 0x7d2   :  { %v6124_v29 = vpop.eup %6123  ;;  %v1328_v30 = vadd.f32 1.0, %v6122_v27  ;;  %v7374_v27 = vld [vmem:[#allocation9 + $0x120] ss:$16 sps:$4 sm:$0xff]  }
 0x7d3   :  { %v1338_v44 = vadd.f32 1.0, %v6124_v29  ;;  %v7379_v29 = vld [vmem:[#allocation9 + $0x12c] ss:$16 sps:$4 sm:$0xff]  }
 0x7d4   :  { %6125 = vrcp.f32 %v1328_v30  ;;  %9507 = vst [vmem:[#allocation33_spill] sm:$0xff] %v7379_v29  ;;  %v7381_v30 = vld [vmem:[#allocation9 + $0x144] ss:$16 sps:$4 sm:$0xff]  }
 0x7d5   :  { %6127 = vrcp.f32 %v1338_v44  ;;  %v7383_v44 = vld [vmem:[#allocation9 + $0x128] ss:$16 sps:$4 sm:$0xff]  }
 0x7d6   :  { %9508 = vst [vmem:[#allocation34_spill] sm:$0xff] %v7383_v44 }
 0x7de   :  { %v6126_v49 = vpop.eup %6125 }
 0x7df   :  { %v6128_v33 = vpop.eup %6127  ;;  %v1352_v34 = vmul.f32 %v6126_v49, %v1350_v32  ;;  %v1347_v50 = vsub.f32 1.0, %v6126_v49  ;;  %v7386_v32 = vld [vmem:[#allocation9 + $0x140] ss:$16 sps:$4 sm:$0xff]   ;;  %v7391_v49 = vld [vmem:[#allocation9 + $0x14c] ss:$16 sps:$4 sm:$0xff]  }
 0x7e0   :  { %v1344_v47 = vmul.f32 %v6128_v33, %v1342_v45  ;;  %9509 = vst [vmem:[#allocation35_spill] sm:$0xff] %v7391_v49  ;;  %v7393_v45 = vld [vmem:[#allocation9 + $0x164] ss:$16 sps:$4 sm:$0xff]   ;;  %v7395_v33 = vld [vmem:[#allocation9 + $0x148] ss:$16 sps:$4 sm:$0xff]  }
 0x7e1   :  { %9510 = vst [vmem:[#allocation36_spill] sm:$0xff] %v7395_v33 }
 0x7e2   :  { %v1345_v35 = vadd.f32 %v1344_v47, %v6971_v28  ;;  %v7400_v47 = vld [vmem:[#allocation9 + $0x16c] ss:$16 sps:$4 sm:$0xff]  }
 0x7e3   :  { %9511 = vst [vmem:[#allocation37_spill] sm:$0xff] %v7400_v47 }
 0x7e4   :  { %6129 = vtanh.f32 %v1345_v35  ;;  %v7402_v35 = vld [vmem:[#allocation9 + $0x184] ss:$16 sps:$4 sm:$0xff]  }
 0x7ee   :  { %v6130_v26 = vpop.eup %6129 }
 0x7ef   :  { %v1348_v36 = vmul.f32 %v6130_v26, %v1347_v50  ;;  %v7406_v50 = vld [vmem:[#allocation9 + $0x168] ss:$16 sps:$4 sm:$0xff]   ;;  %v7410_v26 = vld [vmem:[#allocation9 + $0x180] ss:$16 sps:$4 sm:$0xff]  }
 0x7f0   :  { %9512 = vst [vmem:[#allocation38_spill] sm:$0xff] %v7406_v50 }
 0x7f1   :  { %v7266_v37 = vadd.f32 %v1352_v34, %v1348_v36  ;;  %v7397_v34 = vld [vmem:[#allocation9 + $0x160] ss:$16 sps:$4 sm:$0xff]   ;;  %v7412_v36 = vld [vmem:[#allocation9 + $0x18c] ss:$16 sps:$4 sm:$0xff]  }
 0x7f2   :  { %9513 = vst [vmem:[#allocation39_spill] sm:$0xff] %v7412_v36 }
 0x7f3   :  { %1354 = vst [vmem:[#allocation2] sm:$0x40] %v7266_v37  ;;  %v1355_v38 = vpack.c.bf16 %v7266_v37, %v7266_v37 }
 0x7f5   :  { %v1357_v41 = vrot.slane %v1355_v38, 3  ;;  %v7415_v38 = vld [vmem:[#allocation9 + $0x1a4] ss:$16 sps:$4 sm:$0xff]  }
 0x7f7   :  { %1392 = vmatmul.mubr.bf16.vlgmr.msra.gmra.mrb[32].mxu0 %v1357_v41  ;;  %5488 = vmatmul.mubr.bf16.vlgmr.msra.gmra.mrb[32].mxu1 %v1357_v41  ;;  %v7418_v41 = vld [vmem:[#allocation9 + $0x188] ss:$16 sps:$4 sm:$0xff]  }
 0x7f8   :  { %1984 = vmatpush1.bf16.msra.mxu0 %v7271_v39  ;;  %2025 = vmatpush1.bf16.msra.mxu1 %v7273_v40  ;;  %9514 = vst [vmem:[#allocation40_spill] sm:$0xff] %v7418_v41 }
 0x7f9   :  { %1985 = vmatprep.subr.bf16.mxu0 %v7275_v42  ;;  %2026 = vmatprep.subr.bf16.mxu1 %v7283_v6 }
 0x7fc   :  { %1986 = vmatpush1.bf16.msra.mxu0 %v7279_v2  ;;  %2027 = vmatpush1.bf16.msra.mxu1 %v7287_v8 }
 0x7fd   :  { %1987 = vmatprep.subr.bf16.mxu0 %v7285_v7  ;;  %2028 = vmatprep.subr.bf16.mxu1 %v7295_v11 }
 0x800   :  { %1988 = vmatpush1.bf16.msra.mxu0 %v7290_v10  ;;  %2029 = vmatpush1.bf16.msra.mxu1 %v7299_v13 }
 0x801   :  { %1989 = vmatprep.subr.bf16.mxu0 %v7297_v12  ;;  %2030 = vmatprep.subr.bf16.mxu1 %v7307_v15 }
 0x804   :  { %1990 = vmatpush1.bf16.msra.mxu0 %v7302_v14  ;;  %2031 = vmatpush1.bf16.msra.mxu1 %v7311_v17 }
 0x805   :  { %1991 = vmatprep.subr.bf16.mxu0 %v7309_v16  ;;  %2032 = vmatprep.subr.bf16.mxu1 %v7319_v23 }
 0x808   :  { %1992 = vmatpush1.bf16.msra.mxu0 %v7314_v18  ;;  %2033 = vmatpush1.bf16.msra.mxu1 %v7323_v21 }
 0x809   :  { %1993 = vmatprep.subr.bf16.mxu0 %v7321_v19  ;;  %2034 = vmatprep.subr.bf16.mxu1 %v7331_v24 }
 0x80c   :  { %1994 = vmatpush1.bf16.msra.mxu0 %v7326_v22  ;;  %2035 = vmatpush1.bf16.msra.mxu1 %v7335_v52 }
 0x80d   :  { %1995 = vmatprep.subr.bf16.mxu0 %v7333_v51  ;;  %2036 = vmatprep.subr.bf16.mxu1 %v7343_v54 }
 0x810   :  { %1996 = vmatpush1.bf16.msra.mxu0 %v7338_v53  ;;  %2037 = vmatpush1.bf16.msra.mxu1 %v7347_v57 }
 0x811   :  { %1997 = vmatprep.subr.bf16.mxu0 %v7345_v56  ;;  %2038 = vmatprep.subr.bf16.mxu1 %v7355_v58 }
 0x814   :  { %1998 = vmatpush1.bf16.msra.mxu0 %v7350_v55  ;;  %2039 = vmatpush1.bf16.msra.mxu1 %v7359_v62 }
 0x815   :  { %1999 = vmatprep.subr.bf16.mxu0 %v7357_v5  ;;  %2040 = vmatprep.subr.bf16.mxu1 %v7367_v43 }
 0x818   :  { %2000 = vmatpush1.bf16.msra.mxu0 %v7362_v3  ;;  %2041 = vmatpush1.bf16.msra.mxu1 %v7371_v48 }
 0x819   :  { %2001 = vmatprep.subr.bf16.mxu0 %v7369_v46  ;;  %2042 = vmatprep.subr.bf16.mxu1 %v7379_v29 }
 0x81c   :  { %2002 = vmatpush1.bf16.msra.mxu0 %v7374_v27  ;;  %2043 = vmatpush1.bf16.msra.mxu1 %v7383_v44 }
 0x81d   :  { %2003 = vmatprep.subr.bf16.mxu0 %v7381_v30  ;;  %2044 = vmatprep.subr.bf16.mxu1 %v7391_v49 }
 0x820   :  { %2004 = vmatpush1.bf16.msra.mxu0 %v7386_v32  ;;  %2045 = vmatpush1.bf16.msra.mxu1 %v7395_v33  ;;  %v9521_v33 = vmov 0.0  }
 0x821   :  { %2005 = vmatprep.subr.bf16.mxu0 %v7393_v45  ;;  %2046 = vmatprep.subr.bf16.mxu1 %v7400_v47  ;;  %v7453_v47 = vld [vmem:[#allocation9 + $0x1e8] ss:$16 sps:$4 sm:$0xff]  }
 0x822   :  { %9520 = vst [vmem:[#allocation46_spill] sm:$0xff] %v7453_v47 }
 0x824   :  { %2006 = vmatpush1.bf16.msra.mxu0 %v7397_v34  ;;  %2047 = vmatpush1.bf16.msra.mxu1 %v7406_v50  ;;  %v7442_v50 = vld [vmem:[#allocation9 + $0x1c8] ss:$16 sps:$4 sm:$0xff]  }
 0x825   :  { %2007 = vmatprep.subr.bf16.mxu0 %v7402_v35  ;;  %2048 = vmatprep.subr.bf16.mxu1 %v7412_v36  ;;  %v7439_v36 = vld [vmem:[#allocation9 + $0x1e4] ss:$16 sps:$4 sm:$0xff]   ;;  %9518 = vst [vmem:[#allocation44_spill] sm:$0xff] %v7442_v50 }
 0x828   :  { %2008 = vmatpush1.bf16.msra.mxu0 %v7410_v26  ;;  %2049 = vmatpush1.bf16.msra.mxu1 %v7418_v41  ;;  %v7446_v41 = vld [vmem:[#allocation9 + $0x1e0] ss:$16 sps:$4 sm:$0xff]  }
 0x829   :  { %2009 = vmatprep.subr.bf16.mxu0 %v7415_v38  ;;  %2050 = vmatprep.subr.bf16.mxu1 %v7424_v20  ;;  %v7451_v20 = vld [vmem:[#allocation9 + $0x1ec] ss:$16 sps:$4 sm:$0xff]  }
 0x82a   :  { %9519 = vst [vmem:[#allocation45_spill] sm:$0xff] %v7451_v20 }
 0x82c   :  { %2010 = vmatpush1.bf16.msra.mxu0 %v7422_v1  ;;  %2051 = vmatpush1.bf16.msra.mxu1 %v7430_v63 }
 0x82d   :  { %2011 = vmatprep.subr.bf16.mxu0 %v7427_v61  ;;  %2052 = vmatprep.subr.bf16.mxu1 %v7436_v0 }
 0x830   :  { %2012 = vmatpush1.bf16.msra.mxu0 %v7434_v59  ;;  %2053 = vmatpush1.bf16.msra.mxu1 %v7442_v50 }
 0x831   :  { %2013 = vmatprep.subr.bf16.mxu0 %v7439_v36  ;;  %2054 = vmatprep.subr.bf16.mxu1 %v7451_v20 }
 0x834   :  { %2014 = vmatpush1.bf16.msra.mxu0 %v7446_v41  ;;  %2055 = vmatpush1.bf16.msra.mxu1 %v7453_v47 }
 0x835   :  { %5491 = vmatprep.subr.bf16.mxu0 %v9521_v33  ;;  %5511 = vmatprep.subr.bf16.mxu1 %v9521_v33 }
 0x8ca   :  { %v1393_v0 = vpop.f32.mrb[32].mxu0  ;;  %v1434_v63 = vpop.f32.mrb[32].mxu1 }
 0x8cb   :  { %v1441_v49 = vrot.slane %v1393_v0, 1  ;;  %v1395_v44 = vpop.f32.mrb[33].mxu0  ;;  %v5489_v29 = vpop.f32.mrb[33].mxu1  ;;  %v1469_v0 = vrot.slane %v7266_v37, 7 }
 0x8cc   :  { %v1451_v50 = vrot.slane %v1395_v44, 1  ;;  %v1397_v48 = vpop.f32.mrb[34].mxu0  ;;  %v1437_v43 = vpop.f32.mrb[34].mxu1 }
 0x8cd   :  { %v1443_v62 = vadd.f32 %v1441_v49, %v6965_v9  ;;  %v1398_v58 = vpop.f32.mrb[35].mxu0  ;;  %v5490_v57 = vpop.f32.mrb[35].mxu1  ;;  %v1461_v43 = vrot.slane %v1434_v63, 1 }
 0x8ce   :  { %v1453_v54 = vadd.f32 %v1451_v50, %v6962_v4 }
 0x8cf   :  { %v4740_v52 = vmul.f32 -1.442695, %v1443_v62 }
 0x8d0   :  { %v4741_v20 = vmul.f32 -1.442695, %v1453_v54 }
 0x8d1   :  { %6131 = vpow2.f32 %v4740_v52 }
 0x8d2   :  { %6133 = vpow2.f32 %v4741_v20  ;;  %v9522_v20 = vlaneseq }
 0x8d4   :  { %v7464_v62 = vand.u32 127, %v9522_v20 }
 0x8d6   :  { %vm1632_vm1 = vcmp.eq.s32.totalorder %v7464_v62, 1  ;;  %vm2746_vm15 = vcmp.eq.s32.totalorder %v7464_v62, 2 }
 0x8d7   :  { %vm4807_vm2 = vmpackc.low %vm1632_vm1, %vm1632_vm1 }
 0x8db   :  { %v6132_v47 = vpop.eup %6131 }
 0x8dc   :  { %v6134_v24 = vpop.eup %6133  ;;  %v1447_v21 = vadd.f32 1.0, %v6132_v47 }
 0x8dd   :  { %v1457_v23 = vadd.f32 1.0, %v6134_v24 }
 0x8de   :  { %6135 = vrcp.f32 %v1447_v21 }
 0x8df   :  { %6137 = vrcp.f32 %v1457_v23 }
 0x8e8   :  { %v6136_v48 = vpop.eup %6135 }
 0x8e9   :  { %v6138_v29 = vpop.eup %6137  ;;  %v1471_v9 = vmul.f32 %v6136_v48, %v1469_v0  ;;  %v1466_v4 = vsub.f32 1.0, %v6136_v48 }
 0x8ea   :  { %v1463_v58 = vmul.f32 %v6138_v29, %v1461_v43 }
 0x8ec   :  { %v1464_v57 = vadd.f32 %v1463_v58, %v6971_v28  ;;  %v9231_v28 = vmov 1.0|1.0  }
 0x8ee   :  { %6139 = vtanh.f32 %v1464_v57 }
 0x8f8   :  { %v6140_v54 = vpop.eup %6139 }
 0x8f9   :  { %v1467_v52 = vmul.f32 %v6140_v54, %v1466_v4 }
 0x8fb   :  { %v7466_v44 = vadd.f32 %v1471_v9, %v1467_v52 }
 0x8fd   :  { %1473 = vst [vmem:[#allocation2] sm:$0x80] %v7466_v44  ;;  %v1636_v37 = vpack.c.bf16 %v7466_v44, %v7466_v44 }
 0x8ff   :  { %v1638_v63 = vshrl.u32 %v1636_v37, 16 }
 0x901   :  { %v1640_v23 = vrot.slane %v1638_v63, 3 }
 0x903   :  { %2015 = vmatprep.mubr.bf16.mxu0 %v1640_v23  ;;  %2056 = vmatprep.mubr.bf16.mxu1 %v1640_v23 }
 0x904   :  { %4808 = vmatmul.mubr.msk.bf16.vlgmr.msra.gmra.mrb[36].mxu0 %vm4807_vm2, %v9231_v28  ;;  %v1474_v21 = vld [vmem:[#allocation2] sm:$0xff]  ;;  %4810 = vmatmul.mubr.msk.bf16.vlgmr.msra.gmra.mrb[36].mxu1 %vm4807_vm2, %v9231_v28 }
 0x905   :  { %1476 = vxpose.xlu0.b32.start.end [1/1] (short) %v1474_v21, 128  ;;  %v1475_v24 = vpack.c.bf16 %v1474_v21, %v1474_v21  ;;  %5507 = vmatprep.mubr.msk.bf16.mxu0 %vm6673_vm0, %v9521_v33 }
 0x906   :  { %5513 = vmatprep.mubr.msk.bf16.mxu1 %vm6673_vm0, %v9521_v33 }
 0x907   :  { %v7481_v49 = vsel %vm2145_vm3, %v1475_v24, 0 }
 0x908   :  { %9523 = vst [vmem:[#allocation47_spill] sm:$0xff] %v7481_v49  ;;  %5512 = vmatpush3.bf16.msra.mxu1 %v7481_v49 }
 0x985   :  { %v1492_v47 = vpop.trf.xlu0 }
 0x989   :  { %v1493_v50 = vpop.trf.xlu0 }
 0x98a   :  { %v7484_v0 = vpack.c.bf16 %v1493_v50, %v1492_v47 }
 0x98c   :  { %9524 = vst [vmem:[#allocation48_spill] sm:$0xff] %v7484_v0  ;;  %5492 = vmatpush3.bf16.msra.mxu0 %v7484_v0  ;;  %v1977_v0 = vsub.s32 3, %v6951_v60 }
 0x98d   :  { %v1494_v48 = vpop.trf.xlu0  ;;  %5493 = vmatprep.subr.bf16.mxu0 %v9521_v33 }
 0x991   :  { %v1495_v43 = vpop.trf.xlu0 }
 0x992   :  { %v7488_v29 = vpack.c.bf16 %v1495_v43, %v1494_v48 }
 0x994   :  { %9525 = vst [vmem:[#allocation49_spill] sm:$0xff] %v7488_v29  ;;  %5494 = vmatpush3.bf16.msra.mxu0 %v7488_v29 }
 0x995   :  { %v1496_v9 = vpop.trf.xlu0  ;;  %5495 = vmatprep.subr.bf16.mxu0 %v9521_v33 }
 0x999   :  { %v1497_v58 = vpop.trf.xlu0 }
 0x99a   :  { %v7492_v57 = vpack.c.bf16 %v1497_v58, %v1496_v9 }
 0x99c   :  { %9526 = vst [vmem:[#allocation50_spill] sm:$0xff] %v7492_v57  ;;  %5496 = vmatpush3.bf16.msra.mxu0 %v7492_v57 }
 0x99d   :  { %v1498_v4 = vpop.trf.xlu0  ;;  %5497 = vmatprep.subr.bf16.mxu0 %v9521_v33 }
 0x9a1   :  { %v1499_v54 = vpop.trf.xlu0 }
 0x9a2   :  { %v7496_v52 = vpack.c.bf16 %v1499_v54, %v1498_v4  ;;  %v1580_v4 = vld [vmem:[%s9193_s5] sm:$0xf]  ;;  %v9532_v54 = vsub.s32 0, %v6951_v60 }
 0x9a4   :  { %9527 = vst [vmem:[#allocation51_spill] sm:$0xff] %v7496_v52  ;;  %5498 = vmatpush3.bf16.msra.mxu0 %v7496_v52 }
 0x9a5   :  { %v1500_v20 = vpop.trf.xlu0  ;;  %5499 = vmatprep.subr.bf16.mxu0 %v9521_v33 }
 0x9a9   :  { %v1501_v37 = vpop.trf.xlu0 }
 0x9aa   :  { %v7500_v63 = vpack.c.bf16 %v1501_v37, %v1500_v20  ;;  %v7521_v20 = vrot.slane %v1580_v4, %v9532_v54  ;;  %v9533_v37 = vsub.s32 1, %v6951_v60 }
 0x9ac   :  { %9528 = vst [vmem:[#allocation52_spill] sm:$0xff] %v7500_v63  ;;  %5500 = vmatpush3.bf16.msra.mxu0 %v7500_v63 }
 0x9ad   :  { %v1502_v23 = vpop.trf.xlu0  ;;  %5501 = vmatprep.subr.bf16.mxu0 %v9521_v33 }
 0x9b1   :  { %v1503_v21 = vpop.trf.xlu0 }
 0x9b2   :  { %v7504_v24 = vpack.c.bf16 %v1503_v21, %v1502_v23  ;;  %v7525_v23 = vrot.slane %v1580_v4, %v9533_v37 }
 0x9b4   :  { %9529 = vst [vmem:[#allocation53_spill] sm:$0xff] %v7504_v24  ;;  %5502 = vmatpush3.bf16.msra.mxu0 %v7504_v24 }
 0x9b5   :  { %v1504_v47 = vpop.trf.xlu0  ;;  %5503 = vmatprep.subr.bf16.mxu0 %v9521_v33 }
 0x9b9   :  { %v1505_v50 = vpop.trf.xlu0 }
 0x9ba   :  { %v7508_v48 = vpack.c.bf16 %v1505_v50, %v1504_v47 }
 0x9bc   :  { %9530 = vst [vmem:[#allocation54_spill] sm:$0xff] %v7508_v48  ;;  %5504 = vmatpush3.bf16.msra.mxu0 %v7508_v48 }
 0x9bd   :  { %v1506_v43 = vpop.trf.xlu0  ;;  %5505 = vmatprep.subr.bf16.mxu0 %v9521_v33 }
 0x9c1   :  { %v1507_v9 = vpop.trf.xlu0 }
 0x9c2   :  { %v7512_v58 = vpack.c.bf16 %v1507_v9, %v1506_v43 }
 0x9c4   :  { %9531 = vst [vmem:[#allocation55_spill] sm:$0xff] %v7512_v58  ;;  %5506 = vmatpush3.bf16.msra.mxu0 %v7512_v58 }
 0x9c5   :  { %5517 = vmatprep.subr.bf16.mxu0 %v9521_v33 }
 0x9d7   :  { %v2017_v21 = vpop.f32.mrb[36].mxu0  ;;  %v2058_v47 = vpop.f32.mrb[36].mxu1 }
 0x9d8   :  { %v2018_v50 = vadd.f32 %v2017_v21, %v7521_v20  ;;  %v2019_v43 = vpop.f32.mrb[37].mxu0  ;;  %v2060_v9 = vpop.f32.mrb[37].mxu1  ;;  %v7530_v21 = vrot.slane %v1580_v4, %v1977_v0 }
 0x9d9   :  { %v2020_v28 = vadd.f32 %v2019_v43, %v7525_v23  ;;  %v2021_v58 = vpop.f32.mrb[38].mxu0  ;;  %v2062_v48 = vpop.f32.mrb[38].mxu1  ;;  %v9534_v43 = vsub.s32 2, %v6951_v60 }
 0x9da   :  { %v4811_v24 = vmul.f32 -1.442695, %v2018_v50  ;;  %v2022_v63 = vpop.f32.mrb[39].mxu0  ;;  %v2063_v52 = vpop.f32.mrb[39].mxu1 }
 0x9db   :  { %v4812_v57 = vmul.f32 -1.442695, %v2020_v28  ;;  %v7534_v58 = vrot.slane %v1580_v4, %v9534_v43  ;;  %v2061_v63 = vadd.f32 %v2060_v9, %v7530_v21  ;;  %v2083_v28 = vrot.slane %v7466_v44, 7 }
 0x9dc   :  { %6141 = vpow2.f32 %v4811_v24 }
 0x9dd   :  { %6143 = vpow2.f32 %v4812_v57  ;;  %v2059_v48 = vadd.f32 %v2058_v47, %v7534_v58 }
 0x9e6   :  { %v6142_v54 = vpop.eup %6141 }
 0x9e7   :  { %v6144_v29 = vpop.eup %6143  ;;  %v2068_v37 = vadd.f32 1.0, %v6142_v54 }
 0x9e8   :  { %v2074_v49 = vadd.f32 1.0, %v6144_v29 }
 0x9e9   :  { %6145 = vrcp.f32 %v2068_v37 }
 0x9ea   :  { %6147 = vrcp.f32 %v2074_v49 }
 0x9f3   :  { %v6146_v52 = vpop.eup %6145 }
 0x9f4   :  { %v6148_v57 = vpop.eup %6147  ;;  %v2085_v24 = vmul.f32 %v6146_v52, %v2083_v28  ;;  %v2080_v54 = vsub.f32 1.0, %v6146_v52 }
 0x9f5   :  { %v2077_v29 = vmul.f32 %v6148_v57, %v2061_v63 }
 0x9f7   :  { %v2078_v50 = vadd.f32 %v2077_v29, %v2059_v48  ;;  %v7550_v48 = vld [vmem:[#allocation11 + $0x40] sm:$0xff]  }
 0x9f8   :  { %4986 = vmatprep.subr.bf16.mxu1 %v7550_v48 }
 0x9f9   :  { %6149 = vtanh.f32 %v2078_v50 }
 0xa03   :  { %v6150_v49 = vpop.eup %6149 }
 0xa04   :  { %v2081_v0 = vmul.f32 %v6150_v49, %v2080_v54  ;;  %v7553_v49 = vld [vmem:[#allocation11] sm:$0xff]  }
 0xa06   :  { %v7539_v37 = vadd.f32 %v2085_v24, %v2081_v0 }
 0xa08   :  { %v7543_v60 = vpack.c.bf16 %v7539_v37, %v7539_v37 }
 0xa0a   :  { %5508 = vmatmul.mubr.bf16.vlgmr.msra.gmra.mrb[40].mxu0 %v7543_v60 }
 0xa0b   :  { %5533 = vmatprep.mubr.msk.bf16.mxu0 %vm6673_vm0, %v9521_v33 }
 0xadd   :  { %v2122_v44 = vpop.f32.mrb[40].mxu0 }
 0xade   :  { %v5509_v4 = vpop.f32.mrb[41].mxu0  ;;  %v2129_v47 = vsel %vm2128_vm4, %v2122_v44, -inf }
 0xadf   :  { %2130 = vmax.xlane.f32.xlu0 %v2129_v47  ;;  %v2125_v9 = vpop.f32.mrb[42].mxu0  ;;  %v7555_v4 = vld [vmem:[#allocation11 + $0x48] sm:$0xff]   ;;  %v7562_v47 = vld [vmem:[#allocation11 + $0x50] sm:$0xff]  }
 0xae0   :  { %v5510_v43 = vpop.f32.mrb[43].mxu0  ;;  %v7565_v9 = vld [vmem:[#allocation11 + $0x10] sm:$0xff]  }
 0xae1   :  { %v7568_v43 = vld [vmem:[#allocation11 + $0x58] sm:$0xff]  }
 0xb6c   :  { %v2131_v63 = vpop.xlane.xlu0 %2130 }
 0xb6d   :  { %v2132_v28 = vsub.f32 %v2122_v44, %v2131_v63  ;;  %v7559_v44 = vld [vmem:[#allocation11 + $0x8] sm:$0xff]   ;;  %v7571_v63 = vld [vmem:[#allocation11 + $0x18] sm:$0xff]  }
 0xb6f   :  { %v2133_v52 = vmul.f32 1.442695, %v2132_v28  ;;  %v7574_v28 = vld [vmem:[#allocation11 + $0x60] sm:$0xff]  }
 0xb70   :  { %9535 = vst [vmem:[#allocation56_spill] sm:$0xff] %v7574_v28 }
 0xb71   :  { %6151 = vpow2.f32 %v2133_v52  ;;  %v7577_v52 = vld [vmem:[#allocation11 + $0x20] sm:$0xff]  }
 0xb72   :  { %9536 = vst [vmem:[#allocation57_spill] sm:$0xff] %v7577_v52 }
 0xb7b   :  { %v6152_v57 = vpop.eup %6151 }
 0xb7c   :  { %v2135_v24 = vsel %vm2128_vm4, %v6152_v57, 0.0 }
 0xb7d   :  { %2136 = vadd.xlane.f32.xlu1 %v2135_v24  ;;  %v7583_v24 = vld [vmem:[#allocation11 + $0x28] sm:$0xff]  }
 0xb7e   :  { %9538 = vst [vmem:[#allocation59_spill] sm:$0xff] %v7583_v24 }
 0xc0a   :  { %v2137_v29 = vpop.xlane.xlu1 %2136 }
 0xc0b   :  { %6153 = vrcp.f32 %v2137_v29  ;;  %v7586_v29 = vld [vmem:[#allocation11 + $0x70] sm:$0xff]  }
 0xc0c   :  { %9539 = vst [vmem:[#allocation60_spill] sm:$0xff] %v7586_v29 }
 0xc15   :  { %v6154_v50 = vpop.eup %6153 }
 0xc16   :  { %v2139_v54 = vmul.f32 %v6154_v50, %v6152_v57  ;;  %v7580_v57 = vld [vmem:[#allocation11 + $0x68] sm:$0xff]   ;;  %v7589_v50 = vld [vmem:[#allocation11 + $0x30] sm:$0xff]  }
 0xc17   :  { %9537 = vst [vmem:[#allocation58_spill] sm:$0xff] %v7580_v57  ;;  %9540 = vst [vmem:[#allocation61_spill] sm:$0xff] %v7589_v50 }
 0xc18   :  { %v2140_v0 = vpack.c.bf16 %v2139_v54, %v2139_v54  ;;  %v7593_v54 = vld [vmem:[#allocation11 + $0x78] sm:$0xff]  }
 0xc19   :  { %9541 = vst [vmem:[#allocation62_spill] sm:$0xff] %v7593_v54 }
 0xc1a   :  { %5514 = vmatmul.mubr.msk.bf16.vlgmr.msra.gmra.mrb[40].mxu1 %vm2141_vm5, %v2140_v0  ;;  %v7595_v0 = vld [vmem:[#allocation11 + $0x38] sm:$0xff]  }
 0xc1b   :  { %4987 = vmatpush3.bf16.msra.mxu1 %v7553_v49  ;;  %9542 = vst [vmem:[#allocation63_spill] sm:$0xff] %v7595_v0 }
 0xc1c   :  { %4988 = vmatprep.subr.bf16.mxu1 %v7555_v4 }
 0xc1f   :  { %4989 = vmatpush3.bf16.msra.mxu1 %v7559_v44 }
 0xc20   :  { %4990 = vmatprep.subr.bf16.mxu1 %v7562_v47 }
 0xc23   :  { %4991 = vmatpush3.bf16.msra.mxu1 %v7565_v9 }
 0xc24   :  { %4992 = vmatprep.subr.bf16.mxu1 %v7568_v43 }
 0xc27   :  { %4993 = vmatpush3.bf16.msra.mxu1 %v7571_v63 }
 0xc28   :  { %4994 = vmatprep.subr.bf16.mxu1 %v7574_v28 }
 0xc2b   :  { %4995 = vmatpush3.bf16.msra.mxu1 %v7577_v52 }
 0xc2c   :  { %4996 = vmatprep.subr.bf16.mxu1 %v7580_v57  ;;  %v7600_v57 = vld [vmem:[#allocation12] sm:$0xff]  }
 0xc2d   :  { %5518 = vmatpush3.bf16.msra.mxu0 %v7600_v57 }
 0xc2e   :  { %5519 = vmatprep.subr.bf16.mxu0 %v9521_v33 }
 0xc2f   :  { %4997 = vmatpush3.bf16.msra.mxu1 %v7583_v24  ;;  %v7603_v24 = vld [vmem:[#allocation12 + $0x8] sm:$0xff]  }
 0xc30   :  { %4998 = vmatprep.subr.bf16.mxu1 %v7586_v29 }
 0xc31   :  { %5520 = vmatpush3.bf16.msra.mxu0 %v7603_v24 }
 0xc32   :  { %5521 = vmatprep.subr.bf16.mxu0 %v9521_v33 }
 0xc33   :  { %4999 = vmatpush3.bf16.msra.mxu1 %v7589_v50  ;;  %v7607_v50 = vld [vmem:[#allocation12 + $0x10] sm:$0xff]  }
 0xc34   :  { %5000 = vmatprep.subr.bf16.mxu1 %v7593_v54  ;;  %v7611_v54 = vld [vmem:[#allocation12 + $0x18] sm:$0xff]  }
 0xc35   :  { %5522 = vmatpush3.bf16.msra.mxu0 %v7607_v50 }
 0xc36   :  { %5523 = vmatprep.subr.bf16.mxu0 %v9521_v33 }
 0xc37   :  { %5001 = vmatpush3.bf16.msra.mxu1 %v7595_v0 }
 0xc38   :  { %2446 = vmatprep.subr.bf16.mxu1 %v7256_v25 }
 0xc39   :  { %5524 = vmatpush3.bf16.msra.mxu0 %v7611_v54 }
 0xc3a   :  { %5525 = vmatprep.subr.bf16.mxu0 %v9521_v33 }
 0xced   :  { %v2183_v25 = vpop.f32.mrb[40].mxu1 }
 0xcee   :  { %v2189_v0 = vpack.c.bf16 %v2183_v25, %v2183_v25  ;;  %v5515_v29 = vpop.f32.mrb[41].mxu1  ;;  %v9565_v25 = vld [vmem:[#allocation45_spill] sm:$0xff] }
 0xcef   :  { %v2186_v52 = vpop.f32.mrb[42].mxu1  ;;  %v9563_v29 = vld [vmem:[#allocation43_spill] sm:$0xff] }
 0xcf0   :  { %v5516_v28 = vpop.f32.mrb[43].mxu1  ;;  %2318 = vmatprep.mubr.bf16.mxu1 %v2189_v0  ;;  %v9562_v52 = vld [vmem:[#allocation42_spill] sm:$0xff]  ;;  %v9564_v0 = vld [vmem:[#allocation44_spill] sm:$0xff] }
 0xcf1   :  { %2319 = vmatmul.mubr.bf16.vlgmr.msra.gmra.mrb[44].mxu1 %v7543_v60  ;;  %v9561_v28 = vld [vmem:[#allocation41_spill] sm:$0xff] }
 0xcf2   :  { %2478 = vmatprep.mubr.bf16.mxu1 %v7543_v60  ;;  %2447 = vmatpush1.bf16.msra.mxu1 %v7271_v39  ;;  %v7650_v39 = vld [vmem:[#allocation12 + $0x20] sm:$0xff]  }
 0xcf3   :  { %2448 = vmatprep.subr.bf16.mxu1 %v7275_v42  ;;  %5526 = vmatpush3.bf16.msra.mxu0 %v7650_v39  ;;  %v7654_v42 = vld [vmem:[#allocation12 + $0x28] sm:$0xff]  }
 0xcf4   :  { %5527 = vmatprep.subr.bf16.mxu0 %v9521_v33 }
 0xcf6   :  { %2449 = vmatpush1.bf16.msra.mxu1 %v7279_v2  ;;  %v7658_v2 = vld [vmem:[#allocation12 + $0x30] sm:$0xff]  }
 0xcf7   :  { %2450 = vmatprep.subr.bf16.mxu1 %v7285_v7  ;;  %5528 = vmatpush3.bf16.msra.mxu0 %v7654_v42  ;;  %v7662_v7 = vld [vmem:[#allocation12 + $0x38] sm:$0xff]  }
 0xcf8   :  { %5529 = vmatprep.subr.bf16.mxu0 %v9521_v33 }
 0xcfa   :  { %2451 = vmatpush1.bf16.msra.mxu1 %v7290_v10 }
 0xcfb   :  { %2452 = vmatprep.subr.bf16.mxu1 %v7297_v12  ;;  %5530 = vmatpush3.bf16.msra.mxu0 %v7658_v2 }
 0xcfc   :  { %5531 = vmatprep.subr.bf16.mxu0 %v9521_v33 }
 0xcfe   :  { %2453 = vmatpush1.bf16.msra.mxu1 %v7302_v14 }
 0xcff   :  { %2454 = vmatprep.subr.bf16.mxu1 %v7309_v16  ;;  %5532 = vmatpush3.bf16.msra.mxu0 %v7662_v7 }
 0xd00   :  { %2487 = vmatprep.subr.bf16.mxu0 %v7258_v31  ;;  %v9543_v31 = vld [vmem:[#allocation23_spill] sm:$0xff] }
 0xd02   :  { %2455 = vmatpush1.bf16.msra.mxu1 %v7314_v18 }
 0xd03   :  { %2456 = vmatprep.subr.bf16.mxu1 %v7321_v19 }
 0xd06   :  { %2457 = vmatpush1.bf16.msra.mxu1 %v7326_v22 }
 0xd07   :  { %2458 = vmatprep.subr.bf16.mxu1 %v7333_v51  ;;  %v9544_v51 = vld [vmem:[#allocation24_spill] sm:$0xff] }
 0xd0a   :  { %2459 = vmatpush1.bf16.msra.mxu1 %v7338_v53  ;;  %v9545_v53 = vld [vmem:[#allocation25_spill] sm:$0xff] }
 0xd0b   :  { %2460 = vmatprep.subr.bf16.mxu1 %v7345_v56  ;;  %v9546_v56 = vld [vmem:[#allocation26_spill] sm:$0xff] }
 0xd0e   :  { %2461 = vmatpush1.bf16.msra.mxu1 %v7350_v55  ;;  %v9554_v55 = vld [vmem:[#allocation34_spill] sm:$0xff] }
 0xd0f   :  { %2462 = vmatprep.subr.bf16.mxu1 %v7357_v5  ;;  %v9555_v5 = vld [vmem:[#allocation35_spill] sm:$0xff] }
 0xd12   :  { %2463 = vmatpush1.bf16.msra.mxu1 %v7362_v3  ;;  %v9556_v3 = vld [vmem:[#allocation36_spill] sm:$0xff] }
 0xd13   :  { %2464 = vmatprep.subr.bf16.mxu1 %v7369_v46  ;;  %v9557_v46 = vld [vmem:[#allocation37_spill] sm:$0xff] }
 0xd16   :  { %2465 = vmatpush1.bf16.msra.mxu1 %v7374_v27  ;;  %v9558_v27 = vld [vmem:[#allocation38_spill] sm:$0xff] }
 0xd17   :  { %2466 = vmatprep.subr.bf16.mxu1 %v7381_v30  ;;  %v9559_v30 = vld [vmem:[#allocation39_spill] sm:$0xff] }
 0xd1a   :  { %2467 = vmatpush1.bf16.msra.mxu1 %v7386_v32 }
 0xd1b   :  { %2468 = vmatprep.subr.bf16.mxu1 %v7393_v45 }
 0xd1e   :  { %2469 = vmatpush1.bf16.msra.mxu1 %v7397_v34 }
 0xd1f   :  { %2470 = vmatprep.subr.bf16.mxu1 %v7402_v35 }
 0xd22   :  { %2471 = vmatpush1.bf16.msra.mxu1 %v7410_v26 }
 0xd23   :  { %2472 = vmatprep.subr.bf16.mxu1 %v7415_v38 }
 0xd26   :  { %2473 = vmatpush1.bf16.msra.mxu1 %v7422_v1 }
 0xd27   :  { %2474 = vmatprep.subr.bf16.mxu1 %v7427_v61 }
 0xd2a   :  { %2475 = vmatpush1.bf16.msra.mxu1 %v7434_v59 }
 0xd2b   :  { %2476 = vmatprep.subr.bf16.mxu1 %v7439_v36 }
 0xd2e   :  { %2477 = vmatpush1.bf16.msra.mxu1 %v7446_v41 }
 0xd2f   :  { %5537 = vmatprep.subr.bf16.mxu1 %v9521_v33 }
 0xdc4   :  { %v5002_v10 = vpop.f32.mrb[44].mxu1 }
 0xdc5   :  { %v5003_v12 = vpop.f32.mrb[45].mxu1 }
 0xdc6   :  { %v5004_v14 = vadd.f32 %v5003_v12, %v5002_v10  ;;  %v5005_v16 = vpop.f32.mrb[46].mxu1  ;;  %v9566_v10 = vld [vmem:[#allocation46_spill] sm:$0xff]  ;;  %v7702_v12 = vld [vmem:[%s9196_s8] sm:$0x1] }
 0xdc7   :  { %v5006_v18 = vpop.f32.mrb[47].mxu1 }
 0xdc8   :  { %6155 = vtanh.f32 %v5004_v14 }
 0xdd2   :  { %v6156_v19 = vpop.eup %6155 }
 0xdd3   :  { %v2327_v22 = vpack.c.bf16 %v6156_v19, %v6156_v19 }
 0xdd5   :  { %5534 = vmatmul.mubr.bf16.vlgmr.msra.gmra.mrb[44].mxu0 %v2327_v22 }
 0xdd6   :  { %2519 = vmatprep.mubr.bf16.mxu0 %v7543_v60  ;;  %2488 = vmatpush1.bf16.msra.mxu0 %v7273_v40  ;;  %v9547_v40 = vld [vmem:[#allocation27_spill] sm:$0xff]  ;;  %v9560_v60 = vld [vmem:[#allocation40_spill] sm:$0xff] }
 0xdd7   :  { %2489 = vmatprep.subr.bf16.mxu0 %v7283_v6  ;;  %v9548_v6 = vld [vmem:[#allocation28_spill] sm:$0xff] }
 0xdda   :  { %2490 = vmatpush1.bf16.msra.mxu0 %v7287_v8  ;;  %v9549_v8 = vld [vmem:[#allocation29_spill] sm:$0xff] }
 0xddb   :  { %2491 = vmatprep.subr.bf16.mxu0 %v7295_v11  ;;  %v9550_v11 = vld [vmem:[#allocation30_spill] sm:$0xff] }
 0xdde   :  { %2492 = vmatpush1.bf16.msra.mxu0 %v7299_v13  ;;  %v9551_v13 = vld [vmem:[#allocation31_spill] sm:$0xff] }
 0xddf   :  { %2493 = vmatprep.subr.bf16.mxu0 %v7307_v15  ;;  %v9552_v15 = vld [vmem:[#allocation32_spill] sm:$0xff] }
 0xde2   :  { %2494 = vmatpush1.bf16.msra.mxu0 %v7311_v17  ;;  %v9553_v17 = vld [vmem:[#allocation33_spill] sm:$0xff] }
 0xde3   :  { %2495 = vmatprep.subr.bf16.mxu0 %v9543_v31 }
 0xde6   :  { %2496 = vmatpush1.bf16.msra.mxu0 %v9544_v51 }
 0xde7   :  { %2497 = vmatprep.subr.bf16.mxu0 %v9545_v53 }
 0xdea   :  { %2498 = vmatpush1.bf16.msra.mxu0 %v9546_v56 }
 0xdeb   :  { %2499 = vmatprep.subr.bf16.mxu0 %v9547_v40 }
 0xdee   :  { %2500 = vmatpush1.bf16.msra.mxu0 %v9548_v6 }
 0xdef   :  { %2501 = vmatprep.subr.bf16.mxu0 %v9549_v8 }
 0xdf2   :  { %2502 = vmatpush1.bf16.msra.mxu0 %v9550_v11 }
 0xdf3   :  { %2503 = vmatprep.subr.bf16.mxu0 %v9551_v13 }
 0xdf6   :  { %2504 = vmatpush1.bf16.msra.mxu0 %v9552_v15 }
 0xdf7   :  { %2505 = vmatprep.subr.bf16.mxu0 %v9553_v17 }
 0xdfa   :  { %2506 = vmatpush1.bf16.msra.mxu0 %v9554_v55 }
 0xdfb   :  { %2507 = vmatprep.subr.bf16.mxu0 %v9555_v5 }
 0xdfe   :  { %2508 = vmatpush1.bf16.msra.mxu0 %v9556_v3 }
 0xdff   :  { %2509 = vmatprep.subr.bf16.mxu0 %v9557_v46 }
 0xe02   :  { %2510 = vmatpush1.bf16.msra.mxu0 %v9558_v27  ;;  %v9567_v27 = vmov 1.0|1.0  }
 0xe03   :  { %2511 = vmatprep.subr.bf16.mxu0 %v9559_v30  ;;  %v9568_v30 = vld [vmem:[#allocation48_spill] sm:$0xff] }
 0xe06   :  { %2512 = vmatpush1.bf16.msra.mxu0 %v9560_v60  ;;  %v9569_v60 = vld [vmem:[#allocation47_spill] sm:$0xff] }
 0xe07   :  { %2513 = vmatprep.subr.bf16.mxu0 %v9561_v28  ;;  %v9570_v28 = vld [vmem:[#allocation49_spill] sm:$0xff] }
 0xe0a   :  { %2514 = vmatpush1.bf16.msra.mxu0 %v9562_v52  ;;  %v9571_v52 = vld [vmem:[#allocation50_spill] sm:$0xff] }
 0xe0b   :  { %2515 = vmatprep.subr.bf16.mxu0 %v9563_v29  ;;  %v9572_v29 = vld [vmem:[#allocation51_spill] sm:$0xff] }
 0xe0e   :  { %2516 = vmatpush1.bf16.msra.mxu0 %v9564_v0  ;;  %v9573_v0 = vld [vmem:[#allocation52_spill] sm:$0xff] }
 0xe0f   :  { %2517 = vmatprep.subr.bf16.mxu0 %v9565_v25  ;;  %v9574_v25 = vld [vmem:[#allocation53_spill] sm:$0xff] }
 0xe12   :  { %2518 = vmatpush1.bf16.msra.mxu0 %v9566_v10  ;;  %v9575_v10 = vld [vmem:[#allocation54_spill] sm:$0xff] }
 0xe13   :  { %5557 = vmatprep.subr.bf16.mxu0 %v9521_v33 }
 0xea8   :  { %v2410_v14 = vpop.f32.mrb[44].mxu0 }
 0xea9   :  { %v2411_v16 = vadd.f32 %v2410_v14, %v7702_v12  ;;  %v5535_v18 = vpop.f32.mrb[45].mxu0  ;;  %v9576_v14 = vld [vmem:[#allocation55_spill] sm:$0xff] }
 0xeaa   :  { %v2413_v19 = vpop.f32.mrb[46].mxu0 }
 0xeab   :  { %v5536_v22 = vpop.f32.mrb[47].mxu0  ;;  %v2417_v31 = vsel %vm2416_vm6, %v2411_v16, -inf }
 0xeac   :  { %2418 = vmax.xlane.f32.xlu1 %v2417_v31 }
 0xf39   :  { %v2419_v51 = vpop.xlane.xlu1 %2418 }
 0xf3a   :  { %vm2420_vm7 = vcmp.ge.f32.partialorder %v2411_v16, %v2419_v51 }
 0xf3b   :  { %v2421_v53 = vsel %vm2420_vm7, %v7464_v62, 128 }
 0xf3c   :  { %v2422_v56 = vsel %vm2416_vm6, %v2421_v53, 2147483647 }
 0xf3d   :  { %v2424_v40 = vshra.s32 %v2422_v56, 16  ;;  %v2423_v8 = vand.u32 65535, %v2422_v56 }
 0xf3f   :  { %v2426_v6 = vcvt.s32.f32 %v2424_v40  ;;  %v2425_v13 = vcvt.s32.f32 %v2423_v8 }
 0xf41   :  { %2427 = vmin.xlane.f32.xlu1 %v2426_v6 }
 0xfce   :  { %v2428_v11 = vpop.xlane.xlu1 %2427 }
 0xfcf   :  { %vm2429_vm8 = vcmp.eq.f32.partialorder %v2426_v6, %v2428_v11  ;;  %v2434_v17 = vcvt.f32.s32 %v2428_v11 }
 0xfd0   :  { %v2430_v15 = vsel %vm2429_vm8, %v2425_v13, inf }
 0xfd1   :  { %2431 = vmin.xlane.f32.xlu1 %v2430_v15  ;;  %v2435_v5 = vshll.u32 %v2434_v17, 16 }
0x105e   :  { %v2432_v55 = vpop.xlane.xlu1 %2431 }
0x105f   :  { %v2433_v3 = vcvt.f32.s32 %v2432_v55 }
0x1061   :  { %v7708_v46 = vadd.s32 %v2435_v5, %v2433_v3 }
0x1063   :  { %vm2441_vm9 = vcmp.eq.s32.totalorder %v7464_v62, %v7708_v46  ;;  %vm2438_vm13 = vcmp.eq.s32.totalorder %v7708_v46, 2 }
0x1064   :  { %vm4839_vm10 = vmpackc.low %vm2441_vm9, %vm2441_vm9 }
0x1065   :  { %4840 = vmatmul.mubr.msk.bf16.vlgmr.msra.gmra.mrb[48].mxu1 %vm4839_vm10, %v9567_v27  ;;  %4842 = vmatmul.mubr.msk.bf16.vlgmr.msra.gmra.mrb[48].mxu0 %vm4839_vm10, %v9567_v27 }
0x1066   :  { %5538 = vmatpush3.bf16.msra.mxu1 %v9568_v30  ;;  %5558 = vmatpush3.bf16.msra.mxu0 %v9569_v60 }
0x1067   :  { %5539 = vmatprep.subr.bf16.mxu1 %v9521_v33  ;;  %5553 = vmatprep.mubr.msk.bf16.mxu1 %vm6673_vm0, %v9521_v33 }
0x1068   :  { %5559 = vmatprep.mubr.msk.bf16.mxu0 %vm6673_vm0, %v9521_v33  ;;  %5028 = vmatprep.subr.bf16.mxu0 %v7550_v48 }
0x106a   :  { %5540 = vmatpush3.bf16.msra.mxu1 %v9570_v28 }
0x106b   :  { %5541 = vmatprep.subr.bf16.mxu1 %v9521_v33 }
0x106e   :  { %5542 = vmatpush3.bf16.msra.mxu1 %v9571_v52 }
0x106f   :  { %5543 = vmatprep.subr.bf16.mxu1 %v9521_v33 }
0x1072   :  { %5544 = vmatpush3.bf16.msra.mxu1 %v9572_v29 }
0x1073   :  { %5545 = vmatprep.subr.bf16.mxu1 %v9521_v33 }
0x1076   :  { %5546 = vmatpush3.bf16.msra.mxu1 %v9573_v0 }
0x1077   :  { %5547 = vmatprep.subr.bf16.mxu1 %v9521_v33 }
0x107a   :  { %5548 = vmatpush3.bf16.msra.mxu1 %v9574_v25 }
0x107b   :  { %5549 = vmatprep.subr.bf16.mxu1 %v9521_v33 }
0x107e   :  { %5550 = vmatpush3.bf16.msra.mxu1 %v9575_v10 }
0x107f   :  { %5551 = vmatprep.subr.bf16.mxu1 %v9521_v33 }
0x1082   :  { %5552 = vmatpush3.bf16.msra.mxu1 %v9576_v14 }
0x1083   :  { %5563 = vmatprep.subr.bf16.mxu1 %v9521_v33 }
0x1138   :  { %v2480_v16 = vpop.f32.mrb[48].mxu1  ;;  %v2521_v18 = vpop.f32.mrb[48].mxu0 }
0x1139   :  { %v2482_v19 = vpop.f32.mrb[49].mxu1  ;;  %v2523_v22 = vpop.f32.mrb[49].mxu0  ;;  %v2481_v8 = vadd.f32 %v2480_v16, %v7521_v20 }
0x113a   :  { %v2483_v31 = vadd.f32 %v2482_v19, %v7525_v23  ;;  %v2484_v51 = vpop.f32.mrb[50].mxu1  ;;  %v2525_v53 = vpop.f32.mrb[50].mxu0  ;;  %v2524_v5 = vadd.f32 %v2523_v22, %v7530_v21  ;;  %v2522_v19 = vadd.f32 %v2521_v18, %v7534_v58 }
0x113b   :  { %v2485_v56 = vpop.f32.mrb[51].mxu1  ;;  %v2526_v40 = vpop.f32.mrb[51].mxu0  ;;  %v4843_v11 = vmul.f32 -1.442695, %v2481_v8 }
0x113c   :  { %v4844_v6 = vmul.f32 -1.442695, %v2483_v31 }
0x113e   :  { %6157 = vpow2.f32 %v4844_v6 }
0x113f   :  { %6159 = vpow2.f32 %v4843_v11 }
0x1148   :  { %v6158_v13 = vpop.eup %6157 }
0x1149   :  { %v2537_v15 = vadd.f32 1.0, %v6158_v13  ;;  %v6160_v17 = vpop.eup %6159 }
0x114a   :  { %v2531_v55 = vadd.f32 1.0, %v6160_v17 }
0x114b   :  { %6161 = vrcp.f32 %v2537_v15 }
0x114c   :  { %6163 = vrcp.f32 %v2531_v55 }
0x1155   :  { %v6162_v3 = vpop.eup %6161 }
0x1156   :  { %v2540_v51 = vmul.f32 %v6162_v3, %v2524_v5  ;;  %v6164_v31 = vpop.eup %6163 }
0x1157   :  { %v2543_v56 = vsub.f32 1.0, %v6164_v31  ;;  %v2545_v6 = vmul.f32 %v6164_v31, %v7539_v37  ;;  %v7765_v37 = vld [vmem:[#allocation9 + $0xc] ss:$16 sps:$4 sm:$0xff]  }
0x1158   :  { %v2541_v53 = vadd.f32 %v2540_v51, %v2522_v19 }
0x115a   :  { %6165 = vtanh.f32 %v2541_v53 }
0x1164   :  { %v6166_v16 = vpop.eup %6165 }
0x1165   :  { %v2544_v40 = vmul.f32 %v6166_v16, %v2543_v56 }
0x1167   :  { %v7741_v8 = vadd.f32 %v2545_v6, %v2544_v40  ;;  %v9577_v40 = vld [vmem:[#allocation56_spill] sm:$0xff]  ;;  %v9578_v6 = vld [vmem:[#allocation57_spill] sm:$0xff] }
0x1169   :  { %v7745_v11 = vpack.c.bf16 %v7741_v8, %v7741_v8 }
0x116b   :  { %5554 = vmatmul.mubr.bf16.vlgmr.msra.gmra.mrb[52].mxu1 %v7745_v11 }
0x116c   :  { %5564 = vmatpush3.bf16.msra.mxu1 %v7600_v57  ;;  %5579 = vmatprep.mubr.msk.bf16.mxu1 %vm6673_vm0, %v9521_v33 }
0x116d   :  { %5565 = vmatprep.subr.bf16.mxu1 %v9521_v33 }
0x1170   :  { %5566 = vmatpush3.bf16.msra.mxu1 %v7603_v24 }
0x1171   :  { %5567 = vmatprep.subr.bf16.mxu1 %v9521_v33 }
0x1174   :  { %5568 = vmatpush3.bf16.msra.mxu1 %v7607_v50 }
0x1175   :  { %5569 = vmatprep.subr.bf16.mxu1 %v9521_v33 }
0x1178   :  { %5570 = vmatpush3.bf16.msra.mxu1 %v7611_v54 }
0x1179   :  { %5571 = vmatprep.subr.bf16.mxu1 %v9521_v33 }
0x117c   :  { %5572 = vmatpush3.bf16.msra.mxu1 %v7650_v39 }
0x117d   :  { %5573 = vmatprep.subr.bf16.mxu1 %v9521_v33 }
0x1180   :  { %5574 = vmatpush3.bf16.msra.mxu1 %v7654_v42 }
0x1181   :  { %5575 = vmatprep.subr.bf16.mxu1 %v9521_v33 }
0x1184   :  { %5576 = vmatpush3.bf16.msra.mxu1 %v7658_v2 }
0x1185   :  { %5577 = vmatprep.subr.bf16.mxu1 %v9521_v33 }
0x1188   :  { %5578 = vmatpush3.bf16.msra.mxu1 %v7662_v7 }
0x1189   :  { %2802 = vmatprep.subr.bf16.mxu1 %v7765_v37 }
0x123e   :  { %v2582_v18 = vpop.f32.mrb[52].mxu1 }
0x123f   :  { %v5555_v22 = vpop.f32.mrb[53].mxu1  ;;  %v2588_v13 = vsel %vm2128_vm4, %v2582_v18, -inf }
0x1240   :  { %2589 = vmax.xlane.f32.xlu1 %v2588_v13  ;;  %v2585_v15 = vpop.f32.mrb[54].mxu1  ;;  %v9580_v22 = vld [vmem:[#allocation59_spill] sm:$0xff]  ;;  %v9581_v13 = vld [vmem:[#allocation60_spill] sm:$0xff] }
0x1241   :  { %v5556_v17 = vpop.f32.mrb[55].mxu1  ;;  %v9582_v15 = vld [vmem:[#allocation61_spill] sm:$0xff] }
0x1242   :  { %v9583_v17 = vld [vmem:[#allocation62_spill] sm:$0xff] }
0x12cd   :  { %v2590_v55 = vpop.xlane.xlu1 %2589 }
0x12ce   :  { %v2591_v5 = vsub.f32 %v2582_v18, %v2590_v55  ;;  %v9579_v18 = vld [vmem:[#allocation58_spill] sm:$0xff]  ;;  %v9584_v55 = vld [vmem:[#allocation63_spill] sm:$0xff] }
0x12d0   :  { %v2592_v3 = vmul.f32 1.442695, %v2591_v5  ;;  %v7786_v5 = vld [vmem:[#allocation9 + $0x4] ss:$16 sps:$4 sm:$0xff]  }
0x12d2   :  { %6167 = vpow2.f32 %v2592_v3 }
0x12dc   :  { %v6168_v19 = vpop.eup %6167 }
0x12dd   :  { %v2594_v51 = vsel %vm2128_vm4, %v6168_v19, 0.0 }
0x12de   :  { %2595 = vadd.xlane.f32.xlu1 %v2594_v51 }
0x136b   :  { %v2596_v53 = vpop.xlane.xlu1 %2595 }
0x136c   :  { %6169 = vrcp.f32 %v2596_v53 }
0x1376   :  { %v6170_v31 = vpop.eup %6169 }
0x1377   :  { %v2598_v56 = vmul.f32 %v6170_v31, %v6168_v19 }
0x1379   :  { %v2599_v16 = vpack.c.bf16 %v2598_v56, %v2598_v56  ;;  %v7791_v56 = vld [vmem:[#allocation9] ss:$16 sps:$4 sm:$0xff]  }
0x137b   :  { %5560 = vmatmul.mubr.msk.bf16.vlgmr.msra.gmra.mrb[52].mxu0 %vm2141_vm5, %v2599_v16  ;;  %v7794_v16 = vld [vmem:[#allocation9 + $0x24] ss:$16 sps:$4 sm:$0xff]  }
0x137c   :  { %5029 = vmatpush3.bf16.msra.mxu0 %v7553_v49 }
0x137d   :  { %5030 = vmatprep.subr.bf16.mxu0 %v7555_v4 }
0x1380   :  { %5031 = vmatpush3.bf16.msra.mxu0 %v7559_v44 }
0x1381   :  { %5032 = vmatprep.subr.bf16.mxu0 %v7562_v47 }
0x1384   :  { %5033 = vmatpush3.bf16.msra.mxu0 %v7565_v9 }
0x1385   :  { %5034 = vmatprep.subr.bf16.mxu0 %v7568_v43 }
0x1388   :  { %5035 = vmatpush3.bf16.msra.mxu0 %v7571_v63 }
0x1389   :  { %5036 = vmatprep.subr.bf16.mxu0 %v9577_v40 }
0x138c   :  { %5037 = vmatpush3.bf16.msra.mxu0 %v9578_v6 }
0x138d   :  { %5038 = vmatprep.subr.bf16.mxu0 %v9579_v18 }
0x1390   :  { %5039 = vmatpush3.bf16.msra.mxu0 %v9580_v22 }
0x1391   :  { %5040 = vmatprep.subr.bf16.mxu0 %v9581_v13 }
0x1394   :  { %5041 = vmatpush3.bf16.msra.mxu0 %v9582_v15 }
0x1395   :  { %5042 = vmatprep.subr.bf16.mxu0 %v9583_v17 }
0x1398   :  { %5043 = vmatpush3.bf16.msra.mxu0 %v9584_v55  ;;  %v7797_v55 = vld [vmem:[#allocation9 + $0x20] ss:$16 sps:$4 sm:$0xff]  }
0x1399   :  { %2761 = vmatprep.subr.bf16.mxu0 %v7786_v5  ;;  %9585 = vst [vmem:[#allocation23_spill] sm:$0xff] %v7797_v55 }
0x144e   :  { %v2637_v3 = vpop.f32.mrb[52].mxu0 }
0x144f   :  { %v2643_v19 = vpack.c.bf16 %v2637_v3, %v2637_v3  ;;  %v5561_v51 = vpop.f32.mrb[53].mxu0  ;;  %v7800_v3 = vld [vmem:[#allocation9 + $0x44] ss:$16 sps:$4 sm:$0xff]  }
0x1450   :  { %v2640_v53 = vpop.f32.mrb[54].mxu0  ;;  %9586 = vst [vmem:[#allocation24_spill] sm:$0xff] %v7800_v3  ;;  %v7806_v51 = vld [vmem:[#allocation9 + $0x64] ss:$16 sps:$4 sm:$0xff]  }
0x1451   :  { %v5562_v31 = vpop.f32.mrb[55].mxu0  ;;  %2676 = vmatprep.mubr.bf16.mxu0 %v2643_v19  ;;  %v7803_v19 = vld [vmem:[#allocation9 + $0x40] ss:$16 sps:$4 sm:$0xff]   ;;  %9588 = vst [vmem:[#allocation26_spill] sm:$0xff] %v7806_v51 }
0x1452   :  { %2677 = vmatmul.mubr.bf16.vlgmr.msra.gmra.mrb[56].mxu0 %v7745_v11  ;;  %9587 = vst [vmem:[#allocation25_spill] sm:$0xff] %v7803_v19  ;;  %v7809_v53 = vld [vmem:[#allocation9 + $0x60] ss:$16 sps:$4 sm:$0xff]   ;;  %v7812_v31 = vld [vmem:[#allocation9 + $0x84] ss:$16 sps:$4 sm:$0xff]  }
0x1453   :  { %2793 = vmatprep.mubr.bf16.mxu0 %v7745_v11  ;;  %2762 = vmatpush1.bf16.msra.mxu0 %v7791_v56  ;;  %9589 = vst [vmem:[#allocation27_spill] sm:$0xff] %v7809_v53  ;;  %9590 = vst [vmem:[#allocation28_spill] sm:$0xff] %v7812_v31 }
0x1454   :  { %2763 = vmatprep.subr.bf16.mxu0 %v7794_v16 }
0x1457   :  { %2764 = vmatpush1.bf16.msra.mxu0 %v7797_v55  ;;  %v7815_v55 = vld [vmem:[#allocation9 + $0x80] ss:$16 sps:$4 sm:$0xff]  }
0x1458   :  { %2765 = vmatprep.subr.bf16.mxu0 %v7800_v3  ;;  %9591 = vst [vmem:[#allocation29_spill] sm:$0xff] %v7815_v55  ;;  %v7818_v3 = vld [vmem:[#allocation9 + $0xa4] ss:$16 sps:$4 sm:$0xff]  }
0x1459   :  { %9592 = vst [vmem:[#allocation30_spill] sm:$0xff] %v7818_v3 }
0x145b   :  { %2766 = vmatpush1.bf16.msra.mxu0 %v7803_v19  ;;  %v7821_v19 = vld [vmem:[#allocation9 + $0xa0] ss:$16 sps:$4 sm:$0xff]  }
0x145c   :  { %2767 = vmatprep.subr.bf16.mxu0 %v7806_v51  ;;  %9593 = vst [vmem:[#allocation31_spill] sm:$0xff] %v7821_v19  ;;  %v7824_v51 = vld [vmem:[#allocation9 + $0xc4] ss:$16 sps:$4 sm:$0xff]  }
0x145d   :  { %9594 = vst [vmem:[#allocation32_spill] sm:$0xff] %v7824_v51 }
0x145f   :  { %2768 = vmatpush1.bf16.msra.mxu0 %v7809_v53  ;;  %v7827_v53 = vld [vmem:[#allocation9 + $0xc0] ss:$16 sps:$4 sm:$0xff]  }
0x1460   :  { %2769 = vmatprep.subr.bf16.mxu0 %v7812_v31  ;;  %9595 = vst [vmem:[#allocation33_spill] sm:$0xff] %v7827_v53  ;;  %v7830_v31 = vld [vmem:[#allocation9 + $0xe4] ss:$16 sps:$4 sm:$0xff]  }
0x1461   :  { %9596 = vst [vmem:[#allocation34_spill] sm:$0xff] %v7830_v31 }
0x1463   :  { %2770 = vmatpush1.bf16.msra.mxu0 %v7815_v55  ;;  %v7833_v55 = vld [vmem:[#allocation9 + $0xe0] ss:$16 sps:$4 sm:$0xff]  }
0x1464   :  { %2771 = vmatprep.subr.bf16.mxu0 %v7818_v3  ;;  %v7836_v3 = vld [vmem:[#allocation9 + $0x104] ss:$16 sps:$4 sm:$0xff]  }
0x1467   :  { %2772 = vmatpush1.bf16.msra.mxu0 %v7821_v19  ;;  %v7839_v19 = vld [vmem:[#allocation9 + $0x100] ss:$16 sps:$4 sm:$0xff]  }
0x1468   :  { %2773 = vmatprep.subr.bf16.mxu0 %v7824_v51  ;;  %v7842_v51 = vld [vmem:[#allocation9 + $0x124] ss:$16 sps:$4 sm:$0xff]  }
0x146b   :  { %2774 = vmatpush1.bf16.msra.mxu0 %v7827_v53  ;;  %v7845_v53 = vld [vmem:[#allocation9 + $0x120] ss:$16 sps:$4 sm:$0xff]  }
0x146c   :  { %2775 = vmatprep.subr.bf16.mxu0 %v7830_v31  ;;  %9597 = vst [vmem:[#allocation35_spill] sm:$0xff] %v7845_v53  ;;  %v7848_v31 = vld [vmem:[#allocation9 + $0x144] ss:$16 sps:$4 sm:$0xff]  }
0x146d   :  { %9598 = vst [vmem:[#allocation36_spill] sm:$0xff] %v7848_v31 }
0x146f   :  { %2776 = vmatpush1.bf16.msra.mxu0 %v7833_v55 }
0x1470   :  { %2777 = vmatprep.subr.bf16.mxu0 %v7836_v3 }
0x1473   :  { %2778 = vmatpush1.bf16.msra.mxu0 %v7839_v19 }
0x1474   :  { %2779 = vmatprep.subr.bf16.mxu0 %v7842_v51 }
0x1477   :  { %2780 = vmatpush1.bf16.msra.mxu0 %v7845_v53 }
0x1478   :  { %2781 = vmatprep.subr.bf16.mxu0 %v7848_v31 }
0x147b   :  { %2782 = vmatpush1.bf16.msra.mxu0 %v7386_v32 }
0x147c   :  { %2783 = vmatprep.subr.bf16.mxu0 %v7393_v45 }
0x147f   :  { %2784 = vmatpush1.bf16.msra.mxu0 %v7397_v34 }
0x1480   :  { %2785 = vmatprep.subr.bf16.mxu0 %v7402_v35 }
0x1483   :  { %2786 = vmatpush1.bf16.msra.mxu0 %v7410_v26 }
0x1484   :  { %2787 = vmatprep.subr.bf16.mxu0 %v7415_v38 }
0x1487   :  { %2788 = vmatpush1.bf16.msra.mxu0 %v7422_v1  ;;  %v7864_v1 = vld [vmem:[#allocation9 + $0x8] ss:$16 sps:$4 sm:$0xff]  }
0x1488   :  { %2789 = vmatprep.subr.bf16.mxu0 %v7427_v61  ;;  %9599 = vst [vmem:[#allocation37_spill] sm:$0xff] %v7864_v1  ;;  %v7870_v61 = vld [vmem:[#allocation9 + $0x28] ss:$16 sps:$4 sm:$0xff]  }
0x1489   :  { %9601 = vst [vmem:[#allocation39_spill] sm:$0xff] %v7870_v61 }
0x148b   :  { %2790 = vmatpush1.bf16.msra.mxu0 %v7434_v59  ;;  %v7867_v59 = vld [vmem:[#allocation9 + $0x2c] ss:$16 sps:$4 sm:$0xff]  }
0x148c   :  { %2791 = vmatprep.subr.bf16.mxu0 %v7439_v36  ;;  %9600 = vst [vmem:[#allocation38_spill] sm:$0xff] %v7867_v59  ;;  %v7873_v36 = vld [vmem:[#allocation9 + $0x4c] ss:$16 sps:$4 sm:$0xff]  }
0x148d   :  { %9602 = vst [vmem:[#allocation40_spill] sm:$0xff] %v7873_v36 }
0x148f   :  { %2792 = vmatpush1.bf16.msra.mxu0 %v7446_v41  ;;  %v7876_v41 = vld [vmem:[#allocation9 + $0x48] ss:$16 sps:$4 sm:$0xff]  }
0x1490   :  { %5583 = vmatprep.subr.bf16.mxu0 %v9521_v33  ;;  %9603 = vst [vmem:[#allocation41_spill] sm:$0xff] %v7876_v41 }
0x1525   :  { %v5044_v32 = vpop.f32.mrb[56].mxu0 }
0x1526   :  { %v5045_v45 = vpop.f32.mrb[57].mxu0 }
0x1527   :  { %v5046_v34 = vadd.f32 %v5045_v45, %v5044_v32  ;;  %v5047_v35 = vpop.f32.mrb[58].mxu0  ;;  %v7885_v32 = vld [vmem:[#allocation9 + $0x8c] ss:$16 sps:$4 sm:$0xff]   ;;  %v7888_v45 = vld [vmem:[#allocation9 + $0x88] ss:$16 sps:$4 sm:$0xff]  }
0x1528   :  { %v5048_v31 = vpop.f32.mrb[59].mxu0  ;;  %9606 = vst [vmem:[#allocation44_spill] sm:$0xff] %v7885_v32  ;;  %9607 = vst [vmem:[#allocation45_spill] sm:$0xff] %v7888_v45  ;;  %v7894_v35 = vld [vmem:[#allocation9 + $0xa8] ss:$16 sps:$4 sm:$0xff]  }
0x1529   :  { %6171 = vtanh.f32 %v5046_v34  ;;  %v7882_v31 = vld [vmem:[#allocation9 + $0x68] ss:$16 sps:$4 sm:$0xff]   ;;  %v7891_v34 = vld [vmem:[#allocation9 + $0xac] ss:$16 sps:$4 sm:$0xff]   ;;  %9609 = vst [vmem:[#allocation48_spill] sm:$0xff] %v7894_v35 }
0x152a   :  { %9605 = vst [vmem:[#allocation43_spill] sm:$0xff] %v7882_v31  ;;  %9608 = vst [vmem:[#allocation46_spill] sm:$0xff] %v7891_v34 }
0x1533   :  { %v6172_v26 = vpop.eup %6171 }
0x1534   :  { %v2685_v38 = vpack.c.bf16 %v6172_v26, %v6172_v26  ;;  %v7897_v26 = vld [vmem:[#allocation9 + $0xcc] ss:$16 sps:$4 sm:$0xff]  }
0x1535   :  { %9610 = vst [vmem:[#allocation56_spill] sm:$0xff] %v7897_v26 }
0x1536   :  { %5580 = vmatmul.mubr.bf16.vlgmr.msra.gmra.mrb[56].mxu1 %v2685_v38  ;;  %v7900_v38 = vld [vmem:[#allocation9 + $0xc8] ss:$16 sps:$4 sm:$0xff]  }
0x1537   :  { %2834 = vmatprep.mubr.bf16.mxu1 %v7745_v11  ;;  %2803 = vmatpush1.bf16.msra.mxu1 %v7864_v1  ;;  %v7879_v11 = vld [vmem:[#allocation9 + $0x6c] ss:$16 sps:$4 sm:$0xff]   ;;  %9611 = vst [vmem:[#allocation57_spill] sm:$0xff] %v7900_v38 }
0x1538   :  { %2804 = vmatprep.subr.bf16.mxu1 %v7867_v59  ;;  %9604 = vst [vmem:[#allocation42_spill] sm:$0xff] %v7879_v11 }
0x153b   :  { %2805 = vmatpush1.bf16.msra.mxu1 %v7870_v61 }
0x153c   :  { %2806 = vmatprep.subr.bf16.mxu1 %v7873_v36 }
0x153f   :  { %2807 = vmatpush1.bf16.msra.mxu1 %v7876_v41 }
0x1540   :  { %2808 = vmatprep.subr.bf16.mxu1 %v7879_v11 }
0x1543   :  { %2809 = vmatpush1.bf16.msra.mxu1 %v7882_v31 }
0x1544   :  { %2810 = vmatprep.subr.bf16.mxu1 %v7885_v32  ;;  %v7903_v32 = vld [vmem:[#allocation9 + $0xec] ss:$16 sps:$4 sm:$0xff]  }
0x1545   :  { %9612 = vst [vmem:[#allocation58_spill] sm:$0xff] %v7903_v32 }
0x1547   :  { %2811 = vmatpush1.bf16.msra.mxu1 %v7888_v45  ;;  %v7906_v45 = vld [vmem:[#allocation9 + $0xe8] ss:$16 sps:$4 sm:$0xff]  }
0x1548   :  { %2812 = vmatprep.subr.bf16.mxu1 %v7891_v34  ;;  %9613 = vst [vmem:[#allocation59_spill] sm:$0xff] %v7906_v45  ;;  %v7909_v34 = vld [vmem:[#allocation9 + $0x10c] ss:$16 sps:$4 sm:$0xff]  }
0x1549   :  { %9614 = vst [vmem:[#allocation60_spill] sm:$0xff] %v7909_v34 }
0x154b   :  { %2813 = vmatpush1.bf16.msra.mxu1 %v7894_v35  ;;  %v7912_v35 = vld [vmem:[#allocation9 + $0x108] ss:$16 sps:$4 sm:$0xff]  }
0x154c   :  { %2814 = vmatprep.subr.bf16.mxu1 %v7897_v26  ;;  %9615 = vst [vmem:[#allocation61_spill] sm:$0xff] %v7912_v35  ;;  %v7915_v26 = vld [vmem:[#allocation9 + $0x12c] ss:$16 sps:$4 sm:$0xff]  }
0x154d   :  { %9616 = vst [vmem:[#allocation62_spill] sm:$0xff] %v7915_v26 }
0x154f   :  { %2815 = vmatpush1.bf16.msra.mxu1 %v7900_v38  ;;  %v7918_v38 = vld [vmem:[#allocation9 + $0x128] ss:$16 sps:$4 sm:$0xff]  }
0x1550   :  { %2816 = vmatprep.subr.bf16.mxu1 %v7903_v32  ;;  %9617 = vst [vmem:[#allocation64_spill] sm:$0xff] %v7918_v38  ;;  %v7921_v32 = vld [vmem:[#allocation9 + $0x14c] ss:$16 sps:$4 sm:$0xff]  }
0x1551   :  { %9618 = vst [vmem:[#allocation65_spill] sm:$0xff] %v7921_v32 }
0x1553   :  { %2817 = vmatpush1.bf16.msra.mxu1 %v7906_v45  ;;  %v7924_v45 = vld [vmem:[#allocation9 + $0x148] ss:$16 sps:$4 sm:$0xff]  }
0x1554   :  { %2818 = vmatprep.subr.bf16.mxu1 %v7909_v34  ;;  %9619 = vst [vmem:[#allocation66_spill] sm:$0xff] %v7924_v45  ;;  %v7927_v34 = vld [vmem:[#allocation9 + $0x16c] ss:$16 sps:$4 sm:$0xff]  }
0x1555   :  { %9620 = vst [vmem:[#allocation67_spill] sm:$0xff] %v7927_v34 }
0x1557   :  { %2819 = vmatpush1.bf16.msra.mxu1 %v7912_v35  ;;  %v7930_v35 = vld [vmem:[#allocation9 + $0x168] ss:$16 sps:$4 sm:$0xff]  }
0x1558   :  { %2820 = vmatprep.subr.bf16.mxu1 %v7915_v26  ;;  %9621 = vst [vmem:[#allocation68_spill] sm:$0xff] %v7930_v35  ;;  %v7933_v26 = vld [vmem:[#allocation9 + $0x18c] ss:$16 sps:$4 sm:$0xff]  }
0x1559   :  { %9622 = vst [vmem:[#allocation69_spill] sm:$0xff] %v7933_v26 }
0x155b   :  { %2821 = vmatpush1.bf16.msra.mxu1 %v7918_v38  ;;  %v7936_v38 = vld [vmem:[#allocation9 + $0x188] ss:$16 sps:$4 sm:$0xff]  }
0x155c   :  { %2822 = vmatprep.subr.bf16.mxu1 %v7921_v32  ;;  %9623 = vst [vmem:[#allocation70_spill] sm:$0xff] %v7936_v38  ;;  %v7939_v32 = vld [vmem:[#allocation9 + $0x1ac] ss:$16 sps:$4 sm:$0xff]  }
0x155d   :  { %9624 = vst [vmem:[#allocation71_spill] sm:$0xff] %v7939_v32 }
0x155f   :  { %2823 = vmatpush1.bf16.msra.mxu1 %v7924_v45  ;;  %v7942_v45 = vld [vmem:[#allocation9 + $0x1a8] ss:$16 sps:$4 sm:$0xff]  }
0x1560   :  { %2824 = vmatprep.subr.bf16.mxu1 %v7927_v34  ;;  %9625 = vst [vmem:[#allocation72_spill] sm:$0xff] %v7942_v45  ;;  %v7945_v34 = vld [vmem:[#allocation9 + $0x1cc] ss:$16 sps:$4 sm:$0xff]  }
0x1561   :  { %9626 = vst [vmem:[#allocation73_spill] sm:$0xff] %v7945_v34 }
0x1563   :  { %2825 = vmatpush1.bf16.msra.mxu1 %v7930_v35  ;;  %v7948_v35 = vld [vmem:[#allocation9 + $0x1c8] ss:$16 sps:$4 sm:$0xff]  }
0x1564   :  { %2826 = vmatprep.subr.bf16.mxu1 %v7933_v26  ;;  %9627 = vst [vmem:[#allocation74_spill] sm:$0xff] %v7948_v35  ;;  %v7951_v26 = vld [vmem:[#allocation9 + $0x1ec] ss:$16 sps:$4 sm:$0xff]  }
0x1565   :  { %9628 = vst [vmem:[#allocation75_spill] sm:$0xff] %v7951_v26 }
0x1567   :  { %2827 = vmatpush1.bf16.msra.mxu1 %v7936_v38  ;;  %v7954_v38 = vld [vmem:[#allocation9 + $0x1e8] ss:$16 sps:$4 sm:$0xff]  }
0x1568   :  { %2828 = vmatprep.subr.bf16.mxu1 %v7939_v32  ;;  %9629 = vst [vmem:[#allocation76_spill] sm:$0xff] %v7954_v38 }
0x156b   :  { %2829 = vmatpush1.bf16.msra.mxu1 %v7942_v45 }
0x156c   :  { %2830 = vmatprep.subr.bf16.mxu1 %v7945_v34 }
0x156f   :  { %2831 = vmatpush1.bf16.msra.mxu1 %v7948_v35 }
0x1570   :  { %2832 = vmatprep.subr.bf16.mxu1 %v7951_v26 }
0x1573   :  { %2833 = vmatpush1.bf16.msra.mxu1 %v7954_v38 }
0x1574   :  { %5603 = vmatprep.subr.bf16.mxu1 %v9521_v33 }
0x1609   :  { %v2720_v32 = vpop.f32.mrb[56].mxu1 }
0x160a   :  { %v2721_v45 = vadd.f32 %v2720_v32, %v7702_v12  ;;  %v5581_v31 = vpop.f32.mrb[57].mxu1 }
0x160b   :  { %v2723_v11 = vpop.f32.mrb[58].mxu1 }
0x160c   :  { %v5582_v34 = vpop.f32.mrb[59].mxu1  ;;  %v2726_v41 = vsel %vm2416_vm6, %v2721_v45, -inf  ;;  %v9630_v11 = vmov 0  }
0x160d   :  { %2727 = vmax.xlane.f32.xlu1 %v2726_v41  ;;  %v2439_v31 = vsel %vm2438_vm13, 1, %v9630_v11 }
0x160e   :  { %v2440_v34 = vsel %vm2438_vm13, %v2439_v31, 0 }
0x160f   :  { %vm2445_vm14 = vcmp.eq.s32.totalorder %v2440_v34, 0 }
0x1610   :  { %vm7972_vm2 = vmand %vm2746_vm15, %vm2445_vm14 }
0x169a   :  { %v2728_v35 = vpop.xlane.xlu1 %2727 }
0x169b   :  { %vm2729_vm11 = vcmp.ge.f32.partialorder %v2721_v45, %v2728_v35 }
0x169c   :  { %v2730_v36 = vsel %vm2729_vm11, %v7464_v62, 128 }
0x169d   :  { %v2731_v26 = vsel %vm2416_vm6, %v2730_v36, 2147483647 }
0x169e   :  { %v2733_v61 = vshra.s32 %v2731_v26, 16  ;;  %v2732_v38 = vand.u32 65535, %v2731_v26  ;;  %v2747_v26 = vsel %vm2445_vm14, 1, %v9630_v11 }
0x16a0   :  { %v2735_v59 = vcvt.s32.f32 %v2733_v61  ;;  %v2734_v53 = vcvt.s32.f32 %v2732_v38 }
0x16a2   :  { %2736 = vmin.xlane.f32.xlu1 %v2735_v59 }
0x172f   :  { %v2737_v1 = vpop.xlane.xlu1 %2736 }
0x1730   :  { %vm2738_vm12 = vcmp.eq.f32.partialorder %v2735_v59, %v2737_v1  ;;  %v2743_v41 = vcvt.f32.s32 %v2737_v1  ;;  %v7970_v59 = vsel %vm1632_vm1, %v7708_v46, 0 }
0x1731   :  { %v2739_v32 = vsel %vm2738_vm12, %v2734_v53, inf  ;;  %vm3061_vm12 = vcmp.eq.s32.totalorder %v7464_v62, 3 }
0x1732   :  { %2740 = vmin.xlane.f32.xlu1 %v2739_v32  ;;  %v2744_v35 = vshll.u32 %v2743_v41, 16  ;;  %v2751_v32 = vadd.s32 2, %v2747_v26 }
0x17bf   :  { %v2741_v45 = vpop.xlane.xlu1 %2740 }
0x17c0   :  { %v2742_v36 = vcvt.f32.s32 %v2741_v45 }
0x17c2   :  { %v7965_v61 = vadd.s32 %v2744_v35, %v2742_v36 }
0x17c4   :  { %vm2752_vm3 = vcmp.eq.s32.totalorder %v7965_v61, 2  ;;  %vm2756_vm7 = vcmp.eq.s32.totalorder %v7464_v62, %v7965_v61 }
0x17c5   :  { %v2753_v38 = vsel %vm2752_vm3, 1, %v9630_v11  ;;  %vm4847_vm1 = vmpackc.low %vm2756_vm7, %vm2756_vm7 }
0x17c6   :  { %vm2754_vm8 = vcmp.gt.s32.totalorder %v2440_v34, %v2753_v38  ;;  %4848 = vmatmul.mubr.msk.bf16.vlgmr.msra.gmra.mrb[60].mxu0 %vm4847_vm1, %v9567_v27  ;;  %4850 = vmatmul.mubr.msk.bf16.vlgmr.msra.gmra.mrb[60].mxu1 %vm4847_vm1, %v9567_v27 }
0x17c7   :  { %v7987_v46 = vsel %vm2754_vm8, %v2440_v34, %v2753_v38  ;;  %5584 = vmatpush3.bf16.msra.mxu0 %v9568_v30  ;;  %5604 = vmatpush3.bf16.msra.mxu1 %v9569_v60 }
0x17c8   :  { %5585 = vmatprep.subr.bf16.mxu0 %v9521_v33  ;;  %5599 = vmatprep.mubr.msk.bf16.mxu0 %vm6673_vm0, %v9521_v33  ;;  %vm2760_vm9 = vcmp.eq.s32.totalorder %v7987_v46, 0 }
0x17c9   :  { %5605 = vmatprep.mubr.msk.bf16.mxu1 %vm6673_vm0, %v9521_v33  ;;  %5070 = vmatprep.subr.bf16.mxu1 %v7550_v48  ;;  %v3062_v31 = vsel %vm2760_vm9, 1, %v9630_v11  ;;  %vm3064_vm13 = vmand %vm3061_vm12, %vm2760_vm9  ;;  %vm3376_vm9 = vcmp.eq.s32.totalorder %v7464_v62, 4 }
0x17ca   :  { %v8001_v41 = vadd.s32 %v3062_v31, %v2751_v32 }
0x17cb   :  { %5586 = vmatpush3.bf16.msra.mxu0 %v9570_v28 }
0x17cc   :  { %9633 = vst [vmem:[#allocation77_spill] sm:$0xff] %v8001_v41  ;;  %5587 = vmatprep.subr.bf16.mxu0 %v9521_v33 }
0x17cf   :  { %5588 = vmatpush3.bf16.msra.mxu0 %v9571_v52 }
0x17d0   :  { %5589 = vmatprep.subr.bf16.mxu0 %v9521_v33 }
0x17d3   :  { %5590 = vmatpush3.bf16.msra.mxu0 %v9572_v29  ;;  %v9682_v53 = vld [vmem:[#allocation77_spill] sm:$0xff] }
0x17d4   :  { %5591 = vmatprep.subr.bf16.mxu0 %v9521_v33 }
0x17d7   :  { %5592 = vmatpush3.bf16.msra.mxu0 %v9573_v0 }
0x17d8   :  { %5593 = vmatprep.subr.bf16.mxu0 %v9521_v33 }
0x17db   :  { %5594 = vmatpush3.bf16.msra.mxu0 %v9574_v25 }
0x17dc   :  { %5595 = vmatprep.subr.bf16.mxu0 %v9521_v33 }
0x17df   :  { %5596 = vmatpush3.bf16.msra.mxu0 %v9575_v10 }
0x17e0   :  { %5597 = vmatprep.subr.bf16.mxu0 %v9521_v33 }
0x17e3   :  { %5598 = vmatpush3.bf16.msra.mxu0 %v9576_v14 }
0x17e4   :  { %5609 = vmatprep.subr.bf16.mxu0 %v9521_v33 }
0x1899   :  { %v2795_v48 = vpop.f32.mrb[60].mxu0  ;;  %v2836_v34 = vpop.f32.mrb[60].mxu1 }
0x189a   :  { %v2797_v45 = vpop.f32.mrb[61].mxu0  ;;  %v2838_v35 = vpop.f32.mrb[61].mxu1  ;;  %v2796_v25 = vadd.f32 %v2795_v48, %v7521_v20 }
0x189b   :  { %v2798_v36 = vadd.f32 %v2797_v45, %v7525_v23  ;;  %v2799_v26 = vpop.f32.mrb[62].mxu0  ;;  %v2840_v38 = vpop.f32.mrb[62].mxu1  ;;  %v2839_v28 = vadd.f32 %v2838_v35, %v7530_v21  ;;  %v2837_v45 = vadd.f32 %v2836_v34, %v7534_v58  ;;  %v9643_v34 = vld [vmem:[#allocation31_spill] sm:$0xff]  ;;  %v9644_v35 = vld [vmem:[#allocation32_spill] sm:$0xff] }
0x189c   :  { %v2800_v32 = vpop.f32.mrb[63].mxu0  ;;  %v2841_v31 = vpop.f32.mrb[63].mxu1  ;;  %v4851_v10 = vmul.f32 -1.442695, %v2796_v25 }
0x189d   :  { %v4852_v1 = vmul.f32 -1.442695, %v2798_v36  ;;  %v9645_v31 = vld [vmem:[#allocation33_spill] sm:$0xff] }
0x189f   :  { %6173 = vpow2.f32 %v4852_v1 }
0x18a0   :  { %6175 = vpow2.f32 %v4851_v10 }
0x18a9   :  { %v6174_v0 = vpop.eup %6173 }
0x18aa   :  { %v2852_v14 = vadd.f32 1.0, %v6174_v0  ;;  %v6176_v29 = vpop.eup %6175 }
0x18ab   :  { %v2846_v52 = vadd.f32 1.0, %v6176_v29 }
0x18ac   :  { %6177 = vrcp.f32 %v2852_v14 }
0x18ad   :  { %6179 = vrcp.f32 %v2846_v52 }
0x18b6   :  { %v6178_v41 = vpop.eup %6177 }
0x18b7   :  { %v2855_v26 = vmul.f32 %v6178_v41, %v2839_v28  ;;  %v6180_v36 = vpop.eup %6179 }
0x18b8   :  { %v2858_v32 = vsub.f32 1.0, %v6180_v36  ;;  %v2860_v25 = vmul.f32 %v6180_v36, %v7741_v8  ;;  %v8088_v36 = vld [vmem:[#allocation9 + $0x140] ss:$16 sps:$4 sm:$0xff]  }
0x18b9   :  { %v2856_v38 = vadd.f32 %v2855_v26, %v2837_v45  ;;  %v9646_v45 = vld [vmem:[#allocation34_spill] sm:$0xff]  ;;  %v9647_v26 = vld [vmem:[#allocation35_spill] sm:$0xff] }
0x18bb   :  { %6181 = vtanh.f32 %v2856_v38  ;;  %v9648_v38 = vld [vmem:[#allocation36_spill] sm:$0xff] }
0x18c5   :  { %v6182_v48 = vpop.eup %6181 }
0x18c6   :  { %v2859_v1 = vmul.f32 %v6182_v48, %v2858_v32  ;;  %v8091_v32 = vld [vmem:[#allocation9 + $0x164] ss:$16 sps:$4 sm:$0xff]   ;;  %v8094_v48 = vld [vmem:[#allocation9 + $0x160] ss:$16 sps:$4 sm:$0xff]  }
0x18c8   :  { %v8022_v10 = vadd.f32 %v2860_v25, %v2859_v1  ;;  %v8097_v1 = vld [vmem:[#allocation9 + $0x184] ss:$16 sps:$4 sm:$0xff]   ;;  %v8100_v25 = vld [vmem:[#allocation9 + $0x180] ss:$16 sps:$4 sm:$0xff]  }
0x18ca   :  { %v8026_v29 = vpack.c.bf16 %v8022_v10, %v8022_v10 }
0x18cc   :  { %5600 = vmatmul.mubr.bf16.vlgmr.msra.gmra.mrb[64].mxu0 %v8026_v29 }
0x18cd   :  { %5610 = vmatpush3.bf16.msra.mxu0 %v7600_v57  ;;  %5625 = vmatprep.mubr.msk.bf16.mxu0 %vm6673_vm0, %v9521_v33 }
0x18ce   :  { %5611 = vmatprep.subr.bf16.mxu0 %v9521_v33 }
0x18d1   :  { %5612 = vmatpush3.bf16.msra.mxu0 %v7603_v24 }
0x18d2   :  { %5613 = vmatprep.subr.bf16.mxu0 %v9521_v33 }
0x18d5   :  { %5614 = vmatpush3.bf16.msra.mxu0 %v7607_v50 }
0x18d6   :  { %5615 = vmatprep.subr.bf16.mxu0 %v9521_v33 }
0x18d9   :  { %5616 = vmatpush3.bf16.msra.mxu0 %v7611_v54 }
0x18da   :  { %5617 = vmatprep.subr.bf16.mxu0 %v9521_v33 }
0x18dd   :  { %5618 = vmatpush3.bf16.msra.mxu0 %v7650_v39 }
0x18de   :  { %5619 = vmatprep.subr.bf16.mxu0 %v9521_v33 }
0x18e1   :  { %5620 = vmatpush3.bf16.msra.mxu0 %v7654_v42 }
0x18e2   :  { %5621 = vmatprep.subr.bf16.mxu0 %v9521_v33 }
0x18e5   :  { %5622 = vmatpush3.bf16.msra.mxu0 %v7658_v2 }
0x18e6   :  { %5623 = vmatprep.subr.bf16.mxu0 %v9521_v33 }
0x18e9   :  { %5624 = vmatpush3.bf16.msra.mxu0 %v7662_v7 }
0x18ea   :  { %3117 = vmatprep.subr.bf16.mxu0 %v7765_v37 }
0x199f   :  { %v2897_v57 = vpop.f32.mrb[64].mxu0 }
0x19a0   :  { %v5601_v24 = vpop.f32.mrb[65].mxu0  ;;  %v2903_v50 = vsel %vm2128_vm4, %v2897_v57, -inf }
0x19a1   :  { %2904 = vmax.xlane.f32.xlu1 %v2903_v50  ;;  %v2900_v54 = vpop.f32.mrb[66].mxu0  ;;  %v8106_v24 = vld [vmem:[#allocation9 + $0x1a0] ss:$16 sps:$4 sm:$0xff]   ;;  %v8109_v50 = vld [vmem:[#allocation9 + $0x1c4] ss:$16 sps:$4 sm:$0xff]  }
0x19a2   :  { %v5602_v39 = vpop.f32.mrb[67].mxu0  ;;  %v8112_v54 = vld [vmem:[#allocation9 + $0x1c0] ss:$16 sps:$4 sm:$0xff]  }
0x19a3   :  { %v8115_v39 = vld [vmem:[#allocation9 + $0x1e4] ss:$16 sps:$4 sm:$0xff]  }
0x1a2e   :  { %v2905_v28 = vpop.xlane.xlu1 %2904 }
0x1a2f   :  { %v2906_v52 = vsub.f32 %v2897_v57, %v2905_v28  ;;  %v8103_v57 = vld [vmem:[#allocation9 + $0x1a4] ss:$16 sps:$4 sm:$0xff]   ;;  %v8118_v28 = vld [vmem:[#allocation9 + $0x1e0] ss:$16 sps:$4 sm:$0xff]  }
0x1a31   :  { %v2907_v42 = vmul.f32 1.442695, %v2906_v52 }
0x1a33   :  { %6183 = vpow2.f32 %v2907_v42 }
0x1a3d   :  { %v6184_v0 = vpop.eup %6183 }
0x1a3e   :  { %v2909_v2 = vsel %vm2128_vm4, %v6184_v0, 0.0 }
0x1a3f   :  { %2910 = vadd.xlane.f32.xlu1 %v2909_v2 }
0x1acc   :  { %v2911_v14 = vpop.xlane.xlu1 %2910 }
0x1acd   :  { %6185 = vrcp.f32 %v2911_v14 }
0x1ad7   :  { %v6186_v7 = vpop.eup %6185 }
0x1ad8   :  { %v2913_v8 = vmul.f32 %v6186_v7, %v6184_v0 }
0x1ada   :  { %v2914_v41 = vpack.c.bf16 %v2913_v8, %v2913_v8 }
0x1adc   :  { %5606 = vmatmul.mubr.msk.bf16.vlgmr.msra.gmra.mrb[64].mxu1 %vm2141_vm5, %v2914_v41  ;;  %v9649_v41 = vld [vmem:[#allocation37_spill] sm:$0xff] }
0x1add   :  { %5071 = vmatpush3.bf16.msra.mxu1 %v7553_v49  ;;  %v9634_v49 = vld [vmem:[#allocation63_spill] sm:$0xff] }
0x1ade   :  { %5072 = vmatprep.subr.bf16.mxu1 %v7555_v4 }
0x1ae1   :  { %5073 = vmatpush3.bf16.msra.mxu1 %v7559_v44 }
0x1ae2   :  { %5074 = vmatprep.subr.bf16.mxu1 %v7562_v47 }
0x1ae5   :  { %5075 = vmatpush3.bf16.msra.mxu1 %v7565_v9 }
0x1ae6   :  { %5076 = vmatprep.subr.bf16.mxu1 %v7568_v43 }
0x1ae9   :  { %5077 = vmatpush3.bf16.msra.mxu1 %v7571_v63  ;;  %v9635_v63 = vld [vmem:[#allocation23_spill] sm:$0xff] }
0x1aea   :  { %5078 = vmatprep.subr.bf16.mxu1 %v9577_v40  ;;  %v9636_v40 = vld [vmem:[#allocation24_spill] sm:$0xff] }
0x1aed   :  { %5079 = vmatpush3.bf16.msra.mxu1 %v9578_v6  ;;  %v9637_v6 = vld [vmem:[#allocation25_spill] sm:$0xff] }
0x1aee   :  { %5080 = vmatprep.subr.bf16.mxu1 %v9579_v18  ;;  %v9638_v18 = vld [vmem:[#allocation26_spill] sm:$0xff] }
0x1af1   :  { %5081 = vmatpush3.bf16.msra.mxu1 %v9580_v22  ;;  %v9639_v22 = vld [vmem:[#allocation27_spill] sm:$0xff] }
0x1af2   :  { %5082 = vmatprep.subr.bf16.mxu1 %v9581_v13  ;;  %v9640_v13 = vld [vmem:[#allocation28_spill] sm:$0xff] }
0x1af5   :  { %5083 = vmatpush3.bf16.msra.mxu1 %v9582_v15  ;;  %v9641_v15 = vld [vmem:[#allocation29_spill] sm:$0xff] }
0x1af6   :  { %5084 = vmatprep.subr.bf16.mxu1 %v9583_v17  ;;  %v9642_v17 = vld [vmem:[#allocation30_spill] sm:$0xff] }
0x1af9   :  { %5085 = vmatpush3.bf16.msra.mxu1 %v9634_v49  ;;  %v9650_v49 = vld [vmem:[#allocation38_spill] sm:$0xff] }
0x1afa   :  { %3076 = vmatprep.subr.bf16.mxu1 %v7786_v5 }
0x1baf   :  { %v2952_v4 = vpop.f32.mrb[64].mxu1 }
0x1bb0   :  { %v2958_v44 = vpack.c.bf16 %v2952_v4, %v2952_v4  ;;  %v5607_v47 = vpop.f32.mrb[65].mxu1  ;;  %v9651_v4 = vld [vmem:[#allocation39_spill] sm:$0xff] }
0x1bb1   :  { %v2955_v9 = vpop.f32.mrb[66].mxu1  ;;  %v9653_v47 = vld [vmem:[#allocation41_spill] sm:$0xff] }
0x1bb2   :  { %v5608_v43 = vpop.f32.mrb[67].mxu1  ;;  %2991 = vmatprep.mubr.bf16.mxu1 %v2958_v44  ;;  %v9652_v44 = vld [vmem:[#allocation40_spill] sm:$0xff]  ;;  %v9654_v9 = vld [vmem:[#allocation42_spill] sm:$0xff] }
0x1bb3   :  { %2992 = vmatmul.mubr.bf16.vlgmr.msra.gmra.mrb[68].mxu1 %v8026_v29  ;;  %v9655_v43 = vld [vmem:[#allocation43_spill] sm:$0xff] }
0x1bb4   :  { %3108 = vmatprep.mubr.bf16.mxu1 %v8026_v29  ;;  %3077 = vmatpush1.bf16.msra.mxu1 %v7791_v56 }
0x1bb5   :  { %3078 = vmatprep.subr.bf16.mxu1 %v7794_v16 }
0x1bb8   :  { %3079 = vmatpush1.bf16.msra.mxu1 %v9635_v63 }
0x1bb9   :  { %3080 = vmatprep.subr.bf16.mxu1 %v9636_v40 }
0x1bbc   :  { %3081 = vmatpush1.bf16.msra.mxu1 %v9637_v6 }
0x1bbd   :  { %3082 = vmatprep.subr.bf16.mxu1 %v9638_v18 }
0x1bc0   :  { %3083 = vmatpush1.bf16.msra.mxu1 %v9639_v22 }
0x1bc1   :  { %3084 = vmatprep.subr.bf16.mxu1 %v9640_v13 }
0x1bc4   :  { %3085 = vmatpush1.bf16.msra.mxu1 %v9641_v15 }
0x1bc5   :  { %3086 = vmatprep.subr.bf16.mxu1 %v9642_v17 }
0x1bc8   :  { %3087 = vmatpush1.bf16.msra.mxu1 %v9643_v34 }
0x1bc9   :  { %3088 = vmatprep.subr.bf16.mxu1 %v9644_v35 }
0x1bcc   :  { %3089 = vmatpush1.bf16.msra.mxu1 %v9645_v31 }
0x1bcd   :  { %3090 = vmatprep.subr.bf16.mxu1 %v9646_v45 }
0x1bd0   :  { %3091 = vmatpush1.bf16.msra.mxu1 %v7833_v55 }
0x1bd1   :  { %3092 = vmatprep.subr.bf16.mxu1 %v7836_v3 }
0x1bd4   :  { %3093 = vmatpush1.bf16.msra.mxu1 %v7839_v19 }
0x1bd5   :  { %3094 = vmatprep.subr.bf16.mxu1 %v7842_v51 }
0x1bd8   :  { %3095 = vmatpush1.bf16.msra.mxu1 %v9647_v26 }
0x1bd9   :  { %3096 = vmatprep.subr.bf16.mxu1 %v9648_v38 }
0x1bdc   :  { %3097 = vmatpush1.bf16.msra.mxu1 %v8088_v36 }
0x1bdd   :  { %3098 = vmatprep.subr.bf16.mxu1 %v8091_v32 }
0x1be0   :  { %3099 = vmatpush1.bf16.msra.mxu1 %v8094_v48 }
0x1be1   :  { %3100 = vmatprep.subr.bf16.mxu1 %v8097_v1 }
0x1be4   :  { %3101 = vmatpush1.bf16.msra.mxu1 %v8100_v25 }
0x1be5   :  { %3102 = vmatprep.subr.bf16.mxu1 %v8103_v57 }
0x1be8   :  { %3103 = vmatpush1.bf16.msra.mxu1 %v8106_v24 }
0x1be9   :  { %3104 = vmatprep.subr.bf16.mxu1 %v8109_v50 }
0x1bec   :  { %3105 = vmatpush1.bf16.msra.mxu1 %v8112_v54 }
0x1bed   :  { %3106 = vmatprep.subr.bf16.mxu1 %v8115_v39 }
0x1bf0   :  { %3107 = vmatpush1.bf16.msra.mxu1 %v8118_v28 }
0x1bf1   :  { %5629 = vmatprep.subr.bf16.mxu1 %v9521_v33 }
0x1c86   :  { %v5086_v52 = vpop.f32.mrb[68].mxu1 }
0x1c87   :  { %v5087_v42 = vpop.f32.mrb[69].mxu1 }
0x1c88   :  { %v5088_v0 = vadd.f32 %v5087_v42, %v5086_v52  ;;  %v5089_v2 = vpop.f32.mrb[70].mxu1  ;;  %v9656_v52 = vld [vmem:[#allocation44_spill] sm:$0xff]  ;;  %v9657_v42 = vld [vmem:[#allocation45_spill] sm:$0xff] }
0x1c89   :  { %v5090_v14 = vpop.f32.mrb[71].mxu1  ;;  %v9660_v2 = vld [vmem:[#allocation56_spill] sm:$0xff] }
0x1c8a   :  { %6187 = vtanh.f32 %v5088_v0  ;;  %v9658_v0 = vld [vmem:[#allocation46_spill] sm:$0xff]  ;;  %v9661_v14 = vld [vmem:[#allocation57_spill] sm:$0xff] }
0x1c94   :  { %v6188_v7 = vpop.eup %6187 }
0x1c95   :  { %v3000_v8 = vpack.c.bf16 %v6188_v7, %v6188_v7  ;;  %v9662_v7 = vld [vmem:[#allocation58_spill] sm:$0xff] }
0x1c97   :  { %5626 = vmatmul.mubr.bf16.vlgmr.msra.gmra.mrb[68].mxu0 %v3000_v8  ;;  %v9663_v8 = vld [vmem:[#allocation59_spill] sm:$0xff] }
0x1c98   :  { %3149 = vmatprep.mubr.bf16.mxu0 %v8026_v29  ;;  %3118 = vmatpush1.bf16.msra.mxu0 %v9649_v41  ;;  %v9659_v29 = vld [vmem:[#allocation48_spill] sm:$0xff] }
0x1c99   :  { %3119 = vmatprep.subr.bf16.mxu0 %v9650_v49 }
0x1c9c   :  { %3120 = vmatpush1.bf16.msra.mxu0 %v9651_v4 }
0x1c9d   :  { %3121 = vmatprep.subr.bf16.mxu0 %v9652_v44 }
0x1ca0   :  { %3122 = vmatpush1.bf16.msra.mxu0 %v9653_v47  ;;  %v9664_v47 = vld [vmem:[#allocation60_spill] sm:$0xff] }
0x1ca1   :  { %3123 = vmatprep.subr.bf16.mxu0 %v9654_v9  ;;  %v9665_v9 = vld [vmem:[#allocation61_spill] sm:$0xff] }
0x1ca4   :  { %3124 = vmatpush1.bf16.msra.mxu0 %v9655_v43  ;;  %v9666_v43 = vld [vmem:[#allocation62_spill] sm:$0xff] }
0x1ca5   :  { %3125 = vmatprep.subr.bf16.mxu0 %v9656_v52  ;;  %v9667_v52 = vld [vmem:[#allocation64_spill] sm:$0xff] }
0x1ca8   :  { %3126 = vmatpush1.bf16.msra.mxu0 %v9657_v42  ;;  %v9668_v42 = vld [vmem:[#allocation65_spill] sm:$0xff] }
0x1ca9   :  { %3127 = vmatprep.subr.bf16.mxu0 %v9658_v0  ;;  %v9669_v0 = vld [vmem:[#allocation66_spill] sm:$0xff] }
0x1cac   :  { %3128 = vmatpush1.bf16.msra.mxu0 %v9659_v29  ;;  %v9670_v29 = vld [vmem:[#allocation67_spill] sm:$0xff] }
0x1cad   :  { %3129 = vmatprep.subr.bf16.mxu0 %v9660_v2  ;;  %v9671_v2 = vld [vmem:[#allocation68_spill] sm:$0xff] }
0x1cb0   :  { %3130 = vmatpush1.bf16.msra.mxu0 %v9661_v14  ;;  %v9672_v14 = vld [vmem:[#allocation69_spill] sm:$0xff] }
0x1cb1   :  { %3131 = vmatprep.subr.bf16.mxu0 %v9662_v7  ;;  %v9673_v7 = vld [vmem:[#allocation70_spill] sm:$0xff] }
0x1cb4   :  { %3132 = vmatpush1.bf16.msra.mxu0 %v9663_v8  ;;  %v9674_v8 = vld [vmem:[#allocation71_spill] sm:$0xff] }
0x1cb5   :  { %3133 = vmatprep.subr.bf16.mxu0 %v9664_v47  ;;  %v9675_v47 = vld [vmem:[#allocation72_spill] sm:$0xff] }
0x1cb8   :  { %3134 = vmatpush1.bf16.msra.mxu0 %v9665_v9  ;;  %v9676_v9 = vld [vmem:[#allocation73_spill] sm:$0xff] }
0x1cb9   :  { %3135 = vmatprep.subr.bf16.mxu0 %v9666_v43  ;;  %v9677_v43 = vld [vmem:[#allocation74_spill] sm:$0xff] }
0x1cbc   :  { %3136 = vmatpush1.bf16.msra.mxu0 %v9667_v52  ;;  %v9678_v52 = vld [vmem:[#allocation75_spill] sm:$0xff] }
0x1cbd   :  { %3137 = vmatprep.subr.bf16.mxu0 %v9668_v42  ;;  %v9679_v42 = vld [vmem:[#allocation76_spill] sm:$0xff] }
0x1cc0   :  { %3138 = vmatpush1.bf16.msra.mxu0 %v9669_v0 }
0x1cc1   :  { %3139 = vmatprep.subr.bf16.mxu0 %v9670_v29 }
0x1cc4   :  { %3140 = vmatpush1.bf16.msra.mxu0 %v9671_v2 }
0x1cc5   :  { %3141 = vmatprep.subr.bf16.mxu0 %v9672_v14 }
0x1cc8   :  { %3142 = vmatpush1.bf16.msra.mxu0 %v9673_v7 }
0x1cc9   :  { %3143 = vmatprep.subr.bf16.mxu0 %v9674_v8 }
0x1ccc   :  { %3144 = vmatpush1.bf16.msra.mxu0 %v9675_v47 }
0x1ccd   :  { %3145 = vmatprep.subr.bf16.mxu0 %v9676_v9 }
0x1cd0   :  { %3146 = vmatpush1.bf16.msra.mxu0 %v9677_v43 }
0x1cd1   :  { %3147 = vmatprep.subr.bf16.mxu0 %v9678_v52 }
0x1cd4   :  { %3148 = vmatpush1.bf16.msra.mxu0 %v9679_v42 }
0x1cd5   :  { %5649 = vmatprep.subr.bf16.mxu0 %v9521_v33 }
0x1d6a   :  { %v3035_v29 = vpop.f32.mrb[68].mxu0 }
0x1d6b   :  { %v3036_v2 = vadd.f32 %v3035_v29, %v7702_v12  ;;  %v5627_v14 = vpop.f32.mrb[69].mxu0 }
0x1d6c   :  { %v3038_v0 = vpop.f32.mrb[70].mxu0 }
0x1d6d   :  { %v5628_v7 = vpop.f32.mrb[71].mxu0  ;;  %v3041_v8 = vsel %vm2416_vm6, %v3036_v2, -inf }
0x1d6e   :  { %3042 = vmax.xlane.f32.xlu1 %v3041_v8  ;;  %v9688_v8 = vld [vmem:[#allocation53_spill] sm:$0xff] }
0x1dfb   :  { %v3043_v47 = vpop.xlane.xlu1 %3042 }
0x1dfc   :  { %vm3044_vm10 = vcmp.ge.f32.partialorder %v3036_v2, %v3043_v47  ;;  %v9687_v2 = vld [vmem:[#allocation52_spill] sm:$0xff] }
0x1dfd   :  { %v3045_v9 = vsel %vm3044_vm10, %v7464_v62, 128 }
0x1dfe   :  { %v3046_v43 = vsel %vm2416_vm6, %v3045_v9, 2147483647  ;;  %v9680_v9 = vsel %vm7972_vm2, %v7965_v61, %v7970_v59  ;;  %v8185_v61 = vld [vmem:[#allocation11 + $0x40] sm:$0xff]  }
0x1dff   :  { %v3048_v52 = vshra.s32 %v3046_v43, 16  ;;  %v3047_v42 = vand.u32 65535, %v3046_v43  ;;  %9681 = vst [vmem:[#allocation63_spill] sm:$0xff] %v8185_v61 }
0x1e01   :  { %v3050_v44 = vcvt.s32.f32 %v3048_v52  ;;  %v3049_v49 = vcvt.s32.f32 %v3047_v42  ;;  %v9685_v52 = vld [vmem:[#allocation50_spill] sm:$0xff]  ;;  %v9686_v42 = vld [vmem:[#allocation51_spill] sm:$0xff] }
0x1e03   :  { %3051 = vmin.xlane.f32.xlu1 %v3050_v44 }
0x1e90   :  { %v3052_v4 = vpop.xlane.xlu1 %3051 }
0x1e91   :  { %vm3053_vm11 = vcmp.eq.f32.partialorder %v3050_v44, %v3052_v4  ;;  %v3058_v0 = vcvt.f32.s32 %v3052_v4  ;;  %v9684_v44 = vld [vmem:[#allocation49_spill] sm:$0xff] }
0x1e92   :  { %v3054_v12 = vsel %vm3053_vm11, %v3049_v49, inf }
0x1e93   :  { %3055 = vmin.xlane.f32.xlu1 %v3054_v12  ;;  %v3059_v14 = vshll.u32 %v3058_v0, 16  ;;  %v9689_v12 = vld [vmem:[#allocation54_spill] sm:$0xff]  ;;  %v9690_v0 = vld [vmem:[#allocation55_spill] sm:$0xff] }
0x1f20   :  { %v3056_v29 = vpop.xlane.xlu1 %3055 }
0x1f21   :  { %v3057_v7 = vcvt.f32.s32 %v3056_v29 }
0x1f23   :  { %v3060_v47 = vadd.s32 %v3059_v14, %v3057_v7 }
0x1f25   :  { %v8167_v43 = vsel %vm3064_vm13, %v3060_v47, %v9680_v9  ;;  %vm3067_vm14 = vcmp.eq.s32.totalorder %v3060_v47, 2  ;;  %vm3071_vm15 = vcmp.eq.s32.totalorder %v7464_v62, %v3060_v47 }
0x1f26   :  { %v3068_v49 = vsel %vm3067_vm14, 1, %v9630_v11  ;;  %vm4855_vm3 = vmpackc.low %vm3071_vm15, %vm3071_vm15 }
0x1f27   :  { %vm3069_vm7 = vcmp.gt.s32.totalorder %v7987_v46, %v3068_v49  ;;  %4856 = vmatmul.mubr.msk.bf16.vlgmr.msra.gmra.mrb[72].mxu1 %vm4855_vm3, %v9567_v27  ;;  %4858 = vmatmul.mubr.msk.bf16.vlgmr.msra.gmra.mrb[72].mxu0 %vm4855_vm3, %v9567_v27 }
0x1f28   :  { %v8175_v4 = vsel %vm3069_vm7, %v7987_v46, %v3068_v49  ;;  %5630 = vmatpush3.bf16.msra.mxu1 %v9568_v30  ;;  %5650 = vmatpush3.bf16.msra.mxu0 %v9569_v60 }
0x1f29   :  { %5631 = vmatprep.subr.bf16.mxu1 %v9521_v33  ;;  %5645 = vmatprep.mubr.msk.bf16.mxu1 %vm6673_vm0, %v9521_v33  ;;  %vm3075_vm2 = vcmp.eq.s32.totalorder %v8175_v4, 0 }
0x1f2a   :  { %5651 = vmatprep.mubr.msk.bf16.mxu0 %vm6673_vm0, %v9521_v33  ;;  %5112 = vmatprep.subr.bf16.mxu0 %v8185_v61  ;;  %v3377_v59 = vsel %vm3075_vm2, 1, %v9630_v11  ;;  %vm8384_vm10 = vmand %vm3376_vm9, %vm3075_vm2  ;;  %vm3691_vm2 = vcmp.eq.s32.totalorder %v7464_v62, 5 }
0x1f2b   :  { %v8192_v46 = vadd.s32 %v3377_v59, %v9682_v53 }
0x1f2c   :  { %5632 = vmatpush3.bf16.msra.mxu1 %v9684_v44 }
0x1f2d   :  { %9683 = vst [vmem:[#allocation23_spill] sm:$0xff] %v8192_v46  ;;  %5633 = vmatprep.subr.bf16.mxu1 %v9521_v33 }
0x1f30   :  { %5634 = vmatpush3.bf16.msra.mxu1 %v9685_v52 }
0x1f31   :  { %5635 = vmatprep.subr.bf16.mxu1 %v9521_v33 }
0x1f34   :  { %5636 = vmatpush3.bf16.msra.mxu1 %v9686_v42 }
0x1f35   :  { %5637 = vmatprep.subr.bf16.mxu1 %v9521_v33 }
0x1f38   :  { %5638 = vmatpush3.bf16.msra.mxu1 %v9687_v2 }
0x1f39   :  { %5639 = vmatprep.subr.bf16.mxu1 %v9521_v33 }
0x1f3c   :  { %5640 = vmatpush3.bf16.msra.mxu1 %v9688_v8 }
0x1f3d   :  { %5641 = vmatprep.subr.bf16.mxu1 %v9521_v33 }
0x1f40   :  { %5642 = vmatpush3.bf16.msra.mxu1 %v9689_v12 }
0x1f41   :  { %5643 = vmatprep.subr.bf16.mxu1 %v9521_v33 }
0x1f44   :  { %5644 = vmatpush3.bf16.msra.mxu1 %v9690_v0 }
0x1f45   :  { %5655 = vmatprep.subr.bf16.mxu1 %v9521_v33 }
0x1ffa   :  { %v3110_v29 = vpop.f32.mrb[72].mxu1  ;;  %v3151_v14 = vpop.f32.mrb[72].mxu0 }
0x1ffb   :  { %v3112_v7 = vpop.f32.mrb[73].mxu1  ;;  %v3153_v47 = vpop.f32.mrb[73].mxu0  ;;  %v3111_v42 = vadd.f32 %v3110_v29, %v7521_v20 }
0x1ffc   :  { %v3113_v9 = vadd.f32 %v3112_v7, %v7525_v23  ;;  %v3114_v49 = vpop.f32.mrb[74].mxu1  ;;  %v3155_v59 = vpop.f32.mrb[74].mxu0  ;;  %v3154_v61 = vadd.f32 %v3153_v47, %v7530_v21  ;;  %v3152_v7 = vadd.f32 %v3151_v14, %v7534_v58  ;;  %v8246_v14 = vld [vmem:[#allocation12 + $0x30] sm:$0xff]   ;;  %v8250_v47 = vld [vmem:[#allocation12 + $0x38] sm:$0xff]  }
0x1ffd   :  { %v3115_v53 = vpop.f32.mrb[75].mxu1  ;;  %v3156_v8 = vpop.f32.mrb[75].mxu0  ;;  %v4859_v12 = vmul.f32 -1.442695, %v3111_v42  ;;  %9693 = vst [vmem:[#allocation26_spill] sm:$0xff] %v8246_v14  ;;  %9694 = vst [vmem:[#allocation27_spill] sm:$0xff] %v8250_v47 }
0x1ffe   :  { %v4860_v2 = vmul.f32 -1.442695, %v3113_v9 }
0x2000   :  { %6189 = vpow2.f32 %v4860_v2 }
0x2001   :  { %6191 = vpow2.f32 %v4859_v12 }
0x200a   :  { %v6190_v52 = vpop.eup %6189 }
0x200b   :  { %v3167_v0 = vadd.f32 1.0, %v6190_v52  ;;  %v6192_v44 = vpop.eup %6191  ;;  %v8238_v52 = vld [vmem:[#allocation12 + $0x20] sm:$0xff]  }
0x200c   :  { %v3161_v46 = vadd.f32 1.0, %v6192_v44  ;;  %9691 = vst [vmem:[#allocation24_spill] sm:$0xff] %v8238_v52 }
0x200d   :  { %6193 = vrcp.f32 %v3167_v0  ;;  %v8242_v0 = vld [vmem:[#allocation12 + $0x28] sm:$0xff]  }
0x200e   :  { %6195 = vrcp.f32 %v3161_v46  ;;  %v8220_v46 = vld [vmem:[#allocation12] sm:$0xff]   ;;  %9692 = vst [vmem:[#allocation25_spill] sm:$0xff] %v8242_v0 }
0x2017   :  { %v6194_v60 = vpop.eup %6193 }
0x2018   :  { %v3170_v49 = vmul.f32 %v6194_v60, %v3154_v61  ;;  %v6196_v8 = vpop.eup %6195  ;;  %v8226_v60 = vld [vmem:[#allocation12 + $0x8] sm:$0xff]   ;;  %v8234_v61 = vld [vmem:[#allocation12 + $0x18] sm:$0xff]  }
0x2019   :  { %v3173_v9 = vsub.f32 1.0, %v6196_v8  ;;  %v3175_v42 = vmul.f32 %v6196_v8, %v8022_v10  ;;  %v8230_v10 = vld [vmem:[#allocation12 + $0x10] sm:$0xff]  }
0x201a   :  { %v3171_v59 = vadd.f32 %v3170_v49, %v3152_v7 }
0x201c   :  { %6197 = vtanh.f32 %v3171_v59 }
0x2026   :  { %v6198_v29 = vpop.eup %6197 }
0x2027   :  { %v3174_v2 = vmul.f32 %v6198_v29, %v3173_v9 }
0x2029   :  { %v8213_v12 = vadd.f32 %v3175_v42, %v3174_v2 }
0x202b   :  { %v8217_v44 = vpack.c.bf16 %v8213_v12, %v8213_v12 }
0x202d   :  { %5646 = vmatmul.mubr.bf16.vlgmr.msra.gmra.mrb[76].mxu1 %v8217_v44 }
0x202e   :  { %5656 = vmatpush3.bf16.msra.mxu1 %v8220_v46  ;;  %5671 = vmatprep.mubr.msk.bf16.mxu1 %vm6673_vm0, %v9521_v33 }
0x202f   :  { %5657 = vmatprep.subr.bf16.mxu1 %v9521_v33 }
0x2032   :  { %5658 = vmatpush3.bf16.msra.mxu1 %v8226_v60 }
0x2033   :  { %5659 = vmatprep.subr.bf16.mxu1 %v9521_v33 }
0x2036   :  { %5660 = vmatpush3.bf16.msra.mxu1 %v8230_v10 }
0x2037   :  { %5661 = vmatprep.subr.bf16.mxu1 %v9521_v33 }
0x203a   :  { %5662 = vmatpush3.bf16.msra.mxu1 %v8234_v61 }
0x203b   :  { %5663 = vmatprep.subr.bf16.mxu1 %v9521_v33 }
0x203e   :  { %5664 = vmatpush3.bf16.msra.mxu1 %v8238_v52 }
0x203f   :  { %5665 = vmatprep.subr.bf16.mxu1 %v9521_v33 }
0x2042   :  { %5666 = vmatpush3.bf16.msra.mxu1 %v8242_v0 }
0x2043   :  { %5667 = vmatprep.subr.bf16.mxu1 %v9521_v33 }
0x2046   :  { %5668 = vmatpush3.bf16.msra.mxu1 %v8246_v14 }
0x2047   :  { %5669 = vmatprep.subr.bf16.mxu1 %v9521_v33 }
0x204a   :  { %5670 = vmatpush3.bf16.msra.mxu1 %v8250_v47 }
0x204b   :  { %3432 = vmatprep.subr.bf16.mxu1 %v7765_v37 }
0x2100   :  { %v3212_v53 = vpop.f32.mrb[76].mxu1 }
0x2101   :  { %v5647_v7 = vpop.f32.mrb[77].mxu1  ;;  %v3218_v49 = vsel %vm2128_vm4, %v3212_v53, -inf }
0x2102   :  { %3219 = vmax.xlane.f32.xlu1 %v3218_v49  ;;  %v3215_v59 = vpop.f32.mrb[78].mxu1  ;;  %v8257_v7 = vld [vmem:[#allocation11] sm:$0xff]   ;;  %v8260_v49 = vld [vmem:[#allocation11 + $0x48] sm:$0xff]  }
0x2103   :  { %v5648_v8 = vpop.f32.mrb[79].mxu1  ;;  %v8278_v59 = vld [vmem:[#allocation11 + $0x60] sm:$0xff]  }
0x2104   :  { %9697 = vst [vmem:[#allocation30_spill] sm:$0xff] %v8278_v59  ;;  %v8281_v8 = vld [vmem:[#allocation11 + $0x20] sm:$0xff]  }
0x2105   :  { %9698 = vst [vmem:[#allocation31_spill] sm:$0xff] %v8281_v8 }
0x218f   :  { %v3220_v9 = vpop.xlane.xlu1 %3219 }
0x2190   :  { %v3221_v29 = vsub.f32 %v3212_v53, %v3220_v9  ;;  %v8263_v53 = vld [vmem:[#allocation11 + $0x8] sm:$0xff]  }
0x2191   :  { %v8284_v9 = vld [vmem:[#allocation11 + $0x68] sm:$0xff]  }
0x2192   :  { %v3222_v2 = vmul.f32 1.442695, %v3221_v29  ;;  %9699 = vst [vmem:[#allocation32_spill] sm:$0xff] %v8284_v9  ;;  %v8287_v29 = vld [vmem:[#allocation11 + $0x28] sm:$0xff]  }
0x2193   :  { %9700 = vst [vmem:[#allocation33_spill] sm:$0xff] %v8287_v29 }
0x2194   :  { %6199 = vpow2.f32 %v3222_v2  ;;  %v8290_v2 = vld [vmem:[#allocation11 + $0x70] sm:$0xff]  }
0x219e   :  { %v6200_v42 = vpop.eup %6199 }
0x219f   :  { %v3224_v14 = vsel %vm2128_vm4, %v6200_v42, 0.0 }
0x21a0   :  { %3225 = vadd.xlane.f32.xlu1 %v3224_v14  ;;  %v8266_v14 = vld [vmem:[#allocation11 + $0x50] sm:$0xff]  }
0x222d   :  { %v3226_v0 = vpop.xlane.xlu1 %3225 }
0x222e   :  { %6201 = vrcp.f32 %v3226_v0  ;;  %v8269_v0 = vld [vmem:[#allocation11 + $0x10] sm:$0xff]  }
0x2238   :  { %v6202_v47 = vpop.eup %6201 }
0x2239   :  { %v3228_v52 = vmul.f32 %v6202_v47, %v6200_v42  ;;  %v8275_v47 = vld [vmem:[#allocation11 + $0x18] sm:$0xff]   ;;  %v8293_v42 = vld [vmem:[#allocation11 + $0x30] sm:$0xff]  }
0x223a   :  { %9696 = vst [vmem:[#allocation29_spill] sm:$0xff] %v8275_v47 }
0x223b   :  { %v3229_v37 = vpack.c.bf16 %v3228_v52, %v3228_v52  ;;  %v8272_v52 = vld [vmem:[#allocation11 + $0x58] sm:$0xff]  }
0x223c   :  { %9695 = vst [vmem:[#allocation28_spill] sm:$0xff] %v8272_v52 }
0x223d   :  { %5652 = vmatmul.mubr.msk.bf16.vlgmr.msra.gmra.mrb[76].mxu0 %vm2141_vm5, %v3229_v37  ;;  %v8296_v37 = vld [vmem:[#allocation11 + $0x78] sm:$0xff]  }
0x223e   :  { %5113 = vmatpush3.bf16.msra.mxu0 %v8257_v7 }
0x223f   :  { %5114 = vmatprep.subr.bf16.mxu0 %v8260_v49 }
0x2242   :  { %5115 = vmatpush3.bf16.msra.mxu0 %v8263_v53 }
0x2243   :  { %5116 = vmatprep.subr.bf16.mxu0 %v8266_v14 }
0x2246   :  { %5117 = vmatpush3.bf16.msra.mxu0 %v8269_v0 }
0x2247   :  { %5118 = vmatprep.subr.bf16.mxu0 %v8272_v52 }
0x224a   :  { %5119 = vmatpush3.bf16.msra.mxu0 %v8275_v47 }
0x224b   :  { %5120 = vmatprep.subr.bf16.mxu0 %v8278_v59 }
0x224e   :  { %5121 = vmatpush3.bf16.msra.mxu0 %v8281_v8  ;;  %v8299_v8 = vld [vmem:[#allocation11 + $0x38] sm:$0xff]  }
0x224f   :  { %5122 = vmatprep.subr.bf16.mxu0 %v8284_v9  ;;  %9701 = vst [vmem:[#allocation34_spill] sm:$0xff] %v8299_v8 }
0x2252   :  { %5123 = vmatpush3.bf16.msra.mxu0 %v8287_v29 }
0x2253   :  { %5124 = vmatprep.subr.bf16.mxu0 %v8290_v2 }
0x2256   :  { %5125 = vmatpush3.bf16.msra.mxu0 %v8293_v42 }
0x2257   :  { %5126 = vmatprep.subr.bf16.mxu0 %v8296_v37 }
0x225a   :  { %5127 = vmatpush3.bf16.msra.mxu0 %v8299_v8 }
0x225b   :  { %3391 = vmatprep.subr.bf16.mxu0 %v7786_v5 }
0x2310   :  { %v3267_v9 = vpop.f32.mrb[76].mxu0 }
0x2311   :  { %v3273_v29 = vpack.c.bf16 %v3267_v9, %v3267_v9  ;;  %v5653_v59 = vpop.f32.mrb[77].mxu0  ;;  %v9721_v9 = vld [vmem:[#allocation66_spill] sm:$0xff] }
0x2312   :  { %v3270_v47 = vpop.f32.mrb[78].mxu0  ;;  %v9720_v59 = vld [vmem:[#allocation65_spill] sm:$0xff] }
0x2313   :  { %v5654_v52 = vpop.f32.mrb[79].mxu0  ;;  %3306 = vmatprep.mubr.bf16.mxu0 %v3273_v29  ;;  %v9719_v47 = vld [vmem:[#allocation64_spill] sm:$0xff]  ;;  %v9722_v29 = vld [vmem:[#allocation67_spill] sm:$0xff] }
0x2314   :  { %3307 = vmatmul.mubr.bf16.vlgmr.msra.gmra.mrb[80].mxu0 %v8217_v44  ;;  %v9718_v52 = vld [vmem:[#allocation62_spill] sm:$0xff] }
0x2315   :  { %3423 = vmatprep.mubr.bf16.mxu0 %v8217_v44  ;;  %3392 = vmatpush1.bf16.msra.mxu0 %v7791_v56 }
0x2316   :  { %3393 = vmatprep.subr.bf16.mxu0 %v7794_v16 }
0x2319   :  { %3394 = vmatpush1.bf16.msra.mxu0 %v9635_v63  ;;  %v9702_v63 = vld [vmem:[#allocation38_spill] sm:$0xff] }
0x231a   :  { %3395 = vmatprep.subr.bf16.mxu0 %v9636_v40  ;;  %v9703_v40 = vld [vmem:[#allocation39_spill] sm:$0xff] }
0x231d   :  { %3396 = vmatpush1.bf16.msra.mxu0 %v9637_v6  ;;  %v9704_v6 = vld [vmem:[#allocation40_spill] sm:$0xff] }
0x231e   :  { %3397 = vmatprep.subr.bf16.mxu0 %v9638_v18  ;;  %v9705_v18 = vld [vmem:[#allocation41_spill] sm:$0xff] }
0x2321   :  { %3398 = vmatpush1.bf16.msra.mxu0 %v9639_v22  ;;  %v9706_v22 = vld [vmem:[#allocation42_spill] sm:$0xff] }
0x2322   :  { %3399 = vmatprep.subr.bf16.mxu0 %v9640_v13  ;;  %v9707_v13 = vld [vmem:[#allocation43_spill] sm:$0xff] }
0x2325   :  { %3400 = vmatpush1.bf16.msra.mxu0 %v9641_v15  ;;  %v9708_v15 = vld [vmem:[#allocation44_spill] sm:$0xff] }
0x2326   :  { %3401 = vmatprep.subr.bf16.mxu0 %v9642_v17  ;;  %v9709_v17 = vld [vmem:[#allocation45_spill] sm:$0xff] }
0x2329   :  { %3402 = vmatpush1.bf16.msra.mxu0 %v9643_v34  ;;  %v9710_v34 = vld [vmem:[#allocation46_spill] sm:$0xff] }
0x232a   :  { %3403 = vmatprep.subr.bf16.mxu0 %v9644_v35  ;;  %v9711_v35 = vld [vmem:[#allocation48_spill] sm:$0xff] }
0x232d   :  { %3404 = vmatpush1.bf16.msra.mxu0 %v9645_v31  ;;  %v9712_v31 = vld [vmem:[#allocation56_spill] sm:$0xff] }
0x232e   :  { %3405 = vmatprep.subr.bf16.mxu0 %v9646_v45  ;;  %v9713_v45 = vld [vmem:[#allocation57_spill] sm:$0xff] }
0x2331   :  { %3406 = vmatpush1.bf16.msra.mxu0 %v7833_v55 }
0x2332   :  { %3407 = vmatprep.subr.bf16.mxu0 %v7836_v3 }
0x2335   :  { %3408 = vmatpush1.bf16.msra.mxu0 %v7839_v19 }
0x2336   :  { %3409 = vmatprep.subr.bf16.mxu0 %v7842_v51 }
0x2339   :  { %3410 = vmatpush1.bf16.msra.mxu0 %v9647_v26  ;;  %v9714_v26 = vld [vmem:[#allocation58_spill] sm:$0xff] }
0x233a   :  { %3411 = vmatprep.subr.bf16.mxu0 %v9648_v38  ;;  %v9715_v38 = vld [vmem:[#allocation59_spill] sm:$0xff] }
0x233d   :  { %3412 = vmatpush1.bf16.msra.mxu0 %v8088_v36 }
0x233e   :  { %3413 = vmatprep.subr.bf16.mxu0 %v8091_v32 }
0x2341   :  { %3414 = vmatpush1.bf16.msra.mxu0 %v8094_v48 }
0x2342   :  { %3415 = vmatprep.subr.bf16.mxu0 %v8097_v1 }
0x2345   :  { %3416 = vmatpush1.bf16.msra.mxu0 %v8100_v25 }
0x2346   :  { %3417 = vmatprep.subr.bf16.mxu0 %v8103_v57 }
0x2349   :  { %3418 = vmatpush1.bf16.msra.mxu0 %v8106_v24 }
0x234a   :  { %3419 = vmatprep.subr.bf16.mxu0 %v8109_v50 }
0x234d   :  { %3420 = vmatpush1.bf16.msra.mxu0 %v8112_v54 }
0x234e   :  { %3421 = vmatprep.subr.bf16.mxu0 %v8115_v39 }
0x2351   :  { %3422 = vmatpush1.bf16.msra.mxu0 %v8118_v28 }
0x2352   :  { %5675 = vmatprep.subr.bf16.mxu0 %v9521_v33 }
0x23e7   :  { %v5128_v55 = vpop.f32.mrb[80].mxu0 }
0x23e8   :  { %v5129_v5 = vpop.f32.mrb[81].mxu0 }
0x23e9   :  { %v5130_v56 = vadd.f32 %v5129_v5, %v5128_v55  ;;  %v5131_v16 = vpop.f32.mrb[82].mxu0  ;;  %v9723_v55 = vld [vmem:[#allocation68_spill] sm:$0xff]  ;;  %v9724_v5 = vld [vmem:[#allocation69_spill] sm:$0xff] }
0x23ea   :  { %v5132_v3 = vpop.f32.mrb[83].mxu0  ;;  %v9726_v16 = vld [vmem:[#allocation71_spill] sm:$0xff] }
0x23eb   :  { %6203 = vtanh.f32 %v5130_v56  ;;  %v9725_v56 = vld [vmem:[#allocation70_spill] sm:$0xff]  ;;  %v9727_v3 = vld [vmem:[#allocation72_spill] sm:$0xff] }
0x23f5   :  { %v6204_v19 = vpop.eup %6203 }
0x23f6   :  { %v3315_v51 = vpack.c.bf16 %v6204_v19, %v6204_v19  ;;  %v9728_v19 = vld [vmem:[#allocation73_spill] sm:$0xff] }
0x23f8   :  { %5672 = vmatmul.mubr.bf16.vlgmr.msra.gmra.mrb[80].mxu1 %v3315_v51  ;;  %v9729_v51 = vld [vmem:[#allocation74_spill] sm:$0xff] }
0x23f9   :  { %3464 = vmatprep.mubr.bf16.mxu1 %v8217_v44  ;;  %3433 = vmatpush1.bf16.msra.mxu1 %v9649_v41  ;;  %v9716_v41 = vld [vmem:[#allocation60_spill] sm:$0xff]  ;;  %v9717_v44 = vld [vmem:[#allocation61_spill] sm:$0xff] }
0x23fa   :  { %3434 = vmatprep.subr.bf16.mxu1 %v9702_v63  ;;  %v9730_v63 = vld [vmem:[#allocation75_spill] sm:$0xff] }
0x23fd   :  { %3435 = vmatpush1.bf16.msra.mxu1 %v9703_v40  ;;  %v9731_v40 = vld [vmem:[#allocation76_spill] sm:$0xff] }
0x23fe   :  { %3436 = vmatprep.subr.bf16.mxu1 %v9704_v6 }
0x2401   :  { %3437 = vmatpush1.bf16.msra.mxu1 %v9705_v18  ;;  %v8373_v18 = vld [vmem:[%s9196_s8] sm:$0x1] }
0x2402   :  { %3438 = vmatprep.subr.bf16.mxu1 %v9706_v22 }
0x2405   :  { %3439 = vmatpush1.bf16.msra.mxu1 %v9707_v13 }
0x2406   :  { %3440 = vmatprep.subr.bf16.mxu1 %v9708_v15 }
0x2409   :  { %3441 = vmatpush1.bf16.msra.mxu1 %v9709_v17 }
0x240a   :  { %3442 = vmatprep.subr.bf16.mxu1 %v9710_v34 }
0x240d   :  { %3443 = vmatpush1.bf16.msra.mxu1 %v9711_v35 }
0x240e   :  { %3444 = vmatprep.subr.bf16.mxu1 %v9712_v31 }
0x2411   :  { %3445 = vmatpush1.bf16.msra.mxu1 %v9713_v45 }
0x2412   :  { %3446 = vmatprep.subr.bf16.mxu1 %v9714_v26 }
0x2415   :  { %3447 = vmatpush1.bf16.msra.mxu1 %v9715_v38 }
0x2416   :  { %3448 = vmatprep.subr.bf16.mxu1 %v9716_v41 }
0x2419   :  { %3449 = vmatpush1.bf16.msra.mxu1 %v9717_v44 }
0x241a   :  { %3450 = vmatprep.subr.bf16.mxu1 %v9718_v52 }
0x241d   :  { %3451 = vmatpush1.bf16.msra.mxu1 %v9719_v47 }
0x241e   :  { %3452 = vmatprep.subr.bf16.mxu1 %v9720_v59 }
0x2421   :  { %3453 = vmatpush1.bf16.msra.mxu1 %v9721_v9 }
0x2422   :  { %3454 = vmatprep.subr.bf16.mxu1 %v9722_v29 }
0x2425   :  { %3455 = vmatpush1.bf16.msra.mxu1 %v9723_v55 }
0x2426   :  { %3456 = vmatprep.subr.bf16.mxu1 %v9724_v5 }
0x2429   :  { %3457 = vmatpush1.bf16.msra.mxu1 %v9725_v56  ;;  %v9801_v56 = vld [vmem:[#allocation53_spill] sm:$0xff] }
0x242a   :  { %3458 = vmatprep.subr.bf16.mxu1 %v9726_v16 }
0x242d   :  { %3459 = vmatpush1.bf16.msra.mxu1 %v9727_v3 }
0x242e   :  { %3460 = vmatprep.subr.bf16.mxu1 %v9728_v19 }
0x2431   :  { %3461 = vmatpush1.bf16.msra.mxu1 %v9729_v51  ;;  %v9734_v51 = vld [vmem:[#allocation47_spill] sm:$0xff] }
0x2432   :  { %3462 = vmatprep.subr.bf16.mxu1 %v9730_v63  ;;  %v9735_v63 = vld [vmem:[#allocation63_spill] sm:$0xff] }
0x2435   :  { %3463 = vmatpush1.bf16.msra.mxu1 %v9731_v40  ;;  %v9736_v40 = vld [vmem:[#allocation23_spill] sm:$0xff] }
0x2436   :  { %5695 = vmatprep.subr.bf16.mxu1 %v9521_v33 }
0x24cb   :  { %v3350_v6 = vpop.f32.mrb[80].mxu1 }
0x24cc   :  { %v3351_v22 = vadd.f32 %v8373_v18, %v3350_v6  ;;  %v5673_v13 = vpop.f32.mrb[81].mxu1 }
0x24cd   :  { %v3353_v15 = vpop.f32.mrb[82].mxu1  ;;  %v9738_v13 = vld [vmem:[#allocation50_spill] sm:$0xff] }
0x24ce   :  { %v5674_v17 = vpop.f32.mrb[83].mxu1  ;;  %v3356_v34 = vsel %vm2416_vm6, %v3351_v22, -inf  ;;  %v9739_v15 = vld [vmem:[#allocation51_spill] sm:$0xff] }
0x24cf   :  { %3357 = vmax.xlane.f32.xlu1 %v3356_v34  ;;  %v9740_v17 = vld [vmem:[#allocation52_spill] sm:$0xff]  ;;  %v9741_v34 = vld [vmem:[#allocation53_spill] sm:$0xff] }
0x255c   :  { %v3358_v35 = vpop.xlane.xlu1 %3357 }
0x255d   :  { %vm3359_vm1 = vcmp.ge.f32.partialorder %v3351_v22, %v3358_v35  ;;  %v9737_v22 = vld [vmem:[#allocation49_spill] sm:$0xff]  ;;  %v9742_v35 = vld [vmem:[#allocation54_spill] sm:$0xff] }
0x255e   :  { %v3360_v31 = vsel %vm3359_vm1, %v7464_v62, 128 }
0x255f   :  { %v3361_v45 = vsel %vm2416_vm6, %v3360_v31, 2147483647  ;;  %v9743_v31 = vld [vmem:[#allocation55_spill] sm:$0xff] }
0x2560   :  { %v3363_v26 = vshra.s32 %v3361_v45, 16  ;;  %v3362_v41 = vand.u32 65535, %v3361_v45 }
0x2562   :  { %v3365_v38 = vcvt.s32.f32 %v3363_v26  ;;  %v3364_v52 = vcvt.s32.f32 %v3362_v41 }
0x2564   :  { %3366 = vmin.xlane.f32.xlu1 %v3365_v38 }
0x25f1   :  { %v3367_v44 = vpop.xlane.xlu1 %3366 }
0x25f2   :  { %vm3368_vm8 = vcmp.eq.f32.partialorder %v3365_v38, %v3367_v44  ;;  %v3373_v59 = vcvt.f32.s32 %v3367_v44 }
0x25f3   :  { %v3369_v47 = vsel %vm3368_vm8, %v3364_v52, inf }
0x25f4   :  { %3370 = vmin.xlane.f32.xlu1 %v3369_v47  ;;  %v3374_v29 = vshll.u32 %v3373_v59, 16 }
0x2681   :  { %v3371_v9 = vpop.xlane.xlu1 %3370 }
0x2682   :  { %v3372_v55 = vcvt.f32.s32 %v3371_v9 }
0x2684   :  { %v8380_v5 = vadd.s32 %v3374_v29, %v3372_v55 }
0x2686   :  { %vm3382_vm11 = vcmp.eq.s32.totalorder %v8380_v5, 2  ;;  %vm3386_vm12 = vcmp.eq.s32.totalorder %v7464_v62, %v8380_v5 }
0x2687   :  { %v3383_v3 = vsel %vm3382_vm11, 1, %v9630_v11  ;;  %vm4863_vm13 = vmpackc.low %vm3386_vm12, %vm3386_vm12 }
0x2688   :  { %vm3384_vm14 = vcmp.gt.s32.totalorder %v8175_v4, %v3383_v3  ;;  %4864 = vmatmul.mubr.msk.bf16.vlgmr.msra.gmra.mrb[84].mxu0 %vm4863_vm13, %v9567_v27  ;;  %4866 = vmatmul.mubr.msk.bf16.vlgmr.msra.gmra.mrb[84].mxu1 %vm4863_vm13, %v9567_v27 }
0x2689   :  { %v8400_v19 = vsel %vm3384_vm14, %v8175_v4, %v3383_v3  ;;  %5676 = vmatpush3.bf16.msra.mxu0 %v9568_v30  ;;  %5696 = vmatpush3.bf16.msra.mxu1 %v9734_v51 }
0x268a   :  { %5677 = vmatprep.subr.bf16.mxu0 %v9521_v33  ;;  %5691 = vmatprep.mubr.msk.bf16.mxu0 %vm6673_vm0, %v9521_v33  ;;  %vm3390_vm15 = vcmp.eq.s32.totalorder %v8400_v19, 0 }
0x268b   :  { %5697 = vmatprep.mubr.msk.bf16.mxu1 %vm6673_vm0, %v9521_v33  ;;  %5154 = vmatprep.subr.bf16.mxu1 %v9735_v63  ;;  %v3692_v4 = vsel %vm3390_vm15, 1, %v9630_v11  ;;  %vm3694_vm1 = vmand %vm3691_vm2, %vm3390_vm15  ;;  %vm4006_vm15 = vcmp.eq.s32.totalorder %v7464_v62, 6 }
0x268c   :  { %v8415_v6 = vadd.s32 %v3692_v4, %v9736_v40 }
0x268d   :  { %5678 = vmatpush3.bf16.msra.mxu0 %v9737_v22 }
0x268e   :  { %5679 = vmatprep.subr.bf16.mxu0 %v9521_v33 }
0x2691   :  { %5680 = vmatpush3.bf16.msra.mxu0 %v9738_v13 }
0x2692   :  { %5681 = vmatprep.subr.bf16.mxu0 %v9521_v33 }
0x2695   :  { %5682 = vmatpush3.bf16.msra.mxu0 %v9739_v15 }
0x2696   :  { %5683 = vmatprep.subr.bf16.mxu0 %v9521_v33 }
0x2699   :  { %5684 = vmatpush3.bf16.msra.mxu0 %v9740_v17 }
0x269a   :  { %5685 = vmatprep.subr.bf16.mxu0 %v9521_v33 }
0x269d   :  { %5686 = vmatpush3.bf16.msra.mxu0 %v9741_v34 }
0x269e   :  { %5687 = vmatprep.subr.bf16.mxu0 %v9521_v33 }
0x26a1   :  { %5688 = vmatpush3.bf16.msra.mxu0 %v9742_v35 }
0x26a2   :  { %5689 = vmatprep.subr.bf16.mxu0 %v9521_v33 }
0x26a5   :  { %5690 = vmatpush3.bf16.msra.mxu0 %v9743_v31 }
0x26a6   :  { %5701 = vmatprep.subr.bf16.mxu0 %v9521_v33 }
0x275b   :  { %v3425_v45 = vpop.f32.mrb[84].mxu0  ;;  %v3466_v26 = vpop.f32.mrb[84].mxu1 }
0x275c   :  { %v3427_v38 = vpop.f32.mrb[85].mxu0  ;;  %v3468_v41 = vpop.f32.mrb[85].mxu1  ;;  %v3426_v55 = vadd.f32 %v3425_v45, %v7521_v20 }
0x275d   :  { %v3428_v44 = vadd.f32 %v3427_v38, %v7525_v23  ;;  %v3429_v52 = vpop.f32.mrb[86].mxu0  ;;  %v3470_v47 = vpop.f32.mrb[86].mxu1  ;;  %v3469_v35 = vadd.f32 %v3468_v41, %v7530_v21  ;;  %v3467_v38 = vadd.f32 %v3466_v26, %v7534_v58  ;;  %v8460_v26 = vld [vmem:[#allocation9 + $0xc] ss:$16 sps:$4 sm:$0xff]  }
0x275e   :  { %v3430_v59 = vpop.f32.mrb[87].mxu0  ;;  %v3471_v9 = vpop.f32.mrb[87].mxu1  ;;  %v4867_v3 = vmul.f32 -1.442695, %v3426_v55  ;;  %9748 = vst [vmem:[#allocation35_spill] sm:$0xff] %v8460_v26 }
0x275f   :  { %v4868_v29 = vmul.f32 -1.442695, %v3428_v44 }
0x2761   :  { %6205 = vpow2.f32 %v4868_v29 }
0x2762   :  { %6207 = vpow2.f32 %v4867_v3 }
0x276b   :  { %v6206_v4 = vpop.eup %6205 }
0x276c   :  { %v3482_v40 = vadd.f32 1.0, %v6206_v4  ;;  %v6208_v16 = vpop.eup %6207 }
0x276d   :  { %v3476_v31 = vadd.f32 1.0, %v6208_v16 }
0x276e   :  { %6209 = vrcp.f32 %v3482_v40 }
0x276f   :  { %6211 = vrcp.f32 %v3476_v31  ;;  %v9747_v31 = vld [vmem:[#allocation27_spill] sm:$0xff] }
0x2778   :  { %v6210_v34 = vpop.eup %6209 }
0x2779   :  { %v3485_v52 = vmul.f32 %v6210_v34, %v3469_v35  ;;  %v6212_v44 = vpop.eup %6211  ;;  %v9745_v34 = vld [vmem:[#allocation25_spill] sm:$0xff]  ;;  %v9746_v35 = vld [vmem:[#allocation26_spill] sm:$0xff] }
0x277a   :  { %v3488_v59 = vsub.f32 1.0, %v6212_v44  ;;  %v3490_v29 = vmul.f32 %v6212_v44, %v8213_v12  ;;  %v9744_v12 = vld [vmem:[#allocation24_spill] sm:$0xff] }
0x277b   :  { %v3486_v47 = vadd.f32 %v3485_v52, %v3467_v38 }
0x277d   :  { %6213 = vtanh.f32 %v3486_v47 }
0x2787   :  { %v6214_v45 = vpop.eup %6213 }
0x2788   :  { %v3489_v9 = vmul.f32 %v6214_v45, %v3488_v59 }
0x278a   :  { %v8436_v55 = vadd.f32 %v3490_v29, %v3489_v9 }
0x278c   :  { %v8440_v16 = vpack.c.bf16 %v8436_v55, %v8436_v55 }
0x278e   :  { %5692 = vmatmul.mubr.bf16.vlgmr.msra.gmra.mrb[88].mxu0 %v8440_v16 }
0x278f   :  { %5702 = vmatpush3.bf16.msra.mxu0 %v8220_v46  ;;  %5717 = vmatprep.mubr.msk.bf16.mxu0 %vm6673_vm0, %v9521_v33 }
0x2790   :  { %5703 = vmatprep.subr.bf16.mxu0 %v9521_v33 }
0x2793   :  { %5704 = vmatpush3.bf16.msra.mxu0 %v8226_v60 }
0x2794   :  { %5705 = vmatprep.subr.bf16.mxu0 %v9521_v33 }
0x2797   :  { %5706 = vmatpush3.bf16.msra.mxu0 %v8230_v10 }
0x2798   :  { %5707 = vmatprep.subr.bf16.mxu0 %v9521_v33 }
0x279b   :  { %5708 = vmatpush3.bf16.msra.mxu0 %v8234_v61 }
0x279c   :  { %5709 = vmatprep.subr.bf16.mxu0 %v9521_v33 }
0x279f   :  { %5710 = vmatpush3.bf16.msra.mxu0 %v9744_v12 }
0x27a0   :  { %5711 = vmatprep.subr.bf16.mxu0 %v9521_v33 }
0x27a3   :  { %5712 = vmatpush3.bf16.msra.mxu0 %v9745_v34 }
0x27a4   :  { %5713 = vmatprep.subr.bf16.mxu0 %v9521_v33 }
0x27a7   :  { %5714 = vmatpush3.bf16.msra.mxu0 %v9746_v35 }
0x27a8   :  { %5715 = vmatprep.subr.bf16.mxu0 %v9521_v33 }
0x27ab   :  { %5716 = vmatpush3.bf16.msra.mxu0 %v9747_v31 }
0x27ac   :  { %3747 = vmatprep.subr.bf16.mxu0 %v8460_v26 }
0x2861   :  { %v3527_v41 = vpop.f32.mrb[88].mxu0 }
0x2862   :  { %v5693_v3 = vpop.f32.mrb[89].mxu0  ;;  %v3533_v4 = vsel %vm2128_vm4, %v3527_v41, -inf }
0x2863   :  { %3534 = vmax.xlane.f32.xlu1 %v3533_v4  ;;  %v3530_v40 = vpop.f32.mrb[90].mxu0  ;;  %v9750_v3 = vld [vmem:[#allocation29_spill] sm:$0xff]  ;;  %v9751_v4 = vld [vmem:[#allocation30_spill] sm:$0xff] }
0x2864   :  { %v5694_v38 = vpop.f32.mrb[91].mxu0  ;;  %v9752_v40 = vld [vmem:[#allocation31_spill] sm:$0xff] }
0x2865   :  { %v8481_v38 = vld [vmem:[#allocation9 + $0x4] ss:$16 sps:$4 sm:$0xff]  }
0x28f0   :  { %v3535_v52 = vpop.xlane.xlu1 %3534 }
0x28f1   :  { %v3536_v47 = vsub.f32 %v3527_v41, %v3535_v52  ;;  %v9749_v41 = vld [vmem:[#allocation28_spill] sm:$0xff] }
0x28f3   :  { %v3537_v44 = vmul.f32 1.442695, %v3536_v47 }
0x28f5   :  { %6215 = vpow2.f32 %v3537_v44 }
0x28ff   :  { %v6216_v59 = vpop.eup %6215 }
0x2900   :  { %v3539_v45 = vsel %vm2128_vm4, %v6216_v59, 0.0 }
0x2901   :  { %3540 = vadd.xlane.f32.xlu1 %v3539_v45 }
0x298e   :  { %v3541_v9 = vpop.xlane.xlu1 %3540 }
0x298f   :  { %6217 = vrcp.f32 %v3541_v9  ;;  %v8486_v9 = vld [vmem:[#allocation9] ss:$16 sps:$4 sm:$0xff]  }
0x2999   :  { %v6218_v29 = vpop.eup %6217 }
0x299a   :  { %v3543_v31 = vmul.f32 %v6218_v29, %v6216_v59  ;;  %v8489_v29 = vld [vmem:[#allocation9 + $0x24] ss:$16 sps:$4 sm:$0xff]  }
0x299c   :  { %v3544_v26 = vpack.c.bf16 %v3543_v31, %v3543_v31  ;;  %v9753_v31 = vld [vmem:[#allocation32_spill] sm:$0xff] }
0x299e   :  { %5698 = vmatmul.mubr.msk.bf16.vlgmr.msra.gmra.mrb[88].mxu1 %vm2141_vm5, %v3544_v26  ;;  %v9754_v26 = vld [vmem:[#allocation33_spill] sm:$0xff] }
0x299f   :  { %5155 = vmatpush3.bf16.msra.mxu1 %v8257_v7 }
0x29a0   :  { %5156 = vmatprep.subr.bf16.mxu1 %v8260_v49 }
0x29a3   :  { %5157 = vmatpush3.bf16.msra.mxu1 %v8263_v53 }
0x29a4   :  { %5158 = vmatprep.subr.bf16.mxu1 %v8266_v14 }
0x29a7   :  { %5159 = vmatpush3.bf16.msra.mxu1 %v8269_v0 }
0x29a8   :  { %5160 = vmatprep.subr.bf16.mxu1 %v9749_v41 }
0x29ab   :  { %5161 = vmatpush3.bf16.msra.mxu1 %v9750_v3 }
0x29ac   :  { %5162 = vmatprep.subr.bf16.mxu1 %v9751_v4 }
0x29af   :  { %5163 = vmatpush3.bf16.msra.mxu1 %v9752_v40 }
0x29b0   :  { %5164 = vmatprep.subr.bf16.mxu1 %v9753_v31 }
0x29b3   :  { %5165 = vmatpush3.bf16.msra.mxu1 %v9754_v26 }
0x29b4   :  { %5166 = vmatprep.subr.bf16.mxu1 %v8290_v2 }
0x29b7   :  { %5167 = vmatpush3.bf16.msra.mxu1 %v8293_v42 }
0x29b8   :  { %5168 = vmatprep.subr.bf16.mxu1 %v8296_v37 }
0x29bb   :  { %5169 = vmatpush3.bf16.msra.mxu1 %v8299_v8  ;;  %v8492_v8 = vld [vmem:[#allocation9 + $0x20] ss:$16 sps:$4 sm:$0xff]  }
0x29bc   :  { %3706 = vmatprep.subr.bf16.mxu1 %v8481_v38  ;;  %9755 = vst [vmem:[#allocation36_spill] sm:$0xff] %v8492_v8 }
0x2a71   :  { %v3582_v52 = vpop.f32.mrb[88].mxu1 }
0x2a72   :  { %v3588_v47 = vpack.c.bf16 %v3582_v52, %v3582_v52  ;;  %v5699_v44 = vpop.f32.mrb[89].mxu1  ;;  %v8495_v52 = vld [vmem:[#allocation9 + $0x44] ss:$16 sps:$4 sm:$0xff]  }
0x2a73   :  { %v3585_v59 = vpop.f32.mrb[90].mxu1  ;;  %9756 = vst [vmem:[#allocation37_spill] sm:$0xff] %v8495_v52  ;;  %v8501_v44 = vld [vmem:[#allocation9 + $0x64] ss:$16 sps:$4 sm:$0xff]  }
0x2a74   :  { %v5700_v45 = vpop.f32.mrb[91].mxu1  ;;  %3621 = vmatprep.mubr.bf16.mxu1 %v3588_v47  ;;  %v8498_v47 = vld [vmem:[#allocation9 + $0x40] ss:$16 sps:$4 sm:$0xff]   ;;  %9758 = vst [vmem:[#allocation38_spill] sm:$0xff] %v8501_v44 }
0x2a75   :  { %3622 = vmatmul.mubr.bf16.vlgmr.msra.gmra.mrb[92].mxu1 %v8440_v16  ;;  %9757 = vst [vmem:[#allocation77_spill] sm:$0xff] %v8498_v47  ;;  %v8504_v59 = vld [vmem:[#allocation9 + $0x60] ss:$16 sps:$4 sm:$0xff]   ;;  %v8507_v45 = vld [vmem:[#allocation9 + $0x84] ss:$16 sps:$4 sm:$0xff]  }
0x2a76   :  { %3738 = vmatprep.mubr.bf16.mxu1 %v8440_v16  ;;  %3707 = vmatpush1.bf16.msra.mxu1 %v8486_v9  ;;  %9759 = vst [vmem:[#allocation39_spill] sm:$0xff] %v8504_v59  ;;  %9760 = vst [vmem:[#allocation40_spill] sm:$0xff] %v8507_v45 }
0x2a77   :  { %3708 = vmatprep.subr.bf16.mxu1 %v8489_v29 }
0x2a7a   :  { %3709 = vmatpush1.bf16.msra.mxu1 %v8492_v8  ;;  %v8510_v8 = vld [vmem:[#allocation9 + $0x80] ss:$16 sps:$4 sm:$0xff]  }
0x2a7b   :  { %3710 = vmatprep.subr.bf16.mxu1 %v8495_v52  ;;  %9761 = vst [vmem:[#allocation41_spill] sm:$0xff] %v8510_v8  ;;  %v8513_v52 = vld [vmem:[#allocation9 + $0xa4] ss:$16 sps:$4 sm:$0xff]  }
0x2a7c   :  { %9762 = vst [vmem:[#allocation42_spill] sm:$0xff] %v8513_v52 }
0x2a7e   :  { %3711 = vmatpush1.bf16.msra.mxu1 %v8498_v47  ;;  %v8516_v47 = vld [vmem:[#allocation9 + $0xa0] ss:$16 sps:$4 sm:$0xff]  }
0x2a7f   :  { %3712 = vmatprep.subr.bf16.mxu1 %v8501_v44  ;;  %9763 = vst [vmem:[#allocation43_spill] sm:$0xff] %v8516_v47  ;;  %v8519_v44 = vld [vmem:[#allocation9 + $0xc4] ss:$16 sps:$4 sm:$0xff]  }
0x2a80   :  { %9764 = vst [vmem:[#allocation44_spill] sm:$0xff] %v8519_v44 }
0x2a82   :  { %3713 = vmatpush1.bf16.msra.mxu1 %v8504_v59  ;;  %v8522_v59 = vld [vmem:[#allocation9 + $0xc0] ss:$16 sps:$4 sm:$0xff]  }
0x2a83   :  { %3714 = vmatprep.subr.bf16.mxu1 %v8507_v45  ;;  %9765 = vst [vmem:[#allocation45_spill] sm:$0xff] %v8522_v59  ;;  %v8525_v45 = vld [vmem:[#allocation9 + $0xe4] ss:$16 sps:$4 sm:$0xff]  }
0x2a84   :  { %9766 = vst [vmem:[#allocation46_spill] sm:$0xff] %v8525_v45 }
0x2a86   :  { %3715 = vmatpush1.bf16.msra.mxu1 %v8510_v8  ;;  %v8528_v8 = vld [vmem:[#allocation9 + $0xe0] ss:$16 sps:$4 sm:$0xff]  }
0x2a87   :  { %3716 = vmatprep.subr.bf16.mxu1 %v8513_v52  ;;  %v8531_v52 = vld [vmem:[#allocation9 + $0x104] ss:$16 sps:$4 sm:$0xff]  }
0x2a8a   :  { %3717 = vmatpush1.bf16.msra.mxu1 %v8516_v47  ;;  %v8534_v47 = vld [vmem:[#allocation9 + $0x100] ss:$16 sps:$4 sm:$0xff]  }
0x2a8b   :  { %3718 = vmatprep.subr.bf16.mxu1 %v8519_v44  ;;  %v8537_v44 = vld [vmem:[#allocation9 + $0x124] ss:$16 sps:$4 sm:$0xff]  }
0x2a8e   :  { %3719 = vmatpush1.bf16.msra.mxu1 %v8522_v59  ;;  %v8540_v59 = vld [vmem:[#allocation9 + $0x120] ss:$16 sps:$4 sm:$0xff]  }
0x2a8f   :  { %3720 = vmatprep.subr.bf16.mxu1 %v8525_v45  ;;  %9767 = vst [vmem:[#allocation48_spill] sm:$0xff] %v8540_v59  ;;  %v8543_v45 = vld [vmem:[#allocation9 + $0x144] ss:$16 sps:$4 sm:$0xff]  }
0x2a90   :  { %9768 = vst [vmem:[#allocation56_spill] sm:$0xff] %v8543_v45 }
0x2a92   :  { %3721 = vmatpush1.bf16.msra.mxu1 %v8528_v8 }
0x2a93   :  { %3722 = vmatprep.subr.bf16.mxu1 %v8531_v52 }
0x2a96   :  { %3723 = vmatpush1.bf16.msra.mxu1 %v8534_v47 }
0x2a97   :  { %3724 = vmatprep.subr.bf16.mxu1 %v8537_v44 }
0x2a9a   :  { %3725 = vmatpush1.bf16.msra.mxu1 %v8540_v59 }
0x2a9b   :  { %3726 = vmatprep.subr.bf16.mxu1 %v8543_v45 }
0x2a9e   :  { %3727 = vmatpush1.bf16.msra.mxu1 %v8088_v36 }
0x2a9f   :  { %3728 = vmatprep.subr.bf16.mxu1 %v8091_v32 }
0x2aa2   :  { %3729 = vmatpush1.bf16.msra.mxu1 %v8094_v48 }
0x2aa3   :  { %3730 = vmatprep.subr.bf16.mxu1 %v8097_v1 }
0x2aa6   :  { %3731 = vmatpush1.bf16.msra.mxu1 %v8100_v25 }
0x2aa7   :  { %3732 = vmatprep.subr.bf16.mxu1 %v8103_v57 }
0x2aaa   :  { %3733 = vmatpush1.bf16.msra.mxu1 %v8106_v24  ;;  %v8559_v24 = vld [vmem:[#allocation9 + $0x8] ss:$16 sps:$4 sm:$0xff]  }
0x2aab   :  { %3734 = vmatprep.subr.bf16.mxu1 %v8109_v50  ;;  %9769 = vst [vmem:[#allocation57_spill] sm:$0xff] %v8559_v24  ;;  %v8562_v50 = vld [vmem:[#allocation9 + $0x2c] ss:$16 sps:$4 sm:$0xff]  }
0x2aac   :  { %9770 = vst [vmem:[#allocation58_spill] sm:$0xff] %v8562_v50 }
0x2aae   :  { %3735 = vmatpush1.bf16.msra.mxu1 %v8112_v54  ;;  %v8565_v54 = vld [vmem:[#allocation9 + $0x28] ss:$16 sps:$4 sm:$0xff]  }
0x2aaf   :  { %3736 = vmatprep.subr.bf16.mxu1 %v8115_v39  ;;  %9771 = vst [vmem:[#allocation59_spill] sm:$0xff] %v8565_v54  ;;  %v8568_v39 = vld [vmem:[#allocation9 + $0x4c] ss:$16 sps:$4 sm:$0xff]  }
0x2ab0   :  { %9772 = vst [vmem:[#allocation60_spill] sm:$0xff] %v8568_v39 }
0x2ab2   :  { %3737 = vmatpush1.bf16.msra.mxu1 %v8118_v28  ;;  %v8571_v28 = vld [vmem:[#allocation9 + $0x48] ss:$16 sps:$4 sm:$0xff]  }
0x2ab3   :  { %5721 = vmatprep.subr.bf16.mxu1 %v9521_v33  ;;  %9773 = vst [vmem:[#allocation61_spill] sm:$0xff] %v8571_v28 }
0x2b48   :  { %v5170_v36 = vpop.f32.mrb[92].mxu1 }
0x2b49   :  { %v5171_v32 = vpop.f32.mrb[93].mxu1 }
0x2b4a   :  { %v5172_v48 = vadd.f32 %v5171_v32, %v5170_v36  ;;  %v5173_v1 = vpop.f32.mrb[94].mxu1  ;;  %v8580_v36 = vld [vmem:[#allocation9 + $0x8c] ss:$16 sps:$4 sm:$0xff]   ;;  %v8583_v32 = vld [vmem:[#allocation9 + $0x88] ss:$16 sps:$4 sm:$0xff]  }
0x2b4b   :  { %v5174_v45 = vpop.f32.mrb[95].mxu1  ;;  %9776 = vst [vmem:[#allocation65_spill] sm:$0xff] %v8580_v36  ;;  %9777 = vst [vmem:[#allocation66_spill] sm:$0xff] %v8583_v32  ;;  %v8589_v1 = vld [vmem:[#allocation9 + $0xa8] ss:$16 sps:$4 sm:$0xff]  }
0x2b4c   :  { %6219 = vtanh.f32 %v5172_v48  ;;  %v8577_v45 = vld [vmem:[#allocation9 + $0x68] ss:$16 sps:$4 sm:$0xff]   ;;  %v8586_v48 = vld [vmem:[#allocation9 + $0xac] ss:$16 sps:$4 sm:$0xff]   ;;  %9779 = vst [vmem:[#allocation68_spill] sm:$0xff] %v8589_v1 }
0x2b4d   :  { %9775 = vst [vmem:[#allocation64_spill] sm:$0xff] %v8577_v45  ;;  %9778 = vst [vmem:[#allocation67_spill] sm:$0xff] %v8586_v48 }
0x2b56   :  { %v6220_v25 = vpop.eup %6219 }
0x2b57   :  { %v3630_v57 = vpack.c.bf16 %v6220_v25, %v6220_v25  ;;  %v8592_v25 = vld [vmem:[#allocation9 + $0xcc] ss:$16 sps:$4 sm:$0xff]  }
0x2b58   :  { %9780 = vst [vmem:[#allocation69_spill] sm:$0xff] %v8592_v25 }
0x2b59   :  { %5718 = vmatmul.mubr.bf16.vlgmr.msra.gmra.mrb[92].mxu0 %v3630_v57  ;;  %v8595_v57 = vld [vmem:[#allocation9 + $0xc8] ss:$16 sps:$4 sm:$0xff]  }
0x2b5a   :  { %3779 = vmatprep.mubr.bf16.mxu0 %v8440_v16  ;;  %3748 = vmatpush1.bf16.msra.mxu0 %v8559_v24  ;;  %v8574_v16 = vld [vmem:[#allocation9 + $0x6c] ss:$16 sps:$4 sm:$0xff]   ;;  %9781 = vst [vmem:[#allocation70_spill] sm:$0xff] %v8595_v57 }
0x2b5b   :  { %3749 = vmatprep.subr.bf16.mxu0 %v8562_v50  ;;  %9774 = vst [vmem:[#allocation62_spill] sm:$0xff] %v8574_v16 }
0x2b5e   :  { %3750 = vmatpush1.bf16.msra.mxu0 %v8565_v54 }
0x2b5f   :  { %3751 = vmatprep.subr.bf16.mxu0 %v8568_v39 }
0x2b62   :  { %3752 = vmatpush1.bf16.msra.mxu0 %v8571_v28 }
0x2b63   :  { %3753 = vmatprep.subr.bf16.mxu0 %v8574_v16 }
0x2b66   :  { %3754 = vmatpush1.bf16.msra.mxu0 %v8577_v45 }
0x2b67   :  { %3755 = vmatprep.subr.bf16.mxu0 %v8580_v36  ;;  %v8598_v36 = vld [vmem:[#allocation9 + $0xec] ss:$16 sps:$4 sm:$0xff]  }
0x2b68   :  { %9782 = vst [vmem:[#allocation71_spill] sm:$0xff] %v8598_v36 }
0x2b6a   :  { %3756 = vmatpush1.bf16.msra.mxu0 %v8583_v32  ;;  %v8601_v32 = vld [vmem:[#allocation9 + $0xe8] ss:$16 sps:$4 sm:$0xff]  }
0x2b6b   :  { %3757 = vmatprep.subr.bf16.mxu0 %v8586_v48  ;;  %9783 = vst [vmem:[#allocation72_spill] sm:$0xff] %v8601_v32  ;;  %v8604_v48 = vld [vmem:[#allocation9 + $0x10c] ss:$16 sps:$4 sm:$0xff]  }
0x2b6c   :  { %9784 = vst [vmem:[#allocation73_spill] sm:$0xff] %v8604_v48 }
0x2b6e   :  { %3758 = vmatpush1.bf16.msra.mxu0 %v8589_v1  ;;  %v8607_v1 = vld [vmem:[#allocation9 + $0x108] ss:$16 sps:$4 sm:$0xff]  }
0x2b6f   :  { %3759 = vmatprep.subr.bf16.mxu0 %v8592_v25  ;;  %9785 = vst [vmem:[#allocation74_spill] sm:$0xff] %v8607_v1  ;;  %v8610_v25 = vld [vmem:[#allocation9 + $0x12c] ss:$16 sps:$4 sm:$0xff]  }
0x2b70   :  { %9786 = vst [vmem:[#allocation75_spill] sm:$0xff] %v8610_v25 }
0x2b72   :  { %3760 = vmatpush1.bf16.msra.mxu0 %v8595_v57  ;;  %v8613_v57 = vld [vmem:[#allocation9 + $0x128] ss:$16 sps:$4 sm:$0xff]  }
0x2b73   :  { %3761 = vmatprep.subr.bf16.mxu0 %v8598_v36  ;;  %9787 = vst [vmem:[#allocation76_spill] sm:$0xff] %v8613_v57  ;;  %v8616_v36 = vld [vmem:[#allocation9 + $0x14c] ss:$16 sps:$4 sm:$0xff]  }
0x2b74   :  { %9788 = vst [vmem:[#allocation63_spill] sm:$0xff] %v8616_v36 }
0x2b76   :  { %3762 = vmatpush1.bf16.msra.mxu0 %v8601_v32  ;;  %v8619_v32 = vld [vmem:[#allocation9 + $0x148] ss:$16 sps:$4 sm:$0xff]  }
0x2b77   :  { %3763 = vmatprep.subr.bf16.mxu0 %v8604_v48  ;;  %9789 = vst [vmem:[#allocation23_spill] sm:$0xff] %v8619_v32  ;;  %v8622_v48 = vld [vmem:[#allocation9 + $0x16c] ss:$16 sps:$4 sm:$0xff]  }
0x2b78   :  { %9790 = vst [vmem:[#allocation24_spill] sm:$0xff] %v8622_v48 }
0x2b7a   :  { %3764 = vmatpush1.bf16.msra.mxu0 %v8607_v1  ;;  %v8625_v1 = vld [vmem:[#allocation9 + $0x168] ss:$16 sps:$4 sm:$0xff]  }
0x2b7b   :  { %3765 = vmatprep.subr.bf16.mxu0 %v8610_v25  ;;  %9791 = vst [vmem:[#allocation25_spill] sm:$0xff] %v8625_v1  ;;  %v8628_v25 = vld [vmem:[#allocation9 + $0x18c] ss:$16 sps:$4 sm:$0xff]  }
0x2b7c   :  { %9792 = vst [vmem:[#allocation26_spill] sm:$0xff] %v8628_v25 }
0x2b7e   :  { %3766 = vmatpush1.bf16.msra.mxu0 %v8613_v57  ;;  %v8631_v57 = vld [vmem:[#allocation9 + $0x188] ss:$16 sps:$4 sm:$0xff]  }
0x2b7f   :  { %3767 = vmatprep.subr.bf16.mxu0 %v8616_v36  ;;  %9793 = vst [vmem:[#allocation28_spill] sm:$0xff] %v8631_v57  ;;  %v8634_v36 = vld [vmem:[#allocation9 + $0x1ac] ss:$16 sps:$4 sm:$0xff]  }
0x2b80   :  { %9794 = vst [vmem:[#allocation29_spill] sm:$0xff] %v8634_v36 }
0x2b82   :  { %3768 = vmatpush1.bf16.msra.mxu0 %v8619_v32  ;;  %v8637_v32 = vld [vmem:[#allocation9 + $0x1a8] ss:$16 sps:$4 sm:$0xff]  }
0x2b83   :  { %3769 = vmatprep.subr.bf16.mxu0 %v8622_v48  ;;  %9795 = vst [vmem:[#allocation30_spill] sm:$0xff] %v8637_v32  ;;  %v8640_v48 = vld [vmem:[#allocation9 + $0x1cc] ss:$16 sps:$4 sm:$0xff]  }
0x2b84   :  { %9796 = vst [vmem:[#allocation31_spill] sm:$0xff] %v8640_v48 }
0x2b86   :  { %3770 = vmatpush1.bf16.msra.mxu0 %v8625_v1  ;;  %v8643_v1 = vld [vmem:[#allocation9 + $0x1c8] ss:$16 sps:$4 sm:$0xff]  }
0x2b87   :  { %3771 = vmatprep.subr.bf16.mxu0 %v8628_v25  ;;  %9797 = vst [vmem:[#allocation32_spill] sm:$0xff] %v8643_v1  ;;  %v8646_v25 = vld [vmem:[#allocation9 + $0x1ec] ss:$16 sps:$4 sm:$0xff]  }
0x2b88   :  { %9798 = vst [vmem:[#allocation33_spill] sm:$0xff] %v8646_v25 }
0x2b8a   :  { %3772 = vmatpush1.bf16.msra.mxu0 %v8631_v57  ;;  %v8649_v57 = vld [vmem:[#allocation9 + $0x1e8] ss:$16 sps:$4 sm:$0xff]  }
0x2b8b   :  { %3773 = vmatprep.subr.bf16.mxu0 %v8634_v36  ;;  %9799 = vst [vmem:[#allocation78_spill] sm:$0xff] %v8649_v57 }
0x2b8e   :  { %3774 = vmatpush1.bf16.msra.mxu0 %v8637_v32 }
0x2b8f   :  { %3775 = vmatprep.subr.bf16.mxu0 %v8640_v48 }
0x2b92   :  { %3776 = vmatpush1.bf16.msra.mxu0 %v8643_v1 }
0x2b93   :  { %3777 = vmatprep.subr.bf16.mxu0 %v8646_v25 }
0x2b96   :  { %3778 = vmatpush1.bf16.msra.mxu0 %v8649_v57 }
0x2b97   :  { %5741 = vmatprep.subr.bf16.mxu0 %v9521_v33 }
0x2c2c   :  { %v3665_v36 = vpop.f32.mrb[92].mxu0 }
0x2c2d   :  { %v3666_v32 = vadd.f32 %v8373_v18, %v3665_v36  ;;  %v5719_v45 = vpop.f32.mrb[93].mxu0 }
0x2c2e   :  { %v3668_v16 = vpop.f32.mrb[94].mxu0 }
0x2c2f   :  { %v5720_v48 = vpop.f32.mrb[95].mxu0  ;;  %v3671_v28 = vsel %vm2416_vm6, %v3666_v32, -inf }
0x2c30   :  { %3672 = vmax.xlane.f32.xlu1 %v3671_v28 }
0x2cbd   :  { %v3673_v1 = vpop.xlane.xlu1 %3672 }
0x2cbe   :  { %vm3674_vm3 = vcmp.ge.f32.partialorder %v3666_v32, %v3673_v1 }
0x2cbf   :  { %v3675_v39 = vsel %vm3674_vm3, %v7464_v62, 128 }
0x2cc0   :  { %v3676_v25 = vsel %vm2416_vm6, %v3675_v39, 2147483647 }
0x2cc1   :  { %v3678_v54 = vshra.s32 %v3676_v25, 16  ;;  %v3677_v57 = vand.u32 65535, %v3676_v25 }
0x2cc3   :  { %v3680_v50 = vcvt.s32.f32 %v3678_v54  ;;  %v3679_v59 = vcvt.s32.f32 %v3677_v57  ;;  %v9800_v54 = vsel %vm8384_vm10, %v8380_v5, %v8167_v43 }
0x2cc5   :  { %3681 = vmin.xlane.f32.xlu1 %v3680_v50 }
0x2d52   :  { %v3682_v24 = vpop.xlane.xlu1 %3681 }
0x2d53   :  { %vm3683_vm7 = vcmp.eq.f32.partialorder %v3680_v50, %v3682_v24  ;;  %v3688_v16 = vcvt.f32.s32 %v3682_v24 }
0x2d54   :  { %v3684_v36 = vsel %vm3683_vm7, %v3679_v59, inf }
0x2d55   :  { %3685 = vmin.xlane.f32.xlu1 %v3684_v36  ;;  %v3689_v48 = vshll.u32 %v3688_v16, 16 }
0x2de2   :  { %v3686_v45 = vpop.xlane.xlu1 %3685 }
0x2de3   :  { %v3687_v28 = vcvt.f32.s32 %v3686_v45 }
0x2de5   :  { %v3690_v32 = vadd.s32 %v3689_v48, %v3687_v28 }
0x2de7   :  { %v8665_v39 = vsel %vm3694_vm1, %v3690_v32, %v9800_v54  ;;  %vm3697_vm8 = vcmp.eq.s32.totalorder %v3690_v32, 2  ;;  %vm3701_vm9 = vcmp.eq.s32.totalorder %v7464_v62, %v3690_v32 }
0x2de8   :  { %v3698_v59 = vsel %vm3697_vm8, 1, %v9630_v11  ;;  %vm4871_vm11 = vmpackc.low %vm3701_vm9, %vm3701_vm9 }
0x2de9   :  { %vm3699_vm12 = vcmp.gt.s32.totalorder %v8400_v19, %v3698_v59  ;;  %4872 = vmatmul.mubr.msk.bf16.vlgmr.msra.gmra.mrb[96].mxu1 %vm4871_vm11, %v9567_v27  ;;  %4874 = vmatmul.mubr.msk.bf16.vlgmr.msra.gmra.mrb[96].mxu0 %vm4871_vm11, %v9567_v27 }
0x2dea   :  { %v8673_v24 = vsel %vm3699_vm12, %v8400_v19, %v3698_v59  ;;  %5722 = vmatpush3.bf16.msra.mxu1 %v9568_v30  ;;  %5742 = vmatpush3.bf16.msra.mxu0 %v9734_v51  ;;  %v9802_v19 = vld [vmem:[#allocation54_spill] sm:$0xff] }
0x2deb   :  { %5723 = vmatprep.subr.bf16.mxu1 %v9521_v33  ;;  %5737 = vmatprep.mubr.msk.bf16.mxu1 %vm6673_vm0, %v9521_v33  ;;  %vm3705_vm10 = vcmp.eq.s32.totalorder %v8673_v24, 0 }
0x2dec   :  { %5743 = vmatprep.mubr.msk.bf16.mxu0 %vm6673_vm0, %v9521_v33  ;;  %5196 = vmatprep.subr.bf16.mxu0 %v9735_v63  ;;  %v4007_v43 = vsel %vm3705_vm10, 1, %v9630_v11  ;;  %v9803_v63 = vld [vmem:[#allocation55_spill] sm:$0xff]  ;;  %vm8851_vm3 = vmand %vm4006_vm15, %vm3705_vm10  ;;  %vm4321_vm10 = vcmp.eq.s32.totalorder %v7464_v62, 7 }
0x2ded   :  { %v8688_v5 = vadd.s32 %v4007_v43, %v8415_v6 }
0x2dee   :  { %5724 = vmatpush3.bf16.msra.mxu1 %v9737_v22 }
0x2def   :  { %5725 = vmatprep.subr.bf16.mxu1 %v9521_v33 }
0x2df2   :  { %5726 = vmatpush3.bf16.msra.mxu1 %v9738_v13 }
0x2df3   :  { %5727 = vmatprep.subr.bf16.mxu1 %v9521_v33 }
0x2df6   :  { %5728 = vmatpush3.bf16.msra.mxu1 %v9739_v15 }
0x2df7   :  { %5729 = vmatprep.subr.bf16.mxu1 %v9521_v33 }
0x2dfa   :  { %5730 = vmatpush3.bf16.msra.mxu1 %v9740_v17 }
0x2dfb   :  { %5731 = vmatprep.subr.bf16.mxu1 %v9521_v33 }
0x2dfe   :  { %5732 = vmatpush3.bf16.msra.mxu1 %v9801_v56 }
0x2dff   :  { %5733 = vmatprep.subr.bf16.mxu1 %v9521_v33 }
0x2e02   :  { %5734 = vmatpush3.bf16.msra.mxu1 %v9802_v19 }
0x2e03   :  { %5735 = vmatprep.subr.bf16.mxu1 %v9521_v33 }
0x2e06   :  { %5736 = vmatpush3.bf16.msra.mxu1 %v9803_v63 }
0x2e07   :  { %5747 = vmatprep.subr.bf16.mxu1 %v9521_v33 }
0x2ebc   :  { %v3740_v6 = vpop.f32.mrb[96].mxu1  ;;  %v3781_v50 = vpop.f32.mrb[96].mxu0 }
0x2ebd   :  { %v3742_v1 = vpop.f32.mrb[97].mxu1  ;;  %v3783_v25 = vpop.f32.mrb[97].mxu0  ;;  %v3741_v32 = vadd.f32 %v3740_v6, %v7521_v20 }
0x2ebe   :  { %v3743_v57 = vadd.f32 %v3742_v1, %v7525_v23  ;;  %v3744_v36 = vpop.f32.mrb[98].mxu1  ;;  %v3785_v16 = vpop.f32.mrb[98].mxu0  ;;  %v3784_v56 = vadd.f32 %v3783_v25, %v7530_v21  ;;  %v3782_v1 = vadd.f32 %v3781_v50, %v7534_v58 }
0x2ebf   :  { %v3745_v45 = vpop.f32.mrb[99].mxu1  ;;  %v3786_v48 = vpop.f32.mrb[99].mxu0  ;;  %v4875_v54 = vmul.f32 -1.442695, %v3741_v32 }
0x2ec0   :  { %v4876_v28 = vmul.f32 -1.442695, %v3743_v57 }
0x2ec2   :  { %6221 = vpow2.f32 %v4876_v28 }
0x2ec3   :  { %6223 = vpow2.f32 %v4875_v54 }
0x2ecc   :  { %v6222_v59 = vpop.eup %6221 }
0x2ecd   :  { %v3797_v43 = vadd.f32 1.0, %v6222_v59  ;;  %v6224_v63 = vpop.eup %6223 }
0x2ece   :  { %v3791_v19 = vadd.f32 1.0, %v6224_v63 }
0x2ecf   :  { %6225 = vrcp.f32 %v3797_v43 }
0x2ed0   :  { %6227 = vrcp.f32 %v3791_v19 }
0x2ed9   :  { %v6226_v17 = vpop.eup %6225 }
0x2eda   :  { %v3800_v36 = vmul.f32 %v6226_v17, %v3784_v56  ;;  %v6228_v57 = vpop.eup %6227 }
0x2edb   :  { %v3803_v45 = vsub.f32 1.0, %v6228_v57  ;;  %v3805_v28 = vmul.f32 %v6228_v57, %v8436_v55  ;;  %v9818_v57 = vld [vmem:[#allocation46_spill] sm:$0xff] }
0x2edc   :  { %v3801_v16 = vadd.f32 %v3800_v36, %v3782_v1  ;;  %v9815_v1 = vld [vmem:[#allocation43_spill] sm:$0xff]  ;;  %v9816_v36 = vld [vmem:[#allocation44_spill] sm:$0xff] }
0x2ede   :  { %6229 = vtanh.f32 %v3801_v16  ;;  %v9817_v16 = vld [vmem:[#allocation45_spill] sm:$0xff] }
0x2ee8   :  { %v6230_v6 = vpop.eup %6229 }
0x2ee9   :  { %v3804_v48 = vmul.f32 %v6230_v6, %v3803_v45  ;;  %v9819_v45 = vld [vmem:[#allocation48_spill] sm:$0xff] }
0x2eea   :  { %v9820_v6 = vld [vmem:[#allocation56_spill] sm:$0xff] }
0x2eeb   :  { %v8709_v32 = vadd.f32 %v3805_v28, %v3804_v48  ;;  %v8775_v48 = vld [vmem:[#allocation9 + $0x140] ss:$16 sps:$4 sm:$0xff]   ;;  %v8778_v28 = vld [vmem:[#allocation9 + $0x164] ss:$16 sps:$4 sm:$0xff]  }
0x2eed   :  { %v8713_v63 = vpack.c.bf16 %v8709_v32, %v8709_v32 }
0x2eef   :  { %5738 = vmatmul.mubr.bf16.vlgmr.msra.gmra.mrb[100].mxu1 %v8713_v63 }
0x2ef0   :  { %5748 = vmatpush3.bf16.msra.mxu1 %v8220_v46  ;;  %5763 = vmatprep.mubr.msk.bf16.mxu1 %vm6673_vm0, %v9521_v33  ;;  %v9804_v46 = vld [vmem:[#allocation27_spill] sm:$0xff] }
0x2ef1   :  { %5749 = vmatprep.subr.bf16.mxu1 %v9521_v33 }
0x2ef4   :  { %5750 = vmatpush3.bf16.msra.mxu1 %v8226_v60  ;;  %v9805_v60 = vld [vmem:[#allocation35_spill] sm:$0xff] }
0x2ef5   :  { %5751 = vmatprep.subr.bf16.mxu1 %v9521_v33 }
0x2ef8   :  { %5752 = vmatpush3.bf16.msra.mxu1 %v8230_v10 }
0x2ef9   :  { %5753 = vmatprep.subr.bf16.mxu1 %v9521_v33 }
0x2efc   :  { %5754 = vmatpush3.bf16.msra.mxu1 %v8234_v61 }
0x2efd   :  { %5755 = vmatprep.subr.bf16.mxu1 %v9521_v33 }
0x2f00   :  { %5756 = vmatpush3.bf16.msra.mxu1 %v9744_v12 }
0x2f01   :  { %5757 = vmatprep.subr.bf16.mxu1 %v9521_v33 }
0x2f04   :  { %5758 = vmatpush3.bf16.msra.mxu1 %v9745_v34 }
0x2f05   :  { %5759 = vmatprep.subr.bf16.mxu1 %v9521_v33 }
0x2f08   :  { %5760 = vmatpush3.bf16.msra.mxu1 %v9746_v35 }
0x2f09   :  { %5761 = vmatprep.subr.bf16.mxu1 %v9521_v33 }
0x2f0c   :  { %5762 = vmatpush3.bf16.msra.mxu1 %v9804_v46  ;;  %v8781_v46 = vld [vmem:[#allocation9 + $0x160] ss:$16 sps:$4 sm:$0xff]  }
0x2f0d   :  { %4062 = vmatprep.subr.bf16.mxu1 %v9805_v60 }
0x2fc2   :  { %v3842_v10 = vpop.f32.mrb[100].mxu1 }
0x2fc3   :  { %v5739_v61 = vpop.f32.mrb[101].mxu1  ;;  %v3848_v17 = vsel %vm2128_vm4, %v3842_v10, -inf }
0x2fc4   :  { %3849 = vmax.xlane.f32.xlu1 %v3848_v17  ;;  %v3845_v55 = vpop.f32.mrb[102].mxu1  ;;  %v8787_v61 = vld [vmem:[#allocation9 + $0x180] ss:$16 sps:$4 sm:$0xff]   ;;  %v8790_v17 = vld [vmem:[#allocation9 + $0x1a4] ss:$16 sps:$4 sm:$0xff]  }
0x2fc5   :  { %v5740_v12 = vpop.f32.mrb[103].mxu1  ;;  %v8793_v55 = vld [vmem:[#allocation9 + $0x1a0] ss:$16 sps:$4 sm:$0xff]  }
0x2fc6   :  { %v8796_v12 = vld [vmem:[#allocation9 + $0x1c4] ss:$16 sps:$4 sm:$0xff]  }
0x3051   :  { %v3850_v56 = vpop.xlane.xlu1 %3849 }
0x3052   :  { %v3851_v19 = vsub.f32 %v3842_v10, %v3850_v56  ;;  %v8784_v10 = vld [vmem:[#allocation9 + $0x184] ss:$16 sps:$4 sm:$0xff]   ;;  %v8799_v56 = vld [vmem:[#allocation9 + $0x1c0] ss:$16 sps:$4 sm:$0xff]  }
0x3054   :  { %v3852_v34 = vmul.f32 1.442695, %v3851_v19  ;;  %v8802_v19 = vld [vmem:[#allocation9 + $0x1e4] ss:$16 sps:$4 sm:$0xff]  }
0x3056   :  { %6231 = vpow2.f32 %v3852_v34  ;;  %v8805_v34 = vld [vmem:[#allocation9 + $0x1e0] ss:$16 sps:$4 sm:$0xff]  }
0x3057   :  { %9821 = vst [vmem:[#allocation27_spill] sm:$0xff] %v8805_v34 }
0x3060   :  { %v6232_v50 = vpop.eup %6231 }
0x3061   :  { %v3854_v35 = vsel %vm2128_vm4, %v6232_v50, 0.0 }
0x3062   :  { %3855 = vadd.xlane.f32.xlu1 %v3854_v35 }
0x30ef   :  { %v3856_v25 = vpop.xlane.xlu1 %3855 }
0x30f0   :  { %6233 = vrcp.f32 %v3856_v25 }
0x30fa   :  { %v6234_v54 = vpop.eup %6233 }
0x30fb   :  { %v3858_v59 = vmul.f32 %v6234_v54, %v6232_v50 }
0x30fd   :  { %v3859_v43 = vpack.c.bf16 %v3858_v59, %v3858_v59 }
0x30ff   :  { %5744 = vmatmul.mubr.msk.bf16.vlgmr.msra.gmra.mrb[100].mxu0 %vm2141_vm5, %v3859_v43 }
0x3100   :  { %5197 = vmatpush3.bf16.msra.mxu0 %v8257_v7  ;;  %v9806_v7 = vld [vmem:[#allocation34_spill] sm:$0xff] }
0x3101   :  { %5198 = vmatprep.subr.bf16.mxu0 %v8260_v49 }
0x3104   :  { %5199 = vmatpush3.bf16.msra.mxu0 %v8263_v53 }
0x3105   :  { %5200 = vmatprep.subr.bf16.mxu0 %v8266_v14 }
0x3108   :  { %5201 = vmatpush3.bf16.msra.mxu0 %v8269_v0 }
0x3109   :  { %5202 = vmatprep.subr.bf16.mxu0 %v9749_v41 }
0x310c   :  { %5203 = vmatpush3.bf16.msra.mxu0 %v9750_v3  ;;  %v9810_v3 = vld [vmem:[#allocation38_spill] sm:$0xff] }
0x310d   :  { %5204 = vmatprep.subr.bf16.mxu0 %v9751_v4  ;;  %v9811_v4 = vld [vmem:[#allocation39_spill] sm:$0xff] }
0x3110   :  { %5205 = vmatpush3.bf16.msra.mxu0 %v9752_v40  ;;  %v9812_v40 = vld [vmem:[#allocation40_spill] sm:$0xff] }
0x3111   :  { %5206 = vmatprep.subr.bf16.mxu0 %v9753_v31  ;;  %v9813_v31 = vld [vmem:[#allocation41_spill] sm:$0xff] }
0x3114   :  { %5207 = vmatpush3.bf16.msra.mxu0 %v9754_v26  ;;  %v9814_v26 = vld [vmem:[#allocation42_spill] sm:$0xff] }
0x3115   :  { %5208 = vmatprep.subr.bf16.mxu0 %v8290_v2  ;;  %v9807_v2 = vld [vmem:[#allocation36_spill] sm:$0xff] }
0x3118   :  { %5209 = vmatpush3.bf16.msra.mxu0 %v8293_v42  ;;  %v9808_v42 = vld [vmem:[#allocation37_spill] sm:$0xff] }
0x3119   :  { %5210 = vmatprep.subr.bf16.mxu0 %v8296_v37  ;;  %v9809_v37 = vld [vmem:[#allocation77_spill] sm:$0xff] }
0x311c   :  { %5211 = vmatpush3.bf16.msra.mxu0 %v9806_v7 }
0x311d   :  { %4021 = vmatprep.subr.bf16.mxu0 %v8481_v38 }
0x31d2   :  { %v3897_v49 = vpop.f32.mrb[100].mxu0 }
0x31d3   :  { %v3903_v53 = vpack.c.bf16 %v3897_v49, %v3897_v49  ;;  %v5745_v14 = vpop.f32.mrb[101].mxu0  ;;  %v9822_v49 = vld [vmem:[#allocation57_spill] sm:$0xff] }
0x31d4   :  { %v3900_v0 = vpop.f32.mrb[102].mxu0  ;;  %v9824_v14 = vld [vmem:[#allocation59_spill] sm:$0xff] }
0x31d5   :  { %v5746_v41 = vpop.f32.mrb[103].mxu0  ;;  %3936 = vmatprep.mubr.bf16.mxu0 %v3903_v53  ;;  %v9823_v53 = vld [vmem:[#allocation58_spill] sm:$0xff]  ;;  %v9825_v0 = vld [vmem:[#allocation60_spill] sm:$0xff] }
0x31d6   :  { %3937 = vmatmul.mubr.bf16.vlgmr.msra.gmra.mrb[104].mxu0 %v8713_v63  ;;  %v9826_v41 = vld [vmem:[#allocation61_spill] sm:$0xff] }
0x31d7   :  { %4053 = vmatprep.mubr.bf16.mxu0 %v8713_v63  ;;  %4022 = vmatpush1.bf16.msra.mxu0 %v8486_v9 }
0x31d8   :  { %4023 = vmatprep.subr.bf16.mxu0 %v8489_v29 }
0x31db   :  { %4024 = vmatpush1.bf16.msra.mxu0 %v9807_v2 }
0x31dc   :  { %4025 = vmatprep.subr.bf16.mxu0 %v9808_v42 }
0x31df   :  { %4026 = vmatpush1.bf16.msra.mxu0 %v9809_v37 }
0x31e0   :  { %4027 = vmatprep.subr.bf16.mxu0 %v9810_v3 }
0x31e3   :  { %4028 = vmatpush1.bf16.msra.mxu0 %v9811_v4 }
0x31e4   :  { %4029 = vmatprep.subr.bf16.mxu0 %v9812_v40 }
0x31e7   :  { %4030 = vmatpush1.bf16.msra.mxu0 %v9813_v31 }
0x31e8   :  { %4031 = vmatprep.subr.bf16.mxu0 %v9814_v26 }
0x31eb   :  { %4032 = vmatpush1.bf16.msra.mxu0 %v9815_v1 }
0x31ec   :  { %4033 = vmatprep.subr.bf16.mxu0 %v9816_v36 }
0x31ef   :  { %4034 = vmatpush1.bf16.msra.mxu0 %v9817_v16 }
0x31f0   :  { %4035 = vmatprep.subr.bf16.mxu0 %v9818_v57 }
0x31f3   :  { %4036 = vmatpush1.bf16.msra.mxu0 %v8528_v8 }
0x31f4   :  { %4037 = vmatprep.subr.bf16.mxu0 %v8531_v52 }
0x31f7   :  { %4038 = vmatpush1.bf16.msra.mxu0 %v8534_v47 }
0x31f8   :  { %4039 = vmatprep.subr.bf16.mxu0 %v8537_v44 }
0x31fb   :  { %4040 = vmatpush1.bf16.msra.mxu0 %v9819_v45 }
0x31fc   :  { %4041 = vmatprep.subr.bf16.mxu0 %v9820_v6 }
0x31ff   :  { %4042 = vmatpush1.bf16.msra.mxu0 %v8775_v48 }
0x3200   :  { %4043 = vmatprep.subr.bf16.mxu0 %v8778_v28 }
0x3203   :  { %4044 = vmatpush1.bf16.msra.mxu0 %v8781_v46 }
0x3204   :  { %4045 = vmatprep.subr.bf16.mxu0 %v8784_v10 }
0x3207   :  { %4046 = vmatpush1.bf16.msra.mxu0 %v8787_v61 }
0x3208   :  { %4047 = vmatprep.subr.bf16.mxu0 %v8790_v17 }
0x320b   :  { %4048 = vmatpush1.bf16.msra.mxu0 %v8793_v55 }
0x320c   :  { %4049 = vmatprep.subr.bf16.mxu0 %v8796_v12 }
0x320f   :  { %4050 = vmatpush1.bf16.msra.mxu0 %v8799_v56 }
0x3210   :  { %4051 = vmatprep.subr.bf16.mxu0 %v8802_v19 }
0x3213   :  { %4052 = vmatpush1.bf16.msra.mxu0 %v8805_v34  ;;  %v9827_v34 = vld [vmem:[#allocation62_spill] sm:$0xff] }
0x3214   :  { %5767 = vmatprep.subr.bf16.mxu0 %v9521_v33 }
0x32a9   :  { %v5212_v50 = vpop.f32.mrb[104].mxu0 }
0x32aa   :  { %v5213_v35 = vpop.f32.mrb[105].mxu0 }
0x32ab   :  { %v5214_v25 = vadd.f32 %v5213_v35, %v5212_v50  ;;  %v5215_v54 = vpop.f32.mrb[106].mxu0  ;;  %v9828_v50 = vld [vmem:[#allocation64_spill] sm:$0xff]  ;;  %v9829_v35 = vld [vmem:[#allocation65_spill] sm:$0xff] }
0x32ac   :  { %v5216_v59 = vpop.f32.mrb[107].mxu0  ;;  %v9831_v54 = vld [vmem:[#allocation67_spill] sm:$0xff] }
0x32ad   :  { %6235 = vtanh.f32 %v5214_v25  ;;  %v9830_v25 = vld [vmem:[#allocation66_spill] sm:$0xff]  ;;  %v9833_v59 = vld [vmem:[#allocation69_spill] sm:$0xff] }
0x32b7   :  { %v6236_v43 = vpop.eup %6235 }
0x32b8   :  { %v3945_v7 = vpack.c.bf16 %v6236_v43, %v6236_v43  ;;  %v9834_v43 = vld [vmem:[#allocation70_spill] sm:$0xff] }
0x32ba   :  { %5764 = vmatmul.mubr.bf16.vlgmr.msra.gmra.mrb[104].mxu1 %v3945_v7  ;;  %v9835_v7 = vld [vmem:[#allocation71_spill] sm:$0xff] }
0x32bb   :  { %4094 = vmatprep.mubr.bf16.mxu1 %v8713_v63  ;;  %4063 = vmatpush1.bf16.msra.mxu1 %v9822_v49  ;;  %v9832_v63 = vld [vmem:[#allocation68_spill] sm:$0xff] }
0x32bc   :  { %4064 = vmatprep.subr.bf16.mxu1 %v9823_v53 }
0x32bf   :  { %4065 = vmatpush1.bf16.msra.mxu1 %v9824_v14 }
0x32c0   :  { %4066 = vmatprep.subr.bf16.mxu1 %v9825_v0  ;;  %v9836_v0 = vld [vmem:[#allocation72_spill] sm:$0xff] }
0x32c3   :  { %4067 = vmatpush1.bf16.msra.mxu1 %v9826_v41  ;;  %v9837_v41 = vld [vmem:[#allocation73_spill] sm:$0xff] }
0x32c4   :  { %4068 = vmatprep.subr.bf16.mxu1 %v9827_v34  ;;  %v9838_v34 = vld [vmem:[#allocation74_spill] sm:$0xff] }
0x32c7   :  { %4069 = vmatpush1.bf16.msra.mxu1 %v9828_v50  ;;  %v9839_v50 = vld [vmem:[#allocation75_spill] sm:$0xff] }
0x32c8   :  { %4070 = vmatprep.subr.bf16.mxu1 %v9829_v35  ;;  %v9840_v35 = vld [vmem:[#allocation76_spill] sm:$0xff] }
0x32cb   :  { %4071 = vmatpush1.bf16.msra.mxu1 %v9830_v25  ;;  %v9841_v25 = vld [vmem:[#allocation63_spill] sm:$0xff] }
0x32cc   :  { %4072 = vmatprep.subr.bf16.mxu1 %v9831_v54  ;;  %v9842_v54 = vld [vmem:[#allocation23_spill] sm:$0xff] }
0x32cf   :  { %4073 = vmatpush1.bf16.msra.mxu1 %v9832_v63  ;;  %v9843_v63 = vld [vmem:[#allocation24_spill] sm:$0xff] }
0x32d0   :  { %4074 = vmatprep.subr.bf16.mxu1 %v9833_v59  ;;  %v9844_v59 = vld [vmem:[#allocation25_spill] sm:$0xff] }
0x32d3   :  { %4075 = vmatpush1.bf16.msra.mxu1 %v9834_v43  ;;  %v9845_v43 = vld [vmem:[#allocation26_spill] sm:$0xff] }
0x32d4   :  { %4076 = vmatprep.subr.bf16.mxu1 %v9835_v7  ;;  %v9846_v7 = vld [vmem:[#allocation28_spill] sm:$0xff] }
0x32d7   :  { %4077 = vmatpush1.bf16.msra.mxu1 %v9836_v0  ;;  %v9847_v0 = vld [vmem:[#allocation29_spill] sm:$0xff] }
0x32d8   :  { %4078 = vmatprep.subr.bf16.mxu1 %v9837_v41  ;;  %v9848_v41 = vld [vmem:[#allocation30_spill] sm:$0xff] }
0x32db   :  { %4079 = vmatpush1.bf16.msra.mxu1 %v9838_v34  ;;  %v9849_v34 = vld [vmem:[#allocation31_spill] sm:$0xff] }
0x32dc   :  { %4080 = vmatprep.subr.bf16.mxu1 %v9839_v50  ;;  %v9850_v50 = vld [vmem:[#allocation32_spill] sm:$0xff] }
0x32df   :  { %4081 = vmatpush1.bf16.msra.mxu1 %v9840_v35  ;;  %v9851_v35 = vld [vmem:[#allocation33_spill] sm:$0xff] }
0x32e0   :  { %4082 = vmatprep.subr.bf16.mxu1 %v9841_v25  ;;  %v9852_v25 = vld [vmem:[#allocation78_spill] sm:$0xff] }
0x32e3   :  { %4083 = vmatpush1.bf16.msra.mxu1 %v9842_v54 }
0x32e4   :  { %4084 = vmatprep.subr.bf16.mxu1 %v9843_v63 }
0x32e7   :  { %4085 = vmatpush1.bf16.msra.mxu1 %v9844_v59 }
0x32e8   :  { %4086 = vmatprep.subr.bf16.mxu1 %v9845_v43 }
0x32eb   :  { %4087 = vmatpush1.bf16.msra.mxu1 %v9846_v7 }
0x32ec   :  { %4088 = vmatprep.subr.bf16.mxu1 %v9847_v0 }
0x32ef   :  { %4089 = vmatpush1.bf16.msra.mxu1 %v9848_v41 }
0x32f0   :  { %4090 = vmatprep.subr.bf16.mxu1 %v9849_v34 }
0x32f3   :  { %4091 = vmatpush1.bf16.msra.mxu1 %v9850_v50 }
0x32f4   :  { %4092 = vmatprep.subr.bf16.mxu1 %v9851_v35 }
0x32f7   :  { %4093 = vmatpush1.bf16.msra.mxu1 %v9852_v25 }
0x32f8   :  { %5787 = vmatprep.subr.bf16.mxu1 %v9521_v33 }
0x338d   :  { %v3980_v63 = vpop.f32.mrb[104].mxu1 }
0x338e   :  { %v3981_v59 = vadd.f32 %v8373_v18, %v3980_v63  ;;  %v5765_v43 = vpop.f32.mrb[105].mxu1 }
0x338f   :  { %v3983_v54 = vpop.f32.mrb[106].mxu1 }
0x3390   :  { %v5766_v7 = vpop.f32.mrb[107].mxu1  ;;  %v3986_v0 = vsel %vm2416_vm6, %v3981_v59, -inf }
0x3391   :  { %3987 = vmax.xlane.f32.xlu1 %v3986_v0  ;;  %v9860_v7 = vld [vmem:[#allocation55_spill] sm:$0xff] }
0x341e   :  { %v3988_v41 = vpop.xlane.xlu1 %3987 }
0x341f   :  { %vm3989_vm13 = vcmp.ge.f32.partialorder %v3981_v59, %v3988_v41  ;;  %v9858_v59 = vld [vmem:[#allocation53_spill] sm:$0xff] }
0x3420   :  { %v3990_v34 = vsel %vm3989_vm13, %v7464_v62, 128 }
0x3421   :  { %v3991_v50 = vsel %vm2416_vm6, %v3990_v34, 2147483647 }
0x3422   :  { %v3993_v35 = vshra.s32 %v3991_v50, 16  ;;  %v3992_v25 = vand.u32 65535, %v3991_v50  ;;  %v8877_v50 = vld [vmem:[#allocation11 + $0x40] sm:$0xff]  }
0x3423   :  { %9855 = vst [vmem:[#allocation35_spill] sm:$0xff] %v8877_v50 }
0x3424   :  { %v3995_v14 = vcvt.s32.f32 %v3993_v35  ;;  %v3994_v49 = vcvt.s32.f32 %v3992_v25  ;;  %v9857_v25 = vld [vmem:[#allocation52_spill] sm:$0xff] }
0x3426   :  { %3996 = vmin.xlane.f32.xlu1 %v3995_v14 }
0x34b3   :  { %v3997_v53 = vpop.xlane.xlu1 %3996 }
0x34b4   :  { %vm3998_vm14 = vcmp.eq.f32.partialorder %v3995_v14, %v3997_v53  ;;  %v4003_v54 = vcvt.f32.s32 %v3997_v53 }
0x34b5   :  { %v3999_v18 = vsel %vm3998_vm14, %v3994_v49, inf }
0x34b6   :  { %4000 = vmin.xlane.f32.xlu0 %v3999_v18  ;;  %v4004_v43 = vshll.u32 %v4003_v54, 16 }
0x3543   :  { %v4001_v63 = vpop.xlane.xlu0 %4000 }
0x3544   :  { %v4002_v0 = vcvt.f32.s32 %v4001_v63 }
0x3546   :  { %v8847_v41 = vadd.s32 %v4004_v43, %v4002_v0 }
0x3548   :  { %vm4012_vm7 = vcmp.eq.s32.totalorder %v8847_v41, 2  ;;  %vm4016_vm2 = vcmp.eq.s32.totalorder %v7464_v62, %v8847_v41 }
0x3549   :  { %v4013_v53 = vsel %vm4012_vm7, 1, %v9630_v11  ;;  %vm4879_vm1 = vmpackc.low %vm4016_vm2, %vm4016_vm2 }
0x354a   :  { %vm4014_vm8 = vcmp.gt.s32.totalorder %v8673_v24, %v4013_v53  ;;  %4880 = vmatmul.mubr.msk.bf16.vlgmr.msra.gmra.mrb[108].mxu0 %vm4879_vm1, %v9567_v27  ;;  %4882 = vmatmul.mubr.msk.bf16.vlgmr.msra.gmra.mrb[108].mxu1 %vm4879_vm1, %v9567_v27  ;;  %vm4644_vm1 = vcmask 0  }
0x354b   :  { %v8867_v14 = vsel %vm4014_vm8, %v8673_v24, %v4013_v53  ;;  %5768 = vmatpush3.bf16.msra.mxu0 %v9568_v30  ;;  %5788 = vmatpush3.bf16.msra.mxu1 %v9734_v51 }
0x354c   :  { %5769 = vmatprep.subr.bf16.mxu0 %v9521_v33  ;;  %5783 = vmatprep.mubr.msk.bf16.mxu0 %vm6673_vm0, %v9521_v33  ;;  %vm4020_vm9 = vcmp.eq.s32.totalorder %v8867_v14, 0 }
0x354d   :  { %5789 = vmatprep.mubr.msk.bf16.mxu1 %vm6673_vm0, %v9521_v33  ;;  %5238 = vmatprep.subr.bf16.mxu1 %v8877_v50  ;;  %v4322_v24 = vsel %vm4020_vm9, 1, %v9630_v11  ;;  %vm4324_vm13 = vmand %vm4321_vm10, %vm4020_vm9 }
0x354e   :  { %v8884_v35 = vadd.s32 %v4322_v24, %v8688_v5  ;;  %v9859_v5 = vld [vmem:[#allocation54_spill] sm:$0xff] }
0x354f   :  { %5770 = vmatpush3.bf16.msra.mxu0 %v9737_v22 }
0x3550   :  { %9856 = vst [vmem:[#allocation34_spill] sm:$0xff] %v8884_v35  ;;  %5771 = vmatprep.subr.bf16.mxu0 %v9521_v33 }
0x3553   :  { %5772 = vmatpush3.bf16.msra.mxu0 %v9738_v13 }
0x3554   :  { %5773 = vmatprep.subr.bf16.mxu0 %v9521_v33 }
0x3557   :  { %5774 = vmatpush3.bf16.msra.mxu0 %v9739_v15 }
0x3558   :  { %5775 = vmatprep.subr.bf16.mxu0 %v9521_v33 }
0x355b   :  { %5776 = vmatpush3.bf16.msra.mxu0 %v9857_v25 }
0x355c   :  { %5777 = vmatprep.subr.bf16.mxu0 %v9521_v33 }
0x355f   :  { %5778 = vmatpush3.bf16.msra.mxu0 %v9858_v59 }
0x3560   :  { %5779 = vmatprep.subr.bf16.mxu0 %v9521_v33 }
0x3563   :  { %5780 = vmatpush3.bf16.msra.mxu0 %v9859_v5 }
0x3564   :  { %5781 = vmatprep.subr.bf16.mxu0 %v9521_v33 }
0x3567   :  { %5782 = vmatpush3.bf16.msra.mxu0 %v9860_v7 }
0x3568   :  { %5793 = vmatprep.subr.bf16.mxu0 %v9521_v33 }
0x361d   :  { %v4055_v18 = vpop.f32.mrb[108].mxu0  ;;  %v4096_v54 = vpop.f32.mrb[108].mxu1 }
0x361e   :  { %v4057_v63 = vpop.f32.mrb[109].mxu0  ;;  %v4098_v43 = vpop.f32.mrb[109].mxu1  ;;  %v4056_v15 = vadd.f32 %v4055_v18, %v7521_v20 }
0x361f   :  { %v4058_v0 = vadd.f32 %v4057_v63, %v7525_v23  ;;  %v4059_v53 = vpop.f32.mrb[110].mxu0  ;;  %v4100_v24 = vpop.f32.mrb[110].mxu1  ;;  %v4099_v50 = vadd.f32 %v4098_v43, %v7530_v21  ;;  %v4097_v63 = vadd.f32 %v4096_v54, %v7534_v58  ;;  %v8938_v54 = vld [vmem:[#allocation12 + $0x30] sm:$0xff]   ;;  %v8942_v43 = vld [vmem:[#allocation12 + $0x38] sm:$0xff]  }
0x3620   :  { %v4060_v49 = vpop.f32.mrb[111].mxu0  ;;  %v4101_v59 = vpop.f32.mrb[111].mxu1  ;;  %v4883_v5 = vmul.f32 -1.442695, %v4056_v15  ;;  %9863 = vst [vmem:[#allocation77_spill] sm:$0xff] %v8938_v54  ;;  %9864 = vst [vmem:[#allocation38_spill] sm:$0xff] %v8942_v43 }
0x3621   :  { %v4884_v25 = vmul.f32 -1.442695, %v4058_v0 }
0x3623   :  { %6237 = vpow2.f32 %v4884_v25 }
0x3624   :  { %6239 = vpow2.f32 %v4883_v5 }
0x362d   :  { %v6238_v13 = vpop.eup %6237 }
0x362e   :  { %v4112_v7 = vadd.f32 1.0, %v6238_v13  ;;  %v6240_v22 = vpop.eup %6239  ;;  %v8912_v13 = vld [vmem:[#allocation12] sm:$0xff]  }
0x362f   :  { %v4106_v35 = vadd.f32 1.0, %v6240_v22 }
0x3630   :  { %6241 = vrcp.f32 %v4112_v7  ;;  %v8934_v7 = vld [vmem:[#allocation12 + $0x28] sm:$0xff]  }
0x3631   :  { %6243 = vrcp.f32 %v4106_v35  ;;  %v8930_v35 = vld [vmem:[#allocation12 + $0x20] sm:$0xff]   ;;  %9862 = vst [vmem:[#allocation37_spill] sm:$0xff] %v8934_v7 }
0x3632   :  { %9861 = vst [vmem:[#allocation36_spill] sm:$0xff] %v8930_v35 }
0x363a   :  { %v6242_v51 = vpop.eup %6241 }
0x363b   :  { %v4115_v53 = vmul.f32 %v6242_v51, %v4099_v50  ;;  %v6244_v59 = vpop.eup %6243  ;;  %v8918_v51 = vld [vmem:[#allocation12 + $0x8] sm:$0xff]   ;;  %v8926_v50 = vld [vmem:[#allocation12 + $0x18] sm:$0xff]  }
0x363c   :  { %v4118_v0 = vsub.f32 1.0, %v6244_v59  ;;  %v4120_v15 = vmul.f32 %v6244_v59, %v8709_v32  ;;  %v8922_v32 = vld [vmem:[#allocation12 + $0x10] sm:$0xff]  }
0x363d   :  { %v4116_v49 = vadd.f32 %v4115_v53, %v4097_v63 }
0x363f   :  { %6245 = vtanh.f32 %v4116_v49 }
0x3649   :  { %v6246_v18 = vpop.eup %6245 }
0x364a   :  { %v4119_v25 = vmul.f32 %v6246_v18, %v4118_v0 }
0x364c   :  { %v8905_v5 = vadd.f32 %v4120_v15, %v4119_v25 }
0x364e   :  { %v8909_v22 = vpack.c.bf16 %v8905_v5, %v8905_v5 }
0x3650   :  { %5784 = vmatmul.mubr.bf16.vlgmr.msra.gmra.mrb[112].mxu0 %v8909_v22 }
0x3651   :  { %5794 = vmatpush3.bf16.msra.mxu0 %v8912_v13  ;;  %5809 = vmatprep.mubr.msk.bf16.mxu0 %vm6673_vm0, %v9521_v33 }
0x3652   :  { %5795 = vmatprep.subr.bf16.mxu0 %v9521_v33 }
0x3655   :  { %5796 = vmatpush3.bf16.msra.mxu0 %v8918_v51 }
0x3656   :  { %5797 = vmatprep.subr.bf16.mxu0 %v9521_v33 }
0x3659   :  { %5798 = vmatpush3.bf16.msra.mxu0 %v8922_v32 }
0x365a   :  { %5799 = vmatprep.subr.bf16.mxu0 %v9521_v33 }
0x365d   :  { %5800 = vmatpush3.bf16.msra.mxu0 %v8926_v50 }
0x365e   :  { %5801 = vmatprep.subr.bf16.mxu0 %v9521_v33 }
0x3661   :  { %5802 = vmatpush3.bf16.msra.mxu0 %v8930_v35 }
0x3662   :  { %5803 = vmatprep.subr.bf16.mxu0 %v9521_v33 }
0x3665   :  { %5804 = vmatpush3.bf16.msra.mxu0 %v8934_v7 }
0x3666   :  { %5805 = vmatprep.subr.bf16.mxu0 %v9521_v33 }
0x3669   :  { %5806 = vmatpush3.bf16.msra.mxu0 %v8938_v54 }
0x366a   :  { %5807 = vmatprep.subr.bf16.mxu0 %v9521_v33 }
0x366d   :  { %5808 = vmatpush3.bf16.msra.mxu0 %v8942_v43 }
0x366e   :  { %4377 = vmatprep.subr.bf16.mxu0 %v9805_v60 }
0x3723   :  { %v4157_v24 = vpop.f32.mrb[112].mxu0 }
0x3724   :  { %v5785_v63 = vpop.f32.mrb[113].mxu0  ;;  %v4163_v53 = vsel %vm2128_vm4, %v4157_v24, -inf }
0x3725   :  { %4164 = vmax.xlane.f32.xlu1 %v4163_v53  ;;  %v4160_v49 = vpop.f32.mrb[114].mxu0  ;;  %v8949_v63 = vld [vmem:[#allocation11] sm:$0xff]   ;;  %v8952_v53 = vld [vmem:[#allocation11 + $0x48] sm:$0xff]  }
0x3726   :  { %v5786_v59 = vpop.f32.mrb[115].mxu0  ;;  %v8970_v49 = vld [vmem:[#allocation11 + $0x60] sm:$0xff]  }
0x3727   :  { %9867 = vst [vmem:[#allocation41_spill] sm:$0xff] %v8970_v49  ;;  %v8973_v59 = vld [vmem:[#allocation11 + $0x20] sm:$0xff]  }
0x3728   :  { %9868 = vst [vmem:[#allocation42_spill] sm:$0xff] %v8973_v59 }
0x37b2   :  { %v4165_v0 = vpop.xlane.xlu1 %4164 }
0x37b3   :  { %v4166_v18 = vsub.f32 %v4157_v24, %v4165_v0  ;;  %v8955_v24 = vld [vmem:[#allocation11 + $0x8] sm:$0xff]  }
0x37b4   :  { %v8976_v0 = vld [vmem:[#allocation11 + $0x68] sm:$0xff]  }
0x37b5   :  { %v4167_v25 = vmul.f32 1.442695, %v4166_v18  ;;  %9869 = vst [vmem:[#allocation43_spill] sm:$0xff] %v8976_v0  ;;  %v8979_v18 = vld [vmem:[#allocation11 + $0x28] sm:$0xff]  }
0x37b6   :  { %9870 = vst [vmem:[#allocation44_spill] sm:$0xff] %v8979_v18 }
0x37b7   :  { %6247 = vpow2.f32 %v4167_v25  ;;  %v8982_v25 = vld [vmem:[#allocation11 + $0x70] sm:$0xff]  }
0x37c1   :  { %v6248_v15 = vpop.eup %6247 }
0x37c2   :  { %v4169_v54 = vsel %vm2128_vm4, %v6248_v15, 0.0 }
0x37c3   :  { %4170 = vadd.xlane.f32.xlu0 %v4169_v54  ;;  %v8958_v54 = vld [vmem:[#allocation11 + $0x50] sm:$0xff]  }
0x3850   :  { %v4171_v7 = vpop.xlane.xlu0 %4170 }
0x3851   :  { %6249 = vrcp.f32 %v4171_v7  ;;  %v8961_v7 = vld [vmem:[#allocation11 + $0x10] sm:$0xff]  }
0x385b   :  { %v6250_v43 = vpop.eup %6249 }
0x385c   :  { %v4173_v35 = vmul.f32 %v6250_v43, %v6248_v15  ;;  %v8967_v43 = vld [vmem:[#allocation11 + $0x18] sm:$0xff]   ;;  %v8985_v15 = vld [vmem:[#allocation11 + $0x30] sm:$0xff]  }
0x385d   :  { %9866 = vst [vmem:[#allocation40_spill] sm:$0xff] %v8967_v43 }
0x385e   :  { %v4174_v60 = vpack.c.bf16 %v4173_v35, %v4173_v35  ;;  %v8964_v35 = vld [vmem:[#allocation11 + $0x58] sm:$0xff]  }
0x385f   :  { %9865 = vst [vmem:[#allocation39_spill] sm:$0xff] %v8964_v35 }
0x3860   :  { %5790 = vmatmul.mubr.msk.bf16.vlgmr.msra.gmra.mrb[112].mxu1 %vm2141_vm5, %v4174_v60  ;;  %v8988_v60 = vld [vmem:[#allocation11 + $0x78] sm:$0xff]  }
0x3861   :  { %5239 = vmatpush3.bf16.msra.mxu1 %v8949_v63 }
0x3862   :  { %5240 = vmatprep.subr.bf16.mxu1 %v8952_v53 }
0x3865   :  { %5241 = vmatpush3.bf16.msra.mxu1 %v8955_v24 }
0x3866   :  { %5242 = vmatprep.subr.bf16.mxu1 %v8958_v54 }
0x3869   :  { %5243 = vmatpush3.bf16.msra.mxu1 %v8961_v7 }
0x386a   :  { %5244 = vmatprep.subr.bf16.mxu1 %v8964_v35 }
0x386d   :  { %5245 = vmatpush3.bf16.msra.mxu1 %v8967_v43 }
0x386e   :  { %5246 = vmatprep.subr.bf16.mxu1 %v8970_v49 }
0x3871   :  { %5247 = vmatpush3.bf16.msra.mxu1 %v8973_v59  ;;  %v8991_v59 = vld [vmem:[#allocation11 + $0x38] sm:$0xff]  }
0x3872   :  { %5248 = vmatprep.subr.bf16.mxu1 %v8976_v0 }
0x3875   :  { %5249 = vmatpush3.bf16.msra.mxu1 %v8979_v18 }
0x3876   :  { %5250 = vmatprep.subr.bf16.mxu1 %v8982_v25 }
0x3879   :  { %5251 = vmatpush3.bf16.msra.mxu1 %v8985_v15 }
0x387a   :  { %5252 = vmatprep.subr.bf16.mxu1 %v8988_v60 }
0x387d   :  { %5253 = vmatpush3.bf16.msra.mxu1 %v8991_v59 }
0x387e   :  { %4336 = vmatprep.subr.bf16.mxu1 %v8481_v38 }
0x3933   :  { %v4212_v0 = vpop.f32.mrb[112].mxu1 }
0x3934   :  { %v4218_v18 = vpack.c.bf16 %v4212_v0, %v4212_v0  ;;  %v5791_v49 = vpop.f32.mrb[113].mxu1  ;;  %v9899_v0 = vld [vmem:[#allocation31_spill] sm:$0xff] }
0x3935   :  { %v4215_v43 = vpop.f32.mrb[114].mxu1  ;;  %v9898_v49 = vld [vmem:[#allocation30_spill] sm:$0xff] }
0x3936   :  { %v5792_v35 = vpop.f32.mrb[115].mxu1  ;;  %4251 = vmatprep.mubr.bf16.mxu1 %v4218_v18  ;;  %v9897_v43 = vld [vmem:[#allocation29_spill] sm:$0xff]  ;;  %v9900_v18 = vld [vmem:[#allocation32_spill] sm:$0xff] }
0x3937   :  { %4252 = vmatmul.mubr.bf16.vlgmr.msra.gmra.mrb[116].mxu1 %v8909_v22  ;;  %v9896_v35 = vld [vmem:[#allocation28_spill] sm:$0xff] }
0x3938   :  { %4368 = vmatprep.mubr.bf16.mxu1 %v8909_v22  ;;  %4337 = vmatpush1.bf16.msra.mxu1 %v8486_v9 }
0x3939   :  { %4338 = vmatprep.subr.bf16.mxu1 %v8489_v29 }
0x393c   :  { %4339 = vmatpush1.bf16.msra.mxu1 %v9807_v2 }
0x393d   :  { %4340 = vmatprep.subr.bf16.mxu1 %v9808_v42  ;;  %v9872_v42 = vld [vmem:[#allocation57_spill] sm:$0xff] }
0x3940   :  { %4341 = vmatpush1.bf16.msra.mxu1 %v9809_v37  ;;  %v9873_v37 = vld [vmem:[#allocation58_spill] sm:$0xff] }
0x3941   :  { %4342 = vmatprep.subr.bf16.mxu1 %v9810_v3  ;;  %v9874_v3 = vld [vmem:[#allocation59_spill] sm:$0xff] }
0x3944   :  { %4343 = vmatpush1.bf16.msra.mxu1 %v9811_v4  ;;  %v9875_v4 = vld [vmem:[#allocation60_spill] sm:$0xff] }
0x3945   :  { %4344 = vmatprep.subr.bf16.mxu1 %v9812_v40  ;;  %v9876_v40 = vld [vmem:[#allocation61_spill] sm:$0xff] }
0x3948   :  { %4345 = vmatpush1.bf16.msra.mxu1 %v9813_v31  ;;  %v9877_v31 = vld [vmem:[#allocation62_spill] sm:$0xff] }
0x3949   :  { %4346 = vmatprep.subr.bf16.mxu1 %v9814_v26  ;;  %v9878_v26 = vld [vmem:[#allocation64_spill] sm:$0xff] }
0x394c   :  { %4347 = vmatpush1.bf16.msra.mxu1 %v9815_v1  ;;  %v9879_v1 = vld [vmem:[#allocation65_spill] sm:$0xff] }
0x394d   :  { %4348 = vmatprep.subr.bf16.mxu1 %v9816_v36  ;;  %v9880_v36 = vld [vmem:[#allocation66_spill] sm:$0xff] }
0x3950   :  { %4349 = vmatpush1.bf16.msra.mxu1 %v9817_v16  ;;  %v9881_v16 = vld [vmem:[#allocation67_spill] sm:$0xff] }
0x3951   :  { %4350 = vmatprep.subr.bf16.mxu1 %v9818_v57  ;;  %v9882_v57 = vld [vmem:[#allocation68_spill] sm:$0xff] }
0x3954   :  { %4351 = vmatpush1.bf16.msra.mxu1 %v8528_v8  ;;  %v9871_v8 = vld [vmem:[#allocation27_spill] sm:$0xff] }
0x3955   :  { %4352 = vmatprep.subr.bf16.mxu1 %v8531_v52 }
0x3958   :  { %4353 = vmatpush1.bf16.msra.mxu1 %v8534_v47 }
0x3959   :  { %4354 = vmatprep.subr.bf16.mxu1 %v8537_v44 }
0x395c   :  { %4355 = vmatpush1.bf16.msra.mxu1 %v9819_v45  ;;  %v9883_v45 = vld [vmem:[#allocation69_spill] sm:$0xff] }
0x395d   :  { %4356 = vmatprep.subr.bf16.mxu1 %v9820_v6  ;;  %v9884_v6 = vld [vmem:[#allocation70_spill] sm:$0xff] }
0x3960   :  { %4357 = vmatpush1.bf16.msra.mxu1 %v8775_v48  ;;  %v9885_v48 = vld [vmem:[#allocation71_spill] sm:$0xff] }
0x3961   :  { %4358 = vmatprep.subr.bf16.mxu1 %v8778_v28  ;;  %v9886_v28 = vld [vmem:[#allocation72_spill] sm:$0xff] }
0x3964   :  { %4359 = vmatpush1.bf16.msra.mxu1 %v8781_v46  ;;  %v9887_v46 = vld [vmem:[#allocation73_spill] sm:$0xff] }
0x3965   :  { %4360 = vmatprep.subr.bf16.mxu1 %v8784_v10  ;;  %v9888_v10 = vld [vmem:[#allocation74_spill] sm:$0xff] }
0x3968   :  { %4361 = vmatpush1.bf16.msra.mxu1 %v8787_v61  ;;  %v9889_v61 = vld [vmem:[#allocation75_spill] sm:$0xff] }
0x3969   :  { %4362 = vmatprep.subr.bf16.mxu1 %v8790_v17  ;;  %v9890_v17 = vld [vmem:[#allocation76_spill] sm:$0xff] }
0x396c   :  { %4363 = vmatpush1.bf16.msra.mxu1 %v8793_v55  ;;  %v9891_v55 = vld [vmem:[#allocation63_spill] sm:$0xff] }
0x396d   :  { %4364 = vmatprep.subr.bf16.mxu1 %v8796_v12  ;;  %v9892_v12 = vld [vmem:[#allocation23_spill] sm:$0xff] }
0x3970   :  { %4365 = vmatpush1.bf16.msra.mxu1 %v8799_v56  ;;  %v9893_v56 = vld [vmem:[#allocation24_spill] sm:$0xff] }
0x3971   :  { %4366 = vmatprep.subr.bf16.mxu1 %v8802_v19  ;;  %v9894_v19 = vld [vmem:[#allocation25_spill] sm:$0xff] }
0x3974   :  { %4367 = vmatpush1.bf16.msra.mxu1 %v9871_v8  ;;  %v9901_v8 = vld [vmem:[#allocation33_spill] sm:$0xff] }
0x3975   :  { %5813 = vmatprep.subr.bf16.mxu1 %v9521_v33 }
0x3a0a   :  { %v5254_v38 = vpop.f32.mrb[116].mxu1 }
0x3a0b   :  { %v5255_v9 = vpop.f32.mrb[117].mxu1 }
0x3a0c   :  { %v5256_v29 = vadd.f32 %v5255_v9, %v5254_v38  ;;  %v5257_v52 = vpop.f32.mrb[118].mxu1  ;;  %v9902_v38 = vld [vmem:[#allocation78_spill] sm:$0xff] }
0x3a0d   :  { %v5258_v47 = vpop.f32.mrb[119].mxu1 }
0x3a0e   :  { %6251 = vtanh.f32 %v5256_v29  ;;  %v9065_v29 = vld [vmem:[%s9196_s8] sm:$0x1]  ;;  %s6675_s8 = smov [#allocation15]  }
0x3a0f   :  { %s4662_s28 = sshll.u32 %s6675_s8, 4  ;;  %s4663_s28 = int_to_ptr.vmem [resolvable:$true] %s4662_s28 }
0x3a10   :  { %s6603_s15 = scalar_lea.vmem %s4663_s28, 16  ;;  %s6607_s2 = scalar_lea.vmem %s4663_s28, 32 }
0x3a11   :  { %p6604_p6 = scmp.ne.s32.totalorder %s4663_s28, %s6603_s15  ;;  %p6608_p7 = scmp.lt.s32.totalorder %s4663_s28, %s4663_s28 }
0x3a12   :  { %p6609_p8 = scmp.lt.s32.totalorder %s6607_s2, %s6603_s15 }
0x3a14   :  { %p6610_p9 = por %p6609_p8, %p6608_p7 }
0x3a16   :  { %p6611_p10 = pnand %p6610_p9, %p6604_p6 }
0x3a18   :  { %v6252_v44 = vpop.eup %6251 }
0x3a19   :  { %v4260_v2 = vpack.c.bf16 %v6252_v44, %v6252_v44 }
0x3a1b   :  { %5810 = vmatmul.mubr.bf16.vlgmr.msra.gmra.mrb[116].mxu0 %v4260_v2 }
0x3a1c   :  { %4409 = vmatprep.mubr.bf16.mxu0 %v8909_v22  ;;  %4378 = vmatpush1.bf16.msra.mxu0 %v9872_v42  ;;  %v9895_v22 = vld [vmem:[#allocation26_spill] sm:$0xff] }
0x3a1d   :  { %4379 = vmatprep.subr.bf16.mxu0 %v9873_v37 }
0x3a20   :  { %4380 = vmatpush1.bf16.msra.mxu0 %v9874_v3 }
0x3a21   :  { %4381 = vmatprep.subr.bf16.mxu0 %v9875_v4 }
0x3a24   :  { %4382 = vmatpush1.bf16.msra.mxu0 %v9876_v40 }
0x3a25   :  { %4383 = vmatprep.subr.bf16.mxu0 %v9877_v31 }
0x3a28   :  { %4384 = vmatpush1.bf16.msra.mxu0 %v9878_v26 }
0x3a29   :  { %4385 = vmatprep.subr.bf16.mxu0 %v9879_v1 }
0x3a2c   :  { %4386 = vmatpush1.bf16.msra.mxu0 %v9880_v36 }
0x3a2d   :  { %4387 = vmatprep.subr.bf16.mxu0 %v9881_v16 }
0x3a30   :  { %4388 = vmatpush1.bf16.msra.mxu0 %v9882_v57 }
0x3a31   :  { %4389 = vmatprep.subr.bf16.mxu0 %v9883_v45 }
0x3a34   :  { %4390 = vmatpush1.bf16.msra.mxu0 %v9884_v6 }
0x3a35   :  { %4391 = vmatprep.subr.bf16.mxu0 %v9885_v48 }
0x3a38   :  { %4392 = vmatpush1.bf16.msra.mxu0 %v9886_v28 }
0x3a39   :  { %4393 = vmatprep.subr.bf16.mxu0 %v9887_v46  ;;  %v9903_v46 = vsel %vm8851_vm3, %v8847_v41, %v8665_v39  ;;  %v9905_v39 = vld [vmem:[#allocation35_spill] sm:$0xff] }
0x3a3c   :  { %4394 = vmatpush1.bf16.msra.mxu0 %v9888_v10 }
0x3a3d   :  { %4395 = vmatprep.subr.bf16.mxu0 %v9889_v61 }
0x3a40   :  { %4396 = vmatpush1.bf16.msra.mxu0 %v9890_v17  ;;  %v9904_v17 = vld [vmem:[#allocation47_spill] sm:$0xff] }
0x3a41   :  { %4397 = vmatprep.subr.bf16.mxu0 %v9891_v55  ;;  %v9908_v55 = vld [vmem:[#allocation50_spill] sm:$0xff] }
0x3a44   :  { %4398 = vmatpush1.bf16.msra.mxu0 %v9892_v12  ;;  %v9909_v12 = vld [vmem:[#allocation51_spill] sm:$0xff] }
0x3a45   :  { %4399 = vmatprep.subr.bf16.mxu0 %v9893_v56  ;;  %v9910_v56 = vld [vmem:[#allocation52_spill] sm:$0xff] }
0x3a48   :  { %4400 = vmatpush1.bf16.msra.mxu0 %v9894_v19  ;;  %v9912_v19 = vld [vmem:[#allocation54_spill] sm:$0xff] }
0x3a49   :  { %4401 = vmatprep.subr.bf16.mxu0 %v9895_v22  ;;  %v9913_v22 = vld [vmem:[#allocation55_spill] sm:$0xff] }
0x3a4c   :  { %4402 = vmatpush1.bf16.msra.mxu0 %v9896_v35 }
0x3a4d   :  { %4403 = vmatprep.subr.bf16.mxu0 %v9897_v43 }
0x3a50   :  { %4404 = vmatpush1.bf16.msra.mxu0 %v9898_v49 }
0x3a51   :  { %4405 = vmatprep.subr.bf16.mxu0 %v9899_v0 }
0x3a54   :  { %4406 = vmatpush1.bf16.msra.mxu0 %v9900_v18 }
0x3a55   :  { %4407 = vmatprep.subr.bf16.mxu0 %v9901_v8 }
0x3a58   :  { %4408 = vmatpush1.bf16.msra.mxu0 %v9902_v38 }
0x3a59   :  { %5833 = vmatprep.subr.bf16.mxu0 %v9521_v33 }
0x3aee   :  { %v4295_v9 = vpop.f32.mrb[116].mxu0 }
0x3aef   :  { %v4296_v52 = vadd.f32 %v9065_v29, %v4295_v9  ;;  %v5811_v47 = vpop.f32.mrb[117].mxu0 }
0x3af0   :  { %v4298_v44 = vpop.f32.mrb[118].mxu0 }
0x3af1   :  { %v5812_v2 = vpop.f32.mrb[119].mxu0  ;;  %v4301_v42 = vsel %vm2416_vm6, %v4296_v52, -inf }
0x3af2   :  { %4302 = vmax.xlane.f32.xlu1 %v4301_v42 }
0x3b7f   :  { %v4303_v37 = vpop.xlane.xlu1 %4302 }
0x3b80   :  { %vm4304_vm11 = vcmp.ge.f32.partialorder %v4296_v52, %v4303_v37 }
0x3b81   :  { %v4305_v3 = vsel %vm4304_vm11, %v7464_v62, 128 }
0x3b82   :  { %v4306_v4 = vsel %vm2416_vm6, %v4305_v3, 2147483647 }
0x3b83   :  { %v4308_v40 = vshra.s32 %v4306_v4, 16  ;;  %v4307_v26 = vand.u32 65535, %v4306_v4 }
0x3b85   :  { %v4310_v31 = vcvt.s32.f32 %v4308_v40  ;;  %v4309_v36 = vcvt.s32.f32 %v4307_v26 }
0x3b87   :  { %4311 = vmin.xlane.f32.xlu0 %v4310_v31 }
0x3c14   :  { %v4312_v1 = vpop.xlane.xlu0 %4311 }
0x3c15   :  { %vm4313_vm12 = vcmp.eq.f32.partialorder %v4310_v31, %v4312_v1  ;;  %v4318_v57 = vcvt.f32.s32 %v4312_v1 }
0x3c16   :  { %v4314_v16 = vsel %vm4313_vm12, %v4309_v36, inf }
0x3c17   :  { %4315 = vmin.xlane.f32.xlu1 %v4314_v16  ;;  %v4319_v6 = vshll.u32 %v4318_v57, 16 }
0x3ca4   :  { %v4316_v45 = vpop.xlane.xlu1 %4315 }
0x3ca5   :  { %v4317_v48 = vcvt.f32.s32 %v4316_v45 }
0x3ca7   :  { %v4320_v28 = vadd.s32 %v4319_v6, %v4317_v48 }
0x3ca9   :  { %vm4327_vm14 = vcmp.eq.s32.totalorder %v4320_v28, 2  ;;  %vm4331_vm15 = vcmp.eq.s32.totalorder %v7464_v62, %v4320_v28  ;;  %v9080_v10 = vsel %vm4324_vm13, %v4320_v28, %v9903_v46 }
0x3caa   :  { %v4328_v61 = vsel %vm4327_vm14, 1, %v9630_v11  ;;  %vm4887_vm7 = vmpackc.low %vm4331_vm15, %vm4331_vm15 }
0x3cab   :  { %vm4329_vm2 = vcmp.gt.s32.totalorder %v8867_v14, %v4328_v61  ;;  %4888 = vmatmul.mubr.msk.bf16.vlgmr.msra.gmra.mrb[120].mxu1 %vm4887_vm7, %v9567_v27  ;;  %4890 = vmatmul.mubr.msk.bf16.vlgmr.msra.gmra.mrb[120].mxu0 %vm4887_vm7, %v9567_v27 }
0x3cac   :  { %5814 = vmatpush3.bf16.msra.mxu1 %v9568_v30  ;;  %5834 = vmatpush3.bf16.msra.mxu0 %v9904_v17  ;;  %v9089_v34 = vsel %vm4329_vm2, %v8867_v14, %v4328_v61  ;;  %v9906_v30 = vld [vmem:[#allocation34_spill] sm:$0xff]  ;;  %v9907_v14 = vld [vmem:[#allocation49_spill] sm:$0xff] }
0x3cad   :  { %5815 = vmatprep.subr.bf16.mxu1 %v9521_v33  ;;  %5829 = vmatprep.mubr.msk.bf16.mxu1 %vm6673_vm0, %v9521_v33  ;;  %vm4335_vm3 = vcmp.eq.s32.totalorder %v9089_v34, 0 }
0x3cae   :  { %5835 = vmatprep.mubr.msk.bf16.mxu0 %vm6673_vm0, %v9521_v33  ;;  %5280 = vmatprep.subr.bf16.mxu0 %v9905_v39  ;;  %v4637_v27 = vsel %vm4335_vm3, 1, %v9630_v11  ;;  %v9911_v11 = vld [vmem:[#allocation53_spill] sm:$0xff] }
0x3caf   :  { %v4641_v41 = vadd.s32 %v4637_v27, %v9906_v30 }
0x3cb0   :  { %5816 = vmatpush3.bf16.msra.mxu1 %v9907_v14 }
0x3cb1   :  { %5817 = vmatprep.subr.bf16.mxu1 %v9521_v33  ;;  %4645 = vst.msk [vmem:[#allocation15] sm:$0x1] %vm4644_vm1, %v4641_v41 }
0x3cb4   :  { %5818 = vmatpush3.bf16.msra.mxu1 %v9908_v55 }
0x3cb5   :  { %5819 = vmatprep.subr.bf16.mxu1 %v9521_v33 }
0x3cb8   :  { %5820 = vmatpush3.bf16.msra.mxu1 %v9909_v12  ;;  %v9918_v12 = vld [vmem:[#allocation39_spill] sm:$0xff] }
0x3cb9   :  { %5821 = vmatprep.subr.bf16.mxu1 %v9521_v33 }
0x3cbc   :  { %5822 = vmatpush3.bf16.msra.mxu1 %v9910_v56  ;;  %v9919_v56 = vld [vmem:[#allocation40_spill] sm:$0xff] }
0x3cbd   :  { %5823 = vmatprep.subr.bf16.mxu1 %v9521_v33 }
0x3cc0   :  { %5824 = vmatpush3.bf16.msra.mxu1 %v9911_v11  ;;  %v9920_v11 = vld [vmem:[#allocation41_spill] sm:$0xff] }
0x3cc1   :  { %5825 = vmatprep.subr.bf16.mxu1 %v9521_v33 }
0x3cc4   :  { %5826 = vmatpush3.bf16.msra.mxu1 %v9912_v19  ;;  %v9921_v19 = vld [vmem:[#allocation42_spill] sm:$0xff] }
0x3cc5   :  { %5827 = vmatprep.subr.bf16.mxu1 %v9521_v33 }
0x3cc8   :  { %5828 = vmatpush3.bf16.msra.mxu1 %v9913_v22  ;;  %v9922_v22 = vld [vmem:[#allocation43_spill] sm:$0xff] }
0x3cc9   :  { %5839 = vmatprep.subr.bf16.mxu1 %v9521_v33 }
0x3d7e   :  { %v4370_v35 = vpop.f32.mrb[120].mxu1  ;;  %v4411_v43 = vpop.f32.mrb[120].mxu0 }
0x3d7f   :  { %v4372_v49 = vpop.f32.mrb[121].mxu1  ;;  %v4413_v0 = vpop.f32.mrb[121].mxu0  ;;  %v4371_v44 = vadd.f32 %v4370_v35, %v7521_v20  ;;  %v9923_v35 = vld [vmem:[#allocation44_spill] sm:$0xff] }
0x3d80   :  { %v4373_v18 = vadd.f32 %v4372_v49, %v7525_v23  ;;  %v4374_v8 = vpop.f32.mrb[122].mxu1  ;;  %v4415_v38 = vpop.f32.mrb[122].mxu0  ;;  %v4414_v40 = vadd.f32 %v4413_v0, %v7530_v21  ;;  %v4412_v23 = vadd.f32 %v4411_v43, %v7534_v58  ;;  %v9914_v21 = vld [vmem:[#allocation36_spill] sm:$0xff]  ;;  %v9915_v58 = vld [vmem:[#allocation37_spill] sm:$0xff] }
0x3d81   :  { %v4375_v9 = vpop.f32.mrb[123].mxu1  ;;  %v4416_v52 = vpop.f32.mrb[123].mxu0  ;;  %v4891_v2 = vmul.f32 -1.442695, %v4371_v44 }
0x3d82   :  { %v4892_v47 = vmul.f32 -1.442695, %v4373_v18 }
0x3d84   :  { %6253 = vpow2.f32 %v4892_v47 }
0x3d85   :  { %6255 = vpow2.f32 %v4891_v2 }
0x3d8e   :  { %v6254_v42 = vpop.eup %6253 }
0x3d8f   :  { %v4427_v37 = vadd.f32 1.0, %v6254_v42  ;;  %v6256_v3 = vpop.eup %6255 }
0x3d90   :  { %v4421_v4 = vadd.f32 1.0, %v6256_v3 }
0x3d91   :  { %6257 = vrcp.f32 %v4427_v37 }
0x3d92   :  { %6259 = vrcp.f32 %v4421_v4 }
0x3d9b   :  { %v6258_v31 = vpop.eup %6257 }
0x3d9c   :  { %v4430_v26 = vmul.f32 %v6258_v31, %v4414_v40  ;;  %v6260_v36 = vpop.eup %6259 }
0x3d9d   :  { %v4433_v16 = vsub.f32 1.0, %v6260_v36  ;;  %v4435_v45 = vmul.f32 %v6260_v36, %v8905_v5  ;;  %v9916_v5 = vld [vmem:[#allocation77_spill] sm:$0xff] }
0x3d9e   :  { %v4431_v1 = vadd.f32 %v4430_v26, %v4412_v23 }
0x3da0   :  { %6261 = vtanh.f32 %v4431_v1 }
0x3daa   :  { %v6262_v20 = vpop.eup %6261 }
0x3dab   :  { %v4434_v57 = vmul.f32 %v6262_v20, %v4433_v16 }
0x3dad   :  { %v4436_v6 = vadd.f32 %v4435_v45, %v4434_v57 }
0x3daf   :  { %v4437_v48 = vpack.c.bf16 %v4436_v6, %v4436_v6 }
0x3db1   :  { %5830 = vmatmul.mubr.bf16.vlgmr.msra.gmra.mrb[124].mxu1 %v4437_v48 }
0x3db2   :  { %5840 = vmatpush3.bf16.msra.mxu1 %v8912_v13  ;;  %5855 = vmatprep.mubr.msk.bf16.mxu1 %vm6673_vm0, %v9521_v33  ;;  %v9917_v13 = vld [vmem:[#allocation38_spill] sm:$0xff] }
0x3db3   :  { %5841 = vmatprep.subr.bf16.mxu1 %v9521_v33 }
0x3db6   :  { %5842 = vmatpush3.bf16.msra.mxu1 %v8918_v51 }
0x3db7   :  { %5843 = vmatprep.subr.bf16.mxu1 %v9521_v33 }
0x3dba   :  { %5844 = vmatpush3.bf16.msra.mxu1 %v8922_v32 }
0x3dbb   :  { %5845 = vmatprep.subr.bf16.mxu1 %v9521_v33 }
0x3dbe   :  { %5846 = vmatpush3.bf16.msra.mxu1 %v8926_v50 }
0x3dbf   :  { %5847 = vmatprep.subr.bf16.mxu1 %v9521_v33 }
0x3dc2   :  { %5848 = vmatpush3.bf16.msra.mxu1 %v9914_v21 }
0x3dc3   :  { %5849 = vmatprep.subr.bf16.mxu1 %v9521_v33 }
0x3dc6   :  { %5850 = vmatpush3.bf16.msra.mxu1 %v9915_v58 }
0x3dc7   :  { %5851 = vmatprep.subr.bf16.mxu1 %v9521_v33 }
0x3dca   :  { %5852 = vmatpush3.bf16.msra.mxu1 %v9916_v5 }
0x3dcb   :  { %5853 = vmatprep.subr.bf16.mxu1 %v9521_v33 }
0x3dce   :  { %5854 = vmatpush3.bf16.msra.mxu1 %v9917_v13 }
0x3e84   :  { %v4472_v51 = vpop.f32.mrb[124].mxu1 }
0x3e85   :  { %v5831_v32 = vpop.f32.mrb[125].mxu1  ;;  %v4478_v50 = vsel %vm2128_vm4, %v4472_v51, -inf }
0x3e86   :  { %4479 = vmax.xlane.f32.xlu0 %v4478_v50  ;;  %v4475_v28 = vpop.f32.mrb[126].mxu1 }
0x3e87   :  { %v5832_v46 = vpop.f32.mrb[127].mxu1 }
0x3f13   :  { %v4480_v61 = vpop.xlane.xlu0 %4479 }
0x3f14   :  { %v4481_v17 = vsub.f32 %v4472_v51, %v4480_v61 }
0x3f16   :  { %v4482_v39 = vmul.f32 1.442695, %v4481_v17 }
0x3f18   :  { %6263 = vpow2.f32 %v4482_v39 }
0x3f22   :  { %v6264_v27 = vpop.eup %6263 }
0x3f23   :  { %v4484_v30 = vsel %vm2128_vm4, %v6264_v27, 0.0 }
0x3f24   :  { %4485 = vadd.xlane.f32.xlu1 %v4484_v30 }
0x3fb1   :  { %v4486_v41 = vpop.xlane.xlu1 %4485 }
0x3fb2   :  { %6265 = vrcp.f32 %v4486_v41 }
0x3fbc   :  { %v6266_v33 = vpop.eup %6265 }
0x3fbd   :  { %v4488_v14 = vmul.f32 %v6266_v33, %v6264_v27 }
0x3fbf   :  { %v4489_v55 = vpack.c.bf16 %v4488_v14, %v4488_v14 }
0x3fc1   :  { %5836 = vmatmul.mubr.msk.bf16.vlgmr.msra.gmra.mrb[124].mxu0 %vm2141_vm5, %v4489_v55 }
0x3fc2   :  { %5281 = vmatpush3.bf16.msra.mxu0 %v8949_v63 }
0x3fc3   :  { %5282 = vmatprep.subr.bf16.mxu0 %v8952_v53 }
0x3fc6   :  { %5283 = vmatpush3.bf16.msra.mxu0 %v8955_v24 }
0x3fc7   :  { %5284 = vmatprep.subr.bf16.mxu0 %v8958_v54 }
0x3fca   :  { %5285 = vmatpush3.bf16.msra.mxu0 %v8961_v7 }
0x3fcb   :  { %5286 = vmatprep.subr.bf16.mxu0 %v9918_v12 }
0x3fce   :  { %5287 = vmatpush3.bf16.msra.mxu0 %v9919_v56 }
0x3fcf   :  { %5288 = vmatprep.subr.bf16.mxu0 %v9920_v11 }
0x3fd2   :  { %5289 = vmatpush3.bf16.msra.mxu0 %v9921_v19 }
0x3fd3   :  { %5290 = vmatprep.subr.bf16.mxu0 %v9922_v22 }
0x3fd6   :  { %5291 = vmatpush3.bf16.msra.mxu0 %v9923_v35 }
0x3fd7   :  { %5292 = vmatprep.subr.bf16.mxu0 %v8982_v25 }
0x3fda   :  { %5293 = vmatpush3.bf16.msra.mxu0 %v8985_v15 }
0x3fdb   :  { %5294 = vmatprep.subr.bf16.mxu0 %v8988_v60 }
0x3fde   :  { %5295 = vmatpush3.bf16.msra.mxu0 %v8991_v59 }
0x4094   :  { %v4527_v63 = vpop.f32.mrb[124].mxu0 }
0x4095   :  { %v4533_v53 = vpack.c.bf16 %v4527_v63, %v4527_v63  ;;  %v5837_v24 = vpop.f32.mrb[125].mxu0 }
0x4096   :  { %v4530_v54 = vpop.f32.mrb[126].mxu0 }
0x4097   :  { %v5838_v7 = vpop.f32.mrb[127].mxu0  ;;  %4566 = vmatprep.mubr.bf16.mxu0 %v4533_v53 }
0x4098   :  { %4567 = vmatmul.mubr.bf16.vlgmr.msra.gmra.mrb[128].mxu0 %v4437_v48 }
0x416b   :  { %v5296_v43 = vpop.f32.mrb[128].mxu0 }
0x416c   :  { %v5297_v49 = vpop.f32.mrb[129].mxu0 }
0x416d   :  { %v5298_v0 = vadd.f32 %v5297_v49, %v5296_v43  ;;  %v5299_v18 = vpop.f32.mrb[130].mxu0 }
0x416e   :  { %v5300_v8 = vpop.f32.mrb[131].mxu0 }
0x416f   :  { %6267 = vtanh.f32 %v5298_v0 }
0x4179   :  { %v6268_v25 = vpop.eup %6267 }
0x417a   :  { %v4575_v38 = vpack.c.bf16 %v6268_v25, %v6268_v25 }
0x417c   :  { %5856 = vmatmul.mubr.bf16.vlgmr.msra.gmra.mrb[128].mxu1 %v4575_v38 }
0x424f   :  { %v4610_v15 = vpop.f32.mrb[128].mxu1 }
0x4250   :  { %v4611_v60 = vadd.f32 %v9065_v29, %v4610_v15  ;;  %v5857_v59 = vpop.f32.mrb[129].mxu1 }
0x4251   :  { %v4613_v9 = vpop.f32.mrb[130].mxu1 }
0x4252   :  { %v5858_v52 = vpop.f32.mrb[131].mxu1  ;;  %v4616_v47 = vsel %vm2416_vm6, %v4611_v60, -inf }
0x4253   :  { %4617 = vmax.xlane.f32.xlu0 %v4616_v47 }
0x42e0   :  { %v4618_v44 = vpop.xlane.xlu0 %4617 }
0x42e1   :  { %vm4619_vm0 = vcmp.ge.f32.partialorder %v4611_v60, %v4618_v44 }
0x42e2   :  { %v4620_v2 = vsel %vm4619_vm0, %v7464_v62, 128 }
0x42e3   :  { %v4621_v42 = vsel %vm2416_vm6, %v4620_v2, 2147483647 }
0x42e4   :  { %v4623_v37 = vshra.s32 %v4621_v42, 16  ;;  %v4622_v4 = vand.u32 65535, %v4621_v42 }
0x42e6   :  { %v4625_v3 = vcvt.s32.f32 %v4623_v37  ;;  %v4624_v31 = vcvt.s32.f32 %v4622_v4 }
0x42e8   :  { %4626 = vmin.xlane.f32.xlu1 %v4625_v3 }
0x4375   :  { %v4627_v40 = vpop.xlane.xlu1 %4626 }
0x4376   :  { %vm4628_vm4 = vcmp.eq.f32.partialorder %v4625_v3, %v4627_v40 }
0x4377   :  { %v4629_v29 = vsel %vm4628_vm4, %v4624_v31, inf }
0x4378   :  { %4630 = vmin.xlane.f32.xlu0 %v4629_v29 }
0x4379   :  { %6614 = shalt.err (!%p6611_p10)
}
0x437a   :  { %s6615_s25 = scalar_lea.hbm %s9198_s10, 16 }
0x437b   :  { %p6616_p11 = scmp.ne.s32.totalorder %s9198_s10, %s6615_s25  ;;  %p6619_p12 = scmp.lt.u32.totalorder %s6615_s25, %s9198_s10 }
0x437d   :  { %p6621_p13 = pnand %p6619_p12, %p6616_p11 }
0x437f   :  { %6624 = shalt.err (!%p6621_p13)
}
0x4380   :  { %4665 = dma.vmem_to_hbm [thread:$0]  %s4663_s28, 16, %s9198_s10, [#allocation16]   ;;  %v4633_v23 = vcvt.f32.s32 %v4627_v40  ;;  %vm4636_vm5 = vcmp.eq.s32.totalorder %v7464_v62, 8  ;;  %vm4642_vm6 = vcmask 65536  }
0x4381   :  { %s6676_s20 = smov [#allocation14]   ;;  %vm4639_vm8 = vmand %vm4636_vm5, %vm4335_vm3 }
0x4382   :  { %v4634_v1 = vshll.u32 %v4633_v23, 16  ;;  %s4652_s22 = sshll.u32 %s6676_s20, 4  ;;  %s4653_s22 = int_to_ptr.vmem [resolvable:$true] %s4652_s22 }
0x4383   :  { %s6625_s0 = scalar_lea.vmem %s4653_s22, 16  ;;  %s6629_s10 = scalar_lea.vmem %s4653_s22, 32 }
0x4384   :  { %p6626_p0 = scmp.ne.s32.totalorder %s4653_s22, %s6625_s0  ;;  %p6630_p1 = scmp.lt.s32.totalorder %s4653_s22, %s4653_s22 }
0x4385   :  { %p6631_p2 = scmp.lt.s32.totalorder %s6629_s10, %s6625_s0 }
0x4387   :  { %p6632_p3 = por %p6631_p2, %p6630_p1 }
0x4389   :  { %p6633_p4 = pnand %p6632_p3, %p6626_p0 }
0x4405   :  { %v4631_v26 = vpop.xlane.xlu0 %4630 }
0x4406   :  { %v4632_v36 = vcvt.f32.s32 %v4631_v26 }
0x4408   :  { %v4635_v16 = vadd.s32 %v4634_v1, %v4632_v36 }
0x440a   :  { %v4640_v20 = vsel %vm4639_vm8, %v4635_v16, %v9080_v10 }
0x440b   :  { %4643 = vst.msk [vmem:[#allocation14] sm:$0x1] %vm4642_vm6, %v4640_v20 }
0x440c   :  { %6636 = shalt.err (!%p6633_p4)
}
0x440d   :  { %s6637_s26 = scalar_lea.hbm %s9197_s9, 16 }
0x440e   :  { %p6638_p5 = scmp.ne.s32.totalorder %s9197_s9, %s6637_s26  ;;  %p6641_p6 = scmp.lt.u32.totalorder %s6637_s26, %s9197_s9 }
0x4410   :  { %p6643_p7 = pnand %p6641_p6, %p6638_p5 }
0x4412   :  { %6646 = shalt.err (!%p6643_p7)
}
0x4413   :  { %4655 = dma.vmem_to_hbm [thread:$0]  %s4653_s22, 16, %s9197_s9, [#allocation5]  }
0x4414   :  { %6655 = dma.done.wait [#allocation5], 16  }
0x4415   :  { %6656 = vsyncadd [#allocation5], 4294967280 }
0x4416   :  { %6657 = dma.done.wait [#allocation16], 16  }
0x4417   :  { %6658 = vsyncadd [#allocation16], 4294967280 }
0x4418   :  { %4672 = vsyncpa [#allocation4], 1 }
0x4419   :  { %4673 = vsyncpa [#allocation7], 1 }
0x441a   :  { %4674 = vsyncpa [#allocation10], 1 }
0x441b   :  { %4675 = vsyncpa [#allocation13], 1 }
0x441c   :  { %4676 = vsyncpa [#allocation5], 1 }
0x441d   :  { %4677 = vsyncpa [#allocation16], 1 }

</bundles_post_ra>
